<compile_context>
chip_gen: v7x
topology: tpu7x:2x2x1
jax: 0.10.0
libtpu: 0.0.40
codegen_flags: <defaults>
</compile_context>

<pallas_src>
import functools

import jax
import jax.numpy as jnp
from jax import lax
from jax.experimental import pallas as pl
from jax.experimental.pallas import tpu as pltpu

_BN_EPS = 1e-5
_LANE = 128
_SUBLANE = 8


def _round_up(x, m):
    return ((x + m - 1) // m) * m


# ----------------------------------------------------------------------------
# Generation-aware VMEM sizing (128 MiB on v5e/v6e, 64 MiB on v7x).
# ----------------------------------------------------------------------------
@functools.lru_cache(maxsize=None)
def _vmem_capacity_bytes():
    cap = 64 << 20                       # conservative (v7x) fallback
    try:
        info = pltpu.get_tpu_info()
        got = int(getattr(info, "vmem_capacity_bytes", 0) or 0)
        if got > 0:
            cap = got
    except Exception:
        pass
    return int(min(max(cap, 32 << 20), 256 << 20))


def _vmem_limit_bytes():
    # Scoped limit handed to Mosaic: 3/4 of physical, capped at 96 MiB.
    return int(min(_vmem_capacity_bytes() * 3 // 4, 96 << 20))


def _vmem_budget_bytes():
    # Per-kernel tile budget (leave headroom for Pallas internals / spills).
    return _vmem_limit_bytes() // 2


# ----------------------------------------------------------------------------
# Pallas kernel 1: tiled matmul, bf16 in / fp32 accumulate, fused bias + ReLU
# ----------------------------------------------------------------------------
def _mm_kernel(a_ref, w_ref, bias_ref, o_ref, *, relu):
    acc = jnp.dot(a_ref[...], w_ref[...], preferred_element_type=jnp.float32)
    acc = acc + bias_ref[...]
    if relu:
        acc = jnp.maximum(acc, 0.0)
    o_ref[...] = acc.astype(o_ref.dtype)


def _pick_tm(M, K, Np, out_bytes):
    """Largest VMEM-safe M tile; prefer >=4 grid steps when M is large."""
    budget = _vmem_budget_bytes()
    w_bytes = 2 * (K * Np * 2 + Np * 4)             # weight + bias, double-buffered
    tm = _SUBLANE
    for cand in (4096, 2048, 1024, 512, 256, 128, 64, 32, 16, 8):
        if 2 * cand * K * 2 + 2 * cand * Np * out_bytes + w_bytes <= budget:
            tm = cand
            break
    if M >= 4 * 512:
        # Keep >=4 grid steps (>=2 per v7x core) while staying >=512 rows so
        # the HBM-bound 1x1 convs keep real double-buffering.
        tm = min(tm, max(512, _round_up(pl.cdiv(M, 4), _SUBLANE)))
    tm = min(tm, _round_up(M, _SUBLANE))
    return max(_SUBLANE, tm)


def pallas_matmul(a, b, bias=None, relu=False, out_dtype=jnp.bfloat16,
                  pad_out=False):
    """(M,K) @ (K,N) (+bias) (+ReLU), lane-padded N, fp32 MXU accumulation.

    If `pad_out` (or N is already a lane multiple) the 128-padded output is
    returned as-is so downstream consumers avoid an extra HBM slice pass.
    """
    M, K = a.shape
    K2, N = b.shape
    assert K == K2
    Np = _round_up(N, _LANE)

    a16 = a.astype(jnp.bfloat16)
    b16 = jnp.pad(b.astype(jnp.float32), ((0, 0), (0, Np - N))).astype(jnp.bfloat16)
    if bias is None:
        bias_p = jnp.zeros((1, Np), jnp.float32)
    else:
        bias_p = jnp.pad(bias.reshape(1, N).astype(jnp.float32),
                         ((0, 0), (0, Np - N)))

    out_bytes = jnp.dtype(out_dtype).itemsize
    tm = _pick_tm(M, K, Np, out_bytes)
    grid = (pl.cdiv(M, tm),)

    out = pl.pallas_call(
        functools.partial(_mm_kernel, relu=relu),
        out_shape=jax.ShapeDtypeStruct((M, Np), out_dtype),
        grid_spec=pltpu.PrefetchScalarGridSpec(
            num_scalar_prefetch=0,
            grid=grid,
            in_specs=[
                pl.BlockSpec((tm, K), lambda i: (i, 0)),     # A tile (bf16)
                pl.BlockSpec((K, Np), lambda i: (0, 0)),     # weight, resident
                pl.BlockSpec((1, Np), lambda i: (0, 0)),     # bias, resident
            ],
            out_specs=pl.BlockSpec((tm, Np), lambda i: (i, 0)),
        ),
        compiler_params=pltpu.CompilerParams(
            dimension_semantics=("parallel",),
            vmem_limit_bytes=_vmem_limit_bytes()),
    )(a16, b16, bias_p)
    if pad_out or Np == N:
        return out
    return out[:, :N]


# ----------------------------------------------------------------------------
# Pallas kernel 2: fused stride-1 3x3 conv, one big matmul per tap
# ----------------------------------------------------------------------------
def _conv3x3_kernel(x_ref, w_ref, bias_ref, o_ref, acc_ref,
                    *, oh, ow, wp, c, fp, dil, relu):
    # x_ref:   (1, 1, oh + 2*dil, wp, C)  padded row block (Wp is 8-aligned)
    # w_ref:   (9, C, Fp)                 taps, BN scale folded
    # bias_ref:(1, Fp)                    BN shift
    # o_ref:   (1, oh, ow, Fp)
    # acc_ref: (oh, ow, Fp) fp32 VMEM scratch
    for ki in range(3):
        rows = x_ref[0, 0, pl.ds(ki * dil, oh), :, :]        # (oh, wp, C)
        flat = rows.reshape(oh * wp, c)                       # wp % 8 == 0 -> free
        for kj in range(3):
            w_tap = w_ref[3 * ki + kj]                        # (C, Fp), hoisted once/tap
            part = jnp.dot(flat, w_tap,
                           preferred_element_type=jnp.float32)
            part = part.reshape(oh, wp, fp)
            contrib = part[:, kj * dil: kj * dil + ow, :]     # W-shift of the tap
            if ki == 0 and kj == 0:
                acc_ref[...] = contrib
            else:
                acc_ref[...] = acc_ref[...] + contrib
    acc = acc_ref[...] + bias_ref[...]
    if relu:
        acc = jnp.maximum(acc, 0.0)
    o_ref[0] = acc.astype(o_ref.dtype)


def _pick_th(h, wd, wp, c, fp, pad, out_bytes):
    """Largest H tile whose double-buffered blocks fit the VMEM budget."""
    budget = _vmem_budget_bytes()

    def cost(th):
        x_tile = 2 * (th + 2 * pad) * wp * c * 2        # input rows, bf16, x2 buf
        o_tile = 2 * th * wd * fp * out_bytes           # output rows, x2 buf
        acc = 2 * th * wp * fp * 4                      # fp32 scratch + temps
        w_b = 2 * (9 * c * fp * 2 + fp * 4)             # weights + bias, x2 buf
        return x_tile + o_tile + acc + w_b

    th = h
    while th > _SUBLANE and cost(th) > budget:
        th = max(_SUBLANE, _round_up((th + 1) // 2, _SUBLANE))
    return th


def conv3x3_fused(x, w, dilation=1, bn=None, relu=False, out_dtype=jnp.bfloat16):
    """Stride-1 'same' 3x3 conv, BN scale folded into weights, shift as bias.

    The nine taps are accumulated inside the kernel from a single spatially
    padded copy of the input: each tap is ONE (TH*Wp, C)@(C, Fp) MXU matmul
    (per review: no per-row micro-dots). H is tiled with a dilation-sized halo
    so the per-step working set fits v7x's 64 MiB VMEM at production sizes.
    Output channels stay padded to 128 lanes.
    """
    n, h, wd, c = x.shape
    cout = w.shape[-1]
    fp = _round_up(cout, _LANE)
    pad = dilation

    scale, shift = (None, None) if bn is None else bn
    w4 = w.astype(jnp.float32)
    if scale is not None:
        w4 = w4 * scale.reshape(1, 1, 1, cout)               # fold BN scale
    w9 = jnp.pad(w4, ((0, 0), (0, 0), (0, 0), (0, fp - cout)))
    w9 = w9.reshape(9, c, fp).astype(jnp.bfloat16)
    if shift is None:
        bias = jnp.zeros((1, fp), jnp.float32)
    else:
        bias = jnp.pad(shift.reshape(1, cout).astype(jnp.float32),
                       ((0, 0), (0, fp - cout)))

    out_bytes = jnp.dtype(out_dtype).itemsize
    wp = _round_up(wd + 2 * pad, _SUBLANE)                   # 8-aligned padded width
    th = _pick_th(h, wd, wp, c, fp, pad, out_bytes)
    n_th = pl.cdiv(h, th)
    h_tiled = n_th * th

    xb = x.astype(jnp.bfloat16)
    xp = jnp.pad(xb, ((0, 0),
                      (pad, pad + (h_tiled - h)),
                      (pad, wp - wd - pad),
                      (0, 0)))                               # (n, h_tiled+2p, wp, c)
    if n_th == 1:
        x_in = xp[:, None]                                   # (n, 1, th+2p, wp, c)
    else:
        # Overlapping halo'd row windows (cheap: 2*pad duplicated rows / tile).
        row_idx = (jnp.arange(n_th)[:, None] * th
                   + jnp.arange(th + 2 * pad)[None, :])
        x_in = xp[:, row_idx]                                # (n, n_th, th+2p, wp, c)

    out = pl.pallas_call(
        functools.partial(_conv3x3_kernel, oh=th, ow=wd, wp=wp, c=c, fp=fp,
                          dil=dilation, relu=relu),
        out_shape=jax.ShapeDtypeStruct((n, h_tiled, wd, fp), out_dtype),
        grid_spec=pltpu.PrefetchScalarGridSpec(
            num_scalar_prefetch=0,
            grid=(n, n_th),
            in_specs=[
                pl.BlockSpec((1, 1, th + 2 * pad, wp, c),
                             lambda i, j: (i, j, 0, 0, 0)),
                pl.BlockSpec((9, c, fp), lambda i, j: (0, 0, 0)),
                pl.BlockSpec((1, fp), lambda i, j: (0, 0)),
            ],
            out_specs=pl.BlockSpec((1, th, wd, fp), lambda i, j: (i, j, 0, 0)),
            scratch_shapes=[pltpu.VMEM((th, wd, fp), jnp.float32)],
        ),
        compiler_params=pltpu.CompilerParams(
            dimension_semantics=("parallel", "parallel"),
            vmem_limit_bytes=_vmem_limit_bytes()),
    )(x_in, w9, bias)
    if h_tiled != h:
        out = out[:, :h]
    return out                                               # channel-padded (fp)


# ----------------------------------------------------------------------------
# Conv wrappers + glue
# ----------------------------------------------------------------------------
def conv1x1(x, w, bn=None, relu=False, out_dtype=jnp.bfloat16, pad_out=False):
    n, h, wd, c = x.shape
    scale, shift = (None, None) if bn is None else bn
    w2 = w.astype(jnp.float32)
    if scale is not None:
        w2 = w2 * scale[None, :]                             # fold BN scale
    y = pallas_matmul(x.reshape(n * h * wd, c), w2, bias=shift, relu=relu,
                      out_dtype=out_dtype, pad_out=pad_out)
    return y.reshape(n, h, wd, y.shape[1])


def _stem_conv_s2(x, w):
    # TODO(synk): the stride-2 stem belongs to the external trunk (get_trunk);
    # this stand-in uses XLA's native conv (no 9x im2col HBM blow-up).
    y = lax.conv_general_dilated(
        x.astype(jnp.bfloat16), w.astype(jnp.bfloat16),
        window_strides=(2, 2), padding=((1, 1), (1, 1)),
        dimension_numbers=("NHWC", "HWIO", "NHWC"),
        preferred_element_type=jnp.float32)
    return jnp.maximum(y, 0.0).astype(jnp.bfloat16)


def bilinear_resize_nhwc(x, out_h, out_w):
    """PyTorch F.interpolate(mode='bilinear', align_corners=False), in x.dtype."""
    n, h, w, c = x.shape
    dtype = x.dtype

    def coords(in_size, out_size):
        scale = in_size / out_size
        src = (jnp.arange(out_size, dtype=jnp.float32) + 0.5) * scale - 0.5
        src = jnp.clip(src, 0.0, in_size - 1)
        lo = jnp.floor(src).astype(jnp.int32)
        hi = jnp.minimum(lo + 1, in_size - 1)
        frac = (src - lo.astype(jnp.float32)).astype(dtype)
        return lo, hi, frac

    lo_h, hi_h, fh = coords(h, out_h)
    lo_w, hi_w, fw = coords(w, out_w)
    one = jnp.ones((), dtype)
    top = x[:, lo_h, :, :]
    bot = x[:, hi_h, :, :]
    xh = top * (one - fh)[None, :, None, None] + bot * fh[None, :, None, None]
    left = xh[:, :, lo_w, :]
    right = xh[:, :, hi_w, :]
    return left * (one - fw)[None, None, :, None] + right * fw[None, None, :, None]


def _bn_fold(c):
    # Eval-mode BatchNorm2d (fresh params: gamma=1, beta=0, mean=0, var=1)
    # -> per-channel scale (folded into conv weights) + shift (fused as bias).
    gamma = jnp.ones((c,), jnp.float32)
    beta = jnp.zeros((c,), jnp.float32)
    mean = jnp.zeros((c,), jnp.float32)
    var = jnp.ones((c,), jnp.float32)
    scale = gamma / jnp.sqrt(var + _BN_EPS)
    shift = beta - mean * scale
    return scale, shift


# ----------------------------------------------------------------------------
# DeepV3Plus parameters + forward
# ----------------------------------------------------------------------------
# Synthetic channel configuration (trunk / ASPP definitions are external to
# the provided module source).
S2_CH = 32            # low-level features (stride 4)
HIGH_LEVEL_CH = 64    # trunk output (stride 8)
ASPP_BOTTLENECK = 128
ASPP_OUT_CH = 3 * ASPP_BOTTLENECK   # 1x1 + 3x3 + image-pool branches
NUM_CLASSES = 5


def _kaiming(key, fan_in, shape):
    # nn.init.kaiming_normal_ (fan_in, gain=sqrt(2))
    return jax.random.normal(key, shape, jnp.float32) * jnp.sqrt(2.0 / fan_in)


def init_params(key):
    ks = jax.random.split(key, 12)
    p = {}
    # TODO(synk): real wrn38 trunk / ASPP (get_trunk / get_aspp) are external
    # to the provided module; small synthetic stand-ins with identical wiring
    # (stride-4 low-level feats, stride-8 high-level feats) are used.
    p["bb1"] = _kaiming(ks[0], 9 * 4, (3, 3, 4, 16))
    p["bb2"] = _kaiming(ks[1], 9 * 16, (3, 3, 16, S2_CH))
    p["bb3"] = _kaiming(ks[2], 9 * S2_CH, (3, 3, S2_CH, HIGH_LEVEL_CH))
    p["aspp_1x1"] = _kaiming(ks[3], HIGH_LEVEL_CH, (HIGH_LEVEL_CH, ASPP_BOTTLENECK))
    p["aspp_3x3"] = _kaiming(ks[4], 9 * HIGH_LEVEL_CH,
                             (3, 3, HIGH_LEVEL_CH, ASPP_BOTTLENECK))
    p["aspp_pool"] = _kaiming(ks[5], HIGH_LEVEL_CH, (HIGH_LEVEL_CH, ASPP_BOTTLENECK))
    # Decoder (exactly as in the PyTorch module, all convs bias-free).
    p["bot_fine"] = _kaiming(ks[6], S2_CH, (S2_CH, 48))
    p["bot_aspp"] = _kaiming(ks[7], ASPP_OUT_CH, (ASPP_OUT_CH, 256))
    p["final1"] = _kaiming(ks[8], 9 * (256 + 48), (3, 3, 256 + 48, 256))
    p["final2"] = _kaiming(ks[9], 9 * 256, (3, 3, 256, 256))
    p["final3"] = _kaiming(ks[10], 256, (256, NUM_CLASSES))
    return p


def deepv3plus_forward(x_nchw, params):
    x = jnp.transpose(x_nchw, (0, 2, 3, 1)).astype(jnp.bfloat16)   # -> NHWC

    # ---- backbone (synthetic stand-in, stride 8 total) ----
    h1 = _stem_conv_s2(x, params["bb1"])                            # 1/2
    s2_features = _stem_conv_s2(h1, params["bb2"])                  # 1/4 (s2)
    final_features = _stem_conv_s2(s2_features, params["bb3"])      # 1/8

    # ---- ASPP (synthetic simplified: 1x1, 3x3, image pooling; BN+ReLU) ----
    bn128 = _bn_fold(ASPP_BOTTLENECK)
    b1 = conv1x1(final_features, params["aspp_1x1"], bn=bn128, relu=True)
    b2 = conv3x3_fused(final_features, params["aspp_3x3"], bn=bn128, relu=True)
    # Image-pooling branch: M == batch, far below one lane-dense tile, so it
    # is cheaper as a plain dot in the wrapper than as a pallas_call.
    scale128, shift128 = bn128
    pooled = jnp.mean(final_features.astype(jnp.float32), axis=(1, 2))   # (N,C)
    b3 = jnp.maximum(pooled @ (params["aspp_pool"] * scale128[None, :])
                     + shift128[None, :], 0.0)
    b3 = jnp.broadcast_to(b3[:, None, None, :].astype(jnp.bfloat16), b1.shape)
    aspp = jnp.concatenate([b1, b2, b3], axis=-1)                    # ASPP_OUT_CH

    # ---- decoder (matches the PyTorch module exactly) ----
    conv_aspp = conv1x1(aspp, params["bot_aspp"])                    # bf16, 256
    conv_s2 = conv1x1(s2_features, params["bot_fine"], pad_out=True)  # 48 -> padded 128
    conv_aspp = bilinear_resize_nhwc(conv_aspp,
                                     s2_features.shape[1], s2_features.shape[2])
    cat_s4 = jnp.concatenate([conv_s2, conv_aspp], axis=-1)          # 128 + 256

    # final1 weights get zero rows for the 48->128 channel padding of conv_s2
    # (keeps activations lane-padded end-to-end; no post-slice HBM pass).
    w1 = params["final1"]                                            # (3,3,304,256)
    w1p = jnp.zeros((3, 3, 128 + 256, 256), w1.dtype)
    w1p = w1p.at[:, :, :48, :].set(w1[:, :, :48, :])
    w1p = w1p.at[:, :, 128:, :].set(w1[:, :, 48:, :])

    bn256 = _bn_fold(256)
    f = conv3x3_fused(cat_s4, w1p, bn=bn256, relu=True)
    f = conv3x3_fused(f, params["final2"], bn=bn256, relu=True)
    final = conv1x1(f, params["final3"], out_dtype=jnp.float32)      # num_classes

    # NOTE: the provided forward never upsamples `final` back to x_size
    # (x_size is computed but unused in the source), so logits stay at the
    # s2 (stride-4) resolution, matching self.final(cat_s4).
    # TODO(synk): feat=True (avg_pool2d(20,20) -> view(-1,1024)) and the
    # montecarlo branches (final_mc_drop_* are never defined in __init__)
    # are not implemented.
    return jnp.transpose(final, (0, 3, 1, 2))  # back to NCHW


if __name__ == "__main__":
    key = jax.random.PRNGKey(0)
    kx, kp = jax.random.split(key)
    x = jax.random.normal(kx, (2, 4, 16, 16), jnp.float32)  # NCHW like PyTorch
    params = init_params(kp)

    fwd = jax.jit(deepv3plus_forward)
    out = jax.block_until_ready(fwd(x, params))

    assert out.shape == (2, NUM_CLASSES, 4, 4), out.shape  # stride-4 logits
    assert out.dtype == jnp.float32
    assert bool(jnp.all(jnp.isfinite(out)))
    print("KERNEL_OK")
</pallas_src>

<mosaic_0001>
module attributes {stable_mosaic.version = 11 : i64} {
  func.func @_conv3x3_kernel(%arg0: i32, %arg1: i32, %arg2: memref<1x1x4x8x64xbf16, #tpu.memory_space<vmem>>, %arg3: memref<9x64x128xbf16, #tpu.memory_space<vmem>>, %arg4: memref<1x128xf32, #tpu.memory_space<vmem>>, %arg5: memref<1x2x2x128xbf16, #tpu.memory_space<vmem>>, %arg6: memref<2x2x128xf32, #tpu.memory_space<vmem>>) attributes {dimension_semantics = [#tpu.dimension_semantics<parallel>, #tpu.dimension_semantics<parallel>], iteration_bounds = array<i64: 2, 1>, scalar_prefetch = 0 : i64, scratch_operands = 1 : i64, tpu.core_type = #tpu.core_type<tc>, window_params = [{transform_indices = @transform_0, window_bounds = array<i64: 1, 1, 4, 8, 64>}, {pipeline_mode = #tpu.pipeline_mode<synchronous>, transform_indices = @transform_1, window_bounds = array<i64: 9, 64, 128>}, {pipeline_mode = #tpu.pipeline_mode<synchronous>, transform_indices = @transform_2, window_bounds = array<i64: 1, 128>}, {transform_indices = @transform_3, window_bounds = array<i64: 1, 2, 2, 128>}]} {
    %c0 = arith.constant 0 : index
    %c0_0 = arith.constant 0 : index
    %c0_1 = arith.constant 0 : index
    %c0_2 = arith.constant 0 : index
    %c0_3 = arith.constant 0 : index
    %0 = vector.load %arg2[%c0, %c0_0, %c0_1, %c0_2, %c0_3] : memref<1x1x4x8x64xbf16, #tpu.memory_space<vmem>>, vector<1x1x2x8x64xbf16>
    %1 = vector.shape_cast %0 : vector<1x1x2x8x64xbf16> to vector<2x8x64xbf16>
    %2 = vector.shape_cast %1 : vector<2x8x64xbf16> to vector<16x64xbf16>
    %c0_4 = arith.constant 0 : index
    %c0_5 = arith.constant 0 : index
    %c0_6 = arith.constant 0 : index
    %3 = vector.load %arg3[%c0_4, %c0_5, %c0_6] : memref<9x64x128xbf16, #tpu.memory_space<vmem>>, vector<1x64x128xbf16>
    %4 = vector.shape_cast %3 : vector<1x64x128xbf16> to vector<64x128xbf16>
    %cst = arith.constant dense<0.000000e+00> : vector<16x128xf32>
    %5 = tpu.matmul %2, %4, %cst {dimension_numbers = #tpu.dot_dimension_numbers<[1], [0], [0], [1], [0, 0, 1, 1], [], []>} : vector<16x64xbf16>, vector<64x128xbf16>, vector<16x128xf32> -> vector<16x128xf32>
    %6 = vector.shape_cast %5 : vector<16x128xf32> to vector<2x8x128xf32>
    %7 = vector.extract_strided_slice %6 {offsets = [0, 0, 0], sizes = [2, 2, 128], strides = [1, 1, 1]} : vector<2x8x128xf32> to vector<2x2x128xf32>
    %c0_7 = arith.constant 0 : index
    %c0_8 = arith.constant 0 : index
    %c0_9 = arith.constant 0 : index
    %8 = vector.load %arg6[%c0_7, %c0_8, %c0_9] : memref<2x2x128xf32, #tpu.memory_space<vmem>>, vector<2x2x128xf32>
    tpu.vector_store %arg6[%c0_7, %c0_8, %c0_9], %7 {strides = array<i32>} : memref<2x2x128xf32, #tpu.memory_space<vmem>>, vector<2x2x128xf32>,
    %c1 = arith.constant 1 : index
    %c0_10 = arith.constant 0 : index
    %c0_11 = arith.constant 0 : index
    %9 = vector.load %arg3[%c1, %c0_10, %c0_11] : memref<9x64x128xbf16, #tpu.memory_space<vmem>>, vector<1x64x128xbf16>
    %10 = vector.shape_cast %9 : vector<1x64x128xbf16> to vector<64x128xbf16>
    %cst_12 = arith.constant dense<0.000000e+00> : vector<16x128xf32>
    %11 = tpu.matmul %2, %10, %cst_12 {dimension_numbers = #tpu.dot_dimension_numbers<[1], [0], [0], [1], [0, 0, 1, 1], [], []>} : vector<16x64xbf16>, vector<64x128xbf16>, vector<16x128xf32> -> vector<16x128xf32>
    %12 = vector.shape_cast %11 : vector<16x128xf32> to vector<2x8x128xf32>
    %13 = vector.extract_strided_slice %12 {offsets = [0, 1, 0], sizes = [2, 2, 128], strides = [1, 1, 1]} : vector<2x8x128xf32> to vector<2x2x128xf32>
    %c0_13 = arith.constant 0 : index
    %c0_14 = arith.constant 0 : index
    %c0_15 = arith.constant 0 : index
    %14 = vector.load %arg6[%c0_13, %c0_14, %c0_15] : memref<2x2x128xf32, #tpu.memory_space<vmem>>, vector<2x2x128xf32>
    %15 = arith.addf %14, %13 : vector<2x2x128xf32>
    %c0_16 = arith.constant 0 : index
    %c0_17 = arith.constant 0 : index
    %c0_18 = arith.constant 0 : index
    %16 = vector.load %arg6[%c0_16, %c0_17, %c0_18] : memref<2x2x128xf32, #tpu.memory_space<vmem>>, vector<2x2x128xf32>
    tpu.vector_store %arg6[%c0_16, %c0_17, %c0_18], %15 {strides = array<i32>} : memref<2x2x128xf32, #tpu.memory_space<vmem>>, vector<2x2x128xf32>,
    %c2 = arith.constant 2 : index
    %c0_19 = arith.constant 0 : index
    %c0_20 = arith.constant 0 : index
    %17 = vector.load %arg3[%c2, %c0_19, %c0_20] : memref<9x64x128xbf16, #tpu.memory_space<vmem>>, vector<1x64x128xbf16>
    %18 = vector.shape_cast %17 : vector<1x64x128xbf16> to vector<64x128xbf16>
    %cst_21 = arith.constant dense<0.000000e+00> : vector<16x128xf32>
    %19 = tpu.matmul %2, %18, %cst_21 {dimension_numbers = #tpu.dot_dimension_numbers<[1], [0], [0], [1], [0, 0, 1, 1], [], []>} : vector<16x64xbf16>, vector<64x128xbf16>, vector<16x128xf32> -> vector<16x128xf32>
    %20 = vector.shape_cast %19 : vector<16x128xf32> to vector<2x8x128xf32>
    %21 = vector.extract_strided_slice %20 {offsets = [0, 2, 0], sizes = [2, 2, 128], strides = [1, 1, 1]} : vector<2x8x128xf32> to vector<2x2x128xf32>
    %c0_22 = arith.constant 0 : index
    %c0_23 = arith.constant 0 : index
    %c0_24 = arith.constant 0 : index
    %22 = vector.load %arg6[%c0_22, %c0_23, %c0_24] : memref<2x2x128xf32, #tpu.memory_space<vmem>>, vector<2x2x128xf32>
    %23 = arith.addf %22, %21 : vector<2x2x128xf32>
    %c0_25 = arith.constant 0 : index
    %c0_26 = arith.constant 0 : index
    %c0_27 = arith.constant 0 : index
    %24 = vector.load %arg6[%c0_25, %c0_26, %c0_27] : memref<2x2x128xf32, #tpu.memory_space<vmem>>, vector<2x2x128xf32>
    tpu.vector_store %arg6[%c0_25, %c0_26, %c0_27], %23 {strides = array<i32>} : memref<2x2x128xf32, #tpu.memory_space<vmem>>, vector<2x2x128xf32>,
    %c0_28 = arith.constant 0 : index
    %c0_29 = arith.constant 0 : index
    %c1_30 = arith.constant 1 : index
    %c0_31 = arith.constant 0 : index
    %c0_32 = arith.constant 0 : index
    %25 = vector.load %arg2[%c0_28, %c0_29, %c1_30, %c0_31, %c0_32] : memref<1x1x4x8x64xbf16, #tpu.memory_space<vmem>>, vector<1x1x2x8x64xbf16>
    %26 = vector.shape_cast %25 : vector<1x1x2x8x64xbf16> to vector<2x8x64xbf16>
    %27 = vector.shape_cast %26 : vector<2x8x64xbf16> to vector<16x64xbf16>
    %c3 = arith.constant 3 : index
    %c0_33 = arith.constant 0 : index
    %c0_34 = arith.constant 0 : index
    %28 = vector.load %arg3[%c3, %c0_33, %c0_34] : memref<9x64x128xbf16, #tpu.memory_space<vmem>>, vector<1x64x128xbf16>
    %29 = vector.shape_cast %28 : vector<1x64x128xbf16> to vector<64x128xbf16>
    %cst_35 = arith.constant dense<0.000000e+00> : vector<16x128xf32>
    %30 = tpu.matmul %27, %29, %cst_35 {dimension_numbers = #tpu.dot_dimension_numbers<[1], [0], [0], [1], [0, 0, 1, 1], [], []>} : vector<16x64xbf16>, vector<64x128xbf16>, vector<16x128xf32> -> vector<16x128xf32>
    %31 = vector.shape_cast %30 : vector<16x128xf32> to vector<2x8x128xf32>
    %32 = vector.extract_strided_slice %31 {offsets = [0, 0, 0], sizes = [2, 2, 128], strides = [1, 1, 1]} : vector<2x8x128xf32> to vector<2x2x128xf32>
    %c0_36 = arith.constant 0 : index
    %c0_37 = arith.constant 0 : index
    %c0_38 = arith.constant 0 : index
    %33 = vector.load %arg6[%c0_36, %c0_37, %c0_38] : memref<2x2x128xf32, #tpu.memory_space<vmem>>, vector<2x2x128xf32>
    %34 = arith.addf %33, %32 : vector<2x2x128xf32>
    %c0_39 = arith.constant 0 : index
    %c0_40 = arith.constant 0 : index
    %c0_41 = arith.constant 0 : index
    %35 = vector.load %arg6[%c0_39, %c0_40, %c0_41] : memref<2x2x128xf32, #tpu.memory_space<vmem>>, vector<2x2x128xf32>
    tpu.vector_store %arg6[%c0_39, %c0_40, %c0_41], %34 {strides = array<i32>} : memref<2x2x128xf32, #tpu.memory_space<vmem>>, vector<2x2x128xf32>,
    %c4 = arith.constant 4 : index
    %c0_42 = arith.constant 0 : index
    %c0_43 = arith.constant 0 : index
    %36 = vector.load %arg3[%c4, %c0_42, %c0_43] : memref<9x64x128xbf16, #tpu.memory_space<vmem>>, vector<1x64x128xbf16>
    %37 = vector.shape_cast %36 : vector<1x64x128xbf16> to vector<64x128xbf16>
    %cst_44 = arith.constant dense<0.000000e+00> : vector<16x128xf32>
    %38 = tpu.matmul %27, %37, %cst_44 {dimension_numbers = #tpu.dot_dimension_numbers<[1], [0], [0], [1], [0, 0, 1, 1], [], []>} : vector<16x64xbf16>, vector<64x128xbf16>, vector<16x128xf32> -> vector<16x128xf32>
    %39 = vector.shape_cast %38 : vector<16x128xf32> to vector<2x8x128xf32>
    %40 = vector.extract_strided_slice %39 {offsets = [0, 1, 0], sizes = [2, 2, 128], strides = [1, 1, 1]} : vector<2x8x128xf32> to vector<2x2x128xf32>
    %c0_45 = arith.constant 0 : index
    %c0_46 = arith.constant 0 : index
    %c0_47 = arith.constant 0 : index
    %41 = vector.load %arg6[%c0_45, %c0_46, %c0_47] : memref<2x2x128xf32, #tpu.memory_space<vmem>>, vector<2x2x128xf32>
    %42 = arith.addf %41, %40 : vector<2x2x128xf32>
    %c0_48 = arith.constant 0 : index
    %c0_49 = arith.constant 0 : index
    %c0_50 = arith.constant 0 : index
    %43 = vector.load %arg6[%c0_48, %c0_49, %c0_50] : memref<2x2x128xf32, #tpu.memory_space<vmem>>, vector<2x2x128xf32>
    tpu.vector_store %arg6[%c0_48, %c0_49, %c0_50], %42 {strides = array<i32>} : memref<2x2x128xf32, #tpu.memory_space<vmem>>, vector<2x2x128xf32>,
    %c5 = arith.constant 5 : index
    %c0_51 = arith.constant 0 : index
    %c0_52 = arith.constant 0 : index
    %44 = vector.load %arg3[%c5, %c0_51, %c0_52] : memref<9x64x128xbf16, #tpu.memory_space<vmem>>, vector<1x64x128xbf16>
    %45 = vector.shape_cast %44 : vector<1x64x128xbf16> to vector<64x128xbf16>
    %cst_53 = arith.constant dense<0.000000e+00> : vector<16x128xf32>
    %46 = tpu.matmul %27, %45, %cst_53 {dimension_numbers = #tpu.dot_dimension_numbers<[1], [0], [0], [1], [0, 0, 1, 1], [], []>} : vector<16x64xbf16>, vector<64x128xbf16>, vector<16x128xf32> -> vector<16x128xf32>
    %47 = vector.shape_cast %46 : vector<16x128xf32> to vector<2x8x128xf32>
    %48 = vector.extract_strided_slice %47 {offsets = [0, 2, 0], sizes = [2, 2, 128], strides = [1, 1, 1]} : vector<2x8x128xf32> to vector<2x2x128xf32>
    %c0_54 = arith.constant 0 : index
    %c0_55 = arith.constant 0 : index
    %c0_56 = arith.constant 0 : index
    %49 = vector.load %arg6[%c0_54, %c0_55, %c0_56] : memref<2x2x128xf32, #tpu.memory_space<vmem>>, vector<2x2x128xf32>
    %50 = arith.addf %49, %48 : vector<2x2x128xf32>
    %c0_57 = arith.constant 0 : index
    %c0_58 = arith.constant 0 : index
    %c0_59 = arith.constant 0 : index
    %51 = vector.load %arg6[%c0_57, %c0_58, %c0_59] : memref<2x2x128xf32, #tpu.memory_space<vmem>>, vector<2x2x128xf32>
    tpu.vector_store %arg6[%c0_57, %c0_58, %c0_59], %50 {strides = array<i32>} : memref<2x2x128xf32, #tpu.memory_space<vmem>>, vector<2x2x128xf32>,
    %c0_60 = arith.constant 0 : index
    %c0_61 = arith.constant 0 : index
    %c2_62 = arith.constant 2 : index
    %c0_63 = arith.constant 0 : index
    %c0_64 = arith.constant 0 : index
    %52 = vector.load %arg2[%c0_60, %c0_61, %c2_62, %c0_63, %c0_64] : memref<1x1x4x8x64xbf16, #tpu.memory_space<vmem>>, vector<1x1x2x8x64xbf16>
    %53 = vector.shape_cast %52 : vector<1x1x2x8x64xbf16> to vector<2x8x64xbf16>
    %54 = vector.shape_cast %53 : vector<2x8x64xbf16> to vector<16x64xbf16>
    %c6 = arith.constant 6 : index
    %c0_65 = arith.constant 0 : index
    %c0_66 = arith.constant 0 : index
    %55 = vector.load %arg3[%c6, %c0_65, %c0_66] : memref<9x64x128xbf16, #tpu.memory_space<vmem>>, vector<1x64x128xbf16>
    %56 = vector.shape_cast %55 : vector<1x64x128xbf16> to vector<64x128xbf16>
    %cst_67 = arith.constant dense<0.000000e+00> : vector<16x128xf32>
    %57 = tpu.matmul %54, %56, %cst_67 {dimension_numbers = #tpu.dot_dimension_numbers<[1], [0], [0], [1], [0, 0, 1, 1], [], []>} : vector<16x64xbf16>, vector<64x128xbf16>, vector<16x128xf32> -> vector<16x128xf32>
    %58 = vector.shape_cast %57 : vector<16x128xf32> to vector<2x8x128xf32>
    %59 = vector.extract_strided_slice %58 {offsets = [0, 0, 0], sizes = [2, 2, 128], strides = [1, 1, 1]} : vector<2x8x128xf32> to vector<2x2x128xf32>
    %c0_68 = arith.constant 0 : index
    %c0_69 = arith.constant 0 : index
    %c0_70 = arith.constant 0 : index
    %60 = vector.load %arg6[%c0_68, %c0_69, %c0_70] : memref<2x2x128xf32, #tpu.memory_space<vmem>>, vector<2x2x128xf32>
    %61 = arith.addf %60, %59 : vector<2x2x128xf32>
    %c0_71 = arith.constant 0 : index
    %c0_72 = arith.constant 0 : index
    %c0_73 = arith.constant 0 : index
    %62 = vector.load %arg6[%c0_71, %c0_72, %c0_73] : memref<2x2x128xf32, #tpu.memory_space<vmem>>, vector<2x2x128xf32>
    tpu.vector_store %arg6[%c0_71, %c0_72, %c0_73], %61 {strides = array<i32>} : memref<2x2x128xf32, #tpu.memory_space<vmem>>, vector<2x2x128xf32>,
    %c7 = arith.constant 7 : index
    %c0_74 = arith.constant 0 : index
    %c0_75 = arith.constant 0 : index
    %63 = vector.load %arg3[%c7, %c0_74, %c0_75] : memref<9x64x128xbf16, #tpu.memory_space<vmem>>, vector<1x64x128xbf16>
    %64 = vector.shape_cast %63 : vector<1x64x128xbf16> to vector<64x128xbf16>
    %cst_76 = arith.constant dense<0.000000e+00> : vector<16x128xf32>
    %65 = tpu.matmul %54, %64, %cst_76 {dimension_numbers = #tpu.dot_dimension_numbers<[1], [0], [0], [1], [0, 0, 1, 1], [], []>} : vector<16x64xbf16>, vector<64x128xbf16>, vector<16x128xf32> -> vector<16x128xf32>
    %66 = vector.shape_cast %65 : vector<16x128xf32> to vector<2x8x128xf32>
    %67 = vector.extract_strided_slice %66 {offsets = [0, 1, 0], sizes = [2, 2, 128], strides = [1, 1, 1]} : vector<2x8x128xf32> to vector<2x2x128xf32>
    %c0_77 = arith.constant 0 : index
    %c0_78 = arith.constant 0 : index
    %c0_79 = arith.constant 0 : index
    %68 = vector.load %arg6[%c0_77, %c0_78, %c0_79] : memref<2x2x128xf32, #tpu.memory_space<vmem>>, vector<2x2x128xf32>
    %69 = arith.addf %68, %67 : vector<2x2x128xf32>
    %c0_80 = arith.constant 0 : index
    %c0_81 = arith.constant 0 : index
    %c0_82 = arith.constant 0 : index
    %70 = vector.load %arg6[%c0_80, %c0_81, %c0_82] : memref<2x2x128xf32, #tpu.memory_space<vmem>>, vector<2x2x128xf32>
    tpu.vector_store %arg6[%c0_80, %c0_81, %c0_82], %69 {strides = array<i32>} : memref<2x2x128xf32, #tpu.memory_space<vmem>>, vector<2x2x128xf32>,
    %c8 = arith.constant 8 : index
    %c0_83 = arith.constant 0 : index
    %c0_84 = arith.constant 0 : index
    %71 = vector.load %arg3[%c8, %c0_83, %c0_84] : memref<9x64x128xbf16, #tpu.memory_space<vmem>>, vector<1x64x128xbf16>
    %72 = vector.shape_cast %71 : vector<1x64x128xbf16> to vector<64x128xbf16>
    %cst_85 = arith.constant dense<0.000000e+00> : vector<16x128xf32>
    %73 = tpu.matmul %54, %72, %cst_85 {dimension_numbers = #tpu.dot_dimension_numbers<[1], [0], [0], [1], [0, 0, 1, 1], [], []>} : vector<16x64xbf16>, vector<64x128xbf16>, vector<16x128xf32> -> vector<16x128xf32>
    %74 = vector.shape_cast %73 : vector<16x128xf32> to vector<2x8x128xf32>
    %75 = vector.extract_strided_slice %74 {offsets = [0, 2, 0], sizes = [2, 2, 128], strides = [1, 1, 1]} : vector<2x8x128xf32> to vector<2x2x128xf32>
    %c0_86 = arith.constant 0 : index
    %c0_87 = arith.constant 0 : index
    %c0_88 = arith.constant 0 : index
    %76 = vector.load %arg6[%c0_86, %c0_87, %c0_88] : memref<2x2x128xf32, #tpu.memory_space<vmem>>, vector<2x2x128xf32>
    %77 = arith.addf %76, %75 : vector<2x2x128xf32>
    %c0_89 = arith.constant 0 : index
    %c0_90 = arith.constant 0 : index
    %c0_91 = arith.constant 0 : index
    %78 = vector.load %arg6[%c0_89, %c0_90, %c0_91] : memref<2x2x128xf32, #tpu.memory_space<vmem>>, vector<2x2x128xf32>
    tpu.vector_store %arg6[%c0_89, %c0_90, %c0_91], %77 {strides = array<i32>} : memref<2x2x128xf32, #tpu.memory_space<vmem>>, vector<2x2x128xf32>,
    %c0_92 = arith.constant 0 : index
    %c0_93 = arith.constant 0 : index
    %c0_94 = arith.constant 0 : index
    %79 = vector.load %arg6[%c0_92, %c0_93, %c0_94] : memref<2x2x128xf32, #tpu.memory_space<vmem>>, vector<2x2x128xf32>
    %c0_95 = arith.constant 0 : index
    %c0_96 = arith.constant 0 : index
    %80 = vector.load %arg4[%c0_95, %c0_96] : memref<1x128xf32, #tpu.memory_space<vmem>>, vector<1x128xf32>
    %81 = vector.shape_cast %80 : vector<1x128xf32> to vector<1x1x128xf32>
    %82 = vector.broadcast %81 : vector<1x1x128xf32> to vector<2x2x128xf32>
    %83 = arith.addf %79, %82 : vector<2x2x128xf32>
    %cst_97 = arith.constant 0.000000e+00 : f32
    %84 = vector.broadcast %cst_97 : f32 to vector<2x2x128xf32>
    %85 = arith.maximumf %83, %84 : vector<2x2x128xf32>
    %86 = arith.truncf %85 : vector<2x2x128xf32> to vector<2x2x128xbf16>
    %c0_98 = arith.constant 0 : index
    %c0_99 = arith.constant 0 : index
    %c0_100 = arith.constant 0 : index
    %c0_101 = arith.constant 0 : index
    %87 = vector.load %arg5[%c0_98, %c0_99, %c0_100, %c0_101] : memref<1x2x2x128xbf16, #tpu.memory_space<vmem>>, vector<1x2x2x128xbf16>
    %88 = vector.shape_cast %87 : vector<1x2x2x128xbf16> to vector<2x2x128xbf16>
    %89 = vector.shape_cast %86 : vector<2x2x128xbf16> to vector<1x2x2x128xbf16>
    tpu.vector_store %arg5[%c0_98, %c0_99, %c0_100, %c0_101], %89 {strides = array<i32>} : memref<1x2x2x128xbf16, #tpu.memory_space<vmem>>, vector<1x2x2x128xbf16>,
    return
  }
  func.func @transform_0(%arg0: i32, %arg1: i32) -> (i32, i32, i32, i32, i32) {
    %c0_i32 = arith.constant 0 : i32
    %c0_i32_0 = arith.constant 0 : i32
    %c0_i32_1 = arith.constant 0 : i32
    %c0_i32_2 = arith.constant 0 : i32
    return %arg0, %arg1, %c0_i32, %c0_i32_0, %c0_i32_1 : i32, i32, i32, i32, i32
  }
  func.func @transform_1(%arg0: i32, %arg1: i32) -> (i32, i32, i32) {
    %c0_i32 = arith.constant 0 : i32
    %c0_i32_0 = arith.constant 0 : i32
    %c0_i32_1 = arith.constant 0 : i32
    %c0_i32_2 = arith.constant 0 : i32
    return %c0_i32, %c0_i32_0, %c0_i32_1 : i32, i32, i32
  }
  func.func @transform_2(%arg0: i32, %arg1: i32) -> (i32, i32) {
    %c0_i32 = arith.constant 0 : i32
    %c0_i32_0 = arith.constant 0 : i32
    %c0_i32_1 = arith.constant 0 : i32
    return %c0_i32, %c0_i32_0 : i32, i32
  }
  func.func @transform_3(%arg0: i32, %arg1: i32) -> (i32, i32, i32, i32) {
    %c0_i32 = arith.constant 0 : i32
    %c0_i32_0 = arith.constant 0 : i32
    %c0_i32_1 = arith.constant 0 : i32
    return %arg0, %arg1, %c0_i32, %c0_i32_0 : i32, i32, i32, i32
  }
}

module attributes {stable_mosaic.version = 11 : i64} {
  func.func @_mm_kernel(%arg0: i32, %arg1: memref<8x64xbf16, #tpu.memory_space<vmem>>, %arg2: memref<64x128xbf16, #tpu.memory_space<vmem>>, %arg3: memref<1x128xf32, #tpu.memory_space<vmem>>, %arg4: memref<8x128xbf16, #tpu.memory_space<vmem>>) attributes {dimension_semantics = [#tpu.dimension_semantics<parallel>], iteration_bounds = array<i64: 1>, scalar_prefetch = 0 : i64, scratch_operands = 0 : i64, tpu.core_type = #tpu.core_type<tc>, window_params = [{transform_indices = @transform_0, window_bounds = array<i64: 8, 64>}, {pipeline_mode = #tpu.pipeline_mode<synchronous>, transform_indices = @transform_1, window_bounds = array<i64: 64, 128>}, {pipeline_mode = #tpu.pipeline_mode<synchronous>, transform_indices = @transform_2, window_bounds = array<i64: 1, 128>}, {transform_indices = @transform_3, window_bounds = array<i64: 8, 128>}]} {
    %c0 = arith.constant 0 : index
    %c0_0 = arith.constant 0 : index
    %0 = vector.load %arg1[%c0, %c0_0] : memref<8x64xbf16, #tpu.memory_space<vmem>>, vector<8x64xbf16>
    %c0_1 = arith.constant 0 : index
    %c0_2 = arith.constant 0 : index
    %1 = vector.load %arg2[%c0_1, %c0_2] : memref<64x128xbf16, #tpu.memory_space<vmem>>, vector<64x128xbf16>
    %cst = arith.constant dense<0.000000e+00> : vector<8x128xf32>
    %2 = tpu.matmul %0, %1, %cst {dimension_numbers = #tpu.dot_dimension_numbers<[1], [0], [0], [1], [0, 0, 1, 1], [], []>} : vector<8x64xbf16>, vector<64x128xbf16>, vector<8x128xf32> -> vector<8x128xf32>
    %c0_3 = arith.constant 0 : index
    %c0_4 = arith.constant 0 : index
    %3 = vector.load %arg3[%c0_3, %c0_4] : memref<1x128xf32, #tpu.memory_space<vmem>>, vector<1x128xf32>
    %4 = vector.broadcast %3 : vector<1x128xf32> to vector<8x128xf32>
    %5 = arith.addf %2, %4 : vector<8x128xf32>
    %cst_5 = arith.constant 0.000000e+00 : f32
    %6 = vector.broadcast %cst_5 : f32 to vector<8x128xf32>
    %7 = arith.maximumf %5, %6 : vector<8x128xf32>
    %8 = arith.truncf %7 : vector<8x128xf32> to vector<8x128xbf16>
    %c0_6 = arith.constant 0 : index
    %c0_7 = arith.constant 0 : index
    %9 = vector.load %arg4[%c0_6, %c0_7] : memref<8x128xbf16, #tpu.memory_space<vmem>>, vector<8x128xbf16>
    tpu.vector_store %arg4[%c0_6, %c0_7], %8 {strides = array<i32>} : memref<8x128xbf16, #tpu.memory_space<vmem>>, vector<8x128xbf16>,
    return
  }
  func.func @transform_0(%arg0: i32) -> (i32, i32) {
    %c0_i32 = arith.constant 0 : i32
    %c0_i32_0 = arith.constant 0 : i32
    return %arg0, %c0_i32 : i32, i32
  }
  func.func @transform_1(%arg0: i32) -> (i32, i32) {
    %c0_i32 = arith.constant 0 : i32
    %c0_i32_0 = arith.constant 0 : i32
    %c0_i32_1 = arith.constant 0 : i32
    return %c0_i32, %c0_i32_0 : i32, i32
  }
  func.func @transform_2(%arg0: i32) -> (i32, i32) {
    %c0_i32 = arith.constant 0 : i32
    %c0_i32_0 = arith.constant 0 : i32
    %c0_i32_1 = arith.constant 0 : i32
    return %c0_i32, %c0_i32_0 : i32, i32
  }
  func.func @transform_3(%arg0: i32) -> (i32, i32) {
    %c0_i32 = arith.constant 0 : i32
    %c0_i32_0 = arith.constant 0 : i32
    return %arg0, %c0_i32 : i32, i32
  }
}

module attributes {stable_mosaic.version = 11 : i64} {
  func.func @_mm_kernel(%arg0: i32, %arg1: memref<8x384xbf16, #tpu.memory_space<vmem>>, %arg2: memref<384x256xbf16, #tpu.memory_space<vmem>>, %arg3: memref<1x256xf32, #tpu.memory_space<vmem>>, %arg4: memref<8x256xbf16, #tpu.memory_space<vmem>>) attributes {dimension_semantics = [#tpu.dimension_semantics<parallel>], iteration_bounds = array<i64: 1>, scalar_prefetch = 0 : i64, scratch_operands = 0 : i64, tpu.core_type = #tpu.core_type<tc>, window_params = [{transform_indices = @transform_0, window_bounds = array<i64: 8, 384>}, {pipeline_mode = #tpu.pipeline_mode<synchronous>, transform_indices = @transform_1, window_bounds = array<i64: 384, 256>}, {pipeline_mode = #tpu.pipeline_mode<synchronous>, transform_indices = @transform_2, window_bounds = array<i64: 1, 256>}, {transform_indices = @transform_3, window_bounds = array<i64: 8, 256>}]} {
    %c0 = arith.constant 0 : index
    %c0_0 = arith.constant 0 : index
    %0 = vector.load %arg1[%c0, %c0_0] : memref<8x384xbf16, #tpu.memory_space<vmem>>, vector<8x384xbf16>
    %c0_1 = arith.constant 0 : index
    %c0_2 = arith.constant 0 : index
    %1 = vector.load %arg2[%c0_1, %c0_2] : memref<384x256xbf16, #tpu.memory_space<vmem>>, vector<384x256xbf16>
    %cst = arith.constant dense<0.000000e+00> : vector<8x256xf32>
    %2 = tpu.matmul %0, %1, %cst {dimension_numbers = #tpu.dot_dimension_numbers<[1], [0], [0], [1], [0, 0, 1, 1], [], []>} : vector<8x384xbf16>, vector<384x256xbf16>, vector<8x256xf32> -> vector<8x256xf32>
    %c0_3 = arith.constant 0 : index
    %c0_4 = arith.constant 0 : index
    %3 = vector.load %arg3[%c0_3, %c0_4] : memref<1x256xf32, #tpu.memory_space<vmem>>, vector<1x256xf32>
    %4 = vector.broadcast %3 : vector<1x256xf32> to vector<8x256xf32>
    %5 = arith.addf %2, %4 : vector<8x256xf32>
    %6 = arith.truncf %5 : vector<8x256xf32> to vector<8x256xbf16>
    %c0_5 = arith.constant 0 : index
    %c0_6 = arith.constant 0 : index
    %7 = vector.load %arg4[%c0_5, %c0_6] : memref<8x256xbf16, #tpu.memory_space<vmem>>, vector<8x256xbf16>
    tpu.vector_store %arg4[%c0_5, %c0_6], %6 {strides = array<i32>} : memref<8x256xbf16, #tpu.memory_space<vmem>>, vector<8x256xbf16>,
    return
  }
  func.func @transform_0(%arg0: i32) -> (i32, i32) {
    %c0_i32 = arith.constant 0 : i32
    %c0_i32_0 = arith.constant 0 : i32
    return %arg0, %c0_i32 : i32, i32
  }
  func.func @transform_1(%arg0: i32) -> (i32, i32) {
    %c0_i32 = arith.constant 0 : i32
    %c0_i32_0 = arith.constant 0 : i32
    %c0_i32_1 = arith.constant 0 : i32
    return %c0_i32, %c0_i32_0 : i32, i32
  }
  func.func @transform_2(%arg0: i32) -> (i32, i32) {
    %c0_i32 = arith.constant 0 : i32
    %c0_i32_0 = arith.constant 0 : i32
    %c0_i32_1 = arith.constant 0 : i32
    return %c0_i32, %c0_i32_0 : i32, i32
  }
  func.func @transform_3(%arg0: i32) -> (i32, i32) {
    %c0_i32 = arith.constant 0 : i32
    %c0_i32_0 = arith.constant 0 : i32
    return %arg0, %c0_i32 : i32, i32
  }
}

module attributes {stable_mosaic.version = 11 : i64} {
  func.func @_mm_kernel(%arg0: i32, %arg1: memref<32x32xbf16, #tpu.memory_space<vmem>>, %arg2: memref<32x128xbf16, #tpu.memory_space<vmem>>, %arg3: memref<1x128xf32, #tpu.memory_space<vmem>>, %arg4: memref<32x128xbf16, #tpu.memory_space<vmem>>) attributes {dimension_semantics = [#tpu.dimension_semantics<parallel>], iteration_bounds = array<i64: 1>, scalar_prefetch = 0 : i64, scratch_operands = 0 : i64, tpu.core_type = #tpu.core_type<tc>, window_params = [{transform_indices = @transform_0, window_bounds = array<i64: 32, 32>}, {pipeline_mode = #tpu.pipeline_mode<synchronous>, transform_indices = @transform_1, window_bounds = array<i64: 32, 128>}, {pipeline_mode = #tpu.pipeline_mode<synchronous>, transform_indices = @transform_2, window_bounds = array<i64: 1, 128>}, {transform_indices = @transform_3, window_bounds = array<i64: 32, 128>}]} {
    %c0 = arith.constant 0 : index
    %c0_0 = arith.constant 0 : index
    %0 = vector.load %arg1[%c0, %c0_0] : memref<32x32xbf16, #tpu.memory_space<vmem>>, vector<32x32xbf16>
    %c0_1 = arith.constant 0 : index
    %c0_2 = arith.constant 0 : index
    %1 = vector.load %arg2[%c0_1, %c0_2] : memref<32x128xbf16, #tpu.memory_space<vmem>>, vector<32x128xbf16>
    %cst = arith.constant dense<0.000000e+00> : vector<32x128xf32>
    %2 = tpu.matmul %0, %1, %cst {dimension_numbers = #tpu.dot_dimension_numbers<[1], [0], [0], [1], [0, 0, 1, 1], [], []>} : vector<32x32xbf16>, vector<32x128xbf16>, vector<32x128xf32> -> vector<32x128xf32>
    %c0_3 = arith.constant 0 : index
    %c0_4 = arith.constant 0 : index
    %3 = vector.load %arg3[%c0_3, %c0_4] : memref<1x128xf32, #tpu.memory_space<vmem>>, vector<1x128xf32>
    %4 = vector.broadcast %3 : vector<1x128xf32> to vector<32x128xf32>
    %5 = arith.addf %2, %4 : vector<32x128xf32>
    %6 = arith.truncf %5 : vector<32x128xf32> to vector<32x128xbf16>
    %c0_5 = arith.constant 0 : index
    %c0_6 = arith.constant 0 : index
    %7 = vector.load %arg4[%c0_5, %c0_6] : memref<32x128xbf16, #tpu.memory_space<vmem>>, vector<32x128xbf16>
    tpu.vector_store %arg4[%c0_5, %c0_6], %6 {strides = array<i32>} : memref<32x128xbf16, #tpu.memory_space<vmem>>, vector<32x128xbf16>,
    return
  }
  func.func @transform_0(%arg0: i32) -> (i32, i32) {
    %c0_i32 = arith.constant 0 : i32
    %c0_i32_0 = arith.constant 0 : i32
    return %arg0, %c0_i32 : i32, i32
  }
  func.func @transform_1(%arg0: i32) -> (i32, i32) {
    %c0_i32 = arith.constant 0 : i32
    %c0_i32_0 = arith.constant 0 : i32
    %c0_i32_1 = arith.constant 0 : i32
    return %c0_i32, %c0_i32_0 : i32, i32
  }
  func.func @transform_2(%arg0: i32) -> (i32, i32) {
    %c0_i32 = arith.constant 0 : i32
    %c0_i32_0 = arith.constant 0 : i32
    %c0_i32_1 = arith.constant 0 : i32
    return %c0_i32, %c0_i32_0 : i32, i32
  }
  func.func @transform_3(%arg0: i32) -> (i32, i32) {
    %c0_i32 = arith.constant 0 : i32
    %c0_i32_0 = arith.constant 0 : i32
    return %arg0, %c0_i32 : i32, i32
  }
}

module attributes {stable_mosaic.version = 11 : i64} {
  func.func @_conv3x3_kernel(%arg0: i32, %arg1: i32, %arg2: memref<1x1x6x8x384xbf16, #tpu.memory_space<vmem>>, %arg3: memref<9x384x256xbf16, #tpu.memory_space<vmem>>, %arg4: memref<1x256xf32, #tpu.memory_space<vmem>>, %arg5: memref<1x4x4x256xbf16, #tpu.memory_space<vmem>>, %arg6: memref<4x4x256xf32, #tpu.memory_space<vmem>>) attributes {dimension_semantics = [#tpu.dimension_semantics<parallel>, #tpu.dimension_semantics<parallel>], iteration_bounds = array<i64: 2, 1>, scalar_prefetch = 0 : i64, scratch_operands = 1 : i64, tpu.core_type = #tpu.core_type<tc>, window_params = [{transform_indices = @transform_0, window_bounds = array<i64: 1, 1, 6, 8, 384>}, {pipeline_mode = #tpu.pipeline_mode<synchronous>, transform_indices = @transform_1, window_bounds = array<i64: 9, 384, 256>}, {pipeline_mode = #tpu.pipeline_mode<synchronous>, transform_indices = @transform_2, window_bounds = array<i64: 1, 256>}, {transform_indices = @transform_3, window_bounds = array<i64: 1, 4, 4, 256>}]} {
    %c0 = arith.constant 0 : index
    %c0_0 = arith.constant 0 : index
    %c0_1 = arith.constant 0 : index
    %c0_2 = arith.constant 0 : index
    %c0_3 = arith.constant 0 : index
    %0 = vector.load %arg2[%c0, %c0_0, %c0_1, %c0_2, %c0_3] : memref<1x1x6x8x384xbf16, #tpu.memory_space<vmem>>, vector<1x1x4x8x384xbf16>
    %1 = vector.shape_cast %0 : vector<1x1x4x8x384xbf16> to vector<4x8x384xbf16>
    %2 = vector.shape_cast %1 : vector<4x8x384xbf16> to vector<32x384xbf16>
    %c0_4 = arith.constant 0 : index
    %c0_5 = arith.constant 0 : index
    %c0_6 = arith.constant 0 : index
    %3 = vector.load %arg3[%c0_4, %c0_5, %c0_6] : memref<9x384x256xbf16, #tpu.memory_space<vmem>>, vector<1x384x256xbf16>
    %4 = vector.shape_cast %3 : vector<1x384x256xbf16> to vector<384x256xbf16>
    %cst = arith.constant dense<0.000000e+00> : vector<32x256xf32>
    %5 = tpu.matmul %2, %4, %cst {dimension_numbers = #tpu.dot_dimension_numbers<[1], [0], [0], [1], [0, 0, 1, 1], [], []>} : vector<32x384xbf16>, vector<384x256xbf16>, vector<32x256xf32> -> vector<32x256xf32>
    %6 = vector.shape_cast %5 : vector<32x256xf32> to vector<4x8x256xf32>
    %7 = vector.extract_strided_slice %6 {offsets = [0, 0, 0], sizes = [4, 4, 256], strides = [1, 1, 1]} : vector<4x8x256xf32> to vector<4x4x256xf32>
    %c0_7 = arith.constant 0 : index
    %c0_8 = arith.constant 0 : index
    %c0_9 = arith.constant 0 : index
    %8 = vector.load %arg6[%c0_7, %c0_8, %c0_9] : memref<4x4x256xf32, #tpu.memory_space<vmem>>, vector<4x4x256xf32>
    tpu.vector_store %arg6[%c0_7, %c0_8, %c0_9], %7 {strides = array<i32>} : memref<4x4x256xf32, #tpu.memory_space<vmem>>, vector<4x4x256xf32>,
    %c1 = arith.constant 1 : index
    %c0_10 = arith.constant 0 : index
    %c0_11 = arith.constant 0 : index
    %9 = vector.load %arg3[%c1, %c0_10, %c0_11] : memref<9x384x256xbf16, #tpu.memory_space<vmem>>, vector<1x384x256xbf16>
    %10 = vector.shape_cast %9 : vector<1x384x256xbf16> to vector<384x256xbf16>
    %cst_12 = arith.constant dense<0.000000e+00> : vector<32x256xf32>
    %11 = tpu.matmul %2, %10, %cst_12 {dimension_numbers = #tpu.dot_dimension_numbers<[1], [0], [0], [1], [0, 0, 1, 1], [], []>} : vector<32x384xbf16>, vector<384x256xbf16>, vector<32x256xf32> -> vector<32x256xf32>
    %12 = vector.shape_cast %11 : vector<32x256xf32> to vector<4x8x256xf32>
    %13 = vector.extract_strided_slice %12 {offsets = [0, 1, 0], sizes = [4, 4, 256], strides = [1, 1, 1]} : vector<4x8x256xf32> to vector<4x4x256xf32>
    %c0_13 = arith.constant 0 : index
    %c0_14 = arith.constant 0 : index
    %c0_15 = arith.constant 0 : index
    %14 = vector.load %arg6[%c0_13, %c0_14, %c0_15] : memref<4x4x256xf32, #tpu.memory_space<vmem>>, vector<4x4x256xf32>
    %15 = arith.addf %14, %13 : vector<4x4x256xf32>
    %c0_16 = arith.constant 0 : index
    %c0_17 = arith.constant 0 : index
    %c0_18 = arith.constant 0 : index
    %16 = vector.load %arg6[%c0_16, %c0_17, %c0_18] : memref<4x4x256xf32, #tpu.memory_space<vmem>>, vector<4x4x256xf32>
    tpu.vector_store %arg6[%c0_16, %c0_17, %c0_18], %15 {strides = array<i32>} : memref<4x4x256xf32, #tpu.memory_space<vmem>>, vector<4x4x256xf32>,
    %c2 = arith.constant 2 : index
    %c0_19 = arith.constant 0 : index
    %c0_20 = arith.constant 0 : index
    %17 = vector.load %arg3[%c2, %c0_19, %c0_20] : memref<9x384x256xbf16, #tpu.memory_space<vmem>>, vector<1x384x256xbf16>
    %18 = vector.shape_cast %17 : vector<1x384x256xbf16> to vector<384x256xbf16>
    %cst_21 = arith.constant dense<0.000000e+00> : vector<32x256xf32>
    %19 = tpu.matmul %2, %18, %cst_21 {dimension_numbers = #tpu.dot_dimension_numbers<[1], [0], [0], [1], [0, 0, 1, 1], [], []>} : vector<32x384xbf16>, vector<384x256xbf16>, vector<32x256xf32> -> vector<32x256xf32>
    %20 = vector.shape_cast %19 : vector<32x256xf32> to vector<4x8x256xf32>
    %21 = vector.extract_strided_slice %20 {offsets = [0, 2, 0], sizes = [4, 4, 256], strides = [1, 1, 1]} : vector<4x8x256xf32> to vector<4x4x256xf32>
    %c0_22 = arith.constant 0 : index
    %c0_23 = arith.constant 0 : index
    %c0_24 = arith.constant 0 : index
    %22 = vector.load %arg6[%c0_22, %c0_23, %c0_24] : memref<4x4x256xf32, #tpu.memory_space<vmem>>, vector<4x4x256xf32>
    %23 = arith.addf %22, %21 : vector<4x4x256xf32>
    %c0_25 = arith.constant 0 : index
    %c0_26 = arith.constant 0 : index
    %c0_27 = arith.constant 0 : index
    %24 = vector.load %arg6[%c0_25, %c0_26, %c0_27] : memref<4x4x256xf32, #tpu.memory_space<vmem>>, vector<4x4x256xf32>
    tpu.vector_store %arg6[%c0_25, %c0_26, %c0_27], %23 {strides = array<i32>} : memref<4x4x256xf32, #tpu.memory_space<vmem>>, vector<4x4x256xf32>,
    %c0_28 = arith.constant 0 : index
    %c0_29 = arith.constant 0 : index
    %c1_30 = arith.constant 1 : index
    %c0_31 = arith.constant 0 : index
    %c0_32 = arith.constant 0 : index
    %25 = vector.load %arg2[%c0_28, %c0_29, %c1_30, %c0_31, %c0_32] : memref<1x1x6x8x384xbf16, #tpu.memory_space<vmem>>, vector<1x1x4x8x384xbf16>
    %26 = vector.shape_cast %25 : vector<1x1x4x8x384xbf16> to vector<4x8x384xbf16>
    %27 = vector.shape_cast %26 : vector<4x8x384xbf16> to vector<32x384xbf16>
    %c3 = arith.constant 3 : index
    %c0_33 = arith.constant 0 : index
    %c0_34 = arith.constant 0 : index
    %28 = vector.load %arg3[%c3, %c0_33, %c0_34] : memref<9x384x256xbf16, #tpu.memory_space<vmem>>, vector<1x384x256xbf16>
    %29 = vector.shape_cast %28 : vector<1x384x256xbf16> to vector<384x256xbf16>
    %cst_35 = arith.constant dense<0.000000e+00> : vector<32x256xf32>
    %30 = tpu.matmul %27, %29, %cst_35 {dimension_numbers = #tpu.dot_dimension_numbers<[1], [0], [0], [1], [0, 0, 1, 1], [], []>} : vector<32x384xbf16>, vector<384x256xbf16>, vector<32x256xf32> -> vector<32x256xf32>
    %31 = vector.shape_cast %30 : vector<32x256xf32> to vector<4x8x256xf32>
    %32 = vector.extract_strided_slice %31 {offsets = [0, 0, 0], sizes = [4, 4, 256], strides = [1, 1, 1]} : vector<4x8x256xf32> to vector<4x4x256xf32>
    %c0_36 = arith.constant 0 : index
    %c0_37 = arith.constant 0 : index
    %c0_38 = arith.constant 0 : index
    %33 = vector.load %arg6[%c0_36, %c0_37, %c0_38] : memref<4x4x256xf32, #tpu.memory_space<vmem>>, vector<4x4x256xf32>
    %34 = arith.addf %33, %32 : vector<4x4x256xf32>
    %c0_39 = arith.constant 0 : index
    %c0_40 = arith.constant 0 : index
    %c0_41 = arith.constant 0 : index
    %35 = vector.load %arg6[%c0_39, %c0_40, %c0_41] : memref<4x4x256xf32, #tpu.memory_space<vmem>>, vector<4x4x256xf32>
    tpu.vector_store %arg6[%c0_39, %c0_40, %c0_41], %34 {strides = array<i32>} : memref<4x4x256xf32, #tpu.memory_space<vmem>>, vector<4x4x256xf32>,
    %c4 = arith.constant 4 : index
    %c0_42 = arith.constant 0 : index
    %c0_43 = arith.constant 0 : index
    %36 = vector.load %arg3[%c4, %c0_42, %c0_43] : memref<9x384x256xbf16, #tpu.memory_space<vmem>>, vector<1x384x256xbf16>
    %37 = vector.shape_cast %36 : vector<1x384x256xbf16> to vector<384x256xbf16>
    %cst_44 = arith.constant dense<0.000000e+00> : vector<32x256xf32>
    %38 = tpu.matmul %27, %37, %cst_44 {dimension_numbers = #tpu.dot_dimension_numbers<[1], [0], [0], [1], [0, 0, 1, 1], [], []>} : vector<32x384xbf16>, vector<384x256xbf16>, vector<32x256xf32> -> vector<32x256xf32>
    %39 = vector.shape_cast %38 : vector<32x256xf32> to vector<4x8x256xf32>
    %40 = vector.extract_strided_slice %39 {offsets = [0, 1, 0], sizes = [4, 4, 256], strides = [1, 1, 1]} : vector<4x8x256xf32> to vector<4x4x256xf32>
    %c0_45 = arith.constant 0 : index
    %c0_46 = arith.constant 0 : index
    %c0_47 = arith.constant 0 : index
    %41 = vector.load %arg6[%c0_45, %c0_46, %c0_47] : memref<4x4x256xf32, #tpu.memory_space<vmem>>, vector<4x4x256xf32>
    %42 = arith.addf %41, %40 : vector<4x4x256xf32>
    %c0_48 = arith.constant 0 : index
    %c0_49 = arith.constant 0 : index
    %c0_50 = arith.constant 0 : index
    %43 = vector.load %arg6[%c0_48, %c0_49, %c0_50] : memref<4x4x256xf32, #tpu.memory_space<vmem>>, vector<4x4x256xf32>
    tpu.vector_store %arg6[%c0_48, %c0_49, %c0_50], %42 {strides = array<i32>} : memref<4x4x256xf32, #tpu.memory_space<vmem>>, vector<4x4x256xf32>,
    %c5 = arith.constant 5 : index
    %c0_51 = arith.constant 0 : index
    %c0_52 = arith.constant 0 : index
    %44 = vector.load %arg3[%c5, %c0_51, %c0_52] : memref<9x384x256xbf16, #tpu.memory_space<vmem>>, vector<1x384x256xbf16>
    %45 = vector.shape_cast %44 : vector<1x384x256xbf16> to vector<384x256xbf16>
    %cst_53 = arith.constant dense<0.000000e+00> : vector<32x256xf32>
    %46 = tpu.matmul %27, %45, %cst_53 {dimension_numbers = #tpu.dot_dimension_numbers<[1], [0], [0], [1], [0, 0, 1, 1], [], []>} : vector<32x384xbf16>, vector<384x256xbf16>, vector<32x256xf32> -> vector<32x256xf32>
    %47 = vector.shape_cast %46 : vector<32x256xf32> to vector<4x8x256xf32>
    %48 = vector.extract_strided_slice %47 {offsets = [0, 2, 0], sizes = [4, 4, 256], strides = [1, 1, 1]} : vector<4x8x256xf32> to vector<4x4x256xf32>
    %c0_54 = arith.constant 0 : index
    %c0_55 = arith.constant 0 : index
    %c0_56 = arith.constant 0 : index
    %49 = vector.load %arg6[%c0_54, %c0_55, %c0_56] : memref<4x4x256xf32, #tpu.memory_space<vmem>>, vector<4x4x256xf32>
    %50 = arith.addf %49, %48 : vector<4x4x256xf32>
    %c0_57 = arith.constant 0 : index
    %c0_58 = arith.constant 0 : index
    %c0_59 = arith.constant 0 : index
    %51 = vector.load %arg6[%c0_57, %c0_58, %c0_59] : memref<4x4x256xf32, #tpu.memory_space<vmem>>, vector<4x4x256xf32>
    tpu.vector_store %arg6[%c0_57, %c0_58, %c0_59], %50 {strides = array<i32>} : memref<4x4x256xf32, #tpu.memory_space<vmem>>, vector<4x4x256xf32>,
    %c0_60 = arith.constant 0 : index
    %c0_61 = arith.constant 0 : index
    %c2_62 = arith.constant 2 : index
    %c0_63 = arith.constant 0 : index
    %c0_64 = arith.constant 0 : index
    %52 = vector.load %arg2[%c0_60, %c0_61, %c2_62, %c0_63, %c0_64] : memref<1x1x6x8x384xbf16, #tpu.memory_space<vmem>>, vector<1x1x4x8x384xbf16>
    %53 = vector.shape_cast %52 : vector<1x1x4x8x384xbf16> to vector<4x8x384xbf16>
    %54 = vector.shape_cast %53 : vector<4x8x384xbf16> to vector<32x384xbf16>
    %c6 = arith.constant 6 : index
    %c0_65 = arith.constant 0 : index
    %c0_66 = arith.constant 0 : index
    %55 = vector.load %arg3[%c6, %c0_65, %c0_66] : memref<9x384x256xbf16, #tpu.memory_space<vmem>>, vector<1x384x256xbf16>
    %56 = vector.shape_cast %55 : vector<1x384x256xbf16> to vector<384x256xbf16>
    %cst_67 = arith.constant dense<0.000000e+00> : vector<32x256xf32>
    %57 = tpu.matmul %54, %56, %cst_67 {dimension_numbers = #tpu.dot_dimension_numbers<[1], [0], [0], [1], [0, 0, 1, 1], [], []>} : vector<32x384xbf16>, vector<384x256xbf16>, vector<32x256xf32> -> vector<32x256xf32>
    %58 = vector.shape_cast %57 : vector<32x256xf32> to vector<4x8x256xf32>
    %59 = vector.extract_strided_slice %58 {offsets = [0, 0, 0], sizes = [4, 4, 256], strides = [1, 1, 1]} : vector<4x8x256xf32> to vector<4x4x256xf32>
    %c0_68 = arith.constant 0 : index
    %c0_69 = arith.constant 0 : index
    %c0_70 = arith.constant 0 : index
    %60 = vector.load %arg6[%c0_68, %c0_69, %c0_70] : memref<4x4x256xf32, #tpu.memory_space<vmem>>, vector<4x4x256xf32>
    %61 = arith.addf %60, %59 : vector<4x4x256xf32>
    %c0_71 = arith.constant 0 : index
    %c0_72 = arith.constant 0 : index
    %c0_73 = arith.constant 0 : index
    %62 = vector.load %arg6[%c0_71, %c0_72, %c0_73] : memref<4x4x256xf32, #tpu.memory_space<vmem>>, vector<4x4x256xf32>
    tpu.vector_store %arg6[%c0_71, %c0_72, %c0_73], %61 {strides = array<i32>} : memref<4x4x256xf32, #tpu.memory_space<vmem>>, vector<4x4x256xf32>,
    %c7 = arith.constant 7 : index
    %c0_74 = arith.constant 0 : index
    %c0_75 = arith.constant 0 : index
    %63 = vector.load %arg3[%c7, %c0_74, %c0_75] : memref<9x384x256xbf16, #tpu.memory_space<vmem>>, vector<1x384x256xbf16>
    %64 = vector.shape_cast %63 : vector<1x384x256xbf16> to vector<384x256xbf16>
    %cst_76 = arith.constant dense<0.000000e+00> : vector<32x256xf32>
    %65 = tpu.matmul %54, %64, %cst_76 {dimension_numbers = #tpu.dot_dimension_numbers<[1], [0], [0], [1], [0, 0, 1, 1], [], []>} : vector<32x384xbf16>, vector<384x256xbf16>, vector<32x256xf32> -> vector<32x256xf32>
    %66 = vector.shape_cast %65 : vector<32x256xf32> to vector<4x8x256xf32>
    %67 = vector.extract_strided_slice %66 {offsets = [0, 1, 0], sizes = [4, 4, 256], strides = [1, 1, 1]} : vector<4x8x256xf32> to vector<4x4x256xf32>
    %c0_77 = arith.constant 0 : index
    %c0_78 = arith.constant 0 : index
    %c0_79 = arith.constant 0 : index
    %68 = vector.load %arg6[%c0_77, %c0_78, %c0_79] : memref<4x4x256xf32, #tpu.memory_space<vmem>>, vector<4x4x256xf32>
    %69 = arith.addf %68, %67 : vector<4x4x256xf32>
    %c0_80 = arith.constant 0 : index
    %c0_81 = arith.constant 0 : index
    %c0_82 = arith.constant 0 : index
    %70 = vector.load %arg6[%c0_80, %c0_81, %c0_82] : memref<4x4x256xf32, #tpu.memory_space<vmem>>, vector<4x4x256xf32>
    tpu.vector_store %arg6[%c0_80, %c0_81, %c0_82], %69 {strides = array<i32>} : memref<4x4x256xf32, #tpu.memory_space<vmem>>, vector<4x4x256xf32>,
    %c8 = arith.constant 8 : index
    %c0_83 = arith.constant 0 : index
    %c0_84 = arith.constant 0 : index
    %71 = vector.load %arg3[%c8, %c0_83, %c0_84] : memref<9x384x256xbf16, #tpu.memory_space<vmem>>, vector<1x384x256xbf16>
    %72 = vector.shape_cast %71 : vector<1x384x256xbf16> to vector<384x256xbf16>
    %cst_85 = arith.constant dense<0.000000e+00> : vector<32x256xf32>
    %73 = tpu.matmul %54, %72, %cst_85 {dimension_numbers = #tpu.dot_dimension_numbers<[1], [0], [0], [1], [0, 0, 1, 1], [], []>} : vector<32x384xbf16>, vector<384x256xbf16>, vector<32x256xf32> -> vector<32x256xf32>
    %74 = vector.shape_cast %73 : vector<32x256xf32> to vector<4x8x256xf32>
    %75 = vector.extract_strided_slice %74 {offsets = [0, 2, 0], sizes = [4, 4, 256], strides = [1, 1, 1]} : vector<4x8x256xf32> to vector<4x4x256xf32>
    %c0_86 = arith.constant 0 : index
    %c0_87 = arith.constant 0 : index
    %c0_88 = arith.constant 0 : index
    %76 = vector.load %arg6[%c0_86, %c0_87, %c0_88] : memref<4x4x256xf32, #tpu.memory_space<vmem>>, vector<4x4x256xf32>
    %77 = arith.addf %76, %75 : vector<4x4x256xf32>
    %c0_89 = arith.constant 0 : index
    %c0_90 = arith.constant 0 : index
    %c0_91 = arith.constant 0 : index
    %78 = vector.load %arg6[%c0_89, %c0_90, %c0_91] : memref<4x4x256xf32, #tpu.memory_space<vmem>>, vector<4x4x256xf32>
    tpu.vector_store %arg6[%c0_89, %c0_90, %c0_91], %77 {strides = array<i32>} : memref<4x4x256xf32, #tpu.memory_space<vmem>>, vector<4x4x256xf32>,
    %c0_92 = arith.constant 0 : index
    %c0_93 = arith.constant 0 : index
    %c0_94 = arith.constant 0 : index
    %79 = vector.load %arg6[%c0_92, %c0_93, %c0_94] : memref<4x4x256xf32, #tpu.memory_space<vmem>>, vector<4x4x256xf32>
    %c0_95 = arith.constant 0 : index
    %c0_96 = arith.constant 0 : index
    %80 = vector.load %arg4[%c0_95, %c0_96] : memref<1x256xf32, #tpu.memory_space<vmem>>, vector<1x256xf32>
    %81 = vector.shape_cast %80 : vector<1x256xf32> to vector<1x1x256xf32>
    %82 = vector.broadcast %81 : vector<1x1x256xf32> to vector<4x4x256xf32>
    %83 = arith.addf %79, %82 : vector<4x4x256xf32>
    %cst_97 = arith.constant 0.000000e+00 : f32
    %84 = vector.broadcast %cst_97 : f32 to vector<4x4x256xf32>
    %85 = arith.maximumf %83, %84 : vector<4x4x256xf32>
    %86 = arith.truncf %85 : vector<4x4x256xf32> to vector<4x4x256xbf16>
    %c0_98 = arith.constant 0 : index
    %c0_99 = arith.constant 0 : index
    %c0_100 = arith.constant 0 : index
    %c0_101 = arith.constant 0 : index
    %87 = vector.load %arg5[%c0_98, %c0_99, %c0_100, %c0_101] : memref<1x4x4x256xbf16, #tpu.memory_space<vmem>>, vector<1x4x4x256xbf16>
    %88 = vector.shape_cast %87 : vector<1x4x4x256xbf16> to vector<4x4x256xbf16>
    %89 = vector.shape_cast %86 : vector<4x4x256xbf16> to vector<1x4x4x256xbf16>
    tpu.vector_store %arg5[%c0_98, %c0_99, %c0_100, %c0_101], %89 {strides = array<i32>} : memref<1x4x4x256xbf16, #tpu.memory_space<vmem>>, vector<1x4x4x256xbf16>,
    return
  }
  func.func @transform_0(%arg0: i32, %arg1: i32) -> (i32, i32, i32, i32, i32) {
    %c0_i32 = arith.constant 0 : i32
    %c0_i32_0 = arith.constant 0 : i32
    %c0_i32_1 = arith.constant 0 : i32
    %c0_i32_2 = arith.constant 0 : i32
    return %arg0, %arg1, %c0_i32, %c0_i32_0, %c0_i32_1 : i32, i32, i32, i32, i32
  }
  func.func @transform_1(%arg0: i32, %arg1: i32) -> (i32, i32, i32) {
    %c0_i32 = arith.constant 0 : i32
    %c0_i32_0 = arith.constant 0 : i32
    %c0_i32_1 = arith.constant 0 : i32
    %c0_i32_2 = arith.constant 0 : i32
    return %c0_i32, %c0_i32_0, %c0_i32_1 : i32, i32, i32
  }
  func.func @transform_2(%arg0: i32, %arg1: i32) -> (i32, i32) {
    %c0_i32 = arith.constant 0 : i32
    %c0_i32_0 = arith.constant 0 : i32
    %c0_i32_1 = arith.constant 0 : i32
    return %c0_i32, %c0_i32_0 : i32, i32
  }
  func.func @transform_3(%arg0: i32, %arg1: i32) -> (i32, i32, i32, i32) {
    %c0_i32 = arith.constant 0 : i32
    %c0_i32_0 = arith.constant 0 : i32
    %c0_i32_1 = arith.constant 0 : i32
    return %arg0, %arg1, %c0_i32, %c0_i32_0 : i32, i32, i32, i32
  }
}

module attributes {stable_mosaic.version = 11 : i64} {
  func.func @_conv3x3_kernel(%arg0: i32, %arg1: i32, %arg2: memref<1x1x6x8x256xbf16, #tpu.memory_space<vmem>>, %arg3: memref<9x256x256xbf16, #tpu.memory_space<vmem>>, %arg4: memref<1x256xf32, #tpu.memory_space<vmem>>, %arg5: memref<1x4x4x256xbf16, #tpu.memory_space<vmem>>, %arg6: memref<4x4x256xf32, #tpu.memory_space<vmem>>) attributes {dimension_semantics = [#tpu.dimension_semantics<parallel>, #tpu.dimension_semantics<parallel>], iteration_bounds = array<i64: 2, 1>, scalar_prefetch = 0 : i64, scratch_operands = 1 : i64, tpu.core_type = #tpu.core_type<tc>, window_params = [{transform_indices = @transform_0, window_bounds = array<i64: 1, 1, 6, 8, 256>}, {pipeline_mode = #tpu.pipeline_mode<synchronous>, transform_indices = @transform_1, window_bounds = array<i64: 9, 256, 256>}, {pipeline_mode = #tpu.pipeline_mode<synchronous>, transform_indices = @transform_2, window_bounds = array<i64: 1, 256>}, {transform_indices = @transform_3, window_bounds = array<i64: 1, 4, 4, 256>}]} {
    %c0 = arith.constant 0 : index
    %c0_0 = arith.constant 0 : index
    %c0_1 = arith.constant 0 : index
    %c0_2 = arith.constant 0 : index
    %c0_3 = arith.constant 0 : index
    %0 = vector.load %arg2[%c0, %c0_0, %c0_1, %c0_2, %c0_3] : memref<1x1x6x8x256xbf16, #tpu.memory_space<vmem>>, vector<1x1x4x8x256xbf16>
    %1 = vector.shape_cast %0 : vector<1x1x4x8x256xbf16> to vector<4x8x256xbf16>
    %2 = vector.shape_cast %1 : vector<4x8x256xbf16> to vector<32x256xbf16>
    %c0_4 = arith.constant 0 : index
    %c0_5 = arith.constant 0 : index
    %c0_6 = arith.constant 0 : index
    %3 = vector.load %arg3[%c0_4, %c0_5, %c0_6] : memref<9x256x256xbf16, #tpu.memory_space<vmem>>, vector<1x256x256xbf16>
    %4 = vector.shape_cast %3 : vector<1x256x256xbf16> to vector<256x256xbf16>
    %cst = arith.constant dense<0.000000e+00> : vector<32x256xf32>
    %5 = tpu.matmul %2, %4, %cst {dimension_numbers = #tpu.dot_dimension_numbers<[1], [0], [0], [1], [0, 0, 1, 1], [], []>} : vector<32x256xbf16>, vector<256x256xbf16>, vector<32x256xf32> -> vector<32x256xf32>
    %6 = vector.shape_cast %5 : vector<32x256xf32> to vector<4x8x256xf32>
    %7 = vector.extract_strided_slice %6 {offsets = [0, 0, 0], sizes = [4, 4, 256], strides = [1, 1, 1]} : vector<4x8x256xf32> to vector<4x4x256xf32>
    %c0_7 = arith.constant 0 : index
    %c0_8 = arith.constant 0 : index
    %c0_9 = arith.constant 0 : index
    %8 = vector.load %arg6[%c0_7, %c0_8, %c0_9] : memref<4x4x256xf32, #tpu.memory_space<vmem>>, vector<4x4x256xf32>
    tpu.vector_store %arg6[%c0_7, %c0_8, %c0_9], %7 {strides = array<i32>} : memref<4x4x256xf32, #tpu.memory_space<vmem>>, vector<4x4x256xf32>,
    %c1 = arith.constant 1 : index
    %c0_10 = arith.constant 0 : index
    %c0_11 = arith.constant 0 : index
    %9 = vector.load %arg3[%c1, %c0_10, %c0_11] : memref<9x256x256xbf16, #tpu.memory_space<vmem>>, vector<1x256x256xbf16>
    %10 = vector.shape_cast %9 : vector<1x256x256xbf16> to vector<256x256xbf16>
    %cst_12 = arith.constant dense<0.000000e+00> : vector<32x256xf32>
    %11 = tpu.matmul %2, %10, %cst_12 {dimension_numbers = #tpu.dot_dimension_numbers<[1], [0], [0], [1], [0, 0, 1, 1], [], []>} : vector<32x256xbf16>, vector<256x256xbf16>, vector<32x256xf32> -> vector<32x256xf32>
    %12 = vector.shape_cast %11 : vector<32x256xf32> to vector<4x8x256xf32>
    %13 = vector.extract_strided_slice %12 {offsets = [0, 1, 0], sizes = [4, 4, 256], strides = [1, 1, 1]} : vector<4x8x256xf32> to vector<4x4x256xf32>
    %c0_13 = arith.constant 0 : index
    %c0_14 = arith.constant 0 : index
    %c0_15 = arith.constant 0 : index
    %14 = vector.load %arg6[%c0_13, %c0_14, %c0_15] : memref<4x4x256xf32, #tpu.memory_space<vmem>>, vector<4x4x256xf32>
    %15 = arith.addf %14, %13 : vector<4x4x256xf32>
    %c0_16 = arith.constant 0 : index
    %c0_17 = arith.constant 0 : index
    %c0_18 = arith.constant 0 : index
    %16 = vector.load %arg6[%c0_16, %c0_17, %c0_18] : memref<4x4x256xf32, #tpu.memory_space<vmem>>, vector<4x4x256xf32>
    tpu.vector_store %arg6[%c0_16, %c0_17, %c0_18], %15 {strides = array<i32>} : memref<4x4x256xf32, #tpu.memory_space<vmem>>, vector<4x4x256xf32>,
    %c2 = arith.constant 2 : index
    %c0_19 = arith.constant 0 : index
    %c0_20 = arith.constant 0 : index
    %17 = vector.load %arg3[%c2, %c0_19, %c0_20] : memref<9x256x256xbf16, #tpu.memory_space<vmem>>, vector<1x256x256xbf16>
    %18 = vector.shape_cast %17 : vector<1x256x256xbf16> to vector<256x256xbf16>
    %cst_21 = arith.constant dense<0.000000e+00> : vector<32x256xf32>
    %19 = tpu.matmul %2, %18, %cst_21 {dimension_numbers = #tpu.dot_dimension_numbers<[1], [0], [0], [1], [0, 0, 1, 1], [], []>} : vector<32x256xbf16>, vector<256x256xbf16>, vector<32x256xf32> -> vector<32x256xf32>
    %20 = vector.shape_cast %19 : vector<32x256xf32> to vector<4x8x256xf32>
    %21 = vector.extract_strided_slice %20 {offsets = [0, 2, 0], sizes = [4, 4, 256], strides = [1, 1, 1]} : vector<4x8x256xf32> to vector<4x4x256xf32>
    %c0_22 = arith.constant 0 : index
    %c0_23 = arith.constant 0 : index
    %c0_24 = arith.constant 0 : index
    %22 = vector.load %arg6[%c0_22, %c0_23, %c0_24] : memref<4x4x256xf32, #tpu.memory_space<vmem>>, vector<4x4x256xf32>
    %23 = arith.addf %22, %21 : vector<4x4x256xf32>
    %c0_25 = arith.constant 0 : index
    %c0_26 = arith.constant 0 : index
    %c0_27 = arith.constant 0 : index
    %24 = vector.load %arg6[%c0_25, %c0_26, %c0_27] : memref<4x4x256xf32, #tpu.memory_space<vmem>>, vector<4x4x256xf32>
    tpu.vector_store %arg6[%c0_25, %c0_26, %c0_27], %23 {strides = array<i32>} : memref<4x4x256xf32, #tpu.memory_space<vmem>>, vector<4x4x256xf32>,
    %c0_28 = arith.constant 0 : index
    %c0_29 = arith.constant 0 : index
    %c1_30 = arith.constant 1 : index
    %c0_31 = arith.constant 0 : index
    %c0_32 = arith.constant 0 : index
    %25 = vector.load %arg2[%c0_28, %c0_29, %c1_30, %c0_31, %c0_32] : memref<1x1x6x8x256xbf16, #tpu.memory_space<vmem>>, vector<1x1x4x8x256xbf16>
    %26 = vector.shape_cast %25 : vector<1x1x4x8x256xbf16> to vector<4x8x256xbf16>
    %27 = vector.shape_cast %26 : vector<4x8x256xbf16> to vector<32x256xbf16>
    %c3 = arith.constant 3 : index
    %c0_33 = arith.constant 0 : index
    %c0_34 = arith.constant 0 : index
    %28 = vector.load %arg3[%c3, %c0_33, %c0_34] : memref<9x256x256xbf16, #tpu.memory_space<vmem>>, vector<1x256x256xbf16>
    %29 = vector.shape_cast %28 : vector<1x256x256xbf16> to vector<256x256xbf16>
    %cst_35 = arith.constant dense<0.000000e+00> : vector<32x256xf32>
    %30 = tpu.matmul %27, %29, %cst_35 {dimension_numbers = #tpu.dot_dimension_numbers<[1], [0], [0], [1], [0, 0, 1, 1], [], []>} : vector<32x256xbf16>, vector<256x256xbf16>, vector<32x256xf32> -> vector<32x256xf32>
    %31 = vector.shape_cast %30 : vector<32x256xf32> to vector<4x8x256xf32>
    %32 = vector.extract_strided_slice %31 {offsets = [0, 0, 0], sizes = [4, 4, 256], strides = [1, 1, 1]} : vector<4x8x256xf32> to vector<4x4x256xf32>
    %c0_36 = arith.constant 0 : index
    %c0_37 = arith.constant 0 : index
    %c0_38 = arith.constant 0 : index
    %33 = vector.load %arg6[%c0_36, %c0_37, %c0_38] : memref<4x4x256xf32, #tpu.memory_space<vmem>>, vector<4x4x256xf32>
    %34 = arith.addf %33, %32 : vector<4x4x256xf32>
    %c0_39 = arith.constant 0 : index
    %c0_40 = arith.constant 0 : index
    %c0_41 = arith.constant 0 : index
    %35 = vector.load %arg6[%c0_39, %c0_40, %c0_41] : memref<4x4x256xf32, #tpu.memory_space<vmem>>, vector<4x4x256xf32>
    tpu.vector_store %arg6[%c0_39, %c0_40, %c0_41], %34 {strides = array<i32>} : memref<4x4x256xf32, #tpu.memory_space<vmem>>, vector<4x4x256xf32>,
    %c4 = arith.constant 4 : index
    %c0_42 = arith.constant 0 : index
    %c0_43 = arith.constant 0 : index
    %36 = vector.load %arg3[%c4, %c0_42, %c0_43] : memref<9x256x256xbf16, #tpu.memory_space<vmem>>, vector<1x256x256xbf16>
    %37 = vector.shape_cast %36 : vector<1x256x256xbf16> to vector<256x256xbf16>
    %cst_44 = arith.constant dense<0.000000e+00> : vector<32x256xf32>
    %38 = tpu.matmul %27, %37, %cst_44 {dimension_numbers = #tpu.dot_dimension_numbers<[1], [0], [0], [1], [0, 0, 1, 1], [], []>} : vector<32x256xbf16>, vector<256x256xbf16>, vector<32x256xf32> -> vector<32x256xf32>
    %39 = vector.shape_cast %38 : vector<32x256xf32> to vector<4x8x256xf32>
    %40 = vector.extract_strided_slice %39 {offsets = [0, 1, 0], sizes = [4, 4, 256], strides = [1, 1, 1]} : vector<4x8x256xf32> to vector<4x4x256xf32>
    %c0_45 = arith.constant 0 : index
    %c0_46 = arith.constant 0 : index
    %c0_47 = arith.constant 0 : index
    %41 = vector.load %arg6[%c0_45, %c0_46, %c0_47] : memref<4x4x256xf32, #tpu.memory_space<vmem>>, vector<4x4x256xf32>
    %42 = arith.addf %41, %40 : vector<4x4x256xf32>
    %c0_48 = arith.constant 0 : index
    %c0_49 = arith.constant 0 : index
    %c0_50 = arith.constant 0 : index
    %43 = vector.load %arg6[%c0_48, %c0_49, %c0_50] : memref<4x4x256xf32, #tpu.memory_space<vmem>>, vector<4x4x256xf32>
    tpu.vector_store %arg6[%c0_48, %c0_49, %c0_50], %42 {strides = array<i32>} : memref<4x4x256xf32, #tpu.memory_space<vmem>>, vector<4x4x256xf32>,
    %c5 = arith.constant 5 : index
    %c0_51 = arith.constant 0 : index
    %c0_52 = arith.constant 0 : index
    %44 = vector.load %arg3[%c5, %c0_51, %c0_52] : memref<9x256x256xbf16, #tpu.memory_space<vmem>>, vector<1x256x256xbf16>
    %45 = vector.shape_cast %44 : vector<1x256x256xbf16> to vector<256x256xbf16>
    %cst_53 = arith.constant dense<0.000000e+00> : vector<32x256xf32>
    %46 = tpu.matmul %27, %45, %cst_53 {dimension_numbers = #tpu.dot_dimension_numbers<[1], [0], [0], [1], [0, 0, 1, 1], [], []>} : vector<32x256xbf16>, vector<256x256xbf16>, vector<32x256xf32> -> vector<32x256xf32>
    %47 = vector.shape_cast %46 : vector<32x256xf32> to vector<4x8x256xf32>
    %48 = vector.extract_strided_slice %47 {offsets = [0, 2, 0], sizes = [4, 4, 256], strides = [1, 1, 1]} : vector<4x8x256xf32> to vector<4x4x256xf32>
    %c0_54 = arith.constant 0 : index
    %c0_55 = arith.constant 0 : index
    %c0_56 = arith.constant 0 : index
    %49 = vector.load %arg6[%c0_54, %c0_55, %c0_56] : memref<4x4x256xf32, #tpu.memory_space<vmem>>, vector<4x4x256xf32>
    %50 = arith.addf %49, %48 : vector<4x4x256xf32>
    %c0_57 = arith.constant 0 : index
    %c0_58 = arith.constant 0 : index
    %c0_59 = arith.constant 0 : index
    %51 = vector.load %arg6[%c0_57, %c0_58, %c0_59] : memref<4x4x256xf32, #tpu.memory_space<vmem>>, vector<4x4x256xf32>
    tpu.vector_store %arg6[%c0_57, %c0_58, %c0_59], %50 {strides = array<i32>} : memref<4x4x256xf32, #tpu.memory_space<vmem>>, vector<4x4x256xf32>,
    %c0_60 = arith.constant 0 : index
    %c0_61 = arith.constant 0 : index
    %c2_62 = arith.constant 2 : index
    %c0_63 = arith.constant 0 : index
    %c0_64 = arith.constant 0 : index
    %52 = vector.load %arg2[%c0_60, %c0_61, %c2_62, %c0_63, %c0_64] : memref<1x1x6x8x256xbf16, #tpu.memory_space<vmem>>, vector<1x1x4x8x256xbf16>
    %53 = vector.shape_cast %52 : vector<1x1x4x8x256xbf16> to vector<4x8x256xbf16>
    %54 = vector.shape_cast %53 : vector<4x8x256xbf16> to vector<32x256xbf16>
    %c6 = arith.constant 6 : index
    %c0_65 = arith.constant 0 : index
    %c0_66 = arith.constant 0 : index
    %55 = vector.load %arg3[%c6, %c0_65, %c0_66] : memref<9x256x256xbf16, #tpu.memory_space<vmem>>, vector<1x256x256xbf16>
    %56 = vector.shape_cast %55 : vector<1x256x256xbf16> to vector<256x256xbf16>
    %cst_67 = arith.constant dense<0.000000e+00> : vector<32x256xf32>
    %57 = tpu.matmul %54, %56, %cst_67 {dimension_numbers = #tpu.dot_dimension_numbers<[1], [0], [0], [1], [0, 0, 1, 1], [], []>} : vector<32x256xbf16>, vector<256x256xbf16>, vector<32x256xf32> -> vector<32x256xf32>
    %58 = vector.shape_cast %57 : vector<32x256xf32> to vector<4x8x256xf32>
    %59 = vector.extract_strided_slice %58 {offsets = [0, 0, 0], sizes = [4, 4, 256], strides = [1, 1, 1]} : vector<4x8x256xf32> to vector<4x4x256xf32>
    %c0_68 = arith.constant 0 : index
    %c0_69 = arith.constant 0 : index
    %c0_70 = arith.constant 0 : index
    %60 = vector.load %arg6[%c0_68, %c0_69, %c0_70] : memref<4x4x256xf32, #tpu.memory_space<vmem>>, vector<4x4x256xf32>
    %61 = arith.addf %60, %59 : vector<4x4x256xf32>
    %c0_71 = arith.constant 0 : index
    %c0_72 = arith.constant 0 : index
    %c0_73 = arith.constant 0 : index
    %62 = vector.load %arg6[%c0_71, %c0_72, %c0_73] : memref<4x4x256xf32, #tpu.memory_space<vmem>>, vector<4x4x256xf32>
    tpu.vector_store %arg6[%c0_71, %c0_72, %c0_73], %61 {strides = array<i32>} : memref<4x4x256xf32, #tpu.memory_space<vmem>>, vector<4x4x256xf32>,
    %c7 = arith.constant 7 : index
    %c0_74 = arith.constant 0 : index
    %c0_75 = arith.constant 0 : index
    %63 = vector.load %arg3[%c7, %c0_74, %c0_75] : memref<9x256x256xbf16, #tpu.memory_space<vmem>>, vector<1x256x256xbf16>
    %64 = vector.shape_cast %63 : vector<1x256x256xbf16> to vector<256x256xbf16>
    %cst_76 = arith.constant dense<0.000000e+00> : vector<32x256xf32>
    %65 = tpu.matmul %54, %64, %cst_76 {dimension_numbers = #tpu.dot_dimension_numbers<[1], [0], [0], [1], [0, 0, 1, 1], [], []>} : vector<32x256xbf16>, vector<256x256xbf16>, vector<32x256xf32> -> vector<32x256xf32>
    %66 = vector.shape_cast %65 : vector<32x256xf32> to vector<4x8x256xf32>
    %67 = vector.extract_strided_slice %66 {offsets = [0, 1, 0], sizes = [4, 4, 256], strides = [1, 1, 1]} : vector<4x8x256xf32> to vector<4x4x256xf32>
    %c0_77 = arith.constant 0 : index
    %c0_78 = arith.constant 0 : index
    %c0_79 = arith.constant 0 : index
    %68 = vector.load %arg6[%c0_77, %c0_78, %c0_79] : memref<4x4x256xf32, #tpu.memory_space<vmem>>, vector<4x4x256xf32>
    %69 = arith.addf %68, %67 : vector<4x4x256xf32>
    %c0_80 = arith.constant 0 : index
    %c0_81 = arith.constant 0 : index
    %c0_82 = arith.constant 0 : index
    %70 = vector.load %arg6[%c0_80, %c0_81, %c0_82] : memref<4x4x256xf32, #tpu.memory_space<vmem>>, vector<4x4x256xf32>
    tpu.vector_store %arg6[%c0_80, %c0_81, %c0_82], %69 {strides = array<i32>} : memref<4x4x256xf32, #tpu.memory_space<vmem>>, vector<4x4x256xf32>,
    %c8 = arith.constant 8 : index
    %c0_83 = arith.constant 0 : index
    %c0_84 = arith.constant 0 : index
    %71 = vector.load %arg3[%c8, %c0_83, %c0_84] : memref<9x256x256xbf16, #tpu.memory_space<vmem>>, vector<1x256x256xbf16>
    %72 = vector.shape_cast %71 : vector<1x256x256xbf16> to vector<256x256xbf16>
    %cst_85 = arith.constant dense<0.000000e+00> : vector<32x256xf32>
    %73 = tpu.matmul %54, %72, %cst_85 {dimension_numbers = #tpu.dot_dimension_numbers<[1], [0], [0], [1], [0, 0, 1, 1], [], []>} : vector<32x256xbf16>, vector<256x256xbf16>, vector<32x256xf32> -> vector<32x256xf32>
    %74 = vector.shape_cast %73 : vector<32x256xf32> to vector<4x8x256xf32>
    %75 = vector.extract_strided_slice %74 {offsets = [0, 2, 0], sizes = [4, 4, 256], strides = [1, 1, 1]} : vector<4x8x256xf32> to vector<4x4x256xf32>
    %c0_86 = arith.constant 0 : index
    %c0_87 = arith.constant 0 : index
    %c0_88 = arith.constant 0 : index
    %76 = vector.load %arg6[%c0_86, %c0_87, %c0_88] : memref<4x4x256xf32, #tpu.memory_space<vmem>>, vector<4x4x256xf32>
    %77 = arith.addf %76, %75 : vector<4x4x256xf32>
    %c0_89 = arith.constant 0 : index
    %c0_90 = arith.constant 0 : index
    %c0_91 = arith.constant 0 : index
    %78 = vector.load %arg6[%c0_89, %c0_90, %c0_91] : memref<4x4x256xf32, #tpu.memory_space<vmem>>, vector<4x4x256xf32>
    tpu.vector_store %arg6[%c0_89, %c0_90, %c0_91], %77 {strides = array<i32>} : memref<4x4x256xf32, #tpu.memory_space<vmem>>, vector<4x4x256xf32>,
    %c0_92 = arith.constant 0 : index
    %c0_93 = arith.constant 0 : index
    %c0_94 = arith.constant 0 : index
    %79 = vector.load %arg6[%c0_92, %c0_93, %c0_94] : memref<4x4x256xf32, #tpu.memory_space<vmem>>, vector<4x4x256xf32>
    %c0_95 = arith.constant 0 : index
    %c0_96 = arith.constant 0 : index
    %80 = vector.load %arg4[%c0_95, %c0_96] : memref<1x256xf32, #tpu.memory_space<vmem>>, vector<1x256xf32>
    %81 = vector.shape_cast %80 : vector<1x256xf32> to vector<1x1x256xf32>
    %82 = vector.broadcast %81 : vector<1x1x256xf32> to vector<4x4x256xf32>
    %83 = arith.addf %79, %82 : vector<4x4x256xf32>
    %cst_97 = arith.constant 0.000000e+00 : f32
    %84 = vector.broadcast %cst_97 : f32 to vector<4x4x256xf32>
    %85 = arith.maximumf %83, %84 : vector<4x4x256xf32>
    %86 = arith.truncf %85 : vector<4x4x256xf32> to vector<4x4x256xbf16>
    %c0_98 = arith.constant 0 : index
    %c0_99 = arith.constant 0 : index
    %c0_100 = arith.constant 0 : index
    %c0_101 = arith.constant 0 : index
    %87 = vector.load %arg5[%c0_98, %c0_99, %c0_100, %c0_101] : memref<1x4x4x256xbf16, #tpu.memory_space<vmem>>, vector<1x4x4x256xbf16>
    %88 = vector.shape_cast %87 : vector<1x4x4x256xbf16> to vector<4x4x256xbf16>
    %89 = vector.shape_cast %86 : vector<4x4x256xbf16> to vector<1x4x4x256xbf16>
    tpu.vector_store %arg5[%c0_98, %c0_99, %c0_100, %c0_101], %89 {strides = array<i32>} : memref<1x4x4x256xbf16, #tpu.memory_space<vmem>>, vector<1x4x4x256xbf16>,
    return
  }
  func.func @transform_0(%arg0: i32, %arg1: i32) -> (i32, i32, i32, i32, i32) {
    %c0_i32 = arith.constant 0 : i32
    %c0_i32_0 = arith.constant 0 : i32
    %c0_i32_1 = arith.constant 0 : i32
    %c0_i32_2 = arith.constant 0 : i32
    return %arg0, %arg1, %c0_i32, %c0_i32_0, %c0_i32_1 : i32, i32, i32, i32, i32
  }
  func.func @transform_1(%arg0: i32, %arg1: i32) -> (i32, i32, i32) {
    %c0_i32 = arith.constant 0 : i32
    %c0_i32_0 = arith.constant 0 : i32
    %c0_i32_1 = arith.constant 0 : i32
    %c0_i32_2 = arith.constant 0 : i32
    return %c0_i32, %c0_i32_0, %c0_i32_1 : i32, i32, i32
  }
  func.func @transform_2(%arg0: i32, %arg1: i32) -> (i32, i32) {
    %c0_i32 = arith.constant 0 : i32
    %c0_i32_0 = arith.constant 0 : i32
    %c0_i32_1 = arith.constant 0 : i32
    return %c0_i32, %c0_i32_0 : i32, i32
  }
  func.func @transform_3(%arg0: i32, %arg1: i32) -> (i32, i32, i32, i32) {
    %c0_i32 = arith.constant 0 : i32
    %c0_i32_0 = arith.constant 0 : i32
    %c0_i32_1 = arith.constant 0 : i32
    return %arg0, %arg1, %c0_i32, %c0_i32_0 : i32, i32, i32, i32
  }
}

module attributes {stable_mosaic.version = 11 : i64} {
  func.func @_mm_kernel(%arg0: i32, %arg1: memref<32x256xbf16, #tpu.memory_space<vmem>>, %arg2: memref<256x128xbf16, #tpu.memory_space<vmem>>, %arg3: memref<1x128xf32, #tpu.memory_space<vmem>>, %arg4: memref<32x128xf32, #tpu.memory_space<vmem>>) attributes {dimension_semantics = [#tpu.dimension_semantics<parallel>], iteration_bounds = array<i64: 1>, scalar_prefetch = 0 : i64, scratch_operands = 0 : i64, tpu.core_type = #tpu.core_type<tc>, window_params = [{transform_indices = @transform_0, window_bounds = array<i64: 32, 256>}, {pipeline_mode = #tpu.pipeline_mode<synchronous>, transform_indices = @transform_1, window_bounds = array<i64: 256, 128>}, {pipeline_mode = #tpu.pipeline_mode<synchronous>, transform_indices = @transform_2, window_bounds = array<i64: 1, 128>}, {transform_indices = @transform_3, window_bounds = array<i64: 32, 128>}]} {
    %c0 = arith.constant 0 : index
    %c0_0 = arith.constant 0 : index
    %0 = vector.load %arg1[%c0, %c0_0] : memref<32x256xbf16, #tpu.memory_space<vmem>>, vector<32x256xbf16>
    %c0_1 = arith.constant 0 : index
    %c0_2 = arith.constant 0 : index
    %1 = vector.load %arg2[%c0_1, %c0_2] : memref<256x128xbf16, #tpu.memory_space<vmem>>, vector<256x128xbf16>
    %cst = arith.constant dense<0.000000e+00> : vector<32x128xf32>
    %2 = tpu.matmul %0, %1, %cst {dimension_numbers = #tpu.dot_dimension_numbers<[1], [0], [0], [1], [0, 0, 1, 1], [], []>} : vector<32x256xbf16>, vector<256x128xbf16>, vector<32x128xf32> -> vector<32x128xf32>
    %c0_3 = arith.constant 0 : index
    %c0_4 = arith.constant 0 : index
    %3 = vector.load %arg3[%c0_3, %c0_4] : memref<1x128xf32, #tpu.memory_space<vmem>>, vector<1x128xf32>
    %4 = vector.broadcast %3 : vector<1x128xf32> to vector<32x128xf32>
    %5 = arith.addf %2, %4 : vector<32x128xf32>
    %c0_5 = arith.constant 0 : index
    %c0_6 = arith.constant 0 : index
    %6 = vector.load %arg4[%c0_5, %c0_6] : memref<32x128xf32, #tpu.memory_space<vmem>>, vector<32x128xf32>
    tpu.vector_store %arg4[%c0_5, %c0_6], %5 {strides = array<i32>} : memref<32x128xf32, #tpu.memory_space<vmem>>, vector<32x128xf32>,
    return
  }
  func.func @transform_0(%arg0: i32) -> (i32, i32) {
    %c0_i32 = arith.constant 0 : i32
    %c0_i32_0 = arith.constant 0 : i32
    return %arg0, %c0_i32 : i32, i32
  }
  func.func @transform_1(%arg0: i32) -> (i32, i32) {
    %c0_i32 = arith.constant 0 : i32
    %c0_i32_0 = arith.constant 0 : i32
    %c0_i32_1 = arith.constant 0 : i32
    return %c0_i32, %c0_i32_0 : i32, i32
  }
  func.func @transform_2(%arg0: i32) -> (i32, i32) {
    %c0_i32 = arith.constant 0 : i32
    %c0_i32_0 = arith.constant 0 : i32
    %c0_i32_1 = arith.constant 0 : i32
    return %c0_i32, %c0_i32_0 : i32, i32
  }
  func.func @transform_3(%arg0: i32) -> (i32, i32) {
    %c0_i32 = arith.constant 0 : i32
    %c0_i32_0 = arith.constant 0 : i32
    return %arg0, %c0_i32 : i32, i32
  }
}

</mosaic_0001>

<bundles_post_ra>
// kernel: deepv3plus_forward.7
= control target key start
LH: loop header
LB: loop body
LE: loop exit
PB: predicated region body
PF: predicated region fallthrough
CT: control target
= control target key end

     0   :  { %v135_v0 = vmov 0.0   ;;  %vm136_vm0 = vmmov 0   ;;  %vm55_vm1 = vcmask 523264   ;;  %s178_s1 = inlined_call_operand.vmem [shape: bf16[64,128], index: 1, kind: input, shape index: {}]   ;;  %s179_s0 = inlined_call_operand.vmem [shape: bf16[8,64], index: 0, kind: input, shape index: {}]   ;;  %s180_s2 = inlined_call_operand.vmem [shape: f32[1,128], index: 2, kind: input, shape index: {}]   ;;  %s181_s3 = inlined_call_operand.vmem [shape: bf16[8,128], index: 3, kind: output, shape index: {}]  }
   0x1   :  { %117 = vmatprep.subr.bf16.mxu0 %v135_v0  ;;  %v131_v1 = vld [vmem:[%s178_s1] sm:$0xff]   ;;  %125 = vmatprep.mubr.msk.bf16.mxu0 %vm136_vm0, %v135_v0  ;;  %v132_v2 = vld [vmem:[%s178_s1 + $0x8] sm:$0xff]   ;;  %v133_v3 = vld [vmem:[%s178_s1 + $0x10] sm:$0xff]  }
   0x2   :  { %118 = vmatpush3.bf16.msra.mxu0 %v131_v1  ;;  %v134_v4 = vld [vmem:[%s178_s1 + $0x18] sm:$0xff]   ;;  %v15_v5 = vld [vmem:[%s179_s0] sm:$0xf] }
   0x3   :  { %119 = vmatprep.subr.bf16.mxu0 %v135_v0  ;;  %v106_v6 = vld [vmem:[%s180_s2] ss:$0 sm:$0xff] }
   0x6   :  { %120 = vmatpush3.bf16.msra.mxu0 %v132_v2 }
   0x7   :  { %121 = vmatprep.subr.bf16.mxu0 %v135_v0 }
   0xa   :  { %122 = vmatpush3.bf16.msra.mxu0 %v133_v3 }
   0xb   :  { %123 = vmatprep.subr.bf16.mxu0 %v135_v0 }
   0xe   :  { %124 = vmatpush3.bf16.msra.mxu0 %v134_v4 }
  0x11   :  { %126 = vmatmul.mubr.msk.bf16.vlgmr.msra.gmra.mrb[0].mxu0 %vm55_vm1, %v15_v5 }
  0xe4   :  { %v93_v7 = vpop.f32.mrb[0].mxu0 }
  0xe5   :  { %v94_v8 = vadd.f32 %v106_v6, %v93_v7  ;;  %v127_v9 = vpop.f32.mrb[1].mxu0 }
  0xe6   :  { %v96_v10 = vpop.f32.mrb[2].mxu0 }
  0xe7   :  { %v99_v11 = vmax.f32 %v94_v8, 0.0  ;;  %v128_v12 = vpop.f32.mrb[3].mxu0 }
  0xe9   :  { %v100_v13 = vpack.c.bf16 %v99_v11, %v99_v11 }
  0xeb   :  { %101 = vst [vmem:[%s181_s3] sm:$0xf] %v100_v13 }

// kernel: deepv3plus_forward.8
= control target key start
LH: loop header
LB: loop body
LE: loop exit
PB: predicated region body
PF: predicated region fallthrough
CT: control target
= control target key end

     0   :  { %s1484_s12 = smov 0   ;;  %s1486_s13 = smov 0   ;;  %s1700_s0 = inlined_call_operand.vmem [shape: bf16[2,1,4,8,64], index: 0, kind: input, shape index: {}]   ;;  %s1701_s1 = inlined_call_operand.vmem [shape: bf16[9,64,128], index: 1, kind: input, shape index: {}]   ;;  %s1702_s2 = inlined_call_operand.vmem [shape: f32[1,128], index: 2, kind: input, shape index: {}]   ;;  %s1703_s3 = inlined_call_operand.vmem [shape: bf16[2,2,2,128], index: 3, kind: output, shape index: {}]  }
   0x1   :  { %s1488_s14 = smov 0  }
   0x2 LB: > { %s25_s15 = sadd.s32 1, %s1456_s13  ;;  %p1096_p0 = scmp.ge.s32.totalorder %s1460_s14, 1  ;;  %s1460_s14 = sphi %s1488_s14, %s13_s14   ;;  %s1456_s13 = sphi %s1486_s13, %s1705_s13   ;;  %s1452_s12 = sphi %s1484_s12, %s1704_s12  }
   0x3   : > { %p27_p1 = scmp.ge.s32.totalorder %s25_s15, 2  ;;  %p157_p2 = scmp.lt.s32.totalorder %s1460_s14, 3 }
   0x5   : > { %s1707_s15 = smov (%p27_p1, %s25_s15), 0  ;;  %p158_p3 = pnand %p1096_p0, %p157_p2 }
   0x6   : > { %v1399_v0 = vld [vmem:[%s1701_s1] sm:$0xff] (!%p158_p3)   ;;  %v1462_v1 = vmov (!%p158_p3), 0.0   ;;  %v1401_v3 = vld [vmem:[%s1701_s1 + $0x8] sm:$0xff] (!%p158_p3)   ;;  %vm1463_vm0 = vmmov (!%p158_p3), 0   ;;  %p188_p4 = scmp.lt.s32.totalorder (!%p158_p3), %s1452_s12, 1  ;;  %v1403_v5 = vld [vmem:[%s1701_s1 + $0x10] sm:$0xff] (!%p158_p3)  }
   0x7   : > { %161 = sbr.rel (%p158_p3) target bundleno = 332 (0x14c), region = 32  ;;  %1265 = vmatprep.subr.bf16.mxu0 (!%p158_p3), %v1462_v1  ;;  %1277 = vmatprep.subr.bf16.mxu1 (!%p158_p3), %v1462_v1  ;;  %v1400_v2 = vld [vmem:[%s1701_s1 + $0x20] sm:$0xff] (!%p158_p3)   ;;  %v1402_v4 = vld [vmem:[%s1701_s1 + $0x28] sm:$0xff] (!%p158_p3)   ;;  %v1404_v6 = vld [vmem:[%s1701_s1 + $0x30] sm:$0xff] (!%p158_p3)   ;;  %vm246_vm1 = vcmask (!%p158_p3), 523264  }
   0x8   : > { %1266 = vmatpush3.bf16.msra.mxu0 (!%p158_p3), %v1399_v0  ;;  %1273 = vmatprep.mubr.msk.bf16.mxu0 (!%p158_p3), %vm1463_vm0, %v1462_v1  ;;  %v1405_v7 = vld [vmem:[%s1701_s1 + $0x18] sm:$0xff] (!%p158_p3)   ;;  %v1408_v10 = vld [vmem:[%s1701_s1 + $0x40] sm:$0xff] (!%p158_p3)   ;;  %v1409_v12 = vld [vmem:[%s1701_s1 + $0x48] sm:$0xff] (!%p158_p3)  }
   0x9   : > { %1267 = vmatprep.subr.bf16.mxu0 (!%p158_p3), %v1462_v1  ;;  %1278 = vmatpush3.bf16.msra.mxu1 (!%p158_p3), %v1400_v2  ;;  %v1407_v8 = vld [vmem:[%s1701_s1 + $0x38] sm:$0xff] (!%p158_p3)   ;;  %v1411_v11 = vld [vmem:[%s1701_s1 + $0x60] sm:$0xff] (!%p158_p3)   ;;  %v1413_v13 = vld [vmem:[%s1701_s1 + $0x68] sm:$0xff] (!%p158_p3)  }
   0xa   : > { %1279 = vmatprep.subr.bf16.mxu1 (!%p158_p3), %v1462_v1  ;;  %1285 = vmatprep.mubr.msk.bf16.mxu1 (!%p158_p3), %vm1463_vm0, %v1462_v1  ;;  %v1410_v14 = vld [vmem:[%s1701_s1 + $0x50] sm:$0xff] (!%p158_p3)   ;;  %v1412_v16 = vld [vmem:[%s1701_s1 + $0x58] sm:$0xff] (!%p158_p3)   ;;  %v1415_v18 = vld [vmem:[%s1701_s1 + $0x80] sm:$0xff] (!%p158_p3)  }
   0xb   : > { %v1414_v15 = vld [vmem:[%s1701_s1 + $0x70] sm:$0xff] (!%p158_p3)   ;;  %v1416_v17 = vld [vmem:[%s1701_s1 + $0x78] sm:$0xff] (!%p158_p3)   ;;  %v1420_v20 = vld [vmem:[%s1701_s1 + $0xa0] sm:$0xff] (!%p158_p3)  }
   0xc   : > { %1268 = vmatpush3.bf16.msra.mxu0 (!%p158_p3), %v1401_v3  ;;  %v1417_v21 = vld [vmem:[%s1701_s1 + $0x88] sm:$0xff] (!%p158_p3)   ;;  %v1419_v23 = vld [vmem:[%s1701_s1 + $0x90] sm:$0xff] (!%p158_p3)   ;;  %v1421_v25 = vld [vmem:[%s1701_s1 + $0x98] sm:$0xff] (!%p158_p3)  }
   0xd   : > { %1269 = vmatprep.subr.bf16.mxu0 (!%p158_p3), %v1462_v1  ;;  %1280 = vmatpush3.bf16.msra.mxu1 (!%p158_p3), %v1402_v4  ;;  %v1422_v22 = vld [vmem:[%s1701_s1 + $0xa8] sm:$0xff] (!%p158_p3)   ;;  %v1423_v24 = vld [vmem:[%s1701_s1 + $0xb0] sm:$0xff] (!%p158_p3)   ;;  %v1424_v26 = vld [vmem:[%s1701_s1 + $0xb8] sm:$0xff] (!%p158_p3)  }
   0xe   : > { %s1709_s12 = smov (!%p188_p4, %s1452_s12), 1  ;;  %1281 = vmatprep.subr.bf16.mxu1 %v1462_v1  ;;  %v1425_v27 = vld [vmem:[%s1701_s1 + $0xc0] sm:$0xff]   ;;  %v1426_v29 = vld [vmem:[%s1701_s1 + $0xc8] sm:$0xff]   ;;  %v1427_v31 = vld [vmem:[%s1701_s1 + $0xd0] sm:$0xff]  }
   0xf   : > { %s1219_s26 = sshll.u32 %s1709_s12, 4  ;;  %v1428_v28 = vld [vmem:[%s1701_s1 + $0xe0] sm:$0xff]   ;;  %v1430_v30 = vld [vmem:[%s1701_s1 + $0xe8] sm:$0xff]   ;;  %v1432_v32 = vld [vmem:[%s1701_s1 + $0xf0] sm:$0xff]  }
  0x10   : > { %s1535_s4 = scalar_lea.vmem %s1700_s0, %s1219_s26  ;;  %1270 = vmatpush3.bf16.msra.mxu0 %v1403_v5  ;;  %v1429_v33 = vld [vmem:[%s1701_s1 + $0xd8] sm:$0xff]   ;;  %v1433_v36 = vld [vmem:[%s1701_s1 + $0x100] sm:$0xff]   ;;  %v1435_v37 = vld [vmem:[%s1701_s1 + $0x108] sm:$0xff]   ;;  %s1099_s26 = sshll.u32 %s1709_s12, 1 }
  0x11   : > { %1271 = vmatprep.subr.bf16.mxu0 %v1462_v1  ;;  %1282 = vmatpush3.bf16.msra.mxu1 %v1404_v6  ;;  %v1406_v9 = vld [vmem:[%s1535_s4] sm:$0xff]   ;;  %v1434_v34 = vld [vmem:[%s1701_s1 + $0xf8] sm:$0xff]   ;;  %v1431_v35 = vld [vmem:[%s1535_s4 + $0x8] sm:$0xff]   ;;  %s204_s29 = scalar_lea.vmem %s1703_s3, %s1099_s26 }
  0x12   : > { %1283 = vmatprep.subr.bf16.mxu1 %v1462_v1  ;;  %v1418_v19 = vld [vmem:[%s1535_s4 + $0x4] sm:$0xff]   ;;  %v1436_v38 = vld [vmem:[%s1701_s1 + $0x110] sm:$0xff]   ;;  %v1437_v39 = vld [vmem:[%s1701_s1 + $0x118] sm:$0xff]  }
  0x14   : > { %1272 = vmatpush3.bf16.msra.mxu0 %v1405_v7 }
  0x15   : > { %1284 = vmatpush3.bf16.msra.mxu1 %v1407_v8  ;;  %1289 = vmatprep.subr.bf16.mxu0 %v1462_v1 }
  0x16   : > { %1301 = vmatprep.subr.bf16.mxu1 %v1462_v1 }
  0x17   : > { %1274 = vmatmul.mubr.msk.bf16.vlgmr.msra.gmra.mrb[0].mxu0 %vm246_vm1, %v1406_v9 }
  0x18   : > { %1290 = vmatpush3.bf16.msra.mxu0 %v1408_v10  ;;  %1286 = vmatmul.mubr.msk.bf16.vlgmr.msra.gmra.mrb[0].mxu1 %vm246_vm1, %v1406_v9 }
  0x19   : > { %1291 = vmatprep.subr.bf16.mxu0 %v1462_v1  ;;  %1302 = vmatpush3.bf16.msra.mxu1 %v1411_v11 }
  0x1a   : > { %1303 = vmatprep.subr.bf16.mxu1 %v1462_v1  ;;  %1297 = vmatprep.mubr.msk.bf16.mxu0 %vm1463_vm0, %v1462_v1 }
  0x1b   : > { %1309 = vmatprep.mubr.msk.bf16.mxu1 %vm1463_vm0, %v1462_v1 }
  0x1c   : > { %1292 = vmatpush3.bf16.msra.mxu0 %v1409_v12 }
  0x1d   : > { %1293 = vmatprep.subr.bf16.mxu0 %v1462_v1  ;;  %1304 = vmatpush3.bf16.msra.mxu1 %v1413_v13 }
  0x1e   : > { %1305 = vmatprep.subr.bf16.mxu1 %v1462_v1 }
  0x20   : > { %1294 = vmatpush3.bf16.msra.mxu0 %v1410_v14 }
  0x21   : > { %1295 = vmatprep.subr.bf16.mxu0 %v1462_v1  ;;  %1306 = vmatpush3.bf16.msra.mxu1 %v1414_v15 }
  0x22   : > { %1307 = vmatprep.subr.bf16.mxu1 %v1462_v1 }
  0x24   : > { %1296 = vmatpush3.bf16.msra.mxu0 %v1412_v16 }
  0x25   : > { %1313 = vmatprep.subr.bf16.mxu0 %v1462_v1  ;;  %1308 = vmatpush3.bf16.msra.mxu1 %v1416_v17 }
  0x26   : > { %1325 = vmatprep.subr.bf16.mxu1 %v1462_v1 }
  0x27   : > { %1298 = vmatmul.mubr.msk.bf16.vlgmr.msra.gmra.mrb[4].mxu0 %vm246_vm1, %v1406_v9 }
  0x28   : > { %1314 = vmatpush3.bf16.msra.mxu0 %v1415_v18  ;;  %1310 = vmatmul.mubr.msk.bf16.vlgmr.msra.gmra.mrb[4].mxu1 %vm246_vm1, %v1418_v19 }
  0x29   : > { %1315 = vmatprep.subr.bf16.mxu0 %v1462_v1  ;;  %1326 = vmatpush3.bf16.msra.mxu1 %v1420_v20 }
  0x2a   : > { %1327 = vmatprep.subr.bf16.mxu1 %v1462_v1  ;;  %1321 = vmatprep.mubr.msk.bf16.mxu0 %vm1463_vm0, %v1462_v1 }
  0x2b   : > { %1333 = vmatprep.mubr.msk.bf16.mxu1 %vm1463_vm0, %v1462_v1 }
  0x2c   : > { %1316 = vmatpush3.bf16.msra.mxu0 %v1417_v21 }
  0x2d   : > { %1317 = vmatprep.subr.bf16.mxu0 %v1462_v1  ;;  %1328 = vmatpush3.bf16.msra.mxu1 %v1422_v22 }
  0x2e   : > { %1329 = vmatprep.subr.bf16.mxu1 %v1462_v1 }
  0x30   : > { %1318 = vmatpush3.bf16.msra.mxu0 %v1419_v23 }
  0x31   : > { %1319 = vmatprep.subr.bf16.mxu0 %v1462_v1  ;;  %1330 = vmatpush3.bf16.msra.mxu1 %v1423_v24 }
  0x32   : > { %1331 = vmatprep.subr.bf16.mxu1 %v1462_v1 }
  0x34   : > { %1320 = vmatpush3.bf16.msra.mxu0 %v1421_v25 }
  0x35   : > { %1337 = vmatprep.subr.bf16.mxu0 %v1462_v1  ;;  %1332 = vmatpush3.bf16.msra.mxu1 %v1424_v26 }
  0x36   : > { %1349 = vmatprep.subr.bf16.mxu1 %v1462_v1 }
  0x37   : > { %1322 = vmatmul.mubr.msk.bf16.vlgmr.msra.gmra.mrb[8].mxu0 %vm246_vm1, %v1418_v19 }
  0x38   : > { %1338 = vmatpush3.bf16.msra.mxu0 %v1425_v27  ;;  %1334 = vmatmul.mubr.msk.bf16.vlgmr.msra.gmra.mrb[8].mxu1 %vm246_vm1, %v1418_v19 }
  0x39   : > { %1339 = vmatprep.subr.bf16.mxu0 %v1462_v1  ;;  %1350 = vmatpush3.bf16.msra.mxu1 %v1428_v28 }
  0x3a   : > { %1351 = vmatprep.subr.bf16.mxu1 %v1462_v1  ;;  %1345 = vmatprep.mubr.msk.bf16.mxu0 %vm1463_vm0, %v1462_v1 }
  0x3b   : > { %1357 = vmatprep.mubr.msk.bf16.mxu1 %vm1463_vm0, %v1462_v1 }
  0x3c   : > { %1340 = vmatpush3.bf16.msra.mxu0 %v1426_v29 }
  0x3d   : > { %1341 = vmatprep.subr.bf16.mxu0 %v1462_v1  ;;  %1352 = vmatpush3.bf16.msra.mxu1 %v1430_v30 }
  0x3e   : > { %1353 = vmatprep.subr.bf16.mxu1 %v1462_v1 }
  0x40   : > { %1342 = vmatpush3.bf16.msra.mxu0 %v1427_v31 }
  0x41   : > { %1343 = vmatprep.subr.bf16.mxu0 %v1462_v1  ;;  %1354 = vmatpush3.bf16.msra.mxu1 %v1432_v32 }
  0x42   : > { %1355 = vmatprep.subr.bf16.mxu1 %v1462_v1 }
  0x44   : > { %1344 = vmatpush3.bf16.msra.mxu0 %v1429_v33 }
  0x45   : > { %1361 = vmatprep.subr.bf16.mxu0 %v1462_v1  ;;  %1356 = vmatpush3.bf16.msra.mxu1 %v1434_v34 }
  0x47   : > { %1346 = vmatmul.mubr.msk.bf16.vlgmr.msra.gmra.mrb[12].mxu0 %vm246_vm1, %v1431_v35 }
  0x48   : > { %1362 = vmatpush3.bf16.msra.mxu0 %v1433_v36  ;;  %1358 = vmatmul.mubr.msk.bf16.vlgmr.msra.gmra.mrb[12].mxu1 %vm246_vm1, %v1431_v35 }
  0x49   : > { %1363 = vmatprep.subr.bf16.mxu0 %v1462_v1  ;;  %1369 = vmatprep.mubr.msk.bf16.mxu0 %vm1463_vm0, %v1462_v1 }
  0x4c   : > { %1364 = vmatpush3.bf16.msra.mxu0 %v1435_v37 }
  0x4d   : > { %1365 = vmatprep.subr.bf16.mxu0 %v1462_v1 }
  0x50   : > { %1366 = vmatpush3.bf16.msra.mxu0 %v1436_v38 }
  0x51   : > { %1367 = vmatprep.subr.bf16.mxu0 %v1462_v1 }
  0x54   : > { %1368 = vmatpush3.bf16.msra.mxu0 %v1437_v39 }
  0x57   : > { %1370 = vmatmul.mubr.msk.bf16.vlgmr.msra.gmra.mrb[16].mxu0 %vm246_vm1, %v1431_v35 }
  0xea   : > { %v284_v40 = vpop.f32.mrb[0].mxu0 }
  0xeb   : > { %291 = vst [vmem:[#allocation2] sm:$0x3] %v284_v40  ;;  %v1275_v41 = vpop.f32.mrb[1].mxu0  ;;  %v360_v42 = vpop.f32.mrb[0].mxu1 }
  0xec   : > { %v287_v43 = vpop.f32.mrb[2].mxu0  ;;  %v1287_v44 = vpop.f32.mrb[1].mxu1  ;;  %v371_v48 = vrot.slane %v360_v42, 1 }
  0xed   : > { %292 = vst [vmem:[#allocation2 + $0x2] sm:$0x3] %v287_v43  ;;  %v1276_v45 = vpop.f32.mrb[3].mxu0  ;;  %v363_v46 = vpop.f32.mrb[2].mxu1 }
  0xee   : > { %v1288_v47 = vpop.f32.mrb[3].mxu1  ;;  %v372_v51 = vrot.slane %v363_v46, 1 }
  0xf2   : > { %v367_v49 = vld [vmem:[#allocation2] sm:$0x3] }
  0xf3   : > { %v375_v50 = vadd.f32 %v371_v48, %v367_v49 }
  0xf4   : > { %v368_v52 = vld [vmem:[#allocation2 + $0x2] sm:$0x3] }
  0xf5   : > { %377 = vst [vmem:[#allocation2] sm:$0x3] %v375_v50  ;;  %v376_v53 = vadd.f32 %v372_v51, %v368_v52 }
  0xf7   : > { %378 = vst [vmem:[#allocation2 + $0x2] sm:$0x3] %v376_v53 }
  0xfa   : > { %v446_v54 = vpop.f32.mrb[4].mxu0 }
  0xfb   : > { %v457_v55 = vrot.slane %v446_v54, 2  ;;  %v1299_v56 = vpop.f32.mrb[5].mxu0  ;;  %v543_v57 = vpop.f32.mrb[4].mxu1 }
  0xfc   : > { %v453_v58 = vld [vmem:[#allocation2] sm:$0x3]  ;;  %v449_v59 = vpop.f32.mrb[6].mxu0  ;;  %v1311_v60 = vpop.f32.mrb[5].mxu1 }
  0xfd   : > { %v461_v61 = vadd.f32 %v457_v55, %v453_v58  ;;  %v458_v62 = vrot.slane %v449_v59, 2  ;;  %v1300_v63 = vpop.f32.mrb[7].mxu0  ;;  %v546_v0 = vpop.f32.mrb[6].mxu1  ;;  %v1216_v56 = vld [vmem:[%s1702_s2] ss:$0 sm:$0xff] }
  0xfe   : > { %v454_v1 = vld [vmem:[#allocation2 + $0x2] sm:$0x3]  ;;  %v1312_v2 = vpop.f32.mrb[7].mxu1 }
  0xff   : > { %463 = vst [vmem:[#allocation2] sm:$0x3] %v461_v61  ;;  %v462_v3 = vadd.f32 %v458_v62, %v454_v1 }
 0x101   : > { %464 = vst [vmem:[#allocation2 + $0x2] sm:$0x3] %v462_v3 }
 0x106   : > { %v550_v4 = vld [vmem:[#allocation2] sm:$0x3] }
 0x107   : > { %v552_v5 = vadd.f32 %v550_v4, %v543_v57 }
 0x108   : > { %v551_v6 = vld [vmem:[#allocation2 + $0x2] sm:$0x3] }
 0x109   : > { %554 = vst [vmem:[#allocation2] sm:$0x3] %v552_v5  ;;  %v553_v7 = vadd.f32 %v551_v6, %v546_v0 }
 0x10a   : > { %v623_v8 = vpop.f32.mrb[8].mxu0 }
 0x10b   : > { %555 = vst [vmem:[#allocation2 + $0x2] sm:$0x3] %v553_v7  ;;  %v1323_v9 = vpop.f32.mrb[9].mxu0  ;;  %v709_v10 = vpop.f32.mrb[8].mxu1  ;;  %v634_v13 = vrot.slane %v623_v8, 1 }
 0x10c   : > { %v626_v11 = vpop.f32.mrb[10].mxu0  ;;  %v1335_v12 = vpop.f32.mrb[9].mxu1  ;;  %v720_v22 = vrot.slane %v709_v10, 2 }
 0x10d   : > { %v1324_v14 = vpop.f32.mrb[11].mxu0  ;;  %v712_v15 = vpop.f32.mrb[10].mxu1  ;;  %v635_v19 = vrot.slane %v626_v11, 1 }
 0x10e   : > { %v1336_v16 = vpop.f32.mrb[11].mxu1  ;;  %v721_v26 = vrot.slane %v712_v15, 2 }
 0x110   : > { %v630_v17 = vld [vmem:[#allocation2] sm:$0x3] }
 0x111   : > { %v638_v18 = vadd.f32 %v634_v13, %v630_v17 }
 0x112   : > { %v631_v20 = vld [vmem:[#allocation2 + $0x2] sm:$0x3] }
 0x113   : > { %640 = vst [vmem:[#allocation2] sm:$0x3] %v638_v18  ;;  %v639_v21 = vadd.f32 %v635_v19, %v631_v20 }
 0x115   : > { %641 = vst [vmem:[#allocation2 + $0x2] sm:$0x3] %v639_v21 }
 0x11a   : > { %v716_v23 = vld [vmem:[#allocation2] sm:$0x3]  ;;  %v806_v24 = vpop.f32.mrb[12].mxu0 }
 0x11b   : > { %v724_v25 = vadd.f32 %v720_v22, %v716_v23  ;;  %v1347_v27 = vpop.f32.mrb[13].mxu0  ;;  %v886_v28 = vpop.f32.mrb[12].mxu1 }
 0x11c   : > { %v717_v29 = vld [vmem:[#allocation2 + $0x2] sm:$0x3]  ;;  %v809_v30 = vpop.f32.mrb[14].mxu0  ;;  %v1359_v31 = vpop.f32.mrb[13].mxu1  ;;  %v897_v41 = vrot.slane %v886_v28, 1 }
 0x11d   : > { %726 = vst [vmem:[#allocation2] sm:$0x3] %v724_v25  ;;  %v725_v32 = vadd.f32 %v721_v26, %v717_v29  ;;  %v1348_v33 = vpop.f32.mrb[15].mxu0  ;;  %v889_v34 = vpop.f32.mrb[14].mxu1 }
 0x11e   : > { %v1360_v35 = vpop.f32.mrb[15].mxu1  ;;  %v898_v47 = vrot.slane %v889_v34, 1 }
 0x11f   : > { %727 = vst [vmem:[#allocation2 + $0x2] sm:$0x3] %v725_v32 }
 0x124   : > { %v813_v36 = vld [vmem:[#allocation2] sm:$0x3] }
 0x125   : > { %v815_v37 = vadd.f32 %v813_v36, %v806_v24 }
 0x126   : > { %v814_v38 = vld [vmem:[#allocation2 + $0x2] sm:$0x3] }
 0x127   : > { %817 = vst [vmem:[#allocation2] sm:$0x3] %v815_v37  ;;  %v816_v39 = vadd.f32 %v814_v38, %v809_v30 }
 0x129   : > { %818 = vst [vmem:[#allocation2 + $0x2] sm:$0x3] %v816_v39 }
 0x12a   : > { %v972_v40 = vpop.f32.mrb[16].mxu0 }
 0x12b   : > { %v1371_v42 = vpop.f32.mrb[17].mxu0  ;;  %v983_v50 = vrot.slane %v972_v40, 2 }
 0x12c   : > { %v975_v43 = vpop.f32.mrb[18].mxu0 }
 0x12d   : > { %v1372_v44 = vpop.f32.mrb[19].mxu0  ;;  %v984_v53 = vrot.slane %v975_v43, 2 }
 0x12e   : > { %v893_v45 = vld [vmem:[#allocation2] sm:$0x3] }
 0x12f   : > { %v901_v46 = vadd.f32 %v897_v41, %v893_v45 }
 0x130   : > { %v894_v48 = vld [vmem:[#allocation2 + $0x2] sm:$0x3] }
 0x131   : > { %903 = vst [vmem:[#allocation2] sm:$0x3] %v901_v46  ;;  %v902_v49 = vadd.f32 %v898_v47, %v894_v48 }
 0x133   : > { %904 = vst [vmem:[#allocation2 + $0x2] sm:$0x3] %v902_v49 }
 0x138   : > { %v979_v51 = vld [vmem:[#allocation2] sm:$0x3] }
 0x139   : > { %v987_v52 = vadd.f32 %v983_v50, %v979_v51 }
 0x13a   : > { %v980_v54 = vld [vmem:[#allocation2 + $0x2] sm:$0x3] }
 0x13b   : > { %989 = vst [vmem:[#allocation2] sm:$0x3] %v987_v52  ;;  %v988_v55 = vadd.f32 %v984_v53, %v980_v54 }
 0x13d   : > { %990 = vst [vmem:[#allocation2 + $0x2] sm:$0x3] %v988_v55 }
 0x142   : > { %v991_v57 = vld [vmem:[#allocation2] sm:$0x3] }
 0x143   : > { %v1000_v58 = vadd.f32 %v1216_v56, %v991_v57 }
 0x144   : > { %v992_v59 = vld [vmem:[#allocation2 + $0x2] sm:$0x3] }
 0x145   : > { %v1002_v60 = vmax.f32 %v1000_v58, 0.0  ;;  %v1001_v61 = vadd.f32 %v1216_v56, %v992_v59 }
 0x147   : > { %v1004_v62 = vpack.c.bf16 %v1002_v60, %v1002_v60  ;;  %v1003_v63 = vmax.f32 %v1001_v61, 0.0 }
 0x149   : > { %1006 = vst [vmem:[%s204_s29] sm:$0x1] %v1004_v62  ;;  %v1005_v0 = vpack.c.bf16 %v1003_v63, %v1003_v63 }
 0x14b   : > { %1007 = vst [vmem:[%s204_s29 + $0x1] sm:$0x1] %v1005_v0 }
 0x14c PF: > { %s13_s14 = sadd.s32 1, %s1460_s14   ;;  %s1704_s12 = smov %s1456_s13 }
 0x14d   : > { %p10_p5 = scmp.ge.s32.totalorder %s13_s14, 4   ;;  %s1705_s13 = smov %s1707_s15 }
 0x14f   :  { %12 = sbr.rel (!%p10_p5) target bundleno = 2 (0x2), region = 72 }

// kernel: deepv3plus_forward.9
= control target key start
LH: loop header
LB: loop body
LE: loop exit
PB: predicated region body
PF: predicated region fallthrough
CT: control target
= control target key end

     0   :  { %v556_v1 = vmov 0   ;;  %v67_v57 = vlaneseq  ;;  %s733_s1 = inlined_call_operand.vmem [shape: bf16[384,256], index: 1, kind: input, shape index: {}]   ;;  %s734_s0 = inlined_call_operand.vmem [shape: bf16[8,384], index: 0, kind: input, shape index: {}]   ;;  %s735_s2 = inlined_call_operand.vmem [shape: f32[1,256], index: 2, kind: input, shape index: {}]   ;;  %s736_s3 = inlined_call_operand.vmem [shape: bf16[8,256], index: 3, kind: output, shape index: {}]  }
   0x1   :  { %v481_v0 = vld [vmem:[%s733_s1 + $0x4] ss:$8 sps:$4 sm:$0xff]   ;;  %401 = vmatprep.mubr.bf16.mxu0 %v556_v1  ;;  %v483_v2 = vld [vmem:[%s733_s1] ss:$8 sps:$4 sm:$0xff]   ;;  %v484_v3 = vld [vmem:[%s733_s1 + $0x14] ss:$8 sps:$4 sm:$0xff]  }
   0x2   :  { %328 = vmatprep.subr.bf16.mxu1 %v481_v0  ;;  %v486_v4 = vld [vmem:[%s733_s1 + $0x10] ss:$8 sps:$4 sm:$0xff]   ;;  %v487_v5 = vld [vmem:[%s733_s1 + $0x24] ss:$8 sps:$4 sm:$0xff]   ;;  %v489_v6 = vld [vmem:[%s733_s1 + $0x20] ss:$8 sps:$4 sm:$0xff]  }
   0x3   :  { %329 = vmatpush1.bf16.msra.mxu1 %v483_v2  ;;  %v490_v7 = vld [vmem:[%s733_s1 + $0x34] ss:$8 sps:$4 sm:$0xff]   ;;  %v492_v8 = vld [vmem:[%s733_s1 + $0x30] ss:$8 sps:$4 sm:$0xff]   ;;  %v505_v9 = vld [vmem:[%s733_s1 + $0x104] ss:$8 sps:$4 sm:$0xff]  }
   0x4   :  { %330 = vmatprep.subr.bf16.mxu1 %v484_v3  ;;  %v493_v10 = vld [vmem:[%s733_s1 + $0x44] ss:$8 sps:$4 sm:$0xff]   ;;  %v509_v11 = vld [vmem:[%s733_s1 + $0x100] ss:$8 sps:$4 sm:$0xff]   ;;  %369 = vmatprep.subr.bf16.mxu0 %v505_v9  ;;  %v511_v12 = vld [vmem:[%s733_s1 + $0x114] ss:$8 sps:$4 sm:$0xff]  }
   0x5   :  { %370 = vmatpush1.bf16.msra.mxu0 %v509_v11  ;;  %v495_v13 = vld [vmem:[%s733_s1 + $0x40] ss:$8 sps:$4 sm:$0xff]   ;;  %v496_v14 = vld [vmem:[%s733_s1 + $0x54] ss:$8 sps:$4 sm:$0xff]   ;;  %v515_v15 = vld [vmem:[%s733_s1 + $0x110] ss:$8 sps:$4 sm:$0xff]  }
   0x6   :  { %371 = vmatprep.subr.bf16.mxu0 %v511_v12  ;;  %v517_v16 = vld [vmem:[%s733_s1 + $0x124] ss:$8 sps:$4 sm:$0xff]   ;;  %v498_v17 = vld [vmem:[%s733_s1 + $0x50] ss:$8 sps:$4 sm:$0xff]   ;;  %v521_v18 = vld [vmem:[%s733_s1 + $0x120] ss:$8 sps:$4 sm:$0xff]  }
   0x7   :  { %331 = vmatpush1.bf16.msra.mxu1 %v486_v4  ;;  %v523_v19 = vld [vmem:[%s733_s1 + $0x134] ss:$8 sps:$4 sm:$0xff]   ;;  %v499_v20 = vld [vmem:[%s733_s1 + $0x64] ss:$8 sps:$4 sm:$0xff]   ;;  %v527_v21 = vld [vmem:[%s733_s1 + $0x130] ss:$8 sps:$4 sm:$0xff]  }
   0x8   :  { %332 = vmatprep.subr.bf16.mxu1 %v487_v5  ;;  %v501_v22 = vld [vmem:[%s733_s1 + $0x60] ss:$8 sps:$4 sm:$0xff]   ;;  %v529_v23 = vld [vmem:[%s733_s1 + $0x144] ss:$8 sps:$4 sm:$0xff]   ;;  %v502_v24 = vld [vmem:[%s733_s1 + $0x74] ss:$8 sps:$4 sm:$0xff]  }
   0x9   :  { %372 = vmatpush1.bf16.msra.mxu0 %v515_v15  ;;  %v504_v25 = vld [vmem:[%s733_s1 + $0x70] ss:$8 sps:$4 sm:$0xff]   ;;  %v533_v26 = vld [vmem:[%s733_s1 + $0x140] ss:$8 sps:$4 sm:$0xff]   ;;  %v535_v27 = vld [vmem:[%s733_s1 + $0x154] ss:$8 sps:$4 sm:$0xff]  }
   0xa   :  { %373 = vmatprep.subr.bf16.mxu0 %v517_v16  ;;  %v507_v28 = vld [vmem:[%s733_s1 + $0x84] ss:$8 sps:$4 sm:$0xff]   ;;  %v539_v29 = vld [vmem:[%s733_s1 + $0x150] ss:$8 sps:$4 sm:$0xff]   ;;  %v510_v30 = vld [vmem:[%s733_s1 + $0x80] ss:$8 sps:$4 sm:$0xff]  }
   0xb   :  { %333 = vmatpush1.bf16.msra.mxu1 %v489_v6  ;;  %v541_v31 = vld [vmem:[%s733_s1 + $0x164] ss:$8 sps:$4 sm:$0xff]   ;;  %v513_v32 = vld [vmem:[%s733_s1 + $0x94] ss:$8 sps:$4 sm:$0xff]   ;;  %v545_v35 = vld [vmem:[%s733_s1 + $0x160] ss:$8 sps:$4 sm:$0xff]  }
   0xc   :  { %334 = vmatprep.subr.bf16.mxu1 %v490_v7  ;;  %v15_v33 = vld [vmem:[%s734_s0] sm:$0xff]  ;;  %v516_v36 = vld [vmem:[%s733_s1 + $0x90] ss:$8 sps:$4 sm:$0xff]   ;;  %v547_v37 = vld [vmem:[%s733_s1 + $0x174] ss:$8 sps:$4 sm:$0xff]   ;;  %v68_v58 = vshrl.u32 %v67_v57, 7 }
   0xd   :  { %374 = vmatpush1.bf16.msra.mxu0 %v521_v18  ;;  %v424_v34 = vcombine.high %v15_v33, %v15_v33  ;;  %v519_v38 = vld [vmem:[%s733_s1 + $0xa4] ss:$8 sps:$4 sm:$0xff]   ;;  %v551_v39 = vld [vmem:[%s733_s1 + $0x170] ss:$8 sps:$4 sm:$0xff]   ;;  %v522_v40 = vld [vmem:[%s733_s1 + $0xa0] ss:$8 sps:$4 sm:$0xff]   ;;  %v423_v52 = vcombine.low %v15_v33, %v15_v33 }
   0xe   :  { %375 = vmatprep.subr.bf16.mxu0 %v523_v19  ;;  %v525_v41 = vld [vmem:[%s733_s1 + $0xb4] ss:$8 sps:$4 sm:$0xff]   ;;  %v555_v42 = vld [vmem:[%s734_s0 + $0x8] ss:$0 sps:$4 sm:$0xff]   ;;  %v528_v43 = vld [vmem:[%s733_s1 + $0xb0] ss:$8 sps:$4 sm:$0xff]  }
   0xf   :  { %335 = vmatpush1.bf16.msra.mxu1 %v492_v8  ;;  %360 = vmatprep.mubr.bf16.mxu1 %v424_v34  ;;  %v531_v44 = vld [vmem:[%s733_s1 + $0xc4] ss:$8 sps:$4 sm:$0xff]   ;;  %v534_v45 = vld [vmem:[%s733_s1 + $0xc0] ss:$8 sps:$4 sm:$0xff]   ;;  %v537_v46 = vld [vmem:[%s733_s1 + $0xd4] ss:$8 sps:$4 sm:$0xff]  }
  0x10   :  { %336 = vmatprep.subr.bf16.mxu1 %v493_v10  ;;  %v540_v47 = vld [vmem:[%s733_s1 + $0xd0] ss:$8 sps:$4 sm:$0xff]   ;;  %v543_v48 = vld [vmem:[%s733_s1 + $0xe4] ss:$8 sps:$4 sm:$0xff]   ;;  %v546_v49 = vld [vmem:[%s733_s1 + $0xe0] ss:$8 sps:$4 sm:$0xff]  }
  0x11   :  { %376 = vmatpush1.bf16.msra.mxu0 %v527_v21  ;;  %v549_v50 = vld [vmem:[%s733_s1 + $0xf4] ss:$8 sps:$4 sm:$0xff]   ;;  %v552_v51 = vld [vmem:[%s733_s1 + $0xf0] ss:$8 sps:$4 sm:$0xff]   ;;  %v69_v59 = vsub.s32 0, %v68_v58  ;;  %v73_v61 = vsub.s32 1, %v68_v58 }
  0x12   :  { %377 = vmatprep.subr.bf16.mxu0 %v529_v23  ;;  %v65_v60 = vld [vmem:[%s735_s2] sm:$0x3] }
  0x13   :  { %337 = vmatpush1.bf16.msra.mxu1 %v495_v13  ;;  %v70_v62 = vrot.slane %v65_v60, %v69_v59  ;;  %v74_v63 = vrot.slane %v65_v60, %v73_v61 }
  0x14   :  { %338 = vmatprep.subr.bf16.mxu1 %v496_v14 }
  0x15   :  { %378 = vmatpush1.bf16.msra.mxu0 %v533_v26 }
  0x16   :  { %379 = vmatprep.subr.bf16.mxu0 %v535_v27 }
  0x17   :  { %339 = vmatpush1.bf16.msra.mxu1 %v498_v17 }
  0x18   :  { %340 = vmatprep.subr.bf16.mxu1 %v499_v20 }
  0x19   :  { %380 = vmatpush1.bf16.msra.mxu0 %v539_v29 }
  0x1a   :  { %381 = vmatprep.subr.bf16.mxu0 %v541_v31 }
  0x1b   :  { %341 = vmatpush1.bf16.msra.mxu1 %v501_v22 }
  0x1c   :  { %342 = vmatprep.subr.bf16.mxu1 %v502_v24 }
  0x1d   :  { %382 = vmatpush1.bf16.msra.mxu0 %v545_v35 }
  0x1e   :  { %383 = vmatprep.subr.bf16.mxu0 %v547_v37 }
  0x1f   :  { %343 = vmatpush1.bf16.msra.mxu1 %v504_v25 }
  0x20   :  { %344 = vmatprep.subr.bf16.mxu1 %v507_v28 }
  0x21   :  { %384 = vmatpush1.bf16.msra.mxu0 %v551_v39 }
  0x23   :  { %345 = vmatpush1.bf16.msra.mxu1 %v510_v30 }
  0x24   :  { %346 = vmatprep.subr.bf16.mxu1 %v513_v32  ;;  %402 = vmatmul.mubr.bf16.vlgmr.msra.gmra.mrb[0].mxu0 %v555_v42 }
  0x27   :  { %347 = vmatpush1.bf16.msra.mxu1 %v516_v36 }
  0x28   :  { %348 = vmatprep.subr.bf16.mxu1 %v519_v38 }
  0x2b   :  { %349 = vmatpush1.bf16.msra.mxu1 %v522_v40 }
  0x2c   :  { %350 = vmatprep.subr.bf16.mxu1 %v525_v41 }
  0x2f   :  { %351 = vmatpush1.bf16.msra.mxu1 %v528_v43 }
  0x30   :  { %352 = vmatprep.subr.bf16.mxu1 %v531_v44 }
  0x33   :  { %353 = vmatpush1.bf16.msra.mxu1 %v534_v45 }
  0x34   :  { %354 = vmatprep.subr.bf16.mxu1 %v537_v46 }
  0x37   :  { %355 = vmatpush1.bf16.msra.mxu1 %v540_v47 }
  0x38   :  { %356 = vmatprep.subr.bf16.mxu1 %v543_v48 }
  0x3b   :  { %357 = vmatpush1.bf16.msra.mxu1 %v546_v49 }
  0x3c   :  { %358 = vmatprep.subr.bf16.mxu1 %v549_v50 }
  0x3f   :  { %359 = vmatpush1.bf16.msra.mxu1 %v552_v51 }
  0x42   :  { %361 = vmatmul.mubr.bf16.vlgmr.msra.gmra.mrb[0].mxu1 %v423_v52 }
  0xf7   :  { %v403_v53 = vpop.f32.mrb[0].mxu0 }
  0xf8   :  { %v405_v54 = vpop.f32.mrb[1].mxu0 }
  0xf9   :  { %v407_v55 = vpop.f32.mrb[2].mxu0 }
  0xfa   :  { %v408_v56 = vpop.f32.mrb[3].mxu0 }
 0x115   :  { %v362_v0 = vpop.f32.mrb[0].mxu1 }
 0x116   :  { %v363_v1 = vadd.f32 %v362_v0, %v70_v62  ;;  %v364_v2 = vpop.f32.mrb[1].mxu1 }
 0x117   :  { %v365_v3 = vadd.f32 %v364_v2, %v74_v63  ;;  %v366_v4 = vpop.f32.mrb[2].mxu1 }
 0x118   :  { %v404_v5 = vadd.f32 %v403_v53, %v363_v1  ;;  %v367_v6 = vpop.f32.mrb[3].mxu1 }
 0x119   :  { %v406_v7 = vadd.f32 %v405_v54, %v365_v3 }
 0x11b   :  { %v475_v8 = vpack.c.bf16 %v406_v7, %v404_v5 }
 0x11d   :  { %418 = vst [vmem:[%s736_s3] sm:$0xff] %v475_v8 }

// kernel: deepv3plus_forward.10
= control target key start
LH: loop header
LB: loop body
LE: loop exit
PB: predicated region body
PF: predicated region fallthrough
CT: control target
= control target key end

     0   :  { %vm52_vm0 = vcmask 261120   ;;  %s215_s1 = inlined_call_operand.vmem [shape: bf16[32,128], index: 1, kind: input, shape index: {}]   ;;  %s216_s0 = inlined_call_operand.vmem [shape: bf16[32,32], index: 0, kind: input, shape index: {}]   ;;  %s217_s2 = inlined_call_operand.vmem [shape: f32[1,128], index: 2, kind: input, shape index: {}]   ;;  %s218_s3 = inlined_call_operand.vmem [shape: bf16[32,128], index: 3, kind: output, shape index: {}]  }
   0x1   :  { %v170_v0 = vld [vmem:[%s215_s1] sm:$0xff]   ;;  %v171_v1 = vld [vmem:[%s215_s1 + $0x8] sm:$0xff]  }
   0x2   :  { %162 = vmatprep.subr.bf16.mxu0 %v170_v0  ;;  %v172_v2 = vld [vmem:[%s216_s0] sm:$0xff]   ;;  %v173_v3 = vld [vmem:[%s216_s0 + $0x8] sm:$0xff]  }
   0x3   :  { %163 = vmatpush3.bf16.msra.mxu0 %v170_v0  ;;  %166 = vmatprep.mubr.msk.bf16.mxu0 %vm52_vm0, %v172_v2  ;;  %v132_v5 = vld [vmem:[%s217_s2] ss:$0 sm:$0xff] }
   0x4   :  { %164 = vmatprep.subr.bf16.mxu0 %v171_v1 }
   0x7   :  { %165 = vmatpush3.bf16.msra.mxu0 %v171_v1 }
   0xa   :  { %167 = vmatmul.mubr.msk.bf16.vlgmr.msra.gmra.mrb[0].mxu0 %vm52_vm0, %v173_v3 }
  0xdd   :  { %v168_v4 = vpop.f32.mrb[0].mxu0 }
  0xde   :  { %v93_v6 = vpop.f32.mrb[1].mxu0  ;;  %v102_v8 = vadd.f32 %v168_v4, %v132_v5 }
  0xdf   :  { %v169_v7 = vpop.f32.mrb[2].mxu0  ;;  %v94_v11 = vadd.f32 %v132_v5, %v93_v6 }
  0xe0   :  { %v105_v9 = vadd.f32 %v169_v7, %v132_v5  ;;  %v96_v10 = vpop.f32.mrb[3].mxu0 }
  0xe1   :  { %v97_v12 = vadd.f32 %v132_v5, %v96_v10 }
  0xe2   :  { %v155_v13 = vpack.c.bf16 %v105_v9, %v102_v8 }
  0xe3   :  { %v150_v14 = vpack.c.bf16 %v97_v12, %v94_v11 }
  0xe4   :  { %157 = vst [vmem:[%s218_s3 + $0x8] sm:$0xff] %v155_v13  }
  0xe5   :  { %151 = vst [vmem:[%s218_s3] sm:$0xff] %v150_v14  }

// kernel: deepv3plus_forward.13
= control target key start
LH: loop header
LB: loop body
LE: loop exit
PB: predicated region body
PF: predicated region fallthrough
CT: control target
= control target key end

     0   :  { %s456_s0 = inlined_call_operand.vmem [shape: bf16[32,256], index: 0, kind: input, shape index: {}]   ;;  %s457_s1 = inlined_call_operand.vmem [shape: bf16[256,128], index: 1, kind: input, shape index: {}]   ;;  %s458_s2 = inlined_call_operand.vmem [shape: f32[1,128], index: 2, kind: input, shape index: {}]   ;;  %s459_s3 = inlined_call_operand.hbm [shape: f32[32,128], index: 3, kind: output, shape index: {}]  }
   0x1   :  { %v312_v0 = vld [vmem:[%s457_s1 + $0x40] sm:$0xff]   ;;  %v314_v2 = vld [vmem:[%s457_s1 + $0x48] sm:$0xff]   ;;  %v316_v4 = vld [vmem:[%s457_s1 + $0x50] sm:$0xff]  }
   0x2   :  { %v313_v1 = vld [vmem:[%s457_s1] sm:$0xff]   ;;  %265 = vmatprep.subr.bf16.mxu0 %v312_v0  ;;  %293 = vmatprep.subr.bf16.mxu1 %v312_v0  ;;  %v315_v3 = vld [vmem:[%s457_s1 + $0x8] sm:$0xff]   ;;  %v317_v5 = vld [vmem:[%s457_s1 + $0x10] sm:$0xff]  }
   0x3   :  { %266 = vmatpush3.bf16.msra.mxu0 %v313_v1  ;;  %301 = vmatpush3.bf16.msra.mxu1 %v313_v1  ;;  %v318_v6 = vld [vmem:[%s457_s1 + $0x58] sm:$0xff]   ;;  %v320_v8 = vld [vmem:[%s457_s1 + $0x60] sm:$0xff]   ;;  %v322_v10 = vld [vmem:[%s457_s1 + $0x68] sm:$0xff]  }
   0x4   :  { %267 = vmatprep.subr.bf16.mxu0 %v314_v2  ;;  %294 = vmatprep.subr.bf16.mxu1 %v314_v2  ;;  %v319_v7 = vld [vmem:[%s457_s1 + $0x18] sm:$0xff]   ;;  %v321_v9 = vld [vmem:[%s457_s1 + $0x20] sm:$0xff]  }
   0x5   :  { %v330_v11 = vld [vmem:[%s456_s0 + $0x4] ss:$8 sps:$4 sm:$0xff]   ;;  %v333_v12 = vld [vmem:[%s456_s0 + $0x14] ss:$8 sps:$4 sm:$0xff]  }
   0x7   :  { %268 = vmatpush3.bf16.msra.mxu0 %v315_v3  ;;  %302 = vmatpush3.bf16.msra.mxu1 %v315_v3 }
   0x8   :  { %269 = vmatprep.subr.bf16.mxu0 %v316_v4  ;;  %295 = vmatprep.subr.bf16.mxu1 %v316_v4 }
   0xb   :  { %270 = vmatpush3.bf16.msra.mxu0 %v317_v5  ;;  %303 = vmatpush3.bf16.msra.mxu1 %v317_v5 }
   0xc   :  { %271 = vmatprep.subr.bf16.mxu0 %v318_v6  ;;  %296 = vmatprep.subr.bf16.mxu1 %v318_v6 }
   0xf   :  { %272 = vmatpush3.bf16.msra.mxu0 %v319_v7  ;;  %304 = vmatpush3.bf16.msra.mxu1 %v319_v7 }
  0x10   :  { %273 = vmatprep.subr.bf16.mxu0 %v320_v8  ;;  %297 = vmatprep.subr.bf16.mxu1 %v320_v8 }
  0x11   :  { %8 = vsyncpa [#allocation3], 0  ;;  %v323_v13 = vld [vmem:[%s457_s1 + $0x28] sm:$0xff]   ;;  %v324_v14 = vld [vmem:[%s457_s1 + $0x70] sm:$0xff]   ;;  %207 = vmatprep.mubr.bf16.mxu0 %v330_v11  ;;  %215 = vmatprep.mubr.bf16.mxu1 %v333_v12 }
  0x12   :  { %v325_v15 = vld [vmem:[%s457_s1 + $0x30] sm:$0xff]   ;;  %v326_v16 = vld [vmem:[%s457_s1 + $0x78] sm:$0xff]   ;;  %v328_v18 = vld [vmem:[%s456_s0] ss:$8 sps:$4 sm:$0xff]  }
  0x13   :  { %274 = vmatpush3.bf16.msra.mxu0 %v321_v9  ;;  %305 = vmatpush3.bf16.msra.mxu1 %v321_v9  ;;  %v327_v17 = vld [vmem:[%s457_s1 + $0x38] sm:$0xff]   ;;  %v244_v22 = vld [vmem:[%s458_s2] ss:$0 sm:$0xff]  ;;  %s358_s1 = smov [#allocation2]  }
  0x14   :  { %275 = vmatprep.subr.bf16.mxu0 %v322_v10  ;;  %298 = vmatprep.subr.bf16.mxu1 %v322_v10  ;;  %v331_v19 = vld [vmem:[%s456_s0 + $0x10] ss:$8 sps:$4 sm:$0xff]   ;;  %s233_s27 = sshll.u32 %s358_s1, 4  ;;  %s234_s27 = int_to_ptr.vmem [resolvable:$true] %s233_s27 }
  0x15   :  { %s334_s0 = scalar_lea.vmem %s234_s27, 512  ;;  %p339_p1 = scmp.lt.s32.totalorder %s234_s27, %s234_s27 }
  0x16   :  { %p335_p0 = scmp.ne.s32.totalorder %s234_s27, %s334_s0  ;;  %p340_p2 = scmp.lt.s32.totalorder %s334_s0, %s334_s0 }
  0x17   :  { %276 = vmatpush3.bf16.msra.mxu0 %v323_v13  ;;  %306 = vmatpush3.bf16.msra.mxu1 %v323_v13 }
  0x18   :  { %277 = vmatprep.subr.bf16.mxu0 %v324_v14  ;;  %299 = vmatprep.subr.bf16.mxu1 %v324_v14  ;;  %p341_p3 = por %p340_p2, %p339_p1 }
  0x1a   :  { %p342_p4 = pnand %p341_p3, %p335_p0 }
  0x1b   :  { %278 = vmatpush3.bf16.msra.mxu0 %v325_v15  ;;  %307 = vmatpush3.bf16.msra.mxu1 %v325_v15 }
  0x1c   :  { %279 = vmatprep.subr.bf16.mxu0 %v326_v16  ;;  %300 = vmatprep.subr.bf16.mxu1 %v326_v16 }
  0x1f   :  { %280 = vmatpush3.bf16.msra.mxu0 %v327_v17  ;;  %308 = vmatpush3.bf16.msra.mxu1 %v327_v17 }
  0x22   :  { %208 = vmatmul.mubr.bf16.vlgmr.msra.gmra.mrb[0].mxu0 %v328_v18  ;;  %216 = vmatmul.mubr.bf16.vlgmr.msra.gmra.mrb[0].mxu1 %v331_v19 }
  0xf5   :  { %v281_v20 = vpop.f32.mrb[0].mxu0  ;;  %v287_v21 = vpop.f32.mrb[0].mxu1 }
  0xf6   :  { %v282_v23 = vpop.f32.mrb[1].mxu0  ;;  %v288_v24 = vpop.f32.mrb[1].mxu1 }
  0xf7   :  { %v283_v25 = vadd.f32 %v282_v23, %v281_v20  ;;  %v289_v26 = vadd.f32 %v288_v24, %v287_v21  ;;  %v284_v27 = vpop.f32.mrb[2].mxu0  ;;  %v290_v28 = vpop.f32.mrb[2].mxu1 }
  0xf8   :  { %v285_v29 = vpop.f32.mrb[3].mxu0  ;;  %v291_v30 = vpop.f32.mrb[3].mxu1 }
  0xf9   :  { %v210_v31 = vadd.f32 %v283_v25, %v244_v22  ;;  %v218_v32 = vadd.f32 %v289_v26, %v244_v22  ;;  %v286_v33 = vadd.f32 %v285_v29, %v284_v27  ;;  %v292_v34 = vadd.f32 %v291_v30, %v290_v28 }
  0xfb   :  { %224 = vst [vmem:[#allocation2] sm:$0xff] %v210_v31  ;;  %226 = vst [vmem:[#allocation2 + $0x10] sm:$0xff] %v218_v32  ;;  %v213_v35 = vadd.f32 %v286_v33, %v244_v22  ;;  %v221_v36 = vadd.f32 %v292_v34, %v244_v22 }
  0xfd   :  { %225 = vst [vmem:[#allocation2 + $0x8] sm:$0xff] %v213_v35  ;;  %227 = vst [vmem:[#allocation2 + $0x18] sm:$0xff] %v221_v36 }
  0xfe   :  { %345 = shalt.err (!%p342_p4)
}
  0xff   :  { %s346_s29 = scalar_lea.hbm %s459_s3, 512 }
 0x100   :  { %p347_p5 = scmp.ne.s32.totalorder %s459_s3, %s346_s29  ;;  %p350_p6 = scmp.lt.u32.totalorder %s346_s29, %s459_s3 }
 0x102   :  { %p352_p7 = pnand %p350_p6, %p347_p5 }
 0x104   :  { %355 = shalt.err (!%p352_p7)
}
 0x105   :  { %s359_s7 = smov 128   ;;  %s360_s8 = smov 8  }
 0x106   :  { %239 = dma.vmem_to_hbm [thread:$0]  %s234_s27, 512, %s459_s3, [#allocation3], %s359_s7, %s359_s7, %s360_s8  }
 0x107   :  { %356 = dma.done.wait [#allocation3], 512  }
 0x108   :  { %357 = vsyncadd [#allocation3], 4294966784 }
 0x109   :  { %243 = vsyncpa [#allocation3], 1 }

// kernel: deepv3plus_forward.12
= control target key start
LH: loop header
LB: loop body
LE: loop exit
PB: predicated region body
PF: predicated region fallthrough
CT: control target
= control target key end

     0   :  { %s4205_s12 = smov 0   ;;  %s4207_s13 = smov 0   ;;  %s5264_s0 = inlined_call_operand.vmem [shape: bf16[2,1,6,8,256], index: 0, kind: input, shape index: {}]   ;;  %s5265_s1 = inlined_call_operand.vmem [shape: bf16[9,256,256], index: 1, kind: input, shape index: {}]   ;;  %s5266_s2 = inlined_call_operand.vmem [shape: f32[1,256], index: 2, kind: input, shape index: {}]   ;;  %s5267_s3 = inlined_call_operand.vmem [shape: bf16[2,4,4,256], index: 3, kind: output, shape index: {}]  }
   0x1   :  { %s4209_s14 = smov 0  }
   0x2 LB: > { %s25_s15 = sadd.s32 1, %s4179_s13  ;;  %p3059_p0 = scmp.ge.s32.totalorder %s4183_s14, 1  ;;  %s4183_s14 = sphi %s4209_s14, %s13_s14   ;;  %s4179_s13 = sphi %s4207_s13, %s5273_s13   ;;  %s4175_s12 = sphi %s4205_s12, %s5272_s12  }
   0x3   : > { %p27_p1 = scmp.ge.s32.totalorder %s25_s15, 2  ;;  %p157_p2 = scmp.lt.s32.totalorder %s4183_s14, 3 }
   0x5   : > { %s5275_s15 = smov (%p27_p1, %s25_s15), 0  ;;  %p158_p3 = pnand %p3059_p0, %p157_p2 }
   0x6   : > { %v3719_v0 = vld [vmem:[%s5265_s1 + $0x4] ss:$8 sps:$4 sm:$0xff] (!%p158_p3)   ;;  %v3723_v2 = vld [vmem:[%s5265_s1] ss:$8 sps:$4 sm:$0xff] (!%p158_p3)   ;;  %v3725_v4 = vld [vmem:[%s5265_s1 + $0x14] ss:$8 sps:$4 sm:$0xff] (!%p158_p3)  }
   0x7   : > { %161 = sbr.rel (%p158_p3) target bundleno = 559 (0x22f), region = 32  ;;  %v3721_v1 = vld [vmem:[%s5265_s1 + $0x104] ss:$8 sps:$4 sm:$0xff] (!%p158_p3)   ;;  %426 = vmatprep.subr.bf16.mxu0 (!%p158_p3), %v3719_v0  ;;  %v3724_v3 = vld [vmem:[%s5265_s1 + $0x100] ss:$8 sps:$4 sm:$0xff] (!%p158_p3)   ;;  %p190_p4 = scmp.lt.s32.totalorder (!%p158_p3), %s4175_s12, 1 }
   0x8   : > { %692 = vmatprep.subr.bf16.mxu1 (!%p158_p3), %v3721_v1  ;;  %427 = vmatpush1.bf16.msra.mxu0 (!%p158_p3), %v3723_v2  ;;  %v3727_v5 = vld [vmem:[%s5265_s1 + $0x114] ss:$8 sps:$4 sm:$0xff] (!%p158_p3)   ;;  %v3729_v6 = vld [vmem:[%s5265_s1 + $0x10] ss:$8 sps:$4 sm:$0xff] (!%p158_p3)   ;;  %v3731_v8 = vld [vmem:[%s5265_s1 + $0x24] ss:$8 sps:$4 sm:$0xff] (!%p158_p3)  }
   0x9   : > { %693 = vmatpush1.bf16.msra.mxu1 (!%p158_p3), %v3724_v3  ;;  %428 = vmatprep.subr.bf16.mxu0 (!%p158_p3), %v3725_v4  ;;  %v3730_v7 = vld [vmem:[%s5265_s1 + $0x110] ss:$8 sps:$4 sm:$0xff] (!%p158_p3)   ;;  %v3733_v9 = vld [vmem:[%s5265_s1 + $0x124] ss:$8 sps:$4 sm:$0xff] (!%p158_p3)   ;;  %v3735_v10 = vld [vmem:[%s5265_s1 + $0x20] ss:$8 sps:$4 sm:$0xff] (!%p158_p3)  }
   0xa   : > { %694 = vmatprep.subr.bf16.mxu1 (!%p158_p3), %v3727_v5  ;;  %v3736_v11 = vld [vmem:[%s5265_s1 + $0x120] ss:$8 sps:$4 sm:$0xff] (!%p158_p3)   ;;  %v3737_v12 = vld [vmem:[%s5265_s1 + $0x34] ss:$8 sps:$4 sm:$0xff] (!%p158_p3)   ;;  %v3741_v14 = vld [vmem:[%s5265_s1 + $0x30] ss:$8 sps:$4 sm:$0xff] (!%p158_p3)  }
   0xb   : > { %v3739_v13 = vld [vmem:[%s5265_s1 + $0x134] ss:$8 sps:$4 sm:$0xff] (!%p158_p3)   ;;  %v3742_v15 = vld [vmem:[%s5265_s1 + $0x130] ss:$8 sps:$4 sm:$0xff] (!%p158_p3)   ;;  %v3743_v16 = vld [vmem:[%s5265_s1 + $0x44] ss:$8 sps:$4 sm:$0xff] (!%p158_p3)  }
   0xc   : > { %429 = vmatpush1.bf16.msra.mxu0 (!%p158_p3), %v3729_v6  ;;  %v3745_v17 = vld [vmem:[%s5265_s1 + $0x144] ss:$8 sps:$4 sm:$0xff] (!%p158_p3)   ;;  %v3747_v18 = vld [vmem:[%s5265_s1 + $0x40] ss:$8 sps:$4 sm:$0xff] (!%p158_p3)   ;;  %v3749_v20 = vld [vmem:[%s5265_s1 + $0x54] ss:$8 sps:$4 sm:$0xff] (!%p158_p3)  }
   0xd   : > { %695 = vmatpush1.bf16.msra.mxu1 (!%p158_p3), %v3730_v7  ;;  %430 = vmatprep.subr.bf16.mxu0 (!%p158_p3), %v3731_v8  ;;  %v3748_v19 = vld [vmem:[%s5265_s1 + $0x140] ss:$8 sps:$4 sm:$0xff] (!%p158_p3)   ;;  %v3751_v21 = vld [vmem:[%s5265_s1 + $0x154] ss:$8 sps:$4 sm:$0xff] (!%p158_p3)   ;;  %v3753_v22 = vld [vmem:[%s5265_s1 + $0x50] ss:$8 sps:$4 sm:$0xff] (!%p158_p3)  }
   0xe   : > { %696 = vmatprep.subr.bf16.mxu1 %v3733_v9  ;;  %v3754_v23 = vld [vmem:[%s5265_s1 + $0x150] ss:$8 sps:$4 sm:$0xff]   ;;  %v3755_v24 = vld [vmem:[%s5265_s1 + $0x64] ss:$8 sps:$4 sm:$0xff]   ;;  %v3759_v26 = vld [vmem:[%s5265_s1 + $0x60] ss:$8 sps:$4 sm:$0xff]  }
   0xf   : > { %v3757_v25 = vld [vmem:[%s5265_s1 + $0x164] ss:$8 sps:$4 sm:$0xff]   ;;  %v3760_v27 = vld [vmem:[%s5265_s1 + $0x160] ss:$8 sps:$4 sm:$0xff]   ;;  %v3761_v28 = vld [vmem:[%s5265_s1 + $0x74] ss:$8 sps:$4 sm:$0xff]  }
  0x10   : > { %431 = vmatpush1.bf16.msra.mxu0 %v3735_v10  ;;  %v3763_v29 = vld [vmem:[%s5265_s1 + $0x174] ss:$8 sps:$4 sm:$0xff]   ;;  %v3765_v30 = vld [vmem:[%s5265_s1 + $0x70] ss:$8 sps:$4 sm:$0xff]   ;;  %v3767_v32 = vld [vmem:[%s5265_s1 + $0x84] ss:$8 sps:$4 sm:$0xff]  }
  0x11   : > { %697 = vmatpush1.bf16.msra.mxu1 %v3736_v11  ;;  %432 = vmatprep.subr.bf16.mxu0 %v3737_v12  ;;  %v3766_v31 = vld [vmem:[%s5265_s1 + $0x170] ss:$8 sps:$4 sm:$0xff]   ;;  %v3769_v33 = vld [vmem:[%s5265_s1 + $0x184] ss:$8 sps:$4 sm:$0xff]   ;;  %v3771_v34 = vld [vmem:[%s5265_s1 + $0x80] ss:$8 sps:$4 sm:$0xff]  }
  0x12   : > { %698 = vmatprep.subr.bf16.mxu1 %v3739_v13  ;;  %v3772_v35 = vld [vmem:[%s5265_s1 + $0x180] ss:$8 sps:$4 sm:$0xff]   ;;  %s5277_s12 = smov (!%p190_p4, %s4175_s12), 1  ;;  %v3773_v36 = vld [vmem:[%s5265_s1 + $0x94] ss:$8 sps:$4 sm:$0xff]   ;;  %vm765_vm0 = vcmask 1042432  }
  0x13   : > { %v3775_v37 = vld [vmem:[%s5265_s1 + $0x194] ss:$8 sps:$4 sm:$0xff]   ;;  %v3777_v38 = vld [vmem:[%s5265_s1 + $0x90] ss:$8 sps:$4 sm:$0xff]   ;;  %s3694_s25 = smul.u32 48, %s5277_s12  ;;  %vm766_vm1 = vcmask 1046532  }
  0x14   : > { %433 = vmatpush1.bf16.msra.mxu0 %v3741_v14  ;;  %v3778_v39 = vld [vmem:[%s5265_s1 + $0x190] ss:$8 sps:$4 sm:$0xff]   ;;  %v3779_v40 = vld [vmem:[%s5265_s1 + $0xa4] ss:$8 sps:$4 sm:$0xff]   ;;  %v3783_v42 = vld [vmem:[%s5265_s1 + $0xa0] ss:$8 sps:$4 sm:$0xff]  }
  0x15   : > { %699 = vmatpush1.bf16.msra.mxu1 %v3742_v15  ;;  %434 = vmatprep.subr.bf16.mxu0 %v3743_v16  ;;  %v3781_v41 = vld [vmem:[%s5265_s1 + $0x1a4] ss:$8 sps:$4 sm:$0xff]   ;;  %v3784_v43 = vld [vmem:[%s5265_s1 + $0x1a0] ss:$8 sps:$4 sm:$0xff]   ;;  %s4365_s11 = scalar_lea.vmem %s5264_s0, %s3694_s25  ;;  %v3785_v44 = vld [vmem:[%s5265_s1 + $0xb4] ss:$8 sps:$4 sm:$0xff]  }
  0x16   : > { %700 = vmatprep.subr.bf16.mxu1 %v3745_v17  ;;  %v3787_v45 = vld [vmem:[%s5265_s1 + $0x1b4] ss:$8 sps:$4 sm:$0xff]   ;;  %v210_v46 = vld [vmem:[%s4365_s11] sm:$0xff]  ;;  %v4375_v47 = vld [vmem:[%s4365_s11 + $0x8] sm:$0xff]  ;;  %vm1062_vm3 = vcmask 1041408   ;;  %vm1063_vm4 = vcmask 1045508  }
  0x17   : > { %v3789_v48 = vld [vmem:[%s5265_s1 + $0xb0] ss:$8 sps:$4 sm:$0xff]   ;;  %v4384_v50 = vcombine.high %v210_v46, %v4375_v47  ;;  %v3791_v51 = vld [vmem:[%s5265_s1 + $0xc4] ss:$8 sps:$4 sm:$0xff]   ;;  %v3795_v53 = vld [vmem:[%s5265_s1 + $0xc0] ss:$8 sps:$4 sm:$0xff]   ;;  %v4443_v5 = vcombine.low %v210_v46, %v4375_v47 }
  0x18   : > { %435 = vmatpush1.bf16.msra.mxu0 %v3747_v18  ;;  %v3790_v49 = vld [vmem:[%s5265_s1 + $0x1b0] ss:$8 sps:$4 sm:$0xff]   ;;  %v3793_v52 = vld [vmem:[%s5265_s1 + $0x1c4] ss:$8 sps:$4 sm:$0xff]   ;;  %v3796_v54 = vld [vmem:[%s5265_s1 + $0x1c0] ss:$8 sps:$4 sm:$0xff]  }
  0x19   : > { %701 = vmatpush1.bf16.msra.mxu1 %v3748_v19  ;;  %436 = vmatprep.subr.bf16.mxu0 %v3749_v20  ;;  %v3797_v55 = vld [vmem:[%s5265_s1 + $0xd4] ss:$8 sps:$4 sm:$0xff]   ;;  %v3801_v57 = vld [vmem:[%s5265_s1 + $0xd0] ss:$8 sps:$4 sm:$0xff]   ;;  %v3803_v59 = vld [vmem:[%s5265_s1 + $0xe4] ss:$8 sps:$4 sm:$0xff]  }
  0x1a   : > { %702 = vmatprep.subr.bf16.mxu1 %v3751_v21  ;;  %458 = vmatprep.mubr.bf16.mxu0 %v4384_v50  ;;  %v3799_v56 = vld [vmem:[%s5265_s1 + $0x1d4] ss:$8 sps:$4 sm:$0xff]   ;;  %v3802_v58 = vld [vmem:[%s5265_s1 + $0x1d0] ss:$8 sps:$4 sm:$0xff]   ;;  %v3805_v60 = vld [vmem:[%s5265_s1 + $0x1e4] ss:$8 sps:$4 sm:$0xff]  }
  0x1b   : > { %724 = vmatprep.mubr.bf16.mxu1 %v4384_v50  ;;  %v3807_v61 = vld [vmem:[%s5265_s1 + $0xe0] ss:$8 sps:$4 sm:$0xff]   ;;  %v3809_v63 = vld [vmem:[%s5265_s1 + $0xf4] ss:$8 sps:$4 sm:$0xff]   ;;  %v3813_v1 = vld [vmem:[%s5265_s1 + $0xf0] ss:$8 sps:$4 sm:$0xff]  }
  0x1c   : > { %437 = vmatpush1.bf16.msra.mxu0 %v3753_v22  ;;  %v3808_v62 = vld [vmem:[%s5265_s1 + $0x1e0] ss:$8 sps:$4 sm:$0xff]   ;;  %v3811_v0 = vld [vmem:[%s5265_s1 + $0x1f4] ss:$8 sps:$4 sm:$0xff]   ;;  %v3814_v2 = vld [vmem:[%s5265_s1 + $0x1f0] ss:$8 sps:$4 sm:$0xff]  }
  0x1d   : > { %703 = vmatpush1.bf16.msra.mxu1 %v3754_v23  ;;  %438 = vmatprep.subr.bf16.mxu0 %v3755_v24  ;;  %v3819_v3 = vld [vmem:[%s5265_s1 + $0x204] ss:$8 sps:$4 sm:$0xff]   ;;  %v3817_v6 = vld [vmem:[%s5265_s1 + $0x200] ss:$8 sps:$4 sm:$0xff]   ;;  %v3825_v8 = vld [vmem:[%s5265_s1 + $0x214] ss:$8 sps:$4 sm:$0xff]  }
  0x1e   : > { %704 = vmatprep.subr.bf16.mxu1 %v3757_v25  ;;  %v3822_v4 = vld [vmem:[%s5265_s1 + $0x304] ss:$8 sps:$4 sm:$0xff]   ;;  %v3820_v7 = vld [vmem:[%s5265_s1 + $0x300] ss:$8 sps:$4 sm:$0xff]   ;;  %v3828_v9 = vld [vmem:[%s5265_s1 + $0x314] ss:$8 sps:$4 sm:$0xff]  }
  0x1f   : > { %v3823_v10 = vld [vmem:[%s5265_s1 + $0x210] ss:$8 sps:$4 sm:$0xff]   ;;  %v3831_v12 = vld [vmem:[%s5265_s1 + $0x224] ss:$8 sps:$4 sm:$0xff]   ;;  %v3829_v14 = vld [vmem:[%s5265_s1 + $0x220] ss:$8 sps:$4 sm:$0xff]  }
  0x20   : > { %439 = vmatpush1.bf16.msra.mxu0 %v3759_v26  ;;  %v3826_v11 = vld [vmem:[%s5265_s1 + $0x310] ss:$8 sps:$4 sm:$0xff]   ;;  %v3834_v13 = vld [vmem:[%s5265_s1 + $0x324] ss:$8 sps:$4 sm:$0xff]   ;;  %v3832_v15 = vld [vmem:[%s5265_s1 + $0x320] ss:$8 sps:$4 sm:$0xff]  }
  0x21   : > { %705 = vmatpush1.bf16.msra.mxu1 %v3760_v27  ;;  %440 = vmatprep.subr.bf16.mxu0 %v3761_v28  ;;  %v3837_v16 = vld [vmem:[%s5265_s1 + $0x234] ss:$8 sps:$4 sm:$0xff]   ;;  %v3835_v18 = vld [vmem:[%s5265_s1 + $0x230] ss:$8 sps:$4 sm:$0xff]   ;;  %v3843_v20 = vld [vmem:[%s5265_s1 + $0x244] ss:$8 sps:$4 sm:$0xff]  }
  0x22   : > { %706 = vmatprep.subr.bf16.mxu1 %v3763_v29  ;;  %v3840_v17 = vld [vmem:[%s5265_s1 + $0x334] ss:$8 sps:$4 sm:$0xff]   ;;  %v3838_v19 = vld [vmem:[%s5265_s1 + $0x330] ss:$8 sps:$4 sm:$0xff]   ;;  %v3846_v21 = vld [vmem:[%s5265_s1 + $0x344] ss:$8 sps:$4 sm:$0xff]  }
  0x23   : > { %v4496_v22 = vld [vmem:[%s4365_s11 + $0x10] sm:$0xff]  ;;  %v4499_v23 = vld [vmem:[%s4365_s11 + $0x18] sm:$0xff]  ;;  %v3841_v24 = vld [vmem:[%s5265_s1 + $0x240] ss:$8 sps:$4 sm:$0xff]   ;;  %s3661_s19 = sshll.u32 %s5277_s12, 4 }
  0x24   : > { %441 = vmatpush1.bf16.msra.mxu0 %v3765_v30  ;;  %v3844_v25 = vld [vmem:[%s5265_s1 + $0x340] ss:$8 sps:$4 sm:$0xff]   ;;  %v4509_v26 = vcombine.high %v4496_v22, %v4499_v23  ;;  %v4513_v27 = vcombine.low %v4496_v22, %v4499_v23  ;;  %v3849_v28 = vld [vmem:[%s5265_s1 + $0x254] ss:$8 sps:$4 sm:$0xff]   ;;  %v4525_v30 = vcombine.high %v4375_v47, %v4496_v22  ;;  %vm5124_vm2 = vmor %vm765_vm0, %vm766_vm1  ;;  %s208_s22 = scalar_lea.vmem %s5267_s3, %s3661_s19 }
  0x25   : > { %707 = vmatpush1.bf16.msra.mxu1 %v3766_v31  ;;  %442 = vmatprep.subr.bf16.mxu0 %v3767_v32  ;;  %v3852_v29 = vld [vmem:[%s5265_s1 + $0x354] ss:$8 sps:$4 sm:$0xff]   ;;  %v3847_v31 = vld [vmem:[%s5265_s1 + $0x250] ss:$8 sps:$4 sm:$0xff]   ;;  %vm5200_vm5 = vmor %vm1062_vm3, %vm1063_vm4 }
  0x26   : > { %708 = vmatprep.subr.bf16.mxu1 %v3769_v33  ;;  %v3850_v32 = vld [vmem:[%s5265_s1 + $0x350] ss:$8 sps:$4 sm:$0xff]   ;;  %v3855_v33 = vld [vmem:[%s5265_s1 + $0x264] ss:$8 sps:$4 sm:$0xff]   ;;  %v3876_v46 = vld [vmem:[%s5265_s1 + $0x394] ss:$8 sps:$4 sm:$0xff]  }
  0x28   : > { %443 = vmatpush1.bf16.msra.mxu0 %v3771_v34  ;;  %v3858_v34 = vld [vmem:[%s5265_s1 + $0x364] ss:$8 sps:$4 sm:$0xff]  }
  0x29   : > { %709 = vmatpush1.bf16.msra.mxu1 %v3772_v35  ;;  %444 = vmatprep.subr.bf16.mxu0 %v3773_v36  ;;  %v3853_v35 = vld [vmem:[%s5265_s1 + $0x260] ss:$8 sps:$4 sm:$0xff]  }
  0x2a   : > { %710 = vmatprep.subr.bf16.mxu1 %v3775_v37  ;;  %v3856_v36 = vld [vmem:[%s5265_s1 + $0x360] ss:$8 sps:$4 sm:$0xff]   ;;  %v3861_v37 = vld [vmem:[%s5265_s1 + $0x274] ss:$8 sps:$4 sm:$0xff]  }
  0x2c   : > { %445 = vmatpush1.bf16.msra.mxu0 %v3777_v38  ;;  %v3864_v38 = vld [vmem:[%s5265_s1 + $0x374] ss:$8 sps:$4 sm:$0xff]  }
  0x2d   : > { %711 = vmatpush1.bf16.msra.mxu1 %v3778_v39  ;;  %446 = vmatprep.subr.bf16.mxu0 %v3779_v40  ;;  %v3859_v39 = vld [vmem:[%s5265_s1 + $0x270] ss:$8 sps:$4 sm:$0xff]  }
  0x2e   : > { %712 = vmatprep.subr.bf16.mxu1 %v3781_v41  ;;  %v3862_v40 = vld [vmem:[%s5265_s1 + $0x370] ss:$8 sps:$4 sm:$0xff]   ;;  %v3867_v41 = vld [vmem:[%s5265_s1 + $0x284] ss:$8 sps:$4 sm:$0xff]  }
  0x30   : > { %447 = vmatpush1.bf16.msra.mxu0 %v3783_v42  ;;  %v3870_v42 = vld [vmem:[%s5265_s1 + $0x384] ss:$8 sps:$4 sm:$0xff]  }
  0x31   : > { %713 = vmatpush1.bf16.msra.mxu1 %v3784_v43  ;;  %448 = vmatprep.subr.bf16.mxu0 %v3785_v44  ;;  %v3865_v43 = vld [vmem:[%s5265_s1 + $0x280] ss:$8 sps:$4 sm:$0xff]  }
  0x32   : > { %714 = vmatprep.subr.bf16.mxu1 %v3787_v45  ;;  %v3868_v44 = vld [vmem:[%s5265_s1 + $0x380] ss:$8 sps:$4 sm:$0xff]   ;;  %v3873_v45 = vld [vmem:[%s5265_s1 + $0x294] ss:$8 sps:$4 sm:$0xff]  }
  0x34   : > { %449 = vmatpush1.bf16.msra.mxu0 %v3789_v48  ;;  %v3871_v48 = vld [vmem:[%s5265_s1 + $0x290] ss:$8 sps:$4 sm:$0xff]  }
  0x35   : > { %715 = vmatpush1.bf16.msra.mxu1 %v3790_v49  ;;  %450 = vmatprep.subr.bf16.mxu0 %v3791_v51  ;;  %v3874_v49 = vld [vmem:[%s5265_s1 + $0x390] ss:$8 sps:$4 sm:$0xff]   ;;  %v3882_v51 = vld [vmem:[%s5265_s1 + $0x3a4] ss:$8 sps:$4 sm:$0xff]  }
  0x36   : > { %716 = vmatprep.subr.bf16.mxu1 %v3793_v52  ;;  %v3877_v52 = vld [vmem:[%s5265_s1 + $0x2a0] ss:$8 sps:$4 sm:$0xff]  }
  0x38   : > { %451 = vmatpush1.bf16.msra.mxu0 %v3795_v53  ;;  %v3880_v53 = vld [vmem:[%s5265_s1 + $0x3a0] ss:$8 sps:$4 sm:$0xff]  }
  0x39   : > { %717 = vmatpush1.bf16.msra.mxu1 %v3796_v54  ;;  %452 = vmatprep.subr.bf16.mxu0 %v3797_v55  ;;  %v3885_v54 = vld [vmem:[%s5265_s1 + $0x2b4] ss:$8 sps:$4 sm:$0xff]  }
  0x3a   : > { %718 = vmatprep.subr.bf16.mxu1 %v3799_v56  ;;  %v3888_v55 = vld [vmem:[%s5265_s1 + $0x3b4] ss:$8 sps:$4 sm:$0xff]   ;;  %v3883_v56 = vld [vmem:[%s5265_s1 + $0x2b0] ss:$8 sps:$4 sm:$0xff]  }
  0x3c   : > { %453 = vmatpush1.bf16.msra.mxu0 %v3801_v57  ;;  %v3886_v57 = vld [vmem:[%s5265_s1 + $0x3b0] ss:$8 sps:$4 sm:$0xff]  }
  0x3d   : > { %719 = vmatpush1.bf16.msra.mxu1 %v3802_v58  ;;  %454 = vmatprep.subr.bf16.mxu0 %v3803_v59  ;;  %v3891_v58 = vld [vmem:[%s5265_s1 + $0x2c4] ss:$8 sps:$4 sm:$0xff]  }
  0x3e   : > { %720 = vmatprep.subr.bf16.mxu1 %v3805_v60  ;;  %v3894_v59 = vld [vmem:[%s5265_s1 + $0x3c4] ss:$8 sps:$4 sm:$0xff]   ;;  %v3889_v60 = vld [vmem:[%s5265_s1 + $0x2c0] ss:$8 sps:$4 sm:$0xff]  }
  0x40   : > { %455 = vmatpush1.bf16.msra.mxu0 %v3807_v61  ;;  %v3892_v61 = vld [vmem:[%s5265_s1 + $0x3c0] ss:$8 sps:$4 sm:$0xff]  }
  0x41   : > { %721 = vmatpush1.bf16.msra.mxu1 %v3808_v62  ;;  %456 = vmatprep.subr.bf16.mxu0 %v3809_v63  ;;  %v3899_v62 = vld [vmem:[%s5265_s1 + $0x2d4] ss:$8 sps:$4 sm:$0xff]  }
  0x42   : > { %722 = vmatprep.subr.bf16.mxu1 %v3811_v0  ;;  %v3902_v63 = vld [vmem:[%s5265_s1 + $0x3d4] ss:$8 sps:$4 sm:$0xff]   ;;  %v3897_v0 = vld [vmem:[%s5265_s1 + $0x2d0] ss:$8 sps:$4 sm:$0xff]  }
  0x44   : > { %457 = vmatpush1.bf16.msra.mxu0 %v3813_v1  ;;  %v3900_v1 = vld [vmem:[%s5265_s1 + $0x3d0] ss:$8 sps:$4 sm:$0xff]  }
  0x45   : > { %723 = vmatpush1.bf16.msra.mxu1 %v3814_v2  ;;  %989 = vmatprep.subr.bf16.mxu0 %v3819_v3  ;;  %v3905_v2 = vld [vmem:[%s5265_s1 + $0x2e4] ss:$8 sps:$4 sm:$0xff]  }
  0x46   : > { %1311 = vmatprep.subr.bf16.mxu1 %v3822_v4  ;;  %v3908_v3 = vld [vmem:[%s5265_s1 + $0x3e4] ss:$8 sps:$4 sm:$0xff]   ;;  %v3903_v4 = vld [vmem:[%s5265_s1 + $0x2e0] ss:$8 sps:$4 sm:$0xff]  }
  0x47   : > { %459 = vmatmul.mubr.bf16.vlgmr.msra.gmra.mrb[0].mxu0 %v4443_v5 }
  0x48   : > { %725 = vmatmul.mubr.bf16.vlgmr.msra.gmra.mrb[0].mxu1 %v4443_v5  ;;  %990 = vmatpush1.bf16.msra.mxu0 %v3817_v6  ;;  %v3906_v6 = vld [vmem:[%s5265_s1 + $0x3e0] ss:$8 sps:$4 sm:$0xff]  }
  0x49   : > { %1312 = vmatpush1.bf16.msra.mxu1 %v3820_v7  ;;  %991 = vmatprep.subr.bf16.mxu0 %v3825_v8  ;;  %v3911_v7 = vld [vmem:[%s5265_s1 + $0x2f4] ss:$8 sps:$4 sm:$0xff]  }
  0x4a   : > { %1313 = vmatprep.subr.bf16.mxu1 %v3828_v9  ;;  %734 = vmatprep.mubr.bf16.mxu1 %v4509_v26  ;;  %v3914_v8 = vld [vmem:[%s5265_s1 + $0x3f4] ss:$8 sps:$4 sm:$0xff]   ;;  %v3909_v9 = vld [vmem:[%s5265_s1 + $0x2f0] ss:$8 sps:$4 sm:$0xff]  }
  0x4b   : > { %468 = vmatprep.mubr.bf16.mxu0 %v4509_v26 }
  0x4c   : > { %992 = vmatpush1.bf16.msra.mxu0 %v3823_v10  ;;  %v3912_v10 = vld [vmem:[%s5265_s1 + $0x3f0] ss:$8 sps:$4 sm:$0xff]  }
  0x4d   : > { %1314 = vmatpush1.bf16.msra.mxu1 %v3826_v11  ;;  %993 = vmatprep.subr.bf16.mxu0 %v3831_v12  ;;  %v3919_v11 = vld [vmem:[%s5265_s1 + $0x404] ss:$8 sps:$4 sm:$0xff]  }
  0x4e   : > { %1315 = vmatprep.subr.bf16.mxu1 %v3834_v13  ;;  %v3922_v12 = vld [vmem:[%s5265_s1 + $0x504] ss:$8 sps:$4 sm:$0xff]   ;;  %v3917_v13 = vld [vmem:[%s5265_s1 + $0x400] ss:$8 sps:$4 sm:$0xff]  }
  0x4f   : > { %469 = vmatmul.mubr.bf16.gmra.mrb[4].mxu0 %v4513_v27 }
  0x50   : > { %994 = vmatpush1.bf16.msra.mxu0 %v3829_v14  ;;  %735 = vmatmul.mubr.bf16.gmra.mrb[4].mxu1 %v4513_v27  ;;  %v4668_v14 = vcombine.low %v4375_v47, %v4496_v22  ;;  %v3929_v22 = vld [vmem:[%s5265_s1 + $0x420] ss:$8 sps:$4 sm:$0xff]  }
  0x51   : > { %1316 = vmatpush1.bf16.msra.mxu1 %v3832_v15  ;;  %995 = vmatprep.subr.bf16.mxu0 %v3837_v16  ;;  %v4671_v15 = vld [vmem:[%s4365_s11 + $0x20] sm:$0xff] }
  0x52   : > { %1317 = vmatprep.subr.bf16.mxu1 %v3840_v17  ;;  %1021 = vmatprep.mubr.bf16.mxu0 %v4384_v50  ;;  %v3879_v50 = vld [vmem:[%s5265_s1 + $0x2a4] ss:$8 sps:$4 sm:$0xff]   ;;  %v3920_v16 = vld [vmem:[%s5265_s1 + $0x500] ss:$8 sps:$4 sm:$0xff]   ;;  %v3925_v17 = vld [vmem:[%s5265_s1 + $0x414] ss:$8 sps:$4 sm:$0xff]   ;;  %v4684_v47 = vcombine.high %v4499_v23, %v4671_v15 }
  0x53   : > { %1343 = vmatprep.mubr.bf16.mxu1 %v4525_v30 }
  0x54   : > { %996 = vmatpush1.bf16.msra.mxu0 %v3835_v18  ;;  %v3928_v18 = vld [vmem:[%s5265_s1 + $0x514] ss:$8 sps:$4 sm:$0xff]  }
  0x55   : > { %1318 = vmatpush1.bf16.msra.mxu1 %v3838_v19  ;;  %997 = vmatprep.subr.bf16.mxu0 %v3843_v20  ;;  %v3923_v19 = vld [vmem:[%s5265_s1 + $0x410] ss:$8 sps:$4 sm:$0xff]  }
  0x56   : > { %1319 = vmatprep.subr.bf16.mxu1 %v3846_v21  ;;  %v3926_v20 = vld [vmem:[%s5265_s1 + $0x510] ss:$8 sps:$4 sm:$0xff]   ;;  %v3931_v21 = vld [vmem:[%s5265_s1 + $0x424] ss:$8 sps:$4 sm:$0xff]  }
  0x58   : > { %998 = vmatpush1.bf16.msra.mxu0 %v3841_v24  ;;  %v4707_v24 = vcombine.low %v4499_v23, %v4671_v15  ;;  %v3936_v23 = vld [vmem:[%s5265_s1 + $0x430] ss:$8 sps:$4 sm:$0xff]  }
  0x59   : > { %1320 = vmatpush1.bf16.msra.mxu1 %v3844_v25  ;;  %999 = vmatprep.subr.bf16.mxu0 %v3849_v28  ;;  %v3932_v25 = vld [vmem:[%s5265_s1 + $0x520] ss:$8 sps:$4 sm:$0xff]   ;;  %v3938_v28 = vld [vmem:[%s5265_s1 + $0x434] ss:$8 sps:$4 sm:$0xff]  }
  0x5a   : > { %1321 = vmatprep.subr.bf16.mxu1 %v3852_v29  ;;  %v3941_v29 = vld [vmem:[%s5265_s1 + $0x534] ss:$8 sps:$4 sm:$0xff]  }
  0x5c   : > { %1000 = vmatpush1.bf16.msra.mxu0 %v3847_v31  ;;  %v3939_v31 = vld [vmem:[%s5265_s1 + $0x530] ss:$8 sps:$4 sm:$0xff]  }
  0x5d   : > { %1322 = vmatpush1.bf16.msra.mxu1 %v3850_v32  ;;  %1001 = vmatprep.subr.bf16.mxu0 %v3855_v33  ;;  %v3945_v32 = vld [vmem:[%s5265_s1 + $0x444] ss:$8 sps:$4 sm:$0xff]  }
  0x5e   : > { %1323 = vmatprep.subr.bf16.mxu1 %v3858_v34  ;;  %v3948_v33 = vld [vmem:[%s5265_s1 + $0x544] ss:$8 sps:$4 sm:$0xff]   ;;  %v3943_v34 = vld [vmem:[%s5265_s1 + $0x440] ss:$8 sps:$4 sm:$0xff]  }
  0x60   : > { %1002 = vmatpush1.bf16.msra.mxu0 %v3853_v35  ;;  %v3946_v35 = vld [vmem:[%s5265_s1 + $0x540] ss:$8 sps:$4 sm:$0xff]  }
  0x61   : > { %1324 = vmatpush1.bf16.msra.mxu1 %v3856_v36  ;;  %1003 = vmatprep.subr.bf16.mxu0 %v3861_v37  ;;  %v3951_v36 = vld [vmem:[%s5265_s1 + $0x454] ss:$8 sps:$4 sm:$0xff]   ;;  %v3949_v37 = vld [vmem:[%s5265_s1 + $0x450] ss:$8 sps:$4 sm:$0xff]  }
  0x62   : > { %1325 = vmatprep.subr.bf16.mxu1 %v3864_v38  ;;  %v3952_v38 = vld [vmem:[%s5265_s1 + $0x550] ss:$8 sps:$4 sm:$0xff]  }
  0x64   : > { %1004 = vmatpush1.bf16.msra.mxu0 %v3859_v39  ;;  %v3957_v39 = vld [vmem:[%s5265_s1 + $0x464] ss:$8 sps:$4 sm:$0xff]  }
  0x65   : > { %1326 = vmatpush1.bf16.msra.mxu1 %v3862_v40  ;;  %1005 = vmatprep.subr.bf16.mxu0 %v3867_v41  ;;  %v3960_v40 = vld [vmem:[%s5265_s1 + $0x564] ss:$8 sps:$4 sm:$0xff]   ;;  %v3955_v41 = vld [vmem:[%s5265_s1 + $0x460] ss:$8 sps:$4 sm:$0xff]  }
  0x66   : > { %1327 = vmatprep.subr.bf16.mxu1 %v3870_v42  ;;  %v3958_v42 = vld [vmem:[%s5265_s1 + $0x560] ss:$8 sps:$4 sm:$0xff]  }
  0x68   : > { %1006 = vmatpush1.bf16.msra.mxu0 %v3865_v43  ;;  %v3963_v43 = vld [vmem:[%s5265_s1 + $0x474] ss:$8 sps:$4 sm:$0xff]  }
  0x69   : > { %1328 = vmatpush1.bf16.msra.mxu1 %v3868_v44  ;;  %1007 = vmatprep.subr.bf16.mxu0 %v3873_v45  ;;  %v3966_v44 = vld [vmem:[%s5265_s1 + $0x574] ss:$8 sps:$4 sm:$0xff]   ;;  %v3961_v45 = vld [vmem:[%s5265_s1 + $0x470] ss:$8 sps:$4 sm:$0xff]  }
  0x6a   : > { %1329 = vmatprep.subr.bf16.mxu1 %v3876_v46  ;;  %v3964_v46 = vld [vmem:[%s5265_s1 + $0x570] ss:$8 sps:$4 sm:$0xff]  }
  0x6c   : > { %1008 = vmatpush1.bf16.msra.mxu0 %v3871_v48  ;;  %v3969_v48 = vld [vmem:[%s5265_s1 + $0x484] ss:$8 sps:$4 sm:$0xff]  }
  0x6d   : > { %1330 = vmatpush1.bf16.msra.mxu1 %v3874_v49  ;;  %1009 = vmatprep.subr.bf16.mxu0 %v3879_v50  ;;  %v3972_v49 = vld [vmem:[%s5265_s1 + $0x584] ss:$8 sps:$4 sm:$0xff]   ;;  %v3967_v50 = vld [vmem:[%s5265_s1 + $0x480] ss:$8 sps:$4 sm:$0xff]  }
  0x6e   : > { %1331 = vmatprep.subr.bf16.mxu1 %v3882_v51  ;;  %v3970_v51 = vld [vmem:[%s5265_s1 + $0x580] ss:$8 sps:$4 sm:$0xff]  }
  0x70   : > { %1010 = vmatpush1.bf16.msra.mxu0 %v3877_v52  ;;  %v3975_v52 = vld [vmem:[%s5265_s1 + $0x494] ss:$8 sps:$4 sm:$0xff]  }
  0x71   : > { %1332 = vmatpush1.bf16.msra.mxu1 %v3880_v53  ;;  %1011 = vmatprep.subr.bf16.mxu0 %v3885_v54  ;;  %v3978_v53 = vld [vmem:[%s5265_s1 + $0x594] ss:$8 sps:$4 sm:$0xff]   ;;  %v3973_v54 = vld [vmem:[%s5265_s1 + $0x490] ss:$8 sps:$4 sm:$0xff]  }
  0x72   : > { %1333 = vmatprep.subr.bf16.mxu1 %v3888_v55  ;;  %v3976_v55 = vld [vmem:[%s5265_s1 + $0x590] ss:$8 sps:$4 sm:$0xff]  }
  0x74   : > { %1012 = vmatpush1.bf16.msra.mxu0 %v3883_v56  ;;  %v3981_v56 = vld [vmem:[%s5265_s1 + $0x4a4] ss:$8 sps:$4 sm:$0xff]  }
  0x75   : > { %1334 = vmatpush1.bf16.msra.mxu1 %v3886_v57  ;;  %1013 = vmatprep.subr.bf16.mxu0 %v3891_v58  ;;  %v3984_v57 = vld [vmem:[%s5265_s1 + $0x5a4] ss:$8 sps:$4 sm:$0xff]   ;;  %v3979_v58 = vld [vmem:[%s5265_s1 + $0x4a0] ss:$8 sps:$4 sm:$0xff]  }
  0x76   : > { %1335 = vmatprep.subr.bf16.mxu1 %v3894_v59  ;;  %v3982_v59 = vld [vmem:[%s5265_s1 + $0x5a0] ss:$8 sps:$4 sm:$0xff]  }
  0x78   : > { %1014 = vmatpush1.bf16.msra.mxu0 %v3889_v60  ;;  %v3987_v60 = vld [vmem:[%s5265_s1 + $0x4b4] ss:$8 sps:$4 sm:$0xff]  }
  0x79   : > { %1336 = vmatpush1.bf16.msra.mxu1 %v3892_v61  ;;  %1015 = vmatprep.subr.bf16.mxu0 %v3899_v62  ;;  %v3990_v61 = vld [vmem:[%s5265_s1 + $0x5b4] ss:$8 sps:$4 sm:$0xff]   ;;  %v3985_v62 = vld [vmem:[%s5265_s1 + $0x4b0] ss:$8 sps:$4 sm:$0xff]  }
  0x7a   : > { %1337 = vmatprep.subr.bf16.mxu1 %v3902_v63  ;;  %v3988_v63 = vld [vmem:[%s5265_s1 + $0x5b0] ss:$8 sps:$4 sm:$0xff]  }
  0x7c   : > { %1016 = vmatpush1.bf16.msra.mxu0 %v3897_v0  ;;  %v3993_v0 = vld [vmem:[%s5265_s1 + $0x4c4] ss:$8 sps:$4 sm:$0xff]  }
  0x7d   : > { %1338 = vmatpush1.bf16.msra.mxu1 %v3900_v1  ;;  %1017 = vmatprep.subr.bf16.mxu0 %v3905_v2  ;;  %v3996_v1 = vld [vmem:[%s5265_s1 + $0x5c4] ss:$8 sps:$4 sm:$0xff]   ;;  %v3991_v2 = vld [vmem:[%s5265_s1 + $0x4c0] ss:$8 sps:$4 sm:$0xff]  }
  0x7e   : > { %1339 = vmatprep.subr.bf16.mxu1 %v3908_v3  ;;  %v3994_v3 = vld [vmem:[%s5265_s1 + $0x5c0] ss:$8 sps:$4 sm:$0xff]  }
  0x80   : > { %1018 = vmatpush1.bf16.msra.mxu0 %v3903_v4  ;;  %v3999_v4 = vld [vmem:[%s5265_s1 + $0x4d4] ss:$8 sps:$4 sm:$0xff]  }
  0x81   : > { %1340 = vmatpush1.bf16.msra.mxu1 %v3906_v6  ;;  %1019 = vmatprep.subr.bf16.mxu0 %v3911_v7  ;;  %v4002_v6 = vld [vmem:[%s5265_s1 + $0x5d4] ss:$8 sps:$4 sm:$0xff]   ;;  %v3997_v7 = vld [vmem:[%s5265_s1 + $0x4d0] ss:$8 sps:$4 sm:$0xff]  }
  0x82   : > { %1341 = vmatprep.subr.bf16.mxu1 %v3914_v8  ;;  %v4000_v8 = vld [vmem:[%s5265_s1 + $0x5d0] ss:$8 sps:$4 sm:$0xff]  }
  0x84   : > { %1020 = vmatpush1.bf16.msra.mxu0 %v3909_v9  ;;  %v4005_v9 = vld [vmem:[%s5265_s1 + $0x4e4] ss:$8 sps:$4 sm:$0xff]  }
  0x85   : > { %1342 = vmatpush1.bf16.msra.mxu1 %v3912_v10  ;;  %1585 = vmatprep.subr.bf16.mxu0 %v3919_v11  ;;  %v4008_v10 = vld [vmem:[%s5265_s1 + $0x5e4] ss:$8 sps:$4 sm:$0xff]   ;;  %v4003_v11 = vld [vmem:[%s5265_s1 + $0x4e0] ss:$8 sps:$4 sm:$0xff]  }
  0x86   : > { %1879 = vmatprep.subr.bf16.mxu1 %v3922_v12  ;;  %v4006_v12 = vld [vmem:[%s5265_s1 + $0x5e0] ss:$8 sps:$4 sm:$0xff]  }
  0x87   : > { %1022 = vmatmul.mubr.bf16.vlgmr.msra.gmra.mrb[8].mxu0 %v4443_v5  ;;  %v3934_v5 = vld [vmem:[%s5265_s1 + $0x524] ss:$8 sps:$4 sm:$0xff]  }
  0x88   : > { %1344 = vmatmul.mubr.bf16.vlgmr.msra.gmra.mrb[8].mxu1 %v4668_v14  ;;  %1586 = vmatpush1.bf16.msra.mxu0 %v3917_v13  ;;  %v4011_v13 = vld [vmem:[%s5265_s1 + $0x4f4] ss:$8 sps:$4 sm:$0xff]  }
  0x89   : > { %1880 = vmatpush1.bf16.msra.mxu1 %v3920_v16  ;;  %1587 = vmatprep.subr.bf16.mxu0 %v3925_v17  ;;  %v4014_v16 = vld [vmem:[%s5265_s1 + $0x5f4] ss:$8 sps:$4 sm:$0xff]   ;;  %v4009_v17 = vld [vmem:[%s5265_s1 + $0x4f0] ss:$8 sps:$4 sm:$0xff]  }
  0x8a   : > { %1881 = vmatprep.subr.bf16.mxu1 %v3928_v18  ;;  %1031 = vmatprep.mubr.bf16.mxu0 %v4509_v26  ;;  %v4012_v18 = vld [vmem:[%s5265_s1 + $0x5f0] ss:$8 sps:$4 sm:$0xff]  }
  0x8b   : > { %1353 = vmatprep.mubr.bf16.mxu1 %v4684_v47 }
  0x8c   : > { %1588 = vmatpush1.bf16.msra.mxu0 %v3923_v19  ;;  %v4017_v19 = vld [vmem:[%s5265_s1 + $0x604] ss:$8 sps:$4 sm:$0xff]  }
  0x8d   : > { %1882 = vmatpush1.bf16.msra.mxu1 %v3926_v20  ;;  %1589 = vmatprep.subr.bf16.mxu0 %v3931_v21  ;;  %v4020_v20 = vld [vmem:[%s5265_s1 + $0x704] ss:$8 sps:$4 sm:$0xff]   ;;  %v4015_v21 = vld [vmem:[%s5265_s1 + $0x600] ss:$8 sps:$4 sm:$0xff]  }
  0x8e   : > { %1883 = vmatprep.subr.bf16.mxu1 %v3934_v5  ;;  %v4018_v5 = vld [vmem:[%s5265_s1 + $0x700] ss:$8 sps:$4 sm:$0xff]  }
  0x8f   : > { %1032 = vmatmul.mubr.bf16.gmra.mrb[12].mxu0 %v4513_v27 }
  0x90   : > { %1354 = vmatmul.mubr.bf16.gmra.mrb[12].mxu1 %v4707_v24  ;;  %1590 = vmatpush1.bf16.msra.mxu0 %v3929_v22  ;;  %v4023_v22 = vld [vmem:[%s5265_s1 + $0x614] ss:$8 sps:$4 sm:$0xff]  }
  0x91   : > { %1884 = vmatpush1.bf16.msra.mxu1 %v3932_v25  ;;  %1591 = vmatprep.subr.bf16.mxu0 %v3938_v28  ;;  %v4026_v25 = vld [vmem:[%s5265_s1 + $0x714] ss:$8 sps:$4 sm:$0xff]   ;;  %v4021_v28 = vld [vmem:[%s5265_s1 + $0x610] ss:$8 sps:$4 sm:$0xff]  }
  0x92   : > { %1885 = vmatprep.subr.bf16.mxu1 %v3941_v29  ;;  %1617 = vmatprep.mubr.bf16.mxu0 %v4525_v30  ;;  %v4024_v29 = vld [vmem:[%s5265_s1 + $0x710] ss:$8 sps:$4 sm:$0xff]  }
  0x93   : > { %1911 = vmatprep.mubr.bf16.mxu1 %v4525_v30  ;;  %v3954_v30 = vld [vmem:[%s5265_s1 + $0x554] ss:$8 sps:$4 sm:$0xff]  }
  0x94   : > { %1592 = vmatpush1.bf16.msra.mxu0 %v3936_v23  ;;  %v4029_v23 = vld [vmem:[%s5265_s1 + $0x624] ss:$8 sps:$4 sm:$0xff]  }
  0x95   : > { %1886 = vmatpush1.bf16.msra.mxu1 %v3939_v31  ;;  %1593 = vmatprep.subr.bf16.mxu0 %v3945_v32  ;;  %v4027_v31 = vld [vmem:[%s5265_s1 + $0x620] ss:$8 sps:$4 sm:$0xff]  }
  0x96   : > { %1887 = vmatprep.subr.bf16.mxu1 %v3948_v33  ;;  %v4030_v32 = vld [vmem:[%s5265_s1 + $0x720] ss:$8 sps:$4 sm:$0xff]   ;;  %v4035_v33 = vld [vmem:[%s5265_s1 + $0x634] ss:$8 sps:$4 sm:$0xff]  }
  0x98   : > { %1594 = vmatpush1.bf16.msra.mxu0 %v3943_v34  ;;  %v4033_v34 = vld [vmem:[%s5265_s1 + $0x630] ss:$8 sps:$4 sm:$0xff]  }
  0x99   : > { %1888 = vmatpush1.bf16.msra.mxu1 %v3946_v35  ;;  %1595 = vmatprep.subr.bf16.mxu0 %v3951_v36  ;;  %v4036_v35 = vld [vmem:[%s5265_s1 + $0x730] ss:$8 sps:$4 sm:$0xff]   ;;  %v4041_v36 = vld [vmem:[%s5265_s1 + $0x644] ss:$8 sps:$4 sm:$0xff]  }
  0x9a   : > { %1889 = vmatprep.subr.bf16.mxu1 %v3954_v30  ;;  %v4039_v30 = vld [vmem:[%s5265_s1 + $0x640] ss:$8 sps:$4 sm:$0xff]  }
  0x9c   : > { %1596 = vmatpush1.bf16.msra.mxu0 %v3949_v37  ;;  %v4042_v37 = vld [vmem:[%s5265_s1 + $0x740] ss:$8 sps:$4 sm:$0xff]  }
  0x9d   : > { %1890 = vmatpush1.bf16.msra.mxu1 %v3952_v38  ;;  %1597 = vmatprep.subr.bf16.mxu0 %v3957_v39  ;;  %v4047_v38 = vld [vmem:[%s5265_s1 + $0x654] ss:$8 sps:$4 sm:$0xff]  }
  0x9e   : > { %1891 = vmatprep.subr.bf16.mxu1 %v3960_v40  ;;  %v4050_v39 = vld [vmem:[%s5265_s1 + $0x754] ss:$8 sps:$4 sm:$0xff]   ;;  %v4045_v40 = vld [vmem:[%s5265_s1 + $0x650] ss:$8 sps:$4 sm:$0xff]  }
  0xa0   : > { %1598 = vmatpush1.bf16.msra.mxu0 %v3955_v41  ;;  %v4048_v41 = vld [vmem:[%s5265_s1 + $0x750] ss:$8 sps:$4 sm:$0xff]  }
  0xa1   : > { %1892 = vmatpush1.bf16.msra.mxu1 %v3958_v42  ;;  %1599 = vmatprep.subr.bf16.mxu0 %v3963_v43  ;;  %v4053_v42 = vld [vmem:[%s5265_s1 + $0x664] ss:$8 sps:$4 sm:$0xff]  }
  0xa2   : > { %1893 = vmatprep.subr.bf16.mxu1 %v3966_v44  ;;  %v4056_v43 = vld [vmem:[%s5265_s1 + $0x764] ss:$8 sps:$4 sm:$0xff]   ;;  %v4051_v44 = vld [vmem:[%s5265_s1 + $0x660] ss:$8 sps:$4 sm:$0xff]  }
  0xa4   : > { %1600 = vmatpush1.bf16.msra.mxu0 %v3961_v45  ;;  %v4054_v45 = vld [vmem:[%s5265_s1 + $0x760] ss:$8 sps:$4 sm:$0xff]  }
  0xa5   : > { %1894 = vmatpush1.bf16.msra.mxu1 %v3964_v46  ;;  %1601 = vmatprep.subr.bf16.mxu0 %v3969_v48  ;;  %v4059_v46 = vld [vmem:[%s5265_s1 + $0x674] ss:$8 sps:$4 sm:$0xff]  }
  0xa6   : > { %1895 = vmatprep.subr.bf16.mxu1 %v3972_v49  ;;  %v4062_v48 = vld [vmem:[%s5265_s1 + $0x774] ss:$8 sps:$4 sm:$0xff]   ;;  %v4057_v49 = vld [vmem:[%s5265_s1 + $0x670] ss:$8 sps:$4 sm:$0xff]  }
  0xa8   : > { %1602 = vmatpush1.bf16.msra.mxu0 %v3967_v50  ;;  %v4060_v50 = vld [vmem:[%s5265_s1 + $0x770] ss:$8 sps:$4 sm:$0xff]  }
  0xa9   : > { %1896 = vmatpush1.bf16.msra.mxu1 %v3970_v51  ;;  %1603 = vmatprep.subr.bf16.mxu0 %v3975_v52  ;;  %v4065_v51 = vld [vmem:[%s5265_s1 + $0x684] ss:$8 sps:$4 sm:$0xff]  }
  0xaa   : > { %1897 = vmatprep.subr.bf16.mxu1 %v3978_v53  ;;  %v4068_v52 = vld [vmem:[%s5265_s1 + $0x784] ss:$8 sps:$4 sm:$0xff]   ;;  %v4063_v53 = vld [vmem:[%s5265_s1 + $0x680] ss:$8 sps:$4 sm:$0xff]  }
  0xac   : > { %1604 = vmatpush1.bf16.msra.mxu0 %v3973_v54  ;;  %v4066_v54 = vld [vmem:[%s5265_s1 + $0x780] ss:$8 sps:$4 sm:$0xff]  }
  0xad   : > { %1898 = vmatpush1.bf16.msra.mxu1 %v3976_v55  ;;  %1605 = vmatprep.subr.bf16.mxu0 %v3981_v56  ;;  %v4071_v55 = vld [vmem:[%s5265_s1 + $0x694] ss:$8 sps:$4 sm:$0xff]  }
  0xae   : > { %1899 = vmatprep.subr.bf16.mxu1 %v3984_v57  ;;  %v4074_v56 = vld [vmem:[%s5265_s1 + $0x794] ss:$8 sps:$4 sm:$0xff]   ;;  %v4069_v57 = vld [vmem:[%s5265_s1 + $0x690] ss:$8 sps:$4 sm:$0xff]  }
  0xb0   : > { %1606 = vmatpush1.bf16.msra.mxu0 %v3979_v58  ;;  %v4072_v58 = vld [vmem:[%s5265_s1 + $0x790] ss:$8 sps:$4 sm:$0xff]  }
  0xb1   : > { %1900 = vmatpush1.bf16.msra.mxu1 %v3982_v59  ;;  %1607 = vmatprep.subr.bf16.mxu0 %v3987_v60  ;;  %v4077_v59 = vld [vmem:[%s5265_s1 + $0x6a4] ss:$8 sps:$4 sm:$0xff]  }
  0xb2   : > { %1901 = vmatprep.subr.bf16.mxu1 %v3990_v61  ;;  %v4080_v60 = vld [vmem:[%s5265_s1 + $0x7a4] ss:$8 sps:$4 sm:$0xff]   ;;  %v4075_v61 = vld [vmem:[%s5265_s1 + $0x6a0] ss:$8 sps:$4 sm:$0xff]  }
  0xb4   : > { %1608 = vmatpush1.bf16.msra.mxu0 %v3985_v62  ;;  %v4078_v62 = vld [vmem:[%s5265_s1 + $0x7a0] ss:$8 sps:$4 sm:$0xff]  }
  0xb5   : > { %1902 = vmatpush1.bf16.msra.mxu1 %v3988_v63  ;;  %1609 = vmatprep.subr.bf16.mxu0 %v3993_v0  ;;  %v4083_v63 = vld [vmem:[%s5265_s1 + $0x6b4] ss:$8 sps:$4 sm:$0xff]  }
  0xb6   : > { %1903 = vmatprep.subr.bf16.mxu1 %v3996_v1  ;;  %v4086_v0 = vld [vmem:[%s5265_s1 + $0x7b4] ss:$8 sps:$4 sm:$0xff]   ;;  %v4081_v1 = vld [vmem:[%s5265_s1 + $0x6b0] ss:$8 sps:$4 sm:$0xff]  }
  0xb8   : > { %1610 = vmatpush1.bf16.msra.mxu0 %v3991_v2  ;;  %v4084_v2 = vld [vmem:[%s5265_s1 + $0x7b0] ss:$8 sps:$4 sm:$0xff]  }
  0xb9   : > { %1904 = vmatpush1.bf16.msra.mxu1 %v3994_v3  ;;  %1611 = vmatprep.subr.bf16.mxu0 %v3999_v4  ;;  %v4089_v3 = vld [vmem:[%s5265_s1 + $0x6c4] ss:$8 sps:$4 sm:$0xff]  }
  0xba   : > { %1905 = vmatprep.subr.bf16.mxu1 %v4002_v6  ;;  %v4092_v4 = vld [vmem:[%s5265_s1 + $0x7c4] ss:$8 sps:$4 sm:$0xff]   ;;  %v4087_v6 = vld [vmem:[%s5265_s1 + $0x6c0] ss:$8 sps:$4 sm:$0xff]  }
  0xbc   : > { %1612 = vmatpush1.bf16.msra.mxu0 %v3997_v7  ;;  %v4090_v7 = vld [vmem:[%s5265_s1 + $0x7c0] ss:$8 sps:$4 sm:$0xff]  }
  0xbd   : > { %1906 = vmatpush1.bf16.msra.mxu1 %v4000_v8  ;;  %1613 = vmatprep.subr.bf16.mxu0 %v4005_v9  ;;  %v4095_v8 = vld [vmem:[%s5265_s1 + $0x6d4] ss:$8 sps:$4 sm:$0xff]  }
  0xbe   : > { %1907 = vmatprep.subr.bf16.mxu1 %v4008_v10  ;;  %v4098_v9 = vld [vmem:[%s5265_s1 + $0x7d4] ss:$8 sps:$4 sm:$0xff]   ;;  %v4093_v10 = vld [vmem:[%s5265_s1 + $0x6d0] ss:$8 sps:$4 sm:$0xff]  }
  0xc0   : > { %1614 = vmatpush1.bf16.msra.mxu0 %v4003_v11  ;;  %v4096_v11 = vld [vmem:[%s5265_s1 + $0x7d0] ss:$8 sps:$4 sm:$0xff]  }
  0xc1   : > { %1908 = vmatpush1.bf16.msra.mxu1 %v4006_v12  ;;  %1615 = vmatprep.subr.bf16.mxu0 %v4011_v13  ;;  %v4101_v12 = vld [vmem:[%s5265_s1 + $0x6e4] ss:$8 sps:$4 sm:$0xff]  }
  0xc2   : > { %1909 = vmatprep.subr.bf16.mxu1 %v4014_v16  ;;  %v4104_v13 = vld [vmem:[%s5265_s1 + $0x7e4] ss:$8 sps:$4 sm:$0xff]   ;;  %v4099_v16 = vld [vmem:[%s5265_s1 + $0x6e0] ss:$8 sps:$4 sm:$0xff]  }
  0xc4   : > { %1616 = vmatpush1.bf16.msra.mxu0 %v4009_v17  ;;  %v4102_v17 = vld [vmem:[%s5265_s1 + $0x7e0] ss:$8 sps:$4 sm:$0xff]  }
  0xc5   : > { %1910 = vmatpush1.bf16.msra.mxu1 %v4012_v18  ;;  %2198 = vmatprep.subr.bf16.mxu0 %v4017_v19  ;;  %v4107_v18 = vld [vmem:[%s5265_s1 + $0x6f4] ss:$8 sps:$4 sm:$0xff]  }
  0xc6   : > { %2472 = vmatprep.subr.bf16.mxu1 %v4020_v20  ;;  %v4110_v19 = vld [vmem:[%s5265_s1 + $0x7f4] ss:$8 sps:$4 sm:$0xff]   ;;  %v4105_v20 = vld [vmem:[%s5265_s1 + $0x6f0] ss:$8 sps:$4 sm:$0xff]  }
  0xc7   : > { %1618 = vmatmul.mubr.bf16.vlgmr.msra.gmra.mrb[16].mxu0 %v4668_v14 }
  0xc8   : > { %1912 = vmatmul.mubr.bf16.vlgmr.msra.gmra.mrb[16].mxu1 %v4668_v14  ;;  %2199 = vmatpush1.bf16.msra.mxu0 %v4015_v21  ;;  %v4032_v14 = vld [vmem:[%s5265_s1 + $0x724] ss:$8 sps:$4 sm:$0xff]   ;;  %v4108_v21 = vld [vmem:[%s5265_s1 + $0x7f0] ss:$8 sps:$4 sm:$0xff]  }
  0xc9   : > { %2473 = vmatpush1.bf16.msra.mxu1 %v4018_v5  ;;  %2200 = vmatprep.subr.bf16.mxu0 %v4023_v22  ;;  %v4113_v5 = vld [vmem:[%s5265_s1 + $0x804] ss:$8 sps:$4 sm:$0xff]  }
  0xca   : > { %2474 = vmatprep.subr.bf16.mxu1 %v4026_v25  ;;  %1627 = vmatprep.mubr.bf16.mxu0 %v4684_v47  ;;  %v3446_v22 = vld [vmem:[%s4365_s11 + $0x28] sm:$0xff] }
  0xcb   : > { %1921 = vmatprep.mubr.bf16.mxu1 %v4684_v47  ;;  %v4038_v47 = vld [vmem:[%s5265_s1 + $0x734] ss:$8 sps:$4 sm:$0xff]   ;;  %v4111_v25 = vld [vmem:[%s5265_s1 + $0x800] ss:$8 sps:$4 sm:$0xff]  }
  0xcc   : > { %2201 = vmatpush1.bf16.msra.mxu0 %v4021_v28  ;;  %v4116_v28 = vld [vmem:[%s5265_s1 + $0x814] ss:$8 sps:$4 sm:$0xff]  }
  0xcd   : > { %2475 = vmatpush1.bf16.msra.mxu1 %v4024_v29  ;;  %2202 = vmatprep.subr.bf16.mxu0 %v4029_v23  ;;  %v3482_v29 = vcombine.high %v4671_v15, %v3446_v22  ;;  %v4114_v23 = vld [vmem:[%s5265_s1 + $0x810] ss:$8 sps:$4 sm:$0xff]  }
  0xce   : > { %2476 = vmatprep.subr.bf16.mxu1 %v4032_v14  ;;  %v4121_v14 = vld [vmem:[%s5265_s1 + $0x824] ss:$8 sps:$4 sm:$0xff]  }
  0xcf   : > { %1628 = vmatmul.mubr.bf16.gmra.mrb[20].mxu0 %v4707_v24 }
  0xd0   : > { %1922 = vmatmul.mubr.bf16.gmra.mrb[20].mxu1 %v4707_v24  ;;  %2203 = vmatpush1.bf16.msra.mxu0 %v4027_v31  ;;  %v4044_v24 = vld [vmem:[%s5265_s1 + $0x744] ss:$8 sps:$4 sm:$0xff]   ;;  %v5092_v31 = vcombine.low %v4671_v15, %v3446_v22  ;;  %v4122_v15 = vld [vmem:[%s5265_s1 + $0x830] ss:$8 sps:$4 sm:$0xff]  }
  0xd1   : > { %2477 = vmatpush1.bf16.msra.mxu1 %v4030_v32  ;;  %2204 = vmatprep.subr.bf16.mxu0 %v4035_v33  ;;  %v4119_v32 = vld [vmem:[%s5265_s1 + $0x820] ss:$8 sps:$4 sm:$0xff]   ;;  %v4124_v33 = vld [vmem:[%s5265_s1 + $0x834] ss:$8 sps:$4 sm:$0xff]  }
  0xd2   : > { %2478 = vmatprep.subr.bf16.mxu1 %v4038_v47  ;;  %2230 = vmatprep.mubr.bf16.mxu0 %v4509_v26  ;;  %v4127_v47 = vld [vmem:[%s5265_s1 + $0x844] ss:$8 sps:$4 sm:$0xff]  }
  0xd3   : > { %2504 = vmatprep.mubr.bf16.mxu1 %v4509_v26 }
  0xd4   : > { %2205 = vmatpush1.bf16.msra.mxu0 %v4033_v34  ;;  %v4125_v34 = vld [vmem:[%s5265_s1 + $0x840] ss:$8 sps:$4 sm:$0xff]  }
  0xd5   : > { %2479 = vmatpush1.bf16.msra.mxu1 %v4036_v35  ;;  %2206 = vmatprep.subr.bf16.mxu0 %v4041_v36  ;;  %v4130_v35 = vld [vmem:[%s5265_s1 + $0x854] ss:$8 sps:$4 sm:$0xff]   ;;  %v4128_v36 = vld [vmem:[%s5265_s1 + $0x850] ss:$8 sps:$4 sm:$0xff]  }
  0xd6   : > { %2480 = vmatprep.subr.bf16.mxu1 %v4044_v24 }
  0xd8   : > { %2207 = vmatpush1.bf16.msra.mxu0 %v4039_v30 }
  0xd9   : > { %2481 = vmatpush1.bf16.msra.mxu1 %v4042_v37  ;;  %2208 = vmatprep.subr.bf16.mxu0 %v4047_v38 }
  0xda   : > { %2482 = vmatprep.subr.bf16.mxu1 %v4050_v39 }
  0xdc   : > { %2209 = vmatpush1.bf16.msra.mxu0 %v4045_v40 }
  0xdd   : > { %2483 = vmatpush1.bf16.msra.mxu1 %v4048_v41  ;;  %2210 = vmatprep.subr.bf16.mxu0 %v4053_v42 }
  0xde   : > { %2484 = vmatprep.subr.bf16.mxu1 %v4056_v43 }
  0xe0   : > { %2211 = vmatpush1.bf16.msra.mxu0 %v4051_v44  ;;  %v4131_v44 = vld [vmem:[%s5265_s1 + $0x860] ss:$8 sps:$4 sm:$0xff]  }
  0xe1   : > { %2485 = vmatpush1.bf16.msra.mxu1 %v4054_v45  ;;  %2212 = vmatprep.subr.bf16.mxu0 %v4059_v46 }
  0xe2   : > { %2486 = vmatprep.subr.bf16.mxu1 %v4062_v48 }
  0xe4   : > { %2213 = vmatpush1.bf16.msra.mxu0 %v4057_v49  ;;  %v4136_v49 = vld [vmem:[%s5265_s1 + $0x874] ss:$8 sps:$4 sm:$0xff]  }
  0xe5   : > { %2487 = vmatpush1.bf16.msra.mxu1 %v4060_v50  ;;  %2214 = vmatprep.subr.bf16.mxu0 %v4065_v51 }
  0xe6   : > { %2488 = vmatprep.subr.bf16.mxu1 %v4068_v52 }
  0xe8   : > { %2215 = vmatpush1.bf16.msra.mxu0 %v4063_v53 }
  0xe9   : > { %2489 = vmatpush1.bf16.msra.mxu1 %v4066_v54  ;;  %2216 = vmatprep.subr.bf16.mxu0 %v4071_v55 }
  0xea   : > { %2490 = vmatprep.subr.bf16.mxu1 %v4074_v56 }
  0xec   : > { %2217 = vmatpush1.bf16.msra.mxu0 %v4069_v57  ;;  %v4134_v57 = vld [vmem:[%s5265_s1 + $0x870] ss:$8 sps:$4 sm:$0xff]  }
  0xed   : > { %2491 = vmatpush1.bf16.msra.mxu1 %v4072_v58  ;;  %2218 = vmatprep.subr.bf16.mxu0 %v4077_v59  ;;  %v4139_v59 = vld [vmem:[%s5265_s1 + $0x884] ss:$8 sps:$4 sm:$0xff]  }
  0xee   : > { %2492 = vmatprep.subr.bf16.mxu1 %v4080_v60 }
  0xf0   : > { %2219 = vmatpush1.bf16.msra.mxu0 %v4075_v61 }
  0xf1   : > { %2493 = vmatpush1.bf16.msra.mxu1 %v4078_v62  ;;  %2220 = vmatprep.subr.bf16.mxu0 %v4083_v63  ;;  %v4137_v62 = vld [vmem:[%s5265_s1 + $0x880] ss:$8 sps:$4 sm:$0xff]  }
  0xf2   : > { %2494 = vmatprep.subr.bf16.mxu1 %v4086_v0  ;;  %v4142_v0 = vld [vmem:[%s5265_s1 + $0x894] ss:$8 sps:$4 sm:$0xff]  }
  0xf4   : > { %2221 = vmatpush1.bf16.msra.mxu0 %v4081_v1  ;;  %v4140_v1 = vld [vmem:[%s5265_s1 + $0x890] ss:$8 sps:$4 sm:$0xff]  }
  0xf5   : > { %2495 = vmatpush1.bf16.msra.mxu1 %v4084_v2  ;;  %2222 = vmatprep.subr.bf16.mxu0 %v4089_v3  ;;  %v4145_v2 = vld [vmem:[%s5265_s1 + $0x8a4] ss:$8 sps:$4 sm:$0xff]  }
  0xf6   : > { %2496 = vmatprep.subr.bf16.mxu1 %v4092_v4 }
  0xf8   : > { %2223 = vmatpush1.bf16.msra.mxu0 %v4087_v6 }
  0xf9   : > { %2497 = vmatpush1.bf16.msra.mxu1 %v4090_v7  ;;  %2224 = vmatprep.subr.bf16.mxu0 %v4095_v8  ;;  %v4143_v8 = vld [vmem:[%s5265_s1 + $0x8a0] ss:$8 sps:$4 sm:$0xff]  }
  0xfa   : > { %2498 = vmatprep.subr.bf16.mxu1 %v4098_v9 }
  0xfc   : > { %2225 = vmatpush1.bf16.msra.mxu0 %v4093_v10 }
  0xfd   : > { %2499 = vmatpush1.bf16.msra.mxu1 %v4096_v11  ;;  %2226 = vmatprep.subr.bf16.mxu0 %v4101_v12 }
  0xfe   : > { %2500 = vmatprep.subr.bf16.mxu1 %v4104_v13 }
 0x100   : > { %2227 = vmatpush1.bf16.msra.mxu0 %v4099_v16  ;;  %v4148_v16 = vld [vmem:[%s5265_s1 + $0x8b4] ss:$8 sps:$4 sm:$0xff]  }
 0x101   : > { %2501 = vmatpush1.bf16.msra.mxu1 %v4102_v17  ;;  %2228 = vmatprep.subr.bf16.mxu0 %v4107_v18 }
 0x102   : > { %2502 = vmatprep.subr.bf16.mxu1 %v4110_v19 }
 0x104   : > { %2229 = vmatpush1.bf16.msra.mxu0 %v4105_v20 }
 0x105   : > { %2503 = vmatpush1.bf16.msra.mxu1 %v4108_v21  ;;  %2766 = vmatprep.subr.bf16.mxu0 %v4113_v5 }
 0x106   : > { %3662 = vmatprep.subr.bf16.mxu1 %v4113_v5 }
 0x107   : > { %2231 = vmatmul.mubr.bf16.vlgmr.msra.gmra.mrb[24].mxu0 %v4513_v27 }
 0x108   : > { %2505 = vmatmul.mubr.bf16.vlgmr.msra.gmra.mrb[24].mxu1 %v4513_v27  ;;  %2767 = vmatpush1.bf16.msra.mxu0 %v4111_v25 }
 0x109   : > { %3678 = vmatpush1.bf16.msra.mxu1 %v4111_v25  ;;  %2768 = vmatprep.subr.bf16.mxu0 %v4116_v28  ;;  %v4146_v25 = vld [vmem:[%s5265_s1 + $0x8b0] ss:$8 sps:$4 sm:$0xff]  }
 0x10a   : > { %3663 = vmatprep.subr.bf16.mxu1 %v4116_v28  ;;  %2240 = vmatprep.mubr.bf16.mxu0 %v3482_v29 }
 0x10b   : > { %2514 = vmatprep.mubr.bf16.mxu1 %v3482_v29 }
 0x10c   : > { %2769 = vmatpush1.bf16.msra.mxu0 %v4114_v23 }
 0x10d   : > { %3679 = vmatpush1.bf16.msra.mxu1 %v4114_v23  ;;  %2770 = vmatprep.subr.bf16.mxu0 %v4121_v14 }
 0x10e   : > { %3664 = vmatprep.subr.bf16.mxu1 %v4121_v14  ;;  %v4151_v14 = vld [vmem:[%s5265_s1 + $0x8c4] ss:$8 sps:$4 sm:$0xff]  }
 0x10f   : > { %2241 = vmatmul.mubr.bf16.gmra.mrb[28].mxu0 %v5092_v31 }
 0x110   : > { %2515 = vmatmul.mubr.bf16.gmra.mrb[28].mxu1 %v5092_v31  ;;  %2771 = vmatpush1.bf16.msra.mxu0 %v4119_v32 }
 0x111   : > { %3680 = vmatpush1.bf16.msra.mxu1 %v4119_v32  ;;  %2772 = vmatprep.subr.bf16.mxu0 %v4124_v33 }
 0x112   : > { %3665 = vmatprep.subr.bf16.mxu1 %v4124_v33  ;;  %2798 = vmatprep.mubr.bf16.mxu0 %v4509_v26  ;;  %v4133_v26 = vld [vmem:[%s5265_s1 + $0x864] ss:$8 sps:$4 sm:$0xff]  }
 0x113   : > { %2808 = vmatprep.mubr.bf16.mxu1 %v3482_v29 }
 0x114   : > { %2773 = vmatpush1.bf16.msra.mxu0 %v4122_v15 }
 0x115   : > { %3681 = vmatpush1.bf16.msra.mxu1 %v4122_v15  ;;  %2774 = vmatprep.subr.bf16.mxu0 %v4127_v47 }
 0x116   : > { %3666 = vmatprep.subr.bf16.mxu1 %v4127_v47  ;;  %v4149_v47 = vld [vmem:[%s5265_s1 + $0x8c0] ss:$8 sps:$4 sm:$0xff]  }
 0x118   : > { %2775 = vmatpush1.bf16.msra.mxu0 %v4125_v34 }
 0x119   : > { %3682 = vmatpush1.bf16.msra.mxu1 %v4125_v34  ;;  %2776 = vmatprep.subr.bf16.mxu0 %v4130_v35  ;;  %v4154_v34 = vld [vmem:[%s5265_s1 + $0x8d4] ss:$8 sps:$4 sm:$0xff]  }
 0x11a   : > { %3667 = vmatprep.subr.bf16.mxu1 %v4130_v35  ;;  %v460_v24 = vpop.f32.mrb[0].mxu0  ;;  %v4152_v35 = vld [vmem:[%s5265_s1 + $0x8d0] ss:$8 sps:$4 sm:$0xff]  }
 0x11b   : > { %v726_v30 = vpop.f32.mrb[0].mxu1  ;;  %v462_v37 = vpop.f32.mrb[1].mxu0 }
 0x11c   : > { %v728_v38 = vpop.f32.mrb[1].mxu1  ;;  %v487_v39 = vcombine.low %v460_v24, %v462_v37  ;;  %v464_v42 = vpop.f32.mrb[2].mxu0  ;;  %2777 = vmatpush1.bf16.msra.mxu0 %v4128_v36  ;;  %v4160_v24 = vld [vmem:[%s5265_s1 + $0x8f4] ss:$8 sps:$4 sm:$0xff]  }
 0x11d   : > { %v757_v40 = vcombine.low %v726_v30, %v728_v38  ;;  %v758_v41 = vcombine.high %v726_v30, %v728_v38  ;;  %v730_v43 = vpop.f32.mrb[2].mxu1  ;;  %3683 = vmatpush1.bf16.msra.mxu1 %v4128_v36  ;;  %v466_v46 = vpop.f32.mrb[3].mxu0  ;;  %2778 = vmatprep.subr.bf16.mxu0 %v4133_v26  ;;  %v4157_v36 = vld [vmem:[%s5265_s1 + $0x8e4] ss:$8 sps:$4 sm:$0xff]   ;;  %v4158_v30 = vld [vmem:[%s5265_s1 + $0x8f0] ss:$8 sps:$4 sm:$0xff]  }
 0x11e   : > { %v732_v48 = vpop.f32.mrb[3].mxu1  ;;  %3668 = vmatprep.subr.bf16.mxu1 %v4133_v26  ;;  %v488_v52 = vcombine.low %v464_v42, %v466_v46  ;;  %v4155_v26 = vld [vmem:[%s5265_s1 + $0x8e0] ss:$8 sps:$4 sm:$0xff]  }
 0x11f   : > { %v3163_v50 = vrot.slane %v757_v40, 9  ;;  %v770_v51 = vrot.slane %v758_v41, 5  ;;  %v759_v53 = vcombine.low %v730_v43, %v732_v48  ;;  %v760_v54 = vcombine.high %v730_v43, %v732_v48 }
 0x120   : > { %2779 = vmatpush1.bf16.msra.mxu0 %v4131_v44 }
 0x121   : > { %v771_v55 = vsel %vm5124_vm2, %v3163_v50, %v770_v51  ;;  %v3164_v56 = vrot.slane %v759_v53, 9  ;;  %3684 = vmatpush1.bf16.msra.mxu1 %v4131_v44  ;;  %v774_v58 = vrot.slane %v760_v54, 5  ;;  %2780 = vmatprep.subr.bf16.mxu0 %v4136_v49 }
 0x122   : > { %3669 = vmatprep.subr.bf16.mxu1 %v4136_v49  ;;  %v5139_v60 = vadd.f32 %v771_v55, %v487_v39  ;;  %v470_v4 = vpop.f32.mrb[4].mxu0 }
 0x123   : > { %v775_v61 = vsel %vm5124_vm2, %v3164_v56, %v774_v58  ;;  %v736_v3 = vpop.f32.mrb[4].mxu1  ;;  %v472_v7 = vpop.f32.mrb[5].mxu0 }
 0x124   : > { %2781 = vmatpush1.bf16.msra.mxu0 %v4134_v57  ;;  %v5146_v63 = vadd.f32 %v775_v61, %v488_v52  ;;  %v738_v6 = vpop.f32.mrb[5].mxu1  ;;  %v489_v12 = vcombine.low %v470_v4, %v472_v7  ;;  %v474_v13 = vpop.f32.mrb[6].mxu0 }
 0x125   : > { %3685 = vmatpush1.bf16.msra.mxu1 %v4134_v57  ;;  %2782 = vmatprep.subr.bf16.mxu0 %v4139_v59  ;;  %v761_v9 = vcombine.low %v736_v3, %v738_v6  ;;  %v762_v10 = vcombine.high %v736_v3, %v738_v6  ;;  %v740_v11 = vpop.f32.mrb[6].mxu1  ;;  %v476_v18 = vpop.f32.mrb[7].mxu0 }
 0x126   : > { %3670 = vmatprep.subr.bf16.mxu1 %v4139_v59  ;;  %v742_v17 = vpop.f32.mrb[7].mxu1  ;;  %v490_v22 = vcombine.low %v474_v13, %v476_v18 }
 0x127   : > { %v3165_v19 = vrot.slane %v761_v9, 9  ;;  %v778_v20 = vrot.slane %v762_v10, 5  ;;  %v763_v21 = vcombine.low %v740_v11, %v742_v17  ;;  %v764_v5 = vcombine.high %v740_v11, %v742_v17 }
 0x128   : > { %2783 = vmatpush1.bf16.msra.mxu0 %v4137_v62 }
 0x129   : > { %3686 = vmatpush1.bf16.msra.mxu1 %v4137_v62  ;;  %2784 = vmatprep.subr.bf16.mxu0 %v4142_v0  ;;  %v3166_v28 = vrot.slane %v763_v21, 9  ;;  %v782_v29 = vrot.slane %v764_v5, 5  ;;  %v779_v23 = vsel %vm5124_vm2, %v3165_v19, %v778_v20 }
 0x12a   : > { %3671 = vmatprep.subr.bf16.mxu1 %v4142_v0  ;;  %v5171_v32 = vadd.f32 %v779_v23, %v489_v12 }
 0x12b   : > { %v783_v33 = vsel %vm5124_vm2, %v3166_v28, %v782_v29 }
 0x12c   : > { %2785 = vmatpush1.bf16.msra.mxu0 %v4140_v1  ;;  %v5175_v15 = vadd.f32 %v783_v33, %v490_v22 }
 0x12d   : > { %3687 = vmatpush1.bf16.msra.mxu1 %v4140_v1  ;;  %2786 = vmatprep.subr.bf16.mxu0 %v4145_v2 }
 0x12e   : > { %3672 = vmatprep.subr.bf16.mxu1 %v4145_v2 }
 0x130   : > { %2787 = vmatpush1.bf16.msra.mxu0 %v4143_v8 }
 0x131   : > { %3688 = vmatpush1.bf16.msra.mxu1 %v4143_v8  ;;  %2788 = vmatprep.subr.bf16.mxu0 %v4148_v16 }
 0x132   : > { %3673 = vmatprep.subr.bf16.mxu1 %v4148_v16 }
 0x134   : > { %2789 = vmatpush1.bf16.msra.mxu0 %v4146_v25 }
 0x135   : > { %3689 = vmatpush1.bf16.msra.mxu1 %v4146_v25  ;;  %2790 = vmatprep.subr.bf16.mxu0 %v4151_v14 }
 0x136   : > { %3674 = vmatprep.subr.bf16.mxu1 %v4151_v14 }
 0x138   : > { %2791 = vmatpush1.bf16.msra.mxu0 %v4149_v47 }
 0x139   : > { %3690 = vmatpush1.bf16.msra.mxu1 %v4149_v47  ;;  %2792 = vmatprep.subr.bf16.mxu0 %v4154_v34 }
 0x13a   : > { %3675 = vmatprep.subr.bf16.mxu1 %v4154_v34 }
 0x13c   : > { %2793 = vmatpush1.bf16.msra.mxu0 %v4152_v35 }
 0x13d   : > { %3691 = vmatpush1.bf16.msra.mxu1 %v4152_v35  ;;  %2794 = vmatprep.subr.bf16.mxu0 %v4157_v36 }
 0x13e   : > { %3676 = vmatprep.subr.bf16.mxu1 %v4157_v36 }
 0x140   : > { %2795 = vmatpush1.bf16.msra.mxu0 %v4155_v26 }
 0x141   : > { %3692 = vmatpush1.bf16.msra.mxu1 %v4155_v26  ;;  %2796 = vmatprep.subr.bf16.mxu0 %v4160_v24 }
 0x142   : > { %3677 = vmatprep.subr.bf16.mxu1 %v4160_v24 }
 0x144   : > { %2797 = vmatpush1.bf16.msra.mxu0 %v4158_v30 }
 0x145   : > { %3693 = vmatpush1.bf16.msra.mxu1 %v4158_v30 }
 0x147   : > { %2799 = vmatmul.mubr.bf16.vlgmr.msra.gmra.mrb[32].mxu0 %v4513_v27 }
 0x148   : > { %2809 = vmatmul.mubr.bf16.vlgmr.msra.gmra.mrb[32].mxu1 %v5092_v31 }
 0x15a   : > { %v1023_v37 = vpop.f32.mrb[8].mxu0 }
 0x15b   : > { %v1345_v38 = vpop.f32.mrb[8].mxu1  ;;  %v1025_v39 = vpop.f32.mrb[9].mxu0 }
 0x15c   : > { %v1347_v40 = vpop.f32.mrb[9].mxu1  ;;  %v1054_v41 = vcombine.low %v1023_v37, %v1025_v39  ;;  %v1055_v42 = vcombine.high %v1023_v37, %v1025_v39  ;;  %v1027_v44 = vpop.f32.mrb[10].mxu0 }
 0x15d   : > { %v1376_v43 = vcombine.low %v1345_v38, %v1347_v40  ;;  %v1349_v46 = vpop.f32.mrb[10].mxu1  ;;  %v1029_v49 = vpop.f32.mrb[11].mxu0 }
 0x15e   : > { %v1351_v50 = vpop.f32.mrb[11].mxu1  ;;  %v3231_v27 = vrot.slane %v1054_v41, 10  ;;  %v1067_v51 = vrot.slane %v1055_v42, 6  ;;  %v1056_v31 = vcombine.low %v1027_v44, %v1029_v49  ;;  %v1057_v52 = vcombine.high %v1027_v44, %v1029_v49 }
 0x15f   : > { %v1377_v53 = vcombine.low %v1349_v46, %v1351_v50 }
 0x160   : > { %v1068_v54 = vsel %vm5200_vm5, %v3231_v27, %v1067_v51  ;;  %v3232_v55 = vrot.slane %v1056_v31, 10  ;;  %v1071_v56 = vrot.slane %v1057_v52, 6 }
 0x161   : > { %v1085_v57 = vadd.f32 %v1068_v54, %v5139_v60 }
 0x162   : > { %v1072_v58 = vsel %vm5200_vm5, %v3232_v55, %v1071_v56  ;;  %v1033_v59 = vpop.f32.mrb[12].mxu0 }
 0x163   : > { %v1355_v61 = vpop.f32.mrb[12].mxu1  ;;  %v1384_v62 = vadd.f32 %v1376_v43, %v1085_v57  ;;  %v1086_v0 = vadd.f32 %v1072_v58, %v5146_v63  ;;  %v1035_v1 = vpop.f32.mrb[13].mxu0 }
 0x164   : > { %v1357_v2 = vpop.f32.mrb[13].mxu1  ;;  %v1058_v3 = vcombine.low %v1033_v59, %v1035_v1  ;;  %v1059_v4 = vcombine.high %v1033_v59, %v1035_v1  ;;  %v1037_v6 = vpop.f32.mrb[14].mxu0 }
 0x165   : > { %v1378_v7 = vcombine.low %v1355_v61, %v1357_v2  ;;  %v1359_v8 = vpop.f32.mrb[14].mxu1  ;;  %v1385_v9 = vadd.f32 %v1377_v53, %v1086_v0  ;;  %v1039_v10 = vpop.f32.mrb[15].mxu0 }
 0x166   : > { %v1361_v11 = vpop.f32.mrb[15].mxu1  ;;  %v3233_v12 = vrot.slane %v1058_v3, 10  ;;  %v1075_v60 = vrot.slane %v1059_v4, 6  ;;  %v1060_v13 = vcombine.low %v1037_v6, %v1039_v10  ;;  %v1061_v16 = vcombine.high %v1037_v6, %v1039_v10 }
 0x167   : > { %v1379_v17 = vcombine.low %v1359_v8, %v1361_v11 }
 0x168   : > { %v3234_v18 = vrot.slane %v1060_v13, 10  ;;  %v1079_v19 = vrot.slane %v1061_v16, 6  ;;  %v1076_v63 = vsel %vm5200_vm5, %v3233_v12, %v1075_v60 }
 0x169   : > { %v1087_v20 = vadd.f32 %v1076_v63, %v5171_v32 }
 0x16a   : > { %v1080_v21 = vsel %vm5200_vm5, %v3234_v18, %v1079_v19 }
 0x16b   : > { %v1386_v5 = vadd.f32 %v1378_v7, %v1087_v20  ;;  %v1088_v22 = vadd.f32 %v1080_v21, %v5175_v15 }
 0x16d   : > { %v1387_v25 = vadd.f32 %v1379_v17, %v1088_v22 }
 0x19a   : > { %v1619_v28 = vpop.f32.mrb[16].mxu0 }
 0x19b   : > { %v1913_v29 = vpop.f32.mrb[16].mxu1  ;;  %v1621_v23 = vpop.f32.mrb[17].mxu0 }
 0x19c   : > { %v1915_v14 = vpop.f32.mrb[17].mxu1  ;;  %v1650_v33 = vcombine.low %v1619_v28, %v1621_v23  ;;  %v1651_v47 = vcombine.high %v1619_v28, %v1621_v23  ;;  %v1623_v36 = vpop.f32.mrb[18].mxu0 }
 0x19d   : > { %v1944_v34 = vcombine.low %v1913_v29, %v1915_v14  ;;  %v1945_v35 = vcombine.high %v1913_v29, %v1915_v14  ;;  %v1917_v26 = vpop.f32.mrb[18].mxu1  ;;  %v1625_v24 = vpop.f32.mrb[19].mxu0 }
 0x19e   : > { %v1919_v30 = vpop.f32.mrb[19].mxu1  ;;  %v3371_v32 = vrot.slane %v1650_v33, 9  ;;  %v1660_v37 = vrot.slane %v1651_v47, 5  ;;  %v1652_v40 = vcombine.low %v1623_v36, %v1625_v24  ;;  %v1653_v41 = vcombine.high %v1623_v36, %v1625_v24 }
 0x19f   : > { %v3439_v38 = vrot.slane %v1944_v34, 10  ;;  %v1954_v39 = vrot.slane %v1945_v35, 6  ;;  %v1946_v15 = vcombine.low %v1917_v26, %v1919_v30  ;;  %v1947_v42 = vcombine.high %v1917_v26, %v1919_v30 }
 0x1a0   : > { %v1661_v43 = vsel %vm5124_vm2, %v3371_v32, %v1660_v37  ;;  %v3372_v46 = vrot.slane %v1652_v40, 9  ;;  %v1664_v49 = vrot.slane %v1653_v41, 5 }
 0x1a1   : > { %v1955_v44 = vsel %vm5200_vm5, %v3439_v38, %v1954_v39  ;;  %v3440_v50 = vrot.slane %v1946_v15, 10  ;;  %v1958_v27 = vrot.slane %v1947_v42, 6  ;;  %v1678_v52 = vadd.f32 %v1661_v43, %v1384_v62 }
 0x1a2   : > { %v1629_v51 = vpop.f32.mrb[20].mxu0  ;;  %v1665_v53 = vsel %vm5124_vm2, %v3372_v46, %v1664_v49 }
 0x1a3   : > { %v1923_v31 = vpop.f32.mrb[20].mxu1  ;;  %v1631_v54 = vpop.f32.mrb[21].mxu0  ;;  %v1959_v56 = vsel %vm5200_vm5, %v3440_v50, %v1958_v27  ;;  %v1972_v4 = vadd.f32 %v1955_v44, %v1678_v52  ;;  %v1679_v6 = vadd.f32 %v1665_v53, %v1385_v9 }
 0x1a4   : > { %v1925_v55 = vpop.f32.mrb[21].mxu1  ;;  %v1654_v57 = vcombine.low %v1629_v51, %v1631_v54  ;;  %v1655_v58 = vcombine.high %v1629_v51, %v1631_v54  ;;  %v1633_v59 = vpop.f32.mrb[22].mxu0 }
 0x1a5   : > { %v1948_v61 = vcombine.low %v1923_v31, %v1925_v55  ;;  %v1949_v0 = vcombine.high %v1923_v31, %v1925_v55  ;;  %v1927_v1 = vpop.f32.mrb[22].mxu1  ;;  %v1635_v2 = vpop.f32.mrb[23].mxu0  ;;  %v1973_v19 = vadd.f32 %v1959_v56, %v1679_v6 }
 0x1a6   : > { %v1929_v3 = vpop.f32.mrb[23].mxu1  ;;  %v3373_v7 = vrot.slane %v1654_v57, 9  ;;  %v1668_v62 = vrot.slane %v1655_v58, 5  ;;  %v1656_v8 = vcombine.low %v1633_v59, %v1635_v2  ;;  %v1657_v10 = vcombine.high %v1633_v59, %v1635_v2 }
 0x1a7   : > { %v3441_v11 = vrot.slane %v1948_v61, 10  ;;  %v1962_v12 = vrot.slane %v1949_v0, 6  ;;  %v1950_v60 = vcombine.low %v1927_v1, %v1929_v3  ;;  %v1951_v13 = vcombine.high %v1927_v1, %v1929_v3 }
 0x1a8   : > { %v1669_v16 = vsel %vm5124_vm2, %v3373_v7, %v1668_v62  ;;  %v3374_v17 = vrot.slane %v1656_v8, 9  ;;  %v1672_v18 = vrot.slane %v1657_v10, 5 }
 0x1a9   : > { %v3442_v63 = vrot.slane %v1950_v60, 10  ;;  %v1966_v20 = vrot.slane %v1951_v13, 6  ;;  %v1680_v21 = vadd.f32 %v1669_v16, %v1386_v5  ;;  %v1963_v9 = vsel %vm5200_vm5, %v3441_v11, %v1962_v12 }
 0x1aa   : > { %v1673_v22 = vsel %vm5124_vm2, %v3374_v17, %v1672_v18  ;;  %v2873_v13 = vlaneseq }
 0x1ab   : > { %v1974_v28 = vadd.f32 %v1963_v9, %v1680_v21  ;;  %v1681_v29 = vadd.f32 %v1673_v22, %v1387_v25  ;;  %v1967_v23 = vsel %vm5200_vm5, %v3442_v63, %v1966_v20 }
 0x1ac   : > { %v2874_v16 = vshrl.u32 %v2873_v13, 7 }
 0x1ad   : > { %v1975_v14 = vadd.f32 %v1967_v23, %v1681_v29 }
 0x1ae   : > { %v2875_v17 = vsub.s32 0, %v2874_v16  ;;  %v2879_v18 = vsub.s32 1, %v2874_v16 }
 0x1da   : > { %v2232_v33 = vpop.f32.mrb[24].mxu0 }
 0x1db   : > { %v2506_v47 = vpop.f32.mrb[24].mxu1  ;;  %v2234_v34 = vpop.f32.mrb[25].mxu0 }
 0x1dc   : > { %v2508_v35 = vpop.f32.mrb[25].mxu1  ;;  %v2263_v36 = vcombine.low %v2232_v33, %v2234_v34  ;;  %v2236_v5 = vpop.f32.mrb[26].mxu0 }
 0x1dd   : > { %v2537_v26 = vcombine.low %v2506_v47, %v2508_v35  ;;  %v2538_v24 = vcombine.high %v2506_v47, %v2508_v35  ;;  %v2510_v30 = vpop.f32.mrb[26].mxu1  ;;  %v2238_v32 = vpop.f32.mrb[27].mxu0 }
 0x1de   : > { %v2512_v37 = vpop.f32.mrb[27].mxu1  ;;  %v2271_v38 = vadd.f32 %v2263_v36, %v1972_v4  ;;  %v2264_v41 = vcombine.low %v2236_v5, %v2238_v32 }
 0x1df   : > { %v3579_v39 = vrot.slane %v2537_v26, 9  ;;  %v2547_v40 = vrot.slane %v2538_v24, 5  ;;  %v2539_v25 = vcombine.low %v2510_v30, %v2512_v37  ;;  %v2540_v15 = vcombine.high %v2510_v30, %v2512_v37 }
 0x1e0   : > { %v2272_v43 = vadd.f32 %v2264_v41, %v1973_v19  ;;  %v2871_v19 = vld [vmem:[%s5266_s2] sm:$0x3] }
 0x1e1   : > { %v2548_v42 = vsel %vm5124_vm2, %v3579_v39, %v2547_v40  ;;  %v3580_v46 = vrot.slane %v2539_v25, 9  ;;  %v2551_v49 = vrot.slane %v2540_v15, 5  ;;  %v2876_v63 = vrot.slane %v2871_v19, %v2875_v17 }
 0x1e2   : > { %v2565_v44 = vadd.f32 %v2548_v42, %v2271_v38  ;;  %v2242_v50 = vpop.f32.mrb[28].mxu0  ;;  %v2880_v20 = vrot.slane %v2871_v19, %v2879_v18 }
 0x1e3   : > { %v2516_v27 = vpop.f32.mrb[28].mxu1  ;;  %v2552_v51 = vsel %vm5124_vm2, %v3580_v46, %v2551_v49  ;;  %v2244_v31 = vpop.f32.mrb[29].mxu0 }
 0x1e4   : > { %v2518_v52 = vpop.f32.mrb[29].mxu1  ;;  %v2566_v53 = vadd.f32 %v2552_v51, %v2272_v43  ;;  %v2265_v54 = vcombine.low %v2242_v50, %v2244_v31  ;;  %v2246_v57 = vpop.f32.mrb[30].mxu0  ;;  %v2881_v34 = vcombine.low %v2876_v63, %v2880_v20 }
 0x1e5   : > { %v2541_v55 = vcombine.low %v2516_v27, %v2518_v52  ;;  %v2542_v56 = vcombine.high %v2516_v27, %v2518_v52  ;;  %v2520_v58 = vpop.f32.mrb[30].mxu1  ;;  %v2248_v59 = vpop.f32.mrb[31].mxu0 }
 0x1e6   : > { %v2522_v61 = vpop.f32.mrb[31].mxu1  ;;  %v2273_v0 = vadd.f32 %v2265_v54, %v1974_v28  ;;  %v2266_v3 = vcombine.low %v2246_v57, %v2248_v59 }
 0x1e7   : > { %v3581_v1 = vrot.slane %v2541_v55, 9  ;;  %v2555_v2 = vrot.slane %v2542_v56, 5  ;;  %v2543_v4 = vcombine.low %v2520_v58, %v2522_v61  ;;  %v2544_v6 = vcombine.high %v2520_v58, %v2522_v61 }
 0x1e8   : > { %v2274_v62 = vadd.f32 %v2266_v3, %v1975_v14 }
 0x1e9   : > { %v2556_v7 = vsel %vm5124_vm2, %v3581_v1, %v2555_v2  ;;  %v3582_v10 = vrot.slane %v2543_v4, 9  ;;  %v2559_v11 = vrot.slane %v2544_v6, 5 }
 0x1ea   : > { %v2567_v8 = vadd.f32 %v2556_v7, %v2273_v0 }
 0x1eb   : > { %v2560_v12 = vsel %vm5124_vm2, %v3582_v10, %v2559_v11 }
 0x1ec   : > { %v2568_v60 = vadd.f32 %v2560_v12, %v2274_v62 }
 0x21a   : > { %v2800_v21 = vpop.f32.mrb[32].mxu0 }
 0x21b   : > { %v2810_v9 = vpop.f32.mrb[32].mxu1  ;;  %v2802_v22 = vpop.f32.mrb[33].mxu0 }
 0x21c   : > { %v2812_v28 = vpop.f32.mrb[33].mxu1  ;;  %v2831_v29 = vcombine.low %v2800_v21, %v2802_v22  ;;  %v2832_v23 = vcombine.high %v2800_v21, %v2802_v22  ;;  %v2804_v33 = vpop.f32.mrb[34].mxu0 }
 0x21d   : > { %v2835_v14 = vcombine.low %v2810_v9, %v2812_v28  ;;  %v2836_v45 = vcombine.high %v2810_v9, %v2812_v28  ;;  %v2814_v47 = vpop.f32.mrb[34].mxu1  ;;  %v2806_v35 = vpop.f32.mrb[35].mxu0 }
 0x21e   : > { %v2816_v36 = vpop.f32.mrb[35].mxu1  ;;  %v3647_v26 = vrot.slane %v2831_v29, 10  ;;  %v2841_v24 = vrot.slane %v2832_v23, 6  ;;  %v2833_v32 = vcombine.low %v2804_v33, %v2806_v35  ;;  %v2834_v37 = vcombine.high %v2804_v33, %v2806_v35 }
 0x21f   : > { %v3649_v5 = vrot.slane %v2835_v14, 10  ;;  %v2849_v30 = vrot.slane %v2836_v45, 6  ;;  %v2837_v38 = vcombine.low %v2814_v47, %v2816_v36  ;;  %v2838_v39 = vcombine.high %v2814_v47, %v2816_v36 }
 0x220   : > { %v2842_v40 = vsel %vm5200_vm5, %v3647_v26, %v2841_v24  ;;  %v3648_v42 = vrot.slane %v2833_v32, 10  ;;  %v2845_v43 = vrot.slane %v2834_v37, 6 }
 0x221   : > { %v2850_v41 = vsel %vm5200_vm5, %v3649_v5, %v2849_v30  ;;  %v2859_v25 = vadd.f32 %v2842_v40, %v2565_v44  ;;  %v3650_v46 = vrot.slane %v2837_v38, 10  ;;  %v2853_v49 = vrot.slane %v2838_v39, 6 }
 0x222   : > { %v2861_v15 = vadd.f32 %v2850_v41, %v2567_v8  ;;  %v2846_v51 = vsel %vm5200_vm5, %v3648_v42, %v2845_v43 }
 0x223   : > { %v2883_v50 = vadd.f32 %v2881_v34, %v2859_v25  ;;  %v2860_v31 = vadd.f32 %v2846_v51, %v2566_v53  ;;  %v2854_v52 = vsel %vm5200_vm5, %v3650_v46, %v2853_v49 }
 0x224   : > { %v2885_v27 = vadd.f32 %v2881_v34, %v2861_v15  ;;  %v2862_v56 = vadd.f32 %v2854_v52, %v2568_v60 }
 0x225   : > { %v2887_v54 = vmax.f32 %v2883_v50, 0.0  ;;  %v2884_v57 = vadd.f32 %v2881_v34, %v2860_v31 }
 0x226   : > { %v2889_v55 = vmax.f32 %v2885_v27, 0.0  ;;  %v2886_v59 = vadd.f32 %v2881_v34, %v2862_v56 }
 0x227   : > { %v2895_v44 = vcombine.high %v2887_v54, %v2887_v54  ;;  %v2888_v61 = vmax.f32 %v2884_v57, 0.0 }
 0x228   : > { %v2897_v58 = vcombine.high %v2889_v55, %v2889_v55  ;;  %v2890_v2 = vmax.f32 %v2886_v59, 0.0 }
 0x229   : > { %v3651_v0 = vpack.c.bf16 %v2895_v44, %v2887_v54  ;;  %v2896_v53 = vcombine.high %v2888_v61, %v2888_v61 }
 0x22a   : > { %v3653_v1 = vpack.c.bf16 %v2897_v58, %v2889_v55  ;;  %v2898_v48 = vcombine.high %v2890_v2, %v2890_v2 }
 0x22b   : > { %3655 = vst.sshfl [vmem:[%s208_s22] sm:$0x33 pattern:$0x76325410] %v3651_v0  ;;  %v3652_v3 = vpack.c.bf16 %v2896_v53, %v2888_v61 }
 0x22c   : > { %3657 = vst.sshfl [vmem:[%s208_s22 + $0x8] sm:$0x33 pattern:$0x76325410] %v3653_v1  ;;  %v3654_v4 = vpack.c.bf16 %v2898_v48, %v2890_v2 }
 0x22d   : > { %3656 = vst.sshfl [vmem:[%s208_s22 + $0x4] sm:$0x33 pattern:$0x76325410] %v3652_v3 }
 0x22e   : > { %3658 = vst.sshfl [vmem:[%s208_s22 + $0xc] sm:$0x33 pattern:$0x76325410] %v3654_v4 }
 0x22f PF: > { %s13_s14 = sadd.s32 1, %s4183_s14   ;;  %s5272_s12 = smov %s4179_s13 }
 0x230   : > { %p10_p5 = scmp.ge.s32.totalorder %s13_s14, 4   ;;  %s5273_s13 = smov %s5275_s15 }
 0x232   :  { %12 = sbr.rel (!%p10_p5) target bundleno = 2 (0x2), region = 72 }

// kernel: deepv3plus_forward.11
= control target key start
LH: loop header
LB: loop body
LE: loop exit
PB: predicated region body
PF: predicated region fallthrough
CT: control target
= control target key end

     0   :  { %s6148_s12 = smov 0   ;;  %s6150_s13 = smov 0   ;;  %s7818_s0 = inlined_call_operand.vmem [shape: bf16[2,1,6,8,384], index: 0, kind: input, shape index: {}]   ;;  %s7819_s1 = inlined_call_operand.vmem [shape: bf16[9,384,256], index: 1, kind: input, shape index: {}]   ;;  %s7820_s2 = inlined_call_operand.vmem [shape: f32[1,256], index: 2, kind: input, shape index: {}]   ;;  %s7821_s3 = inlined_call_operand.vmem [shape: bf16[2,4,4,256], index: 3, kind: output, shape index: {}]  }
   0x1   :  { %s6152_s14 = smov 0  }
   0x2 LB: > { %s25_s15 = sadd.s32 1, %s6121_s13  ;;  %p4449_p0 = scmp.ge.s32.totalorder %s6125_s14, 1  ;;  %s6125_s14 = sphi %s6152_s14, %s13_s14   ;;  %s6121_s13 = sphi %s6150_s13, %s7827_s13   ;;  %s6117_s12 = sphi %s6148_s12, %s7826_s12  }
   0x3   : > { %p27_p1 = scmp.ge.s32.totalorder %s25_s15, 2  ;;  %p157_p2 = scmp.lt.s32.totalorder %s6125_s14, 3 }
   0x5   : > { %s7829_s15 = smov (%p27_p1, %s25_s15), 0  ;;  %p158_p3 = pnand %p4449_p0, %p157_p2 }
   0x6   : > { %v5436_v0 = vld [vmem:[%s7819_s1 + $0x4] ss:$8 sps:$4 sm:$0xff] (!%p158_p3)   ;;  %v6127_v2 = vmov (!%p158_p3), 0   ;;  %v5440_v3 = vld [vmem:[%s7819_s1] ss:$8 sps:$4 sm:$0xff] (!%p158_p3)   ;;  %p190_p4 = scmp.lt.s32.totalorder (!%p158_p3), %s6117_s12, 1 }
   0x7   : > { %161 = sbr.rel (%p158_p3) target bundleno = 696 (0x2b8), region = 32  ;;  %v5438_v1 = vld [vmem:[%s7819_s1 + $0x104] ss:$8 sps:$4 sm:$0xff] (!%p158_p3)   ;;  %624 = vmatprep.mubr.bf16.mxu0 (!%p158_p3), %v6127_v2  ;;  %539 = vmatprep.subr.bf16.mxu1 (!%p158_p3), %v5436_v0  ;;  %v5441_v4 = vld [vmem:[%s7819_s1 + $0x100] ss:$8 sps:$4 sm:$0xff] (!%p158_p3)   ;;  %vm1526_vm0 = vcmask (!%p158_p3), 1041408  }
   0x8   : > { %592 = vmatprep.subr.bf16.mxu0 (!%p158_p3), %v5438_v1  ;;  %v5442_v5 = vld [vmem:[%s7819_s1 + $0x14] ss:$8 sps:$4 sm:$0xff] (!%p158_p3)   ;;  %540 = vmatpush1.bf16.msra.mxu1 (!%p158_p3), %v5440_v3  ;;  %v5446_v7 = vld [vmem:[%s7819_s1 + $0x10] ss:$8 sps:$4 sm:$0xff] (!%p158_p3)   ;;  %v5448_v9 = vld [vmem:[%s7819_s1 + $0x24] ss:$8 sps:$4 sm:$0xff] (!%p158_p3)  }
   0x9   : > { %593 = vmatpush1.bf16.msra.mxu0 (!%p158_p3), %v5441_v4  ;;  %v5444_v6 = vld [vmem:[%s7819_s1 + $0x114] ss:$8 sps:$4 sm:$0xff] (!%p158_p3)   ;;  %541 = vmatprep.subr.bf16.mxu1 (!%p158_p3), %v5442_v5  ;;  %v5447_v8 = vld [vmem:[%s7819_s1 + $0x110] ss:$8 sps:$4 sm:$0xff] (!%p158_p3)   ;;  %v5450_v10 = vld [vmem:[%s7819_s1 + $0x124] ss:$8 sps:$4 sm:$0xff] (!%p158_p3)  }
   0xa   : > { %594 = vmatprep.subr.bf16.mxu0 (!%p158_p3), %v5444_v6  ;;  %v5452_v11 = vld [vmem:[%s7819_s1 + $0x20] ss:$8 sps:$4 sm:$0xff] (!%p158_p3)   ;;  %v5454_v13 = vld [vmem:[%s7819_s1 + $0x34] ss:$8 sps:$4 sm:$0xff] (!%p158_p3)   ;;  %v5458_v15 = vld [vmem:[%s7819_s1 + $0x30] ss:$8 sps:$4 sm:$0xff] (!%p158_p3)  }
   0xb   : > { %v5453_v12 = vld [vmem:[%s7819_s1 + $0x120] ss:$8 sps:$4 sm:$0xff] (!%p158_p3)   ;;  %v5456_v14 = vld [vmem:[%s7819_s1 + $0x134] ss:$8 sps:$4 sm:$0xff] (!%p158_p3)   ;;  %v5459_v16 = vld [vmem:[%s7819_s1 + $0x130] ss:$8 sps:$4 sm:$0xff] (!%p158_p3)  }
   0xc   : > { %542 = vmatpush1.bf16.msra.mxu1 (!%p158_p3), %v5446_v7  ;;  %v5460_v17 = vld [vmem:[%s7819_s1 + $0x44] ss:$8 sps:$4 sm:$0xff] (!%p158_p3)   ;;  %v5464_v19 = vld [vmem:[%s7819_s1 + $0x40] ss:$8 sps:$4 sm:$0xff] (!%p158_p3)   ;;  %v5466_v21 = vld [vmem:[%s7819_s1 + $0x54] ss:$8 sps:$4 sm:$0xff] (!%p158_p3)  }
   0xd   : > { %595 = vmatpush1.bf16.msra.mxu0 (!%p158_p3), %v5447_v8  ;;  %543 = vmatprep.subr.bf16.mxu1 (!%p158_p3), %v5448_v9  ;;  %v5462_v18 = vld [vmem:[%s7819_s1 + $0x144] ss:$8 sps:$4 sm:$0xff] (!%p158_p3)   ;;  %v5465_v20 = vld [vmem:[%s7819_s1 + $0x140] ss:$8 sps:$4 sm:$0xff] (!%p158_p3)   ;;  %v5468_v22 = vld [vmem:[%s7819_s1 + $0x154] ss:$8 sps:$4 sm:$0xff] (!%p158_p3)  }
   0xe   : > { %596 = vmatprep.subr.bf16.mxu0 %v5450_v10  ;;  %s7831_s12 = smov (!%p190_p4, %s6117_s12), 1  ;;  %v5470_v23 = vld [vmem:[%s7819_s1 + $0x50] ss:$8 sps:$4 sm:$0xff]   ;;  %v5472_v25 = vld [vmem:[%s7819_s1 + $0x64] ss:$8 sps:$4 sm:$0xff]   ;;  %vm1527_vm1 = vcmask 1045508  }
   0xf   : > { %s5410_s16 = smul.u32 72, %s7831_s12  ;;  %v5471_v24 = vld [vmem:[%s7819_s1 + $0x150] ss:$8 sps:$4 sm:$0xff]   ;;  %v5474_v26 = vld [vmem:[%s7819_s1 + $0x164] ss:$8 sps:$4 sm:$0xff]   ;;  %vm7402_vm2 = vmor %vm1526_vm0, %vm1527_vm1  ;;  %vm1080_vm3 = vcmask 1042432  }
  0x10   : > { %544 = vmatpush1.bf16.msra.mxu1 %v5452_v11  ;;  %v5476_v27 = vld [vmem:[%s7819_s1 + $0x60] ss:$8 sps:$4 sm:$0xff]   ;;  %v5478_v29 = vld [vmem:[%s7819_s1 + $0x74] ss:$8 sps:$4 sm:$0xff]   ;;  %v5482_v31 = vld [vmem:[%s7819_s1 + $0x70] ss:$8 sps:$4 sm:$0xff]  }
  0x11   : > { %597 = vmatpush1.bf16.msra.mxu0 %v5453_v12  ;;  %545 = vmatprep.subr.bf16.mxu1 %v5454_v13  ;;  %v5477_v28 = vld [vmem:[%s7819_s1 + $0x160] ss:$8 sps:$4 sm:$0xff]   ;;  %s6261_s29 = scalar_lea.vmem %s7818_s0, %s5410_s16  ;;  %v5480_v30 = vld [vmem:[%s7819_s1 + $0x174] ss:$8 sps:$4 sm:$0xff]   ;;  %v5483_v32 = vld [vmem:[%s7819_s1 + $0x170] ss:$8 sps:$4 sm:$0xff]  }
  0x12   : > { %598 = vmatprep.subr.bf16.mxu0 %v5456_v14  ;;  %v5484_v33 = vld [vmem:[%s7819_s1 + $0x84] ss:$8 sps:$4 sm:$0xff]   ;;  %v6282_v35 = vld [vmem:[%s6261_s29 + $0x8] ss:$12 sps:$4 sm:$0xff]   ;;  %v5493_v40 = vld [vmem:[%s7819_s1 + $0x310] ss:$8 sps:$4 sm:$0xff]  }
  0x13   : > { %v5488_v34 = vld [vmem:[%s7819_s1 + $0x304] ss:$8 sps:$4 sm:$0xff]   ;;  %v5486_v36 = vld [vmem:[%s7819_s1 + $0x300] ss:$8 sps:$4 sm:$0xff]   ;;  %v5491_v38 = vld [vmem:[%s7819_s1 + $0x94] ss:$8 sps:$4 sm:$0xff]  }
  0x14   : > { %546 = vmatpush1.bf16.msra.mxu1 %v5458_v15  ;;  %v5489_v37 = vld [vmem:[%s7819_s1 + $0x80] ss:$8 sps:$4 sm:$0xff]   ;;  %v5495_v39 = vld [vmem:[%s7819_s1 + $0x314] ss:$8 sps:$4 sm:$0xff]   ;;  %v5496_v41 = vld [vmem:[%s7819_s1 + $0x90] ss:$8 sps:$4 sm:$0xff]  }
  0x15   : > { %599 = vmatpush1.bf16.msra.mxu0 %v5459_v16  ;;  %547 = vmatprep.subr.bf16.mxu1 %v5460_v17  ;;  %v5497_v42 = vld [vmem:[%s7819_s1 + $0xa4] ss:$8 sps:$4 sm:$0xff]   ;;  %v5499_v44 = vld [vmem:[%s7819_s1 + $0x320] ss:$8 sps:$4 sm:$0xff]   ;;  %v5503_v46 = vld [vmem:[%s7819_s1 + $0xb4] ss:$8 sps:$4 sm:$0xff]  }
  0x16   : > { %600 = vmatprep.subr.bf16.mxu0 %v5462_v18  ;;  %v5501_v43 = vld [vmem:[%s7819_s1 + $0x324] ss:$8 sps:$4 sm:$0xff]   ;;  %v5502_v45 = vld [vmem:[%s7819_s1 + $0xa0] ss:$8 sps:$4 sm:$0xff]   ;;  %v5507_v47 = vld [vmem:[%s7819_s1 + $0x334] ss:$8 sps:$4 sm:$0xff]  }
  0x17   : > { %v5505_v48 = vld [vmem:[%s7819_s1 + $0x330] ss:$8 sps:$4 sm:$0xff]   ;;  %v211_v50 = vld [vmem:[%s6261_s29] sm:$0xff]  ;;  %v5515_v57 = vld [vmem:[%s7819_s1 + $0xd4] ss:$8 sps:$4 sm:$0xff]   ;;  %vm1081_vm4 = vcmask 1046532  }
  0x18   : > { %548 = vmatpush1.bf16.msra.mxu1 %v5464_v19  ;;  %v5508_v49 = vld [vmem:[%s7819_s1 + $0xb0] ss:$8 sps:$4 sm:$0xff]   ;;  %v5509_v52 = vld [vmem:[%s7819_s1 + $0xc4] ss:$8 sps:$4 sm:$0xff]   ;;  %v5511_v55 = vld [vmem:[%s7819_s1 + $0x340] ss:$8 sps:$4 sm:$0xff]  }
  0x19   : > { %601 = vmatpush1.bf16.msra.mxu0 %v5465_v20  ;;  %549 = vmatprep.subr.bf16.mxu1 %v5466_v21  ;;  %v6330_v51 = vld [vmem:[%s6261_s29 + $0xc] sm:$0xff]  ;;  %v5514_v56 = vld [vmem:[%s7819_s1 + $0xc0] ss:$8 sps:$4 sm:$0xff]   ;;  %v5519_v58 = vld [vmem:[%s7819_s1 + $0x354] ss:$8 sps:$4 sm:$0xff]   ;;  %s5337_s16 = sshll.u32 %s7831_s12, 4 }
  0x1a   : > { %602 = vmatprep.subr.bf16.mxu0 %v5468_v22  ;;  %v5513_v53 = vld [vmem:[%s7819_s1 + $0x344] ss:$8 sps:$4 sm:$0xff]   ;;  %v6339_v54 = vcombine.high %v211_v50, %v6330_v51  ;;  %v5517_v59 = vld [vmem:[%s7819_s1 + $0x350] ss:$8 sps:$4 sm:$0xff]   ;;  %v5523_v63 = vld [vmem:[%s7819_s1 + $0x360] ss:$8 sps:$4 sm:$0xff]   ;;  %v6397_v10 = vcombine.low %v211_v50, %v6330_v51  ;;  %s208_s19 = scalar_lea.vmem %s7821_s3, %s5337_s16 }
  0x1b   : > { %v5520_v60 = vld [vmem:[%s7819_s1 + $0xd0] ss:$8 sps:$4 sm:$0xff]   ;;  %v5521_v61 = vld [vmem:[%s7819_s1 + $0xe4] ss:$8 sps:$4 sm:$0xff]   ;;  %v5526_v0 = vld [vmem:[%s7819_s1 + $0xe0] ss:$8 sps:$4 sm:$0xff]  }
  0x1c   : > { %550 = vmatpush1.bf16.msra.mxu1 %v5470_v23  ;;  %571 = vmatprep.mubr.bf16.mxu1 %v6339_v54  ;;  %v5525_v62 = vld [vmem:[%s7819_s1 + $0x364] ss:$8 sps:$4 sm:$0xff]   ;;  %v5527_v1 = vld [vmem:[%s7819_s1 + $0xf4] ss:$8 sps:$4 sm:$0xff]   ;;  %v5529_v4 = vld [vmem:[%s7819_s1 + $0x370] ss:$8 sps:$4 sm:$0xff]  }
  0x1d   : > { %603 = vmatpush1.bf16.msra.mxu0 %v5471_v24  ;;  %551 = vmatprep.subr.bf16.mxu1 %v5472_v25  ;;  %v5531_v3 = vld [vmem:[%s7819_s1 + $0x374] ss:$8 sps:$4 sm:$0xff]   ;;  %v5532_v5 = vld [vmem:[%s7819_s1 + $0xf0] ss:$8 sps:$4 sm:$0xff]   ;;  %v5537_v6 = vld [vmem:[%s7819_s1 + $0x184] ss:$8 sps:$4 sm:$0xff]  }
  0x1e   : > { %604 = vmatprep.subr.bf16.mxu0 %v5474_v26  ;;  %v5540_v7 = vld [vmem:[%s7819_s1 + $0x384] ss:$8 sps:$4 sm:$0xff]   ;;  %v5535_v8 = vld [vmem:[%s7819_s1 + $0x180] ss:$8 sps:$4 sm:$0xff]   ;;  %v5543_v12 = vld [vmem:[%s7819_s1 + $0x194] ss:$8 sps:$4 sm:$0xff]  }
  0x1f   : > { %v5538_v9 = vld [vmem:[%s7819_s1 + $0x380] ss:$8 sps:$4 sm:$0xff]   ;;  %v5546_v13 = vld [vmem:[%s7819_s1 + $0x394] ss:$8 sps:$4 sm:$0xff]   ;;  %v5541_v14 = vld [vmem:[%s7819_s1 + $0x190] ss:$8 sps:$4 sm:$0xff]  }
  0x20   : > { %552 = vmatpush1.bf16.msra.mxu1 %v5476_v27  ;;  %v6400_v11 = vld [vmem:[%s6261_s29 + $0x20] ss:$12 sps:$4 sm:$0xff]   ;;  %v5544_v15 = vld [vmem:[%s7819_s1 + $0x390] ss:$8 sps:$4 sm:$0xff]   ;;  %v5555_v20 = vld [vmem:[%s7819_s1 + $0x1b4] ss:$8 sps:$4 sm:$0xff]  }
  0x21   : > { %605 = vmatpush1.bf16.msra.mxu0 %v5477_v28  ;;  %553 = vmatprep.subr.bf16.mxu1 %v5478_v29  ;;  %v5549_v16 = vld [vmem:[%s7819_s1 + $0x1a4] ss:$8 sps:$4 sm:$0xff]   ;;  %v5547_v18 = vld [vmem:[%s7819_s1 + $0x1a0] ss:$8 sps:$4 sm:$0xff]   ;;  %v5558_v21 = vld [vmem:[%s7819_s1 + $0x3b4] ss:$8 sps:$4 sm:$0xff]  }
  0x22   : > { %606 = vmatprep.subr.bf16.mxu0 %v5480_v30  ;;  %v5552_v17 = vld [vmem:[%s7819_s1 + $0x3a4] ss:$8 sps:$4 sm:$0xff]   ;;  %v5550_v19 = vld [vmem:[%s7819_s1 + $0x3a0] ss:$8 sps:$4 sm:$0xff]   ;;  %v5553_v22 = vld [vmem:[%s7819_s1 + $0x1b0] ss:$8 sps:$4 sm:$0xff]  }
  0x23   : > { %v5556_v23 = vld [vmem:[%s7819_s1 + $0x3b0] ss:$8 sps:$4 sm:$0xff]   ;;  %v5561_v24 = vld [vmem:[%s7819_s1 + $0x1c4] ss:$8 sps:$4 sm:$0xff]   ;;  %v5559_v26 = vld [vmem:[%s7819_s1 + $0x1c0] ss:$8 sps:$4 sm:$0xff]  }
  0x24   : > { %554 = vmatpush1.bf16.msra.mxu1 %v5482_v31  ;;  %v5564_v25 = vld [vmem:[%s7819_s1 + $0x3c4] ss:$8 sps:$4 sm:$0xff]   ;;  %v5562_v27 = vld [vmem:[%s7819_s1 + $0x3c0] ss:$8 sps:$4 sm:$0xff]   ;;  %v5567_v28 = vld [vmem:[%s7819_s1 + $0x1d4] ss:$8 sps:$4 sm:$0xff]  }
  0x25   : > { %607 = vmatpush1.bf16.msra.mxu0 %v5483_v32  ;;  %555 = vmatprep.subr.bf16.mxu1 %v5484_v33  ;;  %v5570_v29 = vld [vmem:[%s7819_s1 + $0x3d4] ss:$8 sps:$4 sm:$0xff]   ;;  %v6463_v31 = vld [vmem:[%s6261_s29 + $0x24] sm:$0xff]  ;;  %v5565_v33 = vld [vmem:[%s7819_s1 + $0x1d0] ss:$8 sps:$4 sm:$0xff]  }
  0x26   : > { %1400 = vmatprep.subr.bf16.mxu0 %v5488_v34  ;;  %v6460_v30 = vld [vmem:[%s6261_s29 + $0x18] sm:$0xff]  ;;  %vm7532_vm5 = vmor %vm1080_vm3, %vm1081_vm4 }
  0x27   : > { %v6467_v32 = vcombine.low %v6330_v51, %v6460_v30  ;;  %v5568_v34 = vld [vmem:[%s7819_s1 + $0x3d0] ss:$8 sps:$4 sm:$0xff]   ;;  %v5592_v50 = vld [vmem:[%s7819_s1 + $0x214] ss:$8 sps:$4 sm:$0xff]  }
  0x28   : > { %625 = vmatmul.mubr.bf16.vlgmr.msra.gmra.mrb[0].mxu0 %v6282_v35  ;;  %556 = vmatpush1.bf16.msra.mxu1 %v5489_v37  ;;  %v6481_v37 = vcombine.low %v6460_v30, %v6463_v31 }
  0x29   : > { %1401 = vmatpush1.bf16.msra.mxu0 %v5486_v36  ;;  %557 = vmatprep.subr.bf16.mxu1 %v5491_v38  ;;  %v6477_v36 = vcombine.high %v6460_v30, %v6463_v31  ;;  %v5573_v38 = vld [vmem:[%s7819_s1 + $0x1e4] ss:$8 sps:$4 sm:$0xff]  }
  0x2a   : > { %1402 = vmatprep.subr.bf16.mxu0 %v5495_v39  ;;  %634 = vmatprep.mubr.bf16.mxu0 %v6127_v2  ;;  %v5576_v39 = vld [vmem:[%s7819_s1 + $0x3e4] ss:$8 sps:$4 sm:$0xff]  }
  0x2c   : > { %558 = vmatpush1.bf16.msra.mxu1 %v5496_v41  ;;  %v5574_v41 = vld [vmem:[%s7819_s1 + $0x3e0] ss:$8 sps:$4 sm:$0xff]  }
  0x2d   : > { %1403 = vmatpush1.bf16.msra.mxu0 %v5493_v40  ;;  %559 = vmatprep.subr.bf16.mxu1 %v5497_v42  ;;  %v5571_v40 = vld [vmem:[%s7819_s1 + $0x1e0] ss:$8 sps:$4 sm:$0xff]   ;;  %v5580_v42 = vld [vmem:[%s7819_s1 + $0x1f4] ss:$8 sps:$4 sm:$0xff]  }
  0x2e   : > { %1404 = vmatprep.subr.bf16.mxu0 %v5501_v43  ;;  %v5583_v43 = vld [vmem:[%s7819_s1 + $0x3f4] ss:$8 sps:$4 sm:$0xff]  }
  0x30   : > { %560 = vmatpush1.bf16.msra.mxu1 %v5502_v45  ;;  %635 = vmatmul.mubr.bf16.gmra.mrb[4].mxu0 %v6400_v11  ;;  %v5581_v45 = vld [vmem:[%s7819_s1 + $0x3f0] ss:$8 sps:$4 sm:$0xff]  }
  0x31   : > { %1405 = vmatpush1.bf16.msra.mxu0 %v5499_v44  ;;  %561 = vmatprep.subr.bf16.mxu1 %v5503_v46  ;;  %v5578_v44 = vld [vmem:[%s7819_s1 + $0x1f0] ss:$8 sps:$4 sm:$0xff]   ;;  %v5586_v46 = vld [vmem:[%s7819_s1 + $0x204] ss:$8 sps:$4 sm:$0xff]  }
  0x32   : > { %1406 = vmatprep.subr.bf16.mxu0 %v5507_v47  ;;  %1432 = vmatprep.mubr.bf16.mxu0 %v6339_v54  ;;  %v5589_v47 = vld [vmem:[%s7819_s1 + $0x404] ss:$8 sps:$4 sm:$0xff]  }
  0x34   : > { %562 = vmatpush1.bf16.msra.mxu1 %v5508_v49  ;;  %v5587_v49 = vld [vmem:[%s7819_s1 + $0x400] ss:$8 sps:$4 sm:$0xff]  }
  0x35   : > { %1407 = vmatpush1.bf16.msra.mxu0 %v5505_v48  ;;  %563 = vmatprep.subr.bf16.mxu1 %v5509_v52  ;;  %v5584_v48 = vld [vmem:[%s7819_s1 + $0x200] ss:$8 sps:$4 sm:$0xff]   ;;  %v5595_v52 = vld [vmem:[%s7819_s1 + $0x414] ss:$8 sps:$4 sm:$0xff]  }
  0x36   : > { %1408 = vmatprep.subr.bf16.mxu0 %v5513_v53  ;;  %v5590_v53 = vld [vmem:[%s7819_s1 + $0x210] ss:$8 sps:$4 sm:$0xff]  }
  0x38   : > { %564 = vmatpush1.bf16.msra.mxu1 %v5514_v56  ;;  %v5601_v56 = vld [vmem:[%s7819_s1 + $0x424] ss:$8 sps:$4 sm:$0xff]  }
  0x39   : > { %1409 = vmatpush1.bf16.msra.mxu0 %v5511_v55  ;;  %565 = vmatprep.subr.bf16.mxu1 %v5515_v57  ;;  %v5598_v55 = vld [vmem:[%s7819_s1 + $0x224] ss:$8 sps:$4 sm:$0xff]   ;;  %v5596_v57 = vld [vmem:[%s7819_s1 + $0x220] ss:$8 sps:$4 sm:$0xff]  }
  0x3a   : > { %1410 = vmatprep.subr.bf16.mxu0 %v5519_v58  ;;  %v5599_v58 = vld [vmem:[%s7819_s1 + $0x420] ss:$8 sps:$4 sm:$0xff]  }
  0x3c   : > { %566 = vmatpush1.bf16.msra.mxu1 %v5520_v60  ;;  %v5607_v60 = vld [vmem:[%s7819_s1 + $0x434] ss:$8 sps:$4 sm:$0xff]  }
  0x3d   : > { %1411 = vmatpush1.bf16.msra.mxu0 %v5517_v59  ;;  %567 = vmatprep.subr.bf16.mxu1 %v5521_v61  ;;  %v5604_v59 = vld [vmem:[%s7819_s1 + $0x234] ss:$8 sps:$4 sm:$0xff]   ;;  %v5602_v61 = vld [vmem:[%s7819_s1 + $0x230] ss:$8 sps:$4 sm:$0xff]  }
  0x3e   : > { %1412 = vmatprep.subr.bf16.mxu0 %v5525_v62  ;;  %v5605_v62 = vld [vmem:[%s7819_s1 + $0x430] ss:$8 sps:$4 sm:$0xff]  }
  0x40   : > { %568 = vmatpush1.bf16.msra.mxu1 %v5526_v0  ;;  %v5613_v0 = vld [vmem:[%s7819_s1 + $0x444] ss:$8 sps:$4 sm:$0xff]  }
  0x41   : > { %1413 = vmatpush1.bf16.msra.mxu0 %v5523_v63  ;;  %569 = vmatprep.subr.bf16.mxu1 %v5527_v1  ;;  %v5610_v63 = vld [vmem:[%s7819_s1 + $0x244] ss:$8 sps:$4 sm:$0xff]   ;;  %v5608_v1 = vld [vmem:[%s7819_s1 + $0x240] ss:$8 sps:$4 sm:$0xff]  }
  0x42   : > { %1414 = vmatprep.subr.bf16.mxu0 %v5531_v3  ;;  %v5611_v3 = vld [vmem:[%s7819_s1 + $0x440] ss:$8 sps:$4 sm:$0xff]  }
  0x44   : > { %570 = vmatpush1.bf16.msra.mxu1 %v5532_v5  ;;  %v5619_v5 = vld [vmem:[%s7819_s1 + $0x454] ss:$8 sps:$4 sm:$0xff]  }
  0x45   : > { %1415 = vmatpush1.bf16.msra.mxu0 %v5529_v4  ;;  %954 = vmatprep.subr.bf16.mxu1 %v5537_v6  ;;  %v5616_v4 = vld [vmem:[%s7819_s1 + $0x254] ss:$8 sps:$4 sm:$0xff]   ;;  %v5614_v6 = vld [vmem:[%s7819_s1 + $0x250] ss:$8 sps:$4 sm:$0xff]  }
  0x46   : > { %1416 = vmatprep.subr.bf16.mxu0 %v5540_v7  ;;  %v5617_v7 = vld [vmem:[%s7819_s1 + $0x450] ss:$8 sps:$4 sm:$0xff]  }
  0x47   : > { %572 = vmatmul.mubr.bf16.vlgmr.msra.gmra.mrb[0].mxu1 %v6397_v10 }
  0x48   : > { %955 = vmatpush1.bf16.msra.mxu1 %v5535_v8  ;;  %581 = vmatprep.mubr.bf16.mxu1 %v6477_v36  ;;  %v5624_v8 = vld [vmem:[%s7819_s1 + $0x264] ss:$8 sps:$4 sm:$0xff]  }
  0x49   : > { %1417 = vmatpush1.bf16.msra.mxu0 %v5538_v9  ;;  %956 = vmatprep.subr.bf16.mxu1 %v5543_v12  ;;  %v5627_v9 = vld [vmem:[%s7819_s1 + $0x464] ss:$8 sps:$4 sm:$0xff]   ;;  %v5622_v12 = vld [vmem:[%s7819_s1 + $0x260] ss:$8 sps:$4 sm:$0xff]  }
  0x4a   : > { %1418 = vmatprep.subr.bf16.mxu0 %v5546_v13  ;;  %v5625_v13 = vld [vmem:[%s7819_s1 + $0x460] ss:$8 sps:$4 sm:$0xff]  }
  0x4c   : > { %957 = vmatpush1.bf16.msra.mxu1 %v5541_v14  ;;  %v5630_v14 = vld [vmem:[%s7819_s1 + $0x274] ss:$8 sps:$4 sm:$0xff]  }
  0x4d   : > { %1419 = vmatpush1.bf16.msra.mxu0 %v5544_v15  ;;  %958 = vmatprep.subr.bf16.mxu1 %v5549_v16  ;;  %v5633_v15 = vld [vmem:[%s7819_s1 + $0x474] ss:$8 sps:$4 sm:$0xff]   ;;  %v5628_v16 = vld [vmem:[%s7819_s1 + $0x270] ss:$8 sps:$4 sm:$0xff]  }
  0x4e   : > { %1420 = vmatprep.subr.bf16.mxu0 %v5552_v17  ;;  %v5631_v17 = vld [vmem:[%s7819_s1 + $0x470] ss:$8 sps:$4 sm:$0xff]  }
  0x4f   : > { %582 = vmatmul.mubr.bf16.gmra.mrb[4].mxu1 %v6481_v37 }
  0x50   : > { %959 = vmatpush1.bf16.msra.mxu1 %v5547_v18  ;;  %986 = vmatprep.mubr.bf16.mxu1 %v6339_v54  ;;  %v5593_v54 = vld [vmem:[%s7819_s1 + $0x410] ss:$8 sps:$4 sm:$0xff]   ;;  %v5636_v18 = vld [vmem:[%s7819_s1 + $0x284] ss:$8 sps:$4 sm:$0xff]  }
  0x51   : > { %1421 = vmatpush1.bf16.msra.mxu0 %v5550_v19  ;;  %960 = vmatprep.subr.bf16.mxu1 %v5555_v20  ;;  %v5639_v19 = vld [vmem:[%s7819_s1 + $0x604] ss:$8 sps:$4 sm:$0xff]   ;;  %v5634_v20 = vld [vmem:[%s7819_s1 + $0x280] ss:$8 sps:$4 sm:$0xff]  }
  0x52   : > { %1422 = vmatprep.subr.bf16.mxu0 %v5558_v21  ;;  %v5637_v21 = vld [vmem:[%s7819_s1 + $0x600] ss:$8 sps:$4 sm:$0xff]  }
  0x54   : > { %961 = vmatpush1.bf16.msra.mxu1 %v5553_v22  ;;  %v5642_v22 = vld [vmem:[%s7819_s1 + $0x294] ss:$8 sps:$4 sm:$0xff]  }
  0x55   : > { %1423 = vmatpush1.bf16.msra.mxu0 %v5556_v23  ;;  %962 = vmatprep.subr.bf16.mxu1 %v5561_v24  ;;  %v5645_v23 = vld [vmem:[%s7819_s1 + $0x614] ss:$8 sps:$4 sm:$0xff]   ;;  %v5640_v24 = vld [vmem:[%s7819_s1 + $0x290] ss:$8 sps:$4 sm:$0xff]  }
  0x56   : > { %1424 = vmatprep.subr.bf16.mxu0 %v5564_v25  ;;  %v5643_v25 = vld [vmem:[%s7819_s1 + $0x610] ss:$8 sps:$4 sm:$0xff]  }
  0x58   : > { %963 = vmatpush1.bf16.msra.mxu1 %v5559_v26  ;;  %v5648_v26 = vld [vmem:[%s7819_s1 + $0x2a4] ss:$8 sps:$4 sm:$0xff]  }
  0x59   : > { %1425 = vmatpush1.bf16.msra.mxu0 %v5562_v27  ;;  %964 = vmatprep.subr.bf16.mxu1 %v5567_v28  ;;  %v5646_v27 = vld [vmem:[%s7819_s1 + $0x2a0] ss:$8 sps:$4 sm:$0xff]  }
  0x5a   : > { %1426 = vmatprep.subr.bf16.mxu0 %v5570_v29  ;;  %v5649_v28 = vld [vmem:[%s7819_s1 + $0x620] ss:$8 sps:$4 sm:$0xff]   ;;  %v5654_v29 = vld [vmem:[%s7819_s1 + $0x2b4] ss:$8 sps:$4 sm:$0xff]  }
  0x5c   : > { %965 = vmatpush1.bf16.msra.mxu1 %v5565_v33  ;;  %v5657_v33 = vld [vmem:[%s7819_s1 + $0x634] ss:$8 sps:$4 sm:$0xff]  }
  0x5d   : > { %1427 = vmatpush1.bf16.msra.mxu0 %v5568_v34  ;;  %966 = vmatprep.subr.bf16.mxu1 %v5573_v38  ;;  %v6658_v34 = vcombine.high %v6330_v51, %v6460_v30  ;;  %v5655_v38 = vld [vmem:[%s7819_s1 + $0x630] ss:$8 sps:$4 sm:$0xff]   ;;  %v5660_v51 = vld [vmem:[%s7819_s1 + $0x2c4] ss:$8 sps:$4 sm:$0xff]  }
  0x5e   : > { %1428 = vmatprep.subr.bf16.mxu0 %v5576_v39  ;;  %v5663_v30 = vld [vmem:[%s7819_s1 + $0x644] ss:$8 sps:$4 sm:$0xff]   ;;  %v5661_v39 = vld [vmem:[%s7819_s1 + $0x640] ss:$8 sps:$4 sm:$0xff]  }
  0x60   : > { %967 = vmatpush1.bf16.msra.mxu1 %v5571_v40  ;;  %v5666_v40 = vld [vmem:[%s7819_s1 + $0x2d4] ss:$8 sps:$4 sm:$0xff]  }
  0x61   : > { %1429 = vmatpush1.bf16.msra.mxu0 %v5574_v41  ;;  %968 = vmatprep.subr.bf16.mxu1 %v5580_v42  ;;  %v5669_v41 = vld [vmem:[%s7819_s1 + $0x654] ss:$8 sps:$4 sm:$0xff]   ;;  %v5664_v42 = vld [vmem:[%s7819_s1 + $0x2d0] ss:$8 sps:$4 sm:$0xff]  }
  0x62   : > { %1430 = vmatprep.subr.bf16.mxu0 %v5583_v43  ;;  %v5667_v43 = vld [vmem:[%s7819_s1 + $0x650] ss:$8 sps:$4 sm:$0xff]  }
  0x64   : > { %969 = vmatpush1.bf16.msra.mxu1 %v5578_v44  ;;  %v5672_v44 = vld [vmem:[%s7819_s1 + $0x2e4] ss:$8 sps:$4 sm:$0xff]  }
  0x65   : > { %1431 = vmatpush1.bf16.msra.mxu0 %v5581_v45  ;;  %970 = vmatprep.subr.bf16.mxu1 %v5586_v46  ;;  %v5675_v45 = vld [vmem:[%s7819_s1 + $0x664] ss:$8 sps:$4 sm:$0xff]   ;;  %v5670_v46 = vld [vmem:[%s7819_s1 + $0x2e0] ss:$8 sps:$4 sm:$0xff]  }
  0x66   : > { %1453 = vmatprep.subr.bf16.mxu0 %v5589_v47  ;;  %v5673_v47 = vld [vmem:[%s7819_s1 + $0x660] ss:$8 sps:$4 sm:$0xff]  }
  0x68   : > { %1433 = vmatmul.mubr.bf16.vlgmr.msra.gmra.mrb[8].mxu0 %v6397_v10  ;;  %971 = vmatpush1.bf16.msra.mxu1 %v5584_v48  ;;  %v5678_v48 = vld [vmem:[%s7819_s1 + $0x2f4] ss:$8 sps:$4 sm:$0xff]  }
  0x69   : > { %1454 = vmatpush1.bf16.msra.mxu0 %v5587_v49  ;;  %972 = vmatprep.subr.bf16.mxu1 %v5592_v50  ;;  %v5681_v49 = vld [vmem:[%s7819_s1 + $0x674] ss:$8 sps:$4 sm:$0xff]   ;;  %v5676_v50 = vld [vmem:[%s7819_s1 + $0x2f0] ss:$8 sps:$4 sm:$0xff]  }
  0x6a   : > { %1455 = vmatprep.subr.bf16.mxu0 %v5595_v52  ;;  %1442 = vmatprep.mubr.bf16.mxu0 %v6477_v36  ;;  %v5679_v52 = vld [vmem:[%s7819_s1 + $0x670] ss:$8 sps:$4 sm:$0xff]  }
  0x6c   : > { %973 = vmatpush1.bf16.msra.mxu1 %v5590_v53  ;;  %v5684_v53 = vld [vmem:[%s7819_s1 + $0x484] ss:$8 sps:$4 sm:$0xff]  }
  0x6d   : > { %1456 = vmatpush1.bf16.msra.mxu0 %v5593_v54  ;;  %974 = vmatprep.subr.bf16.mxu1 %v5598_v55  ;;  %v5687_v54 = vld [vmem:[%s7819_s1 + $0x684] ss:$8 sps:$4 sm:$0xff]   ;;  %v5682_v55 = vld [vmem:[%s7819_s1 + $0x480] ss:$8 sps:$4 sm:$0xff]  }
  0x6e   : > { %1457 = vmatprep.subr.bf16.mxu0 %v5601_v56  ;;  %v5685_v56 = vld [vmem:[%s7819_s1 + $0x680] ss:$8 sps:$4 sm:$0xff]  }
  0x70   : > { %1443 = vmatmul.mubr.bf16.gmra.mrb[12].mxu0 %v6481_v37  ;;  %975 = vmatpush1.bf16.msra.mxu1 %v5596_v57  ;;  %v5690_v57 = vld [vmem:[%s7819_s1 + $0x494] ss:$8 sps:$4 sm:$0xff]  }
  0x71   : > { %1458 = vmatpush1.bf16.msra.mxu0 %v5599_v58  ;;  %976 = vmatprep.subr.bf16.mxu1 %v5604_v59  ;;  %v5693_v58 = vld [vmem:[%s7819_s1 + $0x694] ss:$8 sps:$4 sm:$0xff]   ;;  %v5688_v59 = vld [vmem:[%s7819_s1 + $0x490] ss:$8 sps:$4 sm:$0xff]  }
  0x72   : > { %1459 = vmatprep.subr.bf16.mxu0 %v5607_v60  ;;  %1485 = vmatprep.mubr.bf16.mxu0 %v6127_v2  ;;  %v5691_v60 = vld [vmem:[%s7819_s1 + $0x690] ss:$8 sps:$4 sm:$0xff]  }
  0x74   : > { %977 = vmatpush1.bf16.msra.mxu1 %v5602_v61  ;;  %v5696_v61 = vld [vmem:[%s7819_s1 + $0x4a4] ss:$8 sps:$4 sm:$0xff]  }
  0x75   : > { %1460 = vmatpush1.bf16.msra.mxu0 %v5605_v62  ;;  %978 = vmatprep.subr.bf16.mxu1 %v5610_v63  ;;  %v5694_v62 = vld [vmem:[%s7819_s1 + $0x4a0] ss:$8 sps:$4 sm:$0xff]  }
  0x76   : > { %1461 = vmatprep.subr.bf16.mxu0 %v5613_v0  ;;  %v5697_v63 = vld [vmem:[%s7819_s1 + $0x6a0] ss:$8 sps:$4 sm:$0xff]   ;;  %v5702_v0 = vld [vmem:[%s7819_s1 + $0x4b4] ss:$8 sps:$4 sm:$0xff]  }
  0x78   : > { %979 = vmatpush1.bf16.msra.mxu1 %v5608_v1  ;;  %v5705_v1 = vld [vmem:[%s7819_s1 + $0x6b4] ss:$8 sps:$4 sm:$0xff]  }
  0x79   : > { %1462 = vmatpush1.bf16.msra.mxu0 %v5611_v3  ;;  %980 = vmatprep.subr.bf16.mxu1 %v5616_v4  ;;  %v5700_v3 = vld [vmem:[%s7819_s1 + $0x4b0] ss:$8 sps:$4 sm:$0xff]  }
  0x7a   : > { %1463 = vmatprep.subr.bf16.mxu0 %v5619_v5  ;;  %v5703_v4 = vld [vmem:[%s7819_s1 + $0x6b0] ss:$8 sps:$4 sm:$0xff]   ;;  %v5708_v5 = vld [vmem:[%s7819_s1 + $0x4c4] ss:$8 sps:$4 sm:$0xff]  }
  0x7c   : > { %981 = vmatpush1.bf16.msra.mxu1 %v5614_v6  ;;  %v5706_v6 = vld [vmem:[%s7819_s1 + $0x4c0] ss:$8 sps:$4 sm:$0xff]  }
  0x7d   : > { %1464 = vmatpush1.bf16.msra.mxu0 %v5617_v7  ;;  %982 = vmatprep.subr.bf16.mxu1 %v5624_v8  ;;  %v5709_v7 = vld [vmem:[%s7819_s1 + $0x6c0] ss:$8 sps:$4 sm:$0xff]   ;;  %v5714_v8 = vld [vmem:[%s7819_s1 + $0x4d4] ss:$8 sps:$4 sm:$0xff]  }
  0x7e   : > { %1465 = vmatprep.subr.bf16.mxu0 %v5627_v9  ;;  %v5717_v9 = vld [vmem:[%s7819_s1 + $0x6d4] ss:$8 sps:$4 sm:$0xff]  }
  0x80   : > { %983 = vmatpush1.bf16.msra.mxu1 %v5622_v12  ;;  %v5712_v12 = vld [vmem:[%s7819_s1 + $0x4d0] ss:$8 sps:$4 sm:$0xff]  }
  0x81   : > { %1466 = vmatpush1.bf16.msra.mxu0 %v5625_v13  ;;  %984 = vmatprep.subr.bf16.mxu1 %v5630_v14  ;;  %v5715_v13 = vld [vmem:[%s7819_s1 + $0x6d0] ss:$8 sps:$4 sm:$0xff]   ;;  %v5720_v14 = vld [vmem:[%s7819_s1 + $0x4e4] ss:$8 sps:$4 sm:$0xff]  }
  0x82   : > { %1467 = vmatprep.subr.bf16.mxu0 %v5633_v15  ;;  %v5723_v15 = vld [vmem:[%s7819_s1 + $0x6e4] ss:$8 sps:$4 sm:$0xff]  }
  0x84   : > { %985 = vmatpush1.bf16.msra.mxu1 %v5628_v16  ;;  %v5718_v16 = vld [vmem:[%s7819_s1 + $0x4e0] ss:$8 sps:$4 sm:$0xff]  }
  0x85   : > { %1468 = vmatpush1.bf16.msra.mxu0 %v5631_v17  ;;  %1007 = vmatprep.subr.bf16.mxu1 %v5636_v18  ;;  %v5721_v17 = vld [vmem:[%s7819_s1 + $0x6e0] ss:$8 sps:$4 sm:$0xff]   ;;  %v5726_v18 = vld [vmem:[%s7819_s1 + $0x4f4] ss:$8 sps:$4 sm:$0xff]  }
  0x86   : > { %2310 = vmatprep.subr.bf16.mxu0 %v5639_v19  ;;  %v5729_v19 = vld [vmem:[%s7819_s1 + $0x6f4] ss:$8 sps:$4 sm:$0xff]  }
  0x87   : > { %987 = vmatmul.mubr.bf16.vlgmr.msra.gmra.mrb[8].mxu1 %v6397_v10  ;;  %v5651_v10 = vld [vmem:[%s7819_s1 + $0x624] ss:$8 sps:$4 sm:$0xff]  }
  0x88   : > { %1486 = vmatmul.mubr.bf16.vlgmr.msra.gmra.mrb[8].mxu0 %v6282_v35  ;;  %1008 = vmatpush1.bf16.msra.mxu1 %v5634_v20  ;;  %v5724_v20 = vld [vmem:[%s7819_s1 + $0x4f0] ss:$8 sps:$4 sm:$0xff]  }
  0x89   : > { %2311 = vmatpush1.bf16.msra.mxu0 %v5637_v21  ;;  %1009 = vmatprep.subr.bf16.mxu1 %v5642_v22  ;;  %v5727_v21 = vld [vmem:[%s7819_s1 + $0x6f0] ss:$8 sps:$4 sm:$0xff]   ;;  %v5732_v22 = vld [vmem:[%s7819_s1 + $0x504] ss:$8 sps:$4 sm:$0xff]  }
  0x8a   : > { %2312 = vmatprep.subr.bf16.mxu0 %v5645_v23  ;;  %996 = vmatprep.mubr.bf16.mxu1 %v6477_v36  ;;  %v5652_v36 = vld [vmem:[%s7819_s1 + $0x2b0] ss:$8 sps:$4 sm:$0xff]   ;;  %v5737_v23 = vld [vmem:[%s7819_s1 + $0x704] ss:$8 sps:$4 sm:$0xff]  }
  0x8b   : > { %1495 = vmatprep.mubr.bf16.mxu0 %v6127_v2 }
  0x8c   : > { %1010 = vmatpush1.bf16.msra.mxu1 %v5640_v24  ;;  %v5730_v24 = vld [vmem:[%s7819_s1 + $0x500] ss:$8 sps:$4 sm:$0xff]  }
  0x8d   : > { %2313 = vmatpush1.bf16.msra.mxu0 %v5643_v25  ;;  %1011 = vmatprep.subr.bf16.mxu1 %v5648_v26  ;;  %v6828_v25 = vld [vmem:[%s6261_s29 + $0x30] sm:$0xff]  ;;  %v5735_v26 = vld [vmem:[%s7819_s1 + $0x700] ss:$8 sps:$4 sm:$0xff]  }
  0x8e   : > { %2314 = vmatprep.subr.bf16.mxu0 %v5651_v10  ;;  %v5740_v10 = vld [vmem:[%s7819_s1 + $0x514] ss:$8 sps:$4 sm:$0xff]  }
  0x8f   : > { %997 = vmatmul.mubr.bf16.gmra.mrb[12].mxu1 %v6481_v37  ;;  %v5658_v37 = vld [vmem:[%s7819_s1 + $0x2c0] ss:$8 sps:$4 sm:$0xff]  }
  0x90   : > { %1496 = vmatmul.mubr.bf16.gmra.mrb[12].mxu0 %v6400_v11  ;;  %1012 = vmatpush1.bf16.msra.mxu1 %v5646_v27  ;;  %v5743_v27 = vld [vmem:[%s7819_s1 + $0x714] ss:$8 sps:$4 sm:$0xff]  }
  0x91   : > { %2315 = vmatpush1.bf16.msra.mxu0 %v5649_v28  ;;  %1013 = vmatprep.subr.bf16.mxu1 %v5654_v29  ;;  %v6841_v28 = vcombine.high %v6463_v31, %v6828_v25  ;;  %v5738_v29 = vld [vmem:[%s7819_s1 + $0x510] ss:$8 sps:$4 sm:$0xff]  }
  0x92   : > { %2316 = vmatprep.subr.bf16.mxu0 %v5657_v33  ;;  %1039 = vmatprep.mubr.bf16.mxu1 %v6127_v2  ;;  %v5741_v33 = vld [vmem:[%s7819_s1 + $0x710] ss:$8 sps:$4 sm:$0xff]  }
  0x93   : > { %2342 = vmatprep.mubr.bf16.mxu0 %v6658_v34 }
  0x94   : > { %1014 = vmatpush1.bf16.msra.mxu1 %v5652_v36  ;;  %v5746_v36 = vld [vmem:[%s7819_s1 + $0x524] ss:$8 sps:$4 sm:$0xff]  }
  0x95   : > { %2317 = vmatpush1.bf16.msra.mxu0 %v5655_v38  ;;  %1015 = vmatprep.subr.bf16.mxu1 %v5660_v51  ;;  %v5749_v38 = vld [vmem:[%s7819_s1 + $0x724] ss:$8 sps:$4 sm:$0xff]   ;;  %v5744_v51 = vld [vmem:[%s7819_s1 + $0x520] ss:$8 sps:$4 sm:$0xff]  }
  0x96   : > { %2318 = vmatprep.subr.bf16.mxu0 %v5663_v30  ;;  %v6862_v30 = vcombine.low %v6463_v31, %v6828_v25  ;;  %v5750_v31 = vld [vmem:[%s7819_s1 + $0x530] ss:$8 sps:$4 sm:$0xff]  }
  0x98   : > { %1016 = vmatpush1.bf16.msra.mxu1 %v5658_v37  ;;  %v5747_v37 = vld [vmem:[%s7819_s1 + $0x720] ss:$8 sps:$4 sm:$0xff]  }
  0x99   : > { %2319 = vmatpush1.bf16.msra.mxu0 %v5661_v39  ;;  %1017 = vmatprep.subr.bf16.mxu1 %v5666_v40  ;;  %v5752_v39 = vld [vmem:[%s7819_s1 + $0x534] ss:$8 sps:$4 sm:$0xff]  }
  0x9a   : > { %2320 = vmatprep.subr.bf16.mxu0 %v5669_v41  ;;  %v5755_v40 = vld [vmem:[%s7819_s1 + $0x734] ss:$8 sps:$4 sm:$0xff]   ;;  %v5753_v41 = vld [vmem:[%s7819_s1 + $0x730] ss:$8 sps:$4 sm:$0xff]  }
  0x9c   : > { %1018 = vmatpush1.bf16.msra.mxu1 %v5664_v42  ;;  %v5758_v42 = vld [vmem:[%s7819_s1 + $0x544] ss:$8 sps:$4 sm:$0xff]  }
  0x9d   : > { %2321 = vmatpush1.bf16.msra.mxu0 %v5667_v43  ;;  %1019 = vmatprep.subr.bf16.mxu1 %v5672_v44  ;;  %v5761_v43 = vld [vmem:[%s7819_s1 + $0x744] ss:$8 sps:$4 sm:$0xff]   ;;  %v5756_v44 = vld [vmem:[%s7819_s1 + $0x540] ss:$8 sps:$4 sm:$0xff]  }
  0x9e   : > { %2322 = vmatprep.subr.bf16.mxu0 %v5675_v45  ;;  %v5759_v45 = vld [vmem:[%s7819_s1 + $0x740] ss:$8 sps:$4 sm:$0xff]  }
  0xa0   : > { %1020 = vmatpush1.bf16.msra.mxu1 %v5670_v46  ;;  %v5764_v46 = vld [vmem:[%s7819_s1 + $0x554] ss:$8 sps:$4 sm:$0xff]  }
  0xa1   : > { %2323 = vmatpush1.bf16.msra.mxu0 %v5673_v47  ;;  %1021 = vmatprep.subr.bf16.mxu1 %v5678_v48  ;;  %v5767_v47 = vld [vmem:[%s7819_s1 + $0x754] ss:$8 sps:$4 sm:$0xff]   ;;  %v5762_v48 = vld [vmem:[%s7819_s1 + $0x550] ss:$8 sps:$4 sm:$0xff]  }
  0xa2   : > { %2324 = vmatprep.subr.bf16.mxu0 %v5681_v49  ;;  %v5765_v49 = vld [vmem:[%s7819_s1 + $0x750] ss:$8 sps:$4 sm:$0xff]  }
  0xa4   : > { %1022 = vmatpush1.bf16.msra.mxu1 %v5676_v50  ;;  %v5771_v50 = vld [vmem:[%s7819_s1 + $0x564] ss:$8 sps:$4 sm:$0xff]  }
  0xa5   : > { %2325 = vmatpush1.bf16.msra.mxu0 %v5679_v52  ;;  %1887 = vmatprep.subr.bf16.mxu1 %v5684_v53  ;;  %v5775_v52 = vld [vmem:[%s7819_s1 + $0x764] ss:$8 sps:$4 sm:$0xff]   ;;  %v5769_v53 = vld [vmem:[%s7819_s1 + $0x560] ss:$8 sps:$4 sm:$0xff]  }
  0xa6   : > { %2326 = vmatprep.subr.bf16.mxu0 %v5687_v54  ;;  %v5773_v54 = vld [vmem:[%s7819_s1 + $0x760] ss:$8 sps:$4 sm:$0xff]  }
  0xa7   : > { %1040 = vmatmul.mubr.bf16.vlgmr.msra.gmra.mrb[8].mxu1 %v6282_v35  ;;  %v5699_v35 = vld [vmem:[%s7819_s1 + $0x6a4] ss:$8 sps:$4 sm:$0xff]  }
  0xa8   : > { %1888 = vmatpush1.bf16.msra.mxu1 %v5682_v55  ;;  %1049 = vmatprep.mubr.bf16.mxu1 %v6127_v2  ;;  %v5778_v55 = vld [vmem:[%s7819_s1 + $0x574] ss:$8 sps:$4 sm:$0xff]  }
  0xa9   : > { %2327 = vmatpush1.bf16.msra.mxu0 %v5685_v56  ;;  %1889 = vmatprep.subr.bf16.mxu1 %v5690_v57  ;;  %v5781_v56 = vld [vmem:[%s7819_s1 + $0x774] ss:$8 sps:$4 sm:$0xff]   ;;  %v5776_v57 = vld [vmem:[%s7819_s1 + $0x570] ss:$8 sps:$4 sm:$0xff]  }
  0xaa   : > { %2328 = vmatprep.subr.bf16.mxu0 %v5693_v58  ;;  %v5779_v58 = vld [vmem:[%s7819_s1 + $0x770] ss:$8 sps:$4 sm:$0xff]  }
  0xac   : > { %1890 = vmatpush1.bf16.msra.mxu1 %v5688_v59  ;;  %v5784_v59 = vld [vmem:[%s7819_s1 + $0x584] ss:$8 sps:$4 sm:$0xff]  }
  0xad   : > { %2329 = vmatpush1.bf16.msra.mxu0 %v5691_v60  ;;  %1891 = vmatprep.subr.bf16.mxu1 %v5696_v61  ;;  %v5788_v60 = vld [vmem:[%s7819_s1 + $0x904] ss:$8 sps:$4 sm:$0xff]   ;;  %v5782_v61 = vld [vmem:[%s7819_s1 + $0x580] ss:$8 sps:$4 sm:$0xff]  }
  0xae   : > { %2330 = vmatprep.subr.bf16.mxu0 %v5699_v35  ;;  %v6939_v35 = vld [vmem:[%s6261_s29 + $0x14] ss:$12 sps:$4 sm:$0xff]  }
  0xaf   : > { %1050 = vmatmul.mubr.bf16.gmra.mrb[12].mxu1 %v6400_v11  ;;  %v5711_v11 = vld [vmem:[%s7819_s1 + $0x6c4] ss:$8 sps:$4 sm:$0xff]  }
  0xb0   : > { %1892 = vmatpush1.bf16.msra.mxu1 %v5694_v62  ;;  %1919 = vmatprep.mubr.bf16.mxu1 %v6658_v34  ;;  %v5786_v62 = vld [vmem:[%s7819_s1 + $0x900] ss:$8 sps:$4 sm:$0xff]  }
  0xb1   : > { %2331 = vmatpush1.bf16.msra.mxu0 %v5697_v63  ;;  %1893 = vmatprep.subr.bf16.mxu1 %v5702_v0  ;;  %v5791_v63 = vld [vmem:[%s7819_s1 + $0x594] ss:$8 sps:$4 sm:$0xff]  }
  0xb2   : > { %2332 = vmatprep.subr.bf16.mxu0 %v5705_v1  ;;  %v5794_v0 = vld [vmem:[%s7819_s1 + $0x914] ss:$8 sps:$4 sm:$0xff]   ;;  %v5789_v1 = vld [vmem:[%s7819_s1 + $0x590] ss:$8 sps:$4 sm:$0xff]  }
  0xb4   : > { %1894 = vmatpush1.bf16.msra.mxu1 %v5700_v3  ;;  %v5792_v3 = vld [vmem:[%s7819_s1 + $0x910] ss:$8 sps:$4 sm:$0xff]  }
  0xb5   : > { %2333 = vmatpush1.bf16.msra.mxu0 %v5703_v4  ;;  %1895 = vmatprep.subr.bf16.mxu1 %v5708_v5  ;;  %v5797_v4 = vld [vmem:[%s7819_s1 + $0x5a4] ss:$8 sps:$4 sm:$0xff]  }
  0xb6   : > { %2334 = vmatprep.subr.bf16.mxu0 %v5711_v11  ;;  %v5800_v5 = vld [vmem:[%s7819_s1 + $0x924] ss:$8 sps:$4 sm:$0xff]   ;;  %v5795_v11 = vld [vmem:[%s7819_s1 + $0x5a0] ss:$8 sps:$4 sm:$0xff]  }
  0xb8   : > { %1896 = vmatpush1.bf16.msra.mxu1 %v5706_v6  ;;  %v6970_v6 = vld [vmem:[%s6261_s29 + $0x2c] ss:$12 sps:$4 sm:$0xff]  }
  0xb9   : > { %2335 = vmatpush1.bf16.msra.mxu0 %v5709_v7  ;;  %1897 = vmatprep.subr.bf16.mxu1 %v5714_v8  ;;  %v5798_v7 = vld [vmem:[%s7819_s1 + $0x920] ss:$8 sps:$4 sm:$0xff]   ;;  %v5803_v8 = vld [vmem:[%s7819_s1 + $0x5b4] ss:$8 sps:$4 sm:$0xff]  }
  0xba   : > { %2336 = vmatprep.subr.bf16.mxu0 %v5717_v9  ;;  %v5806_v9 = vld [vmem:[%s7819_s1 + $0x934] ss:$8 sps:$4 sm:$0xff]  }
  0xbc   : > { %1898 = vmatpush1.bf16.msra.mxu1 %v5712_v12  ;;  %v6982_v12 = vld [vmem:[%s6261_s29 + $0x1c] ss:$12 sps:$4 sm:$0xff]  }
  0xbd   : > { %2337 = vmatpush1.bf16.msra.mxu0 %v5715_v13  ;;  %1899 = vmatprep.subr.bf16.mxu1 %v5720_v14  ;;  %v5801_v13 = vld [vmem:[%s7819_s1 + $0x5b0] ss:$8 sps:$4 sm:$0xff]  }
  0xbe   : > { %2338 = vmatprep.subr.bf16.mxu0 %v5723_v15  ;;  %v5804_v14 = vld [vmem:[%s7819_s1 + $0x930] ss:$8 sps:$4 sm:$0xff]   ;;  %v5809_v15 = vld [vmem:[%s7819_s1 + $0x5c4] ss:$8 sps:$4 sm:$0xff]  }
  0xc0   : > { %1900 = vmatpush1.bf16.msra.mxu1 %v5718_v16  ;;  %v5812_v16 = vld [vmem:[%s7819_s1 + $0x944] ss:$8 sps:$4 sm:$0xff]  }
  0xc1   : > { %2339 = vmatpush1.bf16.msra.mxu0 %v5721_v17  ;;  %1901 = vmatprep.subr.bf16.mxu1 %v5726_v18  ;;  %v5807_v17 = vld [vmem:[%s7819_s1 + $0x5c0] ss:$8 sps:$4 sm:$0xff]  }
  0xc2   : > { %2340 = vmatprep.subr.bf16.mxu0 %v5729_v19  ;;  %v5810_v18 = vld [vmem:[%s7819_s1 + $0x940] ss:$8 sps:$4 sm:$0xff]   ;;  %v5815_v19 = vld [vmem:[%s7819_s1 + $0x5d4] ss:$8 sps:$4 sm:$0xff]  }
  0xc4   : > { %1902 = vmatpush1.bf16.msra.mxu1 %v5724_v20  ;;  %v5818_v20 = vld [vmem:[%s7819_s1 + $0x954] ss:$8 sps:$4 sm:$0xff]  }
  0xc5   : > { %2341 = vmatpush1.bf16.msra.mxu0 %v5727_v21  ;;  %1903 = vmatprep.subr.bf16.mxu1 %v5732_v22  ;;  %v5813_v21 = vld [vmem:[%s7819_s1 + $0x5d0] ss:$8 sps:$4 sm:$0xff]  }
  0xc6   : > { %2363 = vmatprep.subr.bf16.mxu0 %v5737_v23  ;;  %v5816_v22 = vld [vmem:[%s7819_s1 + $0x950] ss:$8 sps:$4 sm:$0xff]   ;;  %v5821_v23 = vld [vmem:[%s7819_s1 + $0x5e4] ss:$8 sps:$4 sm:$0xff]  }
  0xc8   : > { %2343 = vmatmul.mubr.bf16.vlgmr.msra.gmra.mrb[16].mxu0 %v6467_v32  ;;  %1904 = vmatpush1.bf16.msra.mxu1 %v5730_v24  ;;  %v5825_v24 = vld [vmem:[%s7819_s1 + $0x964] ss:$8 sps:$4 sm:$0xff]  }
  0xc9   : > { %2364 = vmatpush1.bf16.msra.mxu0 %v5735_v26  ;;  %1905 = vmatprep.subr.bf16.mxu1 %v5740_v10  ;;  %v5819_v10 = vld [vmem:[%s7819_s1 + $0x5e0] ss:$8 sps:$4 sm:$0xff]  }
  0xca   : > { %2365 = vmatprep.subr.bf16.mxu0 %v5743_v27  ;;  %2352 = vmatprep.mubr.bf16.mxu0 %v6841_v28  ;;  %v5823_v27 = vld [vmem:[%s7819_s1 + $0x960] ss:$8 sps:$4 sm:$0xff]  }
  0xcc   : > { %1906 = vmatpush1.bf16.msra.mxu1 %v5738_v29 }
  0xcd   : > { %2366 = vmatpush1.bf16.msra.mxu0 %v5741_v33  ;;  %1907 = vmatprep.subr.bf16.mxu1 %v5746_v36  ;;  %v5828_v33 = vld [vmem:[%s7819_s1 + $0x5f4] ss:$8 sps:$4 sm:$0xff]  }
  0xce   : > { %2367 = vmatprep.subr.bf16.mxu0 %v5749_v38  ;;  %v5831_v38 = vld [vmem:[%s7819_s1 + $0x974] ss:$8 sps:$4 sm:$0xff]  }
  0xd0   : > { %2353 = vmatmul.mubr.bf16.gmra.mrb[20].mxu0 %v6862_v30  ;;  %1908 = vmatpush1.bf16.msra.mxu1 %v5744_v51 }
  0xd1   : > { %2368 = vmatpush1.bf16.msra.mxu0 %v5747_v37  ;;  %1909 = vmatprep.subr.bf16.mxu1 %v5752_v39  ;;  %v5826_v37 = vld [vmem:[%s7819_s1 + $0x5f0] ss:$8 sps:$4 sm:$0xff]  }
  0xd2   : > { %2369 = vmatprep.subr.bf16.mxu0 %v5755_v40  ;;  %2395 = vmatprep.mubr.bf16.mxu0 %v6127_v2  ;;  %v5829_v39 = vld [vmem:[%s7819_s1 + $0x970] ss:$8 sps:$4 sm:$0xff]   ;;  %v5834_v40 = vld [vmem:[%s7819_s1 + $0x784] ss:$8 sps:$4 sm:$0xff]  }
  0xd4   : > { %1910 = vmatpush1.bf16.msra.mxu1 %v5750_v31  ;;  %v5837_v31 = vld [vmem:[%s7819_s1 + $0x984] ss:$8 sps:$4 sm:$0xff]  }
  0xd5   : > { %2370 = vmatpush1.bf16.msra.mxu0 %v5753_v41  ;;  %1911 = vmatprep.subr.bf16.mxu1 %v5758_v42  ;;  %v5832_v41 = vld [vmem:[%s7819_s1 + $0x780] ss:$8 sps:$4 sm:$0xff]  }
  0xd6   : > { %2371 = vmatprep.subr.bf16.mxu0 %v5761_v43  ;;  %v5835_v42 = vld [vmem:[%s7819_s1 + $0x980] ss:$8 sps:$4 sm:$0xff]   ;;  %v5840_v43 = vld [vmem:[%s7819_s1 + $0x794] ss:$8 sps:$4 sm:$0xff]  }
  0xd8   : > { %1912 = vmatpush1.bf16.msra.mxu1 %v5756_v44  ;;  %v5843_v44 = vld [vmem:[%s7819_s1 + $0x994] ss:$8 sps:$4 sm:$0xff]  }
  0xd9   : > { %2372 = vmatpush1.bf16.msra.mxu0 %v5759_v45  ;;  %1913 = vmatprep.subr.bf16.mxu1 %v5764_v46  ;;  %v5838_v45 = vld [vmem:[%s7819_s1 + $0x790] ss:$8 sps:$4 sm:$0xff]  }
  0xda   : > { %2373 = vmatprep.subr.bf16.mxu0 %v5767_v47  ;;  %v5841_v46 = vld [vmem:[%s7819_s1 + $0x990] ss:$8 sps:$4 sm:$0xff]   ;;  %v5846_v47 = vld [vmem:[%s7819_s1 + $0x7a4] ss:$8 sps:$4 sm:$0xff]  }
  0xdc   : > { %1914 = vmatpush1.bf16.msra.mxu1 %v5762_v48  ;;  %v5849_v48 = vld [vmem:[%s7819_s1 + $0x9a4] ss:$8 sps:$4 sm:$0xff]  }
  0xdd   : > { %2374 = vmatpush1.bf16.msra.mxu0 %v5765_v49  ;;  %1915 = vmatprep.subr.bf16.mxu1 %v5771_v50  ;;  %v5844_v49 = vld [vmem:[%s7819_s1 + $0x7a0] ss:$8 sps:$4 sm:$0xff]  }
  0xde   : > { %2375 = vmatprep.subr.bf16.mxu0 %v5775_v52  ;;  %v5847_v50 = vld [vmem:[%s7819_s1 + $0x9a0] ss:$8 sps:$4 sm:$0xff]   ;;  %v5852_v52 = vld [vmem:[%s7819_s1 + $0x7b4] ss:$8 sps:$4 sm:$0xff]  }
  0xe0   : > { %1916 = vmatpush1.bf16.msra.mxu1 %v5769_v53  ;;  %v5855_v53 = vld [vmem:[%s7819_s1 + $0x9b4] ss:$8 sps:$4 sm:$0xff]  }
  0xe1   : > { %2376 = vmatpush1.bf16.msra.mxu0 %v5773_v54  ;;  %1917 = vmatprep.subr.bf16.mxu1 %v5778_v55  ;;  %v5850_v54 = vld [vmem:[%s7819_s1 + $0x7b0] ss:$8 sps:$4 sm:$0xff]  }
  0xe2   : > { %2377 = vmatprep.subr.bf16.mxu0 %v5781_v56  ;;  %v5853_v55 = vld [vmem:[%s7819_s1 + $0x9b0] ss:$8 sps:$4 sm:$0xff]   ;;  %v5858_v56 = vld [vmem:[%s7819_s1 + $0x7c4] ss:$8 sps:$4 sm:$0xff]  }
  0xe4   : > { %1918 = vmatpush1.bf16.msra.mxu1 %v5776_v57  ;;  %v5861_v57 = vld [vmem:[%s7819_s1 + $0x9c4] ss:$8 sps:$4 sm:$0xff]  }
  0xe5   : > { %2378 = vmatpush1.bf16.msra.mxu0 %v5779_v58  ;;  %1940 = vmatprep.subr.bf16.mxu1 %v5784_v59  ;;  %v5856_v58 = vld [vmem:[%s7819_s1 + $0x7c0] ss:$8 sps:$4 sm:$0xff]  }
  0xe6   : > { %3237 = vmatprep.subr.bf16.mxu0 %v5788_v60  ;;  %v5859_v59 = vld [vmem:[%s7819_s1 + $0x9c0] ss:$8 sps:$4 sm:$0xff]   ;;  %v5864_v60 = vld [vmem:[%s7819_s1 + $0x7d4] ss:$8 sps:$4 sm:$0xff]  }
  0xe7   : > { %1920 = vmatmul.mubr.bf16.vlgmr.msra.gmra.mrb[16].mxu1 %v6467_v32 }
  0xe8   : > { %2396 = vmatmul.mubr.bf16.vlgmr.msra.gmra.mrb[16].mxu0 %v6939_v35  ;;  %1941 = vmatpush1.bf16.msra.mxu1 %v5782_v61  ;;  %v5862_v61 = vld [vmem:[%s7819_s1 + $0x7d0] ss:$8 sps:$4 sm:$0xff]  }
  0xe9   : > { %3238 = vmatpush1.bf16.msra.mxu0 %v5786_v62  ;;  %1942 = vmatprep.subr.bf16.mxu1 %v5791_v63  ;;  %v5865_v62 = vld [vmem:[%s7819_s1 + $0x9d0] ss:$8 sps:$4 sm:$0xff]   ;;  %v5870_v63 = vld [vmem:[%s7819_s1 + $0x7e4] ss:$8 sps:$4 sm:$0xff]  }
  0xea   : > { %3239 = vmatprep.subr.bf16.mxu0 %v5794_v0  ;;  %1929 = vmatprep.mubr.bf16.mxu1 %v6841_v28  ;;  %v5873_v0 = vld [vmem:[%s7819_s1 + $0x9e4] ss:$8 sps:$4 sm:$0xff]  }
  0xeb   : > { %2405 = vmatprep.mubr.bf16.mxu0 %v6127_v2 }
  0xec   : > { %1943 = vmatpush1.bf16.msra.mxu1 %v5789_v1 }
  0xed   : > { %3240 = vmatpush1.bf16.msra.mxu0 %v5792_v3  ;;  %1944 = vmatprep.subr.bf16.mxu1 %v5797_v4 }
  0xee   : > { %3241 = vmatprep.subr.bf16.mxu0 %v5800_v5 }
  0xef   : > { %1930 = vmatmul.mubr.bf16.gmra.mrb[20].mxu1 %v6862_v30 }
  0xf0   : > { %2406 = vmatmul.mubr.bf16.gmra.mrb[20].mxu0 %v6970_v6  ;;  %1945 = vmatpush1.bf16.msra.mxu1 %v5795_v11 }
  0xf1   : > { %3242 = vmatpush1.bf16.msra.mxu0 %v5798_v7  ;;  %1946 = vmatprep.subr.bf16.mxu1 %v5803_v8 }
  0xf2   : > { %3243 = vmatprep.subr.bf16.mxu0 %v5806_v9  ;;  %1972 = vmatprep.mubr.bf16.mxu1 %v6127_v2 }
  0xf3   : > { %3269 = vmatprep.mubr.bf16.mxu0 %v6982_v12 }
  0xf4   : > { %1947 = vmatpush1.bf16.msra.mxu1 %v5801_v13  ;;  %v5868_v13 = vld [vmem:[%s7819_s1 + $0x7e0] ss:$8 sps:$4 sm:$0xff]  }
  0xf5   : > { %3244 = vmatpush1.bf16.msra.mxu0 %v5804_v14  ;;  %1948 = vmatprep.subr.bf16.mxu1 %v5809_v15  ;;  %v5871_v14 = vld [vmem:[%s7819_s1 + $0x9e0] ss:$8 sps:$4 sm:$0xff]  }
  0xf6   : > { %3245 = vmatprep.subr.bf16.mxu0 %v5812_v16 }
  0xf8   : > { %1949 = vmatpush1.bf16.msra.mxu1 %v5807_v17 }
  0xf9   : > { %3246 = vmatpush1.bf16.msra.mxu0 %v5810_v18  ;;  %1950 = vmatprep.subr.bf16.mxu1 %v5815_v19  ;;  %v5876_v18 = vld [vmem:[%s7819_s1 + $0x7f4] ss:$8 sps:$4 sm:$0xff]  }
  0xfa   : > { %3247 = vmatprep.subr.bf16.mxu0 %v5818_v20  ;;  %v5879_v19 = vld [vmem:[%s7819_s1 + $0x9f4] ss:$8 sps:$4 sm:$0xff]  }
  0xfb   : > { %v7024_v26 = vpop.f32.mrb[0].mxu0 }
  0xfc   : > { %v7032_v29 = vpop.f32.mrb[1].mxu0  ;;  %1951 = vmatpush1.bf16.msra.mxu1 %v5813_v21 }
  0xfd   : > { %3248 = vmatpush1.bf16.msra.mxu0 %v5816_v22  ;;  %v7037_v36 = vpop.f32.mrb[2].mxu0  ;;  %1952 = vmatprep.subr.bf16.mxu1 %v5821_v23  ;;  %v5874_v22 = vld [vmem:[%s7819_s1 + $0x7f0] ss:$8 sps:$4 sm:$0xff]  }
  0xfe   : > { %3249 = vmatprep.subr.bf16.mxu0 %v5825_v24  ;;  %v7042_v51 = vpop.f32.mrb[3].mxu0  ;;  %v5877_v24 = vld [vmem:[%s7819_s1 + $0x9f0] ss:$8 sps:$4 sm:$0xff]  }
 0x100   : > { %1953 = vmatpush1.bf16.msra.mxu1 %v5819_v10  ;;  %v7176_v10 = vld [vmem:[%s6261_s29 + $0x18] ss:$12 sps:$4 sm:$0xff]  }
 0x101   : > { %3250 = vmatpush1.bf16.msra.mxu0 %v5823_v27  ;;  %1954 = vmatprep.subr.bf16.mxu1 %v5828_v33  ;;  %v5888_v27 = vld [vmem:[%s7819_s1 + $0xa04] ss:$8 sps:$4 sm:$0xff]   ;;  %v5886_v33 = vld [vmem:[%s7819_s1 + $0xa00] ss:$8 sps:$4 sm:$0xff]  }
 0x102   : > { %3251 = vmatprep.subr.bf16.mxu0 %v5831_v38  ;;  %v5891_v38 = vld [vmem:[%s7819_s1 + $0x814] ss:$8 sps:$4 sm:$0xff]  }
 0x103   : > { %v636_v1 = vpop.f32.mrb[4].mxu0 }
 0x104   : > { %1955 = vmatpush1.bf16.msra.mxu1 %v5826_v37  ;;  %v7132_v4 = vpop.f32.mrb[5].mxu0  ;;  %v5889_v37 = vld [vmem:[%s7819_s1 + $0x810] ss:$8 sps:$4 sm:$0xff]  }
 0x105   : > { %3252 = vmatpush1.bf16.msra.mxu0 %v5829_v39  ;;  %2753 = vmatprep.subr.bf16.mxu1 %v5834_v40  ;;  %v7137_v7 = vpop.f32.mrb[6].mxu0  ;;  %v5892_v39 = vld [vmem:[%s7819_s1 + $0xa10] ss:$8 sps:$4 sm:$0xff]  }
 0x106   : > { %3253 = vmatprep.subr.bf16.mxu0 %v5837_v31  ;;  %v7148_v15 = vpop.f32.mrb[7].mxu0  ;;  %v5897_v31 = vld [vmem:[%s7819_s1 + $0x824] ss:$8 sps:$4 sm:$0xff]  }
 0x107   : > { %1973 = vmatmul.mubr.bf16.vlgmr.msra.gmra.mrb[16].mxu1 %v6939_v35 }
 0x108   : > { %2754 = vmatpush1.bf16.msra.mxu1 %v5832_v41  ;;  %1982 = vmatprep.mubr.bf16.mxu1 %v6127_v2  ;;  %v5900_v41 = vld [vmem:[%s7819_s1 + $0xa24] ss:$8 sps:$4 sm:$0xff]  }
 0x109   : > { %3254 = vmatpush1.bf16.msra.mxu0 %v5835_v42  ;;  %2755 = vmatprep.subr.bf16.mxu1 %v5840_v43  ;;  %v5895_v43 = vld [vmem:[%s7819_s1 + $0x820] ss:$8 sps:$4 sm:$0xff]  }
 0x10a   : > { %3255 = vmatprep.subr.bf16.mxu0 %v5843_v44  ;;  %v5898_v44 = vld [vmem:[%s7819_s1 + $0xa20] ss:$8 sps:$4 sm:$0xff]  }
 0x10c   : > { %2756 = vmatpush1.bf16.msra.mxu1 %v5838_v45  ;;  %v5903_v45 = vld [vmem:[%s7819_s1 + $0x834] ss:$8 sps:$4 sm:$0xff]  }
 0x10d   : > { %3256 = vmatpush1.bf16.msra.mxu0 %v5841_v46  ;;  %2757 = vmatprep.subr.bf16.mxu1 %v5846_v47 }
 0x10e   : > { %3257 = vmatprep.subr.bf16.mxu0 %v5849_v48 }
 0x10f   : > { %1983 = vmatmul.mubr.bf16.gmra.mrb[20].mxu1 %v6970_v6 }
 0x110   : > { %2758 = vmatpush1.bf16.msra.mxu1 %v5844_v49  ;;  %2785 = vmatprep.mubr.bf16.mxu1 %v6658_v34  ;;  %v5867_v34 = vld [vmem:[%s7819_s1 + $0x9d4] ss:$8 sps:$4 sm:$0xff]   ;;  %v5901_v49 = vld [vmem:[%s7819_s1 + $0x830] ss:$8 sps:$4 sm:$0xff]  }
 0x111   : > { %3258 = vmatpush1.bf16.msra.mxu0 %v5847_v50  ;;  %2759 = vmatprep.subr.bf16.mxu1 %v5852_v52  ;;  %v5904_v50 = vld [vmem:[%s7819_s1 + $0xa30] ss:$8 sps:$4 sm:$0xff]  }
 0x112   : > { %3259 = vmatprep.subr.bf16.mxu0 %v5855_v53 }
 0x114   : > { %2760 = vmatpush1.bf16.msra.mxu1 %v5850_v54  ;;  %v5909_v54 = vld [vmem:[%s7819_s1 + $0x844] ss:$8 sps:$4 sm:$0xff]  }
 0x115   : > { %3260 = vmatpush1.bf16.msra.mxu0 %v5853_v55  ;;  %2761 = vmatprep.subr.bf16.mxu1 %v5858_v56  ;;  %v5912_v55 = vld [vmem:[%s7819_s1 + $0xa44] ss:$8 sps:$4 sm:$0xff]  }
 0x116   : > { %3261 = vmatprep.subr.bf16.mxu0 %v5861_v57 }
 0x118   : > { %2762 = vmatpush1.bf16.msra.mxu1 %v5856_v58 }
 0x119   : > { %3262 = vmatpush1.bf16.msra.mxu0 %v5859_v59  ;;  %2763 = vmatprep.subr.bf16.mxu1 %v5864_v60  ;;  %v5907_v60 = vld [vmem:[%s7819_s1 + $0x840] ss:$8 sps:$4 sm:$0xff]  }
 0x11a   : > { %3263 = vmatprep.subr.bf16.mxu0 %v5867_v34  ;;  %v573_v3 = vpop.f32.mrb[0].mxu1  ;;  %v5910_v34 = vld [vmem:[%s7819_s1 + $0xa40] ss:$8 sps:$4 sm:$0xff]  }
 0x11b   : > { %v7135_v5 = vadd.f32 %v7024_v26, %v573_v3  ;;  %v575_v11 = vpop.f32.mrb[1].mxu1  ;;  %v5882_v26 = vld [vmem:[%s7819_s1 + $0x804] ss:$8 sps:$4 sm:$0xff]  }
 0x11c   : > { %v7140_v8 = vadd.f32 %v7032_v29, %v575_v11  ;;  %v577_v9 = vpop.f32.mrb[2].mxu1  ;;  %2764 = vmatpush1.bf16.msra.mxu1 %v5862_v61  ;;  %v5880_v29 = vld [vmem:[%s7819_s1 + $0x800] ss:$8 sps:$4 sm:$0xff]   ;;  %v5922_v3 = vld [vmem:[%s7819_s1 + $0x864] ss:$8 sps:$4 sm:$0xff]  }
 0x11d   : > { %3264 = vmatpush1.bf16.msra.mxu0 %v5865_v62  ;;  %v7151_v16 = vadd.f32 %v7037_v36, %v577_v9  ;;  %v579_v17 = vpop.f32.mrb[3].mxu1  ;;  %2765 = vmatprep.subr.bf16.mxu1 %v5870_v63  ;;  %v5023_v36 = vld [vmem:[%s6261_s29 + $0x3c] sm:$0xff] }
 0x11e   : > { %3265 = vmatprep.subr.bf16.mxu0 %v5873_v0  ;;  %v653_v20 = vcombine.low %v7135_v5, %v7140_v8  ;;  %v7162_v21 = vadd.f32 %v7042_v51, %v579_v17  ;;  %v5894_v51 = vld [vmem:[%s7819_s1 + $0xa14] ss:$8 sps:$4 sm:$0xff]   ;;  %v7201_v40 = vcombine.high %v6828_v25, %v5023_v36  ;;  %v7212_v42 = vcombine.low %v6828_v25, %v5023_v36  ;;  %v5913_v0 = vld [vmem:[%s7819_s1 + $0x850] ss:$8 sps:$4 sm:$0xff]   ;;  %v5920_v11 = vld [vmem:[%s7819_s1 + $0x860] ss:$8 sps:$4 sm:$0xff]  }
 0x11f   : > { %v5906_v25 = vld [vmem:[%s7819_s1 + $0xa34] ss:$8 sps:$4 sm:$0xff]   ;;  %v5935_v17 = vld [vmem:[%s7819_s1 + $0x884] ss:$8 sps:$4 sm:$0xff]   ;;  %v6031_v8 = vld [vmem:[%s7819_s1 + $0xb00] ss:$8 sps:$4 sm:$0xff]  }
 0x120   : > { %v654_v23 = vcombine.low %v7151_v16, %v7162_v21  ;;  %2766 = vmatpush1.bf16.msra.mxu1 %v5868_v13  ;;  %v5915_v62 = vld [vmem:[%s7819_s1 + $0x854] ss:$8 sps:$4 sm:$0xff]   ;;  %v5948_v36 = vld [vmem:[%s7819_s1 + $0x8a4] ss:$8 sps:$4 sm:$0xff]  }
 0x121   : > { %3266 = vmatpush1.bf16.msra.mxu0 %v5871_v14  ;;  %2767 = vmatprep.subr.bf16.mxu1 %v5876_v18  ;;  %v5918_v63 = vld [vmem:[%s7819_s1 + $0xa54] ss:$8 sps:$4 sm:$0xff]   ;;  %v5927_v14 = vld [vmem:[%s7819_s1 + $0x870] ss:$8 sps:$4 sm:$0xff]   ;;  %v5939_v18 = vld [vmem:[%s7819_s1 + $0xc04] ss:$8 sps:$4 sm:$0xff]  }
 0x122   : > { %3267 = vmatprep.subr.bf16.mxu0 %v5879_v19  ;;  %v583_v46 = vpop.f32.mrb[4].mxu1  ;;  %v5929_v9 = vld [vmem:[%s7819_s1 + $0x874] ss:$8 sps:$4 sm:$0xff]   ;;  %v7304_v19 = vld [vmem:[%s6261_s29 + $0x20] ss:$12 sps:$4 sm:$0xff]  }
 0x123   : > { %v7227_v47 = vadd.f32 %v636_v1, %v583_v46  ;;  %v585_v48 = vpop.f32.mrb[5].mxu1  ;;  %v5916_v1 = vld [vmem:[%s7819_s1 + $0xa50] ss:$8 sps:$4 sm:$0xff]   ;;  %v5932_v13 = vld [vmem:[%s7819_s1 + $0xa74] ss:$8 sps:$4 sm:$0xff]  }
 0x124   : > { %2768 = vmatpush1.bf16.msra.mxu1 %v5874_v22  ;;  %v7236_v52 = vadd.f32 %v7132_v4, %v585_v48  ;;  %v587_v53 = vpop.f32.mrb[6].mxu1  ;;  %v5926_v4 = vld [vmem:[%s7819_s1 + $0xa64] ss:$8 sps:$4 sm:$0xff]   ;;  %v5933_v22 = vld [vmem:[%s7819_s1 + $0x880] ss:$8 sps:$4 sm:$0xff]  }
 0x125   : > { %3268 = vmatpush1.bf16.msra.mxu0 %v5877_v24  ;;  %2769 = vmatprep.subr.bf16.mxu1 %v5882_v26  ;;  %v7245_v56 = vadd.f32 %v7137_v7, %v587_v53  ;;  %v589_v57 = vpop.f32.mrb[7].mxu1  ;;  %v5924_v7 = vld [vmem:[%s7819_s1 + $0xa60] ss:$8 sps:$4 sm:$0xff]   ;;  %v5942_v26 = vld [vmem:[%s7819_s1 + $0x894] ss:$8 sps:$4 sm:$0xff]  }
 0x126   : > { %3290 = vmatprep.subr.bf16.mxu0 %v5888_v27  ;;  %v655_v58 = vcombine.low %v7227_v47, %v7236_v52  ;;  %v7251_v59 = vadd.f32 %v7148_v15, %v589_v57  ;;  %v5930_v15 = vld [vmem:[%s7819_s1 + $0xa70] ss:$8 sps:$4 sm:$0xff]   ;;  %v5937_v24 = vld [vmem:[%s7819_s1 + $0xc00] ss:$8 sps:$4 sm:$0xff]   ;;  %v5945_v27 = vld [vmem:[%s7819_s1 + $0xc14] ss:$8 sps:$4 sm:$0xff]  }
 0x127   : > { %v5969_v46 = vld [vmem:[%s7819_s1 + $0xc54] ss:$8 sps:$4 sm:$0xff]   ;;  %v5964_v48 = vld [vmem:[%s7819_s1 + $0x8d0] ss:$8 sps:$4 sm:$0xff]   ;;  %v5976_v53 = vld [vmem:[%s7819_s1 + $0xc64] ss:$8 sps:$4 sm:$0xff]  }
 0x128   : > { %3270 = vmatmul.mubr.bf16.vlgmr.msra.gmra.mrb[24].mxu0 %v7176_v10  ;;  %2770 = vmatpush1.bf16.msra.mxu1 %v5880_v29  ;;  %v656_v61 = vcombine.low %v7245_v56, %v7251_v59  ;;  %v5940_v29 = vld [vmem:[%s7819_s1 + $0x890] ss:$8 sps:$4 sm:$0xff]   ;;  %v6039_v16 = vld [vmem:[%s7819_s1 + $0xb14] ss:$8 sps:$4 sm:$0xff]   ;;  %v6043_v47 = vld [vmem:[%s7819_s1 + $0xb20] ss:$8 sps:$4 sm:$0xff]  }
 0x129   : > { %3291 = vmatpush1.bf16.msra.mxu0 %v5886_v33  ;;  %2771 = vmatprep.subr.bf16.mxu1 %v5891_v38  ;;  %v5943_v33 = vld [vmem:[%s7819_s1 + $0xc10] ss:$8 sps:$4 sm:$0xff]   ;;  %v6042_v21 = vld [vmem:[%s7819_s1 + $0xd14] ss:$8 sps:$4 sm:$0xff]   ;;  %v6046_v52 = vld [vmem:[%s7819_s1 + $0xd20] ss:$8 sps:$4 sm:$0xff]  }
 0x12a   : > { %3292 = vmatprep.subr.bf16.mxu0 %v5894_v51  ;;  %3279 = vmatprep.mubr.bf16.mxu0 %v7201_v40  ;;  %v7335_v38 = vld [vmem:[%s6261_s29 + $0x38] ss:$12 sps:$4 sm:$0xff]   ;;  %v5946_v51 = vld [vmem:[%s7819_s1 + $0x8a0] ss:$8 sps:$4 sm:$0xff]   ;;  %v6054_v56 = vld [vmem:[%s7819_s1 + $0xd34] ss:$8 sps:$4 sm:$0xff]  }
 0x12c   : > { %2772 = vmatpush1.bf16.msra.mxu1 %v5889_v37  ;;  %v5949_v37 = vld [vmem:[%s7819_s1 + $0xc20] ss:$8 sps:$4 sm:$0xff]  }
 0x12d   : > { %3293 = vmatpush1.bf16.msra.mxu0 %v5892_v39  ;;  %2773 = vmatprep.subr.bf16.mxu1 %v5897_v31  ;;  %v5957_v39 = vld [vmem:[%s7819_s1 + $0xc34] ss:$8 sps:$4 sm:$0xff]   ;;  %v5952_v31 = vld [vmem:[%s7819_s1 + $0x8b0] ss:$8 sps:$4 sm:$0xff]  }
 0x12e   : > { %3294 = vmatprep.subr.bf16.mxu0 %v5900_v41  ;;  %v5955_v41 = vld [vmem:[%s7819_s1 + $0xc30] ss:$8 sps:$4 sm:$0xff]  }
 0x130   : > { %3280 = vmatmul.mubr.bf16.gmra.mrb[28].mxu0 %v7212_v42  ;;  %2774 = vmatpush1.bf16.msra.mxu1 %v5895_v43  ;;  %v5960_v43 = vld [vmem:[%s7819_s1 + $0x8c4] ss:$8 sps:$4 sm:$0xff]  }
 0x131   : > { %3295 = vmatpush1.bf16.msra.mxu0 %v5898_v44  ;;  %2775 = vmatprep.subr.bf16.mxu1 %v5903_v45  ;;  %v5958_v44 = vld [vmem:[%s7819_s1 + $0x8c0] ss:$8 sps:$4 sm:$0xff]  }
 0x132   : > { %3296 = vmatprep.subr.bf16.mxu0 %v5906_v25  ;;  %3322 = vmatprep.mubr.bf16.mxu0 %v6127_v2  ;;  %v5961_v45 = vld [vmem:[%s7819_s1 + $0xc40] ss:$8 sps:$4 sm:$0xff]   ;;  %v5966_v25 = vld [vmem:[%s7819_s1 + $0x8d4] ss:$8 sps:$4 sm:$0xff]  }
 0x134   : > { %2776 = vmatpush1.bf16.msra.mxu1 %v5901_v49  ;;  %v5967_v49 = vld [vmem:[%s7819_s1 + $0xc50] ss:$8 sps:$4 sm:$0xff]  }
 0x135   : > { %3297 = vmatpush1.bf16.msra.mxu0 %v5904_v50  ;;  %2777 = vmatprep.subr.bf16.mxu1 %v5909_v54  ;;  %v5972_v50 = vld [vmem:[%s7819_s1 + $0x8e4] ss:$8 sps:$4 sm:$0xff]  }
 0x136   : > { %3298 = vmatprep.subr.bf16.mxu0 %v5912_v55 }
 0x138   : > { %2778 = vmatpush1.bf16.msra.mxu1 %v5907_v60 }
 0x139   : > { %3299 = vmatpush1.bf16.msra.mxu0 %v5910_v34  ;;  %2779 = vmatprep.subr.bf16.mxu1 %v5915_v62  ;;  %v5970_v62 = vld [vmem:[%s7819_s1 + $0x8e0] ss:$8 sps:$4 sm:$0xff]  }
 0x13a   : > { %3300 = vmatprep.subr.bf16.mxu0 %v5918_v63  ;;  %v5974_v63 = vld [vmem:[%s7819_s1 + $0xc60] ss:$8 sps:$4 sm:$0xff]  }
 0x13c   : > { %2780 = vmatpush1.bf16.msra.mxu1 %v5913_v0 }
 0x13d   : > { %3301 = vmatpush1.bf16.msra.mxu0 %v5916_v1  ;;  %2781 = vmatprep.subr.bf16.mxu1 %v5922_v3  ;;  %v5979_v1 = vld [vmem:[%s7819_s1 + $0x8f4] ss:$8 sps:$4 sm:$0xff]  }
 0x13e   : > { %3302 = vmatprep.subr.bf16.mxu0 %v5926_v4  ;;  %v5982_v3 = vld [vmem:[%s7819_s1 + $0xc74] ss:$8 sps:$4 sm:$0xff]  }
 0x140   : > { %2782 = vmatpush1.bf16.msra.mxu1 %v5920_v11 }
 0x141   : > { %3303 = vmatpush1.bf16.msra.mxu0 %v5924_v7  ;;  %2783 = vmatprep.subr.bf16.mxu1 %v5929_v9 }
 0x142   : > { %3304 = vmatprep.subr.bf16.mxu0 %v5932_v13 }
 0x144   : > { %2784 = vmatpush1.bf16.msra.mxu1 %v5927_v14 }
 0x145   : > { %3305 = vmatpush1.bf16.msra.mxu0 %v5930_v15  ;;  %2806 = vmatprep.subr.bf16.mxu1 %v5935_v17  ;;  %v5977_v17 = vld [vmem:[%s7819_s1 + $0x8f0] ss:$8 sps:$4 sm:$0xff]  }
 0x146   : > { %4103 = vmatprep.subr.bf16.mxu0 %v5939_v18  ;;  %v5980_v18 = vld [vmem:[%s7819_s1 + $0xc70] ss:$8 sps:$4 sm:$0xff]  }
 0x147   : > { %2786 = vmatmul.mubr.bf16.vlgmr.msra.gmra.mrb[24].mxu1 %v6467_v32  ;;  %v5951_v32 = vld [vmem:[%s7819_s1 + $0xc24] ss:$8 sps:$4 sm:$0xff]  }
 0x148   : > { %3323 = vmatmul.mubr.bf16.vlgmr.msra.gmra.mrb[24].mxu0 %v7304_v19  ;;  %2807 = vmatpush1.bf16.msra.mxu1 %v5933_v22 }
 0x149   : > { %4104 = vmatpush1.bf16.msra.mxu0 %v5937_v24  ;;  %2808 = vmatprep.subr.bf16.mxu1 %v5942_v26  ;;  %v5985_v24 = vld [vmem:[%s7819_s1 + $0xa84] ss:$8 sps:$4 sm:$0xff]  }
 0x14a   : > { %4105 = vmatprep.subr.bf16.mxu0 %v5945_v27  ;;  %2795 = vmatprep.mubr.bf16.mxu1 %v6841_v28  ;;  %v5954_v28 = vld [vmem:[%s7819_s1 + $0x8b4] ss:$8 sps:$4 sm:$0xff]   ;;  %v5988_v26 = vld [vmem:[%s7819_s1 + $0xc84] ss:$8 sps:$4 sm:$0xff]  }
 0x14b   : > { %3332 = vmatprep.mubr.bf16.mxu0 %v6127_v2 }
 0x14c   : > { %2809 = vmatpush1.bf16.msra.mxu1 %v5940_v29 }
 0x14d   : > { %4106 = vmatpush1.bf16.msra.mxu0 %v5943_v33  ;;  %2810 = vmatprep.subr.bf16.mxu1 %v5948_v36  ;;  %v5983_v36 = vld [vmem:[%s7819_s1 + $0xa80] ss:$8 sps:$4 sm:$0xff]  }
 0x14e   : > { %4107 = vmatprep.subr.bf16.mxu0 %v5951_v32  ;;  %v5986_v32 = vld [vmem:[%s7819_s1 + $0xc80] ss:$8 sps:$4 sm:$0xff]  }
 0x14f   : > { %2796 = vmatmul.mubr.bf16.gmra.mrb[28].mxu1 %v6862_v30  ;;  %v5963_v30 = vld [vmem:[%s7819_s1 + $0xc44] ss:$8 sps:$4 sm:$0xff]  }
 0x150   : > { %3333 = vmatmul.mubr.bf16.gmra.mrb[28].mxu0 %v7335_v38  ;;  %2811 = vmatpush1.bf16.msra.mxu1 %v5946_v51 }
 0x151   : > { %4108 = vmatpush1.bf16.msra.mxu0 %v5949_v37  ;;  %2812 = vmatprep.subr.bf16.mxu1 %v5954_v28 }
 0x152   : > { %4109 = vmatprep.subr.bf16.mxu0 %v5957_v39  ;;  %2838 = vmatprep.mubr.bf16.mxu1 %v6127_v2  ;;  %v5991_v39 = vld [vmem:[%s7819_s1 + $0xa94] ss:$8 sps:$4 sm:$0xff]  }
 0x153   : > { %4135 = vmatprep.mubr.bf16.mxu0 %v6982_v12 }
 0x154   : > { %2813 = vmatpush1.bf16.msra.mxu1 %v5952_v31  ;;  %v5994_v31 = vld [vmem:[%s7819_s1 + $0xc94] ss:$8 sps:$4 sm:$0xff]  }
 0x155   : > { %4110 = vmatpush1.bf16.msra.mxu0 %v5955_v41  ;;  %2814 = vmatprep.subr.bf16.mxu1 %v5960_v43 }
 0x156   : > { %4111 = vmatprep.subr.bf16.mxu0 %v5963_v30 }
 0x158   : > { %2815 = vmatpush1.bf16.msra.mxu1 %v5958_v44 }
 0x159   : > { %4112 = vmatpush1.bf16.msra.mxu0 %v5961_v45  ;;  %2816 = vmatprep.subr.bf16.mxu1 %v5966_v25  ;;  %v5989_v25 = vld [vmem:[%s7819_s1 + $0xa90] ss:$8 sps:$4 sm:$0xff]  }
 0x15a   : > { %4113 = vmatprep.subr.bf16.mxu0 %v5969_v46  ;;  %v5992_v46 = vld [vmem:[%s7819_s1 + $0xc90] ss:$8 sps:$4 sm:$0xff]  }
 0x15b   : > { %v1487_v54 = vpop.f32.mrb[8].mxu0 }
 0x15c   : > { %v1489_v55 = vpop.f32.mrb[9].mxu0  ;;  %2817 = vmatpush1.bf16.msra.mxu1 %v5964_v48 }
 0x15d   : > { %v1518_v57 = vcombine.low %v1487_v54, %v1489_v55  ;;  %v1519_v60 = vcombine.high %v1487_v54, %v1489_v55  ;;  %v1491_v34 = vpop.f32.mrb[10].mxu0  ;;  %4114 = vmatpush1.bf16.msra.mxu0 %v5967_v49  ;;  %2818 = vmatprep.subr.bf16.mxu1 %v5972_v50  ;;  %v5995_v55 = vld [vmem:[%s7819_s1 + $0xaa0] ss:$8 sps:$4 sm:$0xff]  }
 0x15e   : > { %v1493_v0 = vpop.f32.mrb[11].mxu0  ;;  %4115 = vmatprep.subr.bf16.mxu0 %v5976_v53  ;;  %v6000_v53 = vld [vmem:[%s7819_s1 + $0xca4] ss:$8 sps:$4 sm:$0xff]  }
 0x15f   : > { %v7406_v11 = vrot.slane %v1518_v57, 10  ;;  %v7408_v7 = vrot.slane %v1519_v60, 6  ;;  %v1520_v9 = vcombine.low %v1491_v34, %v1493_v0  ;;  %v1521_v13 = vcombine.high %v1491_v34, %v1493_v0  ;;  %v5998_v57 = vld [vmem:[%s7819_s1 + $0xca0] ss:$8 sps:$4 sm:$0xff]   ;;  %v6003_v60 = vld [vmem:[%s7819_s1 + $0xab4] ss:$8 sps:$4 sm:$0xff]  }
 0x160   : > { %2819 = vmatpush1.bf16.msra.mxu1 %v5970_v62  ;;  %v6006_v34 = vld [vmem:[%s7819_s1 + $0xcb4] ss:$8 sps:$4 sm:$0xff]   ;;  %v6001_v62 = vld [vmem:[%s7819_s1 + $0xab0] ss:$8 sps:$4 sm:$0xff]   ;;  %v6009_v0 = vld [vmem:[%s7819_s1 + $0xac4] ss:$8 sps:$4 sm:$0xff]  }
 0x161   : > { %v7410_v14 = vrot.slane %v1520_v9, 10  ;;  %v7412_v15 = vrot.slane %v1521_v13, 6  ;;  %4116 = vmatpush1.bf16.msra.mxu0 %v5974_v63  ;;  %v1532_v22 = vsel %vm7402_vm2, %v7406_v11, %v7408_v7  ;;  %2820 = vmatprep.subr.bf16.mxu1 %v5979_v1  ;;  %v6004_v63 = vld [vmem:[%s7819_s1 + $0xcb0] ss:$8 sps:$4 sm:$0xff]   ;;  %v6007_v1 = vld [vmem:[%s7819_s1 + $0xac0] ss:$8 sps:$4 sm:$0xff]  }
 0x162   : > { %4117 = vmatprep.subr.bf16.mxu0 %v5982_v3  ;;  %v6010_v3 = vld [vmem:[%s7819_s1 + $0xcc0] ss:$8 sps:$4 sm:$0xff]   ;;  %v6015_v9 = vld [vmem:[%s7819_s1 + $0xad4] ss:$8 sps:$4 sm:$0xff]   ;;  %v6013_v13 = vld [vmem:[%s7819_s1 + $0xad0] ss:$8 sps:$4 sm:$0xff]  }
 0x163   : > { %v1497_v27 = vpop.f32.mrb[12].mxu0  ;;  %v1536_v29 = vsel %vm7402_vm2, %v7410_v14, %v7412_v15  ;;  %v6040_v14 = vld [vmem:[%s7819_s1 + $0xd10] ss:$8 sps:$4 sm:$0xff]   ;;  %v6045_v15 = vld [vmem:[%s7819_s1 + $0xb24] ss:$8 sps:$4 sm:$0xff]  }
 0x164   : > { %v1499_v33 = vpop.f32.mrb[13].mxu0  ;;  %2821 = vmatpush1.bf16.msra.mxu1 %v5977_v17  ;;  %v6016_v17 = vld [vmem:[%s7819_s1 + $0xcd0] ss:$8 sps:$4 sm:$0xff]  }
 0x165   : > { %4118 = vmatpush1.bf16.msra.mxu0 %v5980_v18  ;;  %v1522_v51 = vcombine.low %v1497_v27, %v1499_v33  ;;  %v1523_v37 = vcombine.high %v1497_v27, %v1499_v33  ;;  %v1501_v28 = vpop.f32.mrb[14].mxu0  ;;  %3660 = vmatprep.subr.bf16.mxu1 %v5985_v24  ;;  %v6021_v18 = vld [vmem:[%s7819_s1 + $0xae4] ss:$8 sps:$4 sm:$0xff]  }
 0x166   : > { %4119 = vmatprep.subr.bf16.mxu0 %v5988_v26  ;;  %v1503_v41 = vpop.f32.mrb[15].mxu0  ;;  %v6024_v24 = vld [vmem:[%s7819_s1 + $0xce4] ss:$8 sps:$4 sm:$0xff]  }
 0x167   : > { %v7446_v43 = vrot.slane %v1522_v51, 10  ;;  %v7448_v30 = vrot.slane %v1523_v37, 6  ;;  %v1524_v44 = vcombine.low %v1501_v28, %v1503_v41  ;;  %v1525_v45 = vcombine.high %v1501_v28, %v1503_v41  ;;  %2839 = vmatmul.mubr.bf16.vlgmr.msra.gmra.mrb[24].mxu1 %v6939_v35  ;;  %v5997_v35 = vld [vmem:[%s7819_s1 + $0xaa4] ss:$8 sps:$4 sm:$0xff]   ;;  %v6019_v51 = vld [vmem:[%s7819_s1 + $0xae0] ss:$8 sps:$4 sm:$0xff]  }
 0x168   : > { %3661 = vmatpush1.bf16.msra.mxu1 %v5983_v36  ;;  %2848 = vmatprep.mubr.bf16.mxu1 %v6127_v2  ;;  %v6022_v37 = vld [vmem:[%s7819_s1 + $0xce0] ss:$8 sps:$4 sm:$0xff]   ;;  %v6030_v41 = vld [vmem:[%s7819_s1 + $0xcf4] ss:$8 sps:$4 sm:$0xff]  }
 0x169   : > { %4120 = vmatpush1.bf16.msra.mxu0 %v5986_v32  ;;  %v7457_v48 = vrot.slane %v1524_v44, 10  ;;  %v7459_v49 = vrot.slane %v1525_v45, 6  ;;  %v1540_v50 = vsel %vm7402_vm2, %v7446_v43, %v7448_v30  ;;  %3662 = vmatprep.subr.bf16.mxu1 %v5991_v39  ;;  %v6052_v43 = vld [vmem:[%s7819_s1 + $0xd30] ss:$8 sps:$4 sm:$0xff]   ;;  %v6057_v30 = vld [vmem:[%s7819_s1 + $0xb44] ss:$8 sps:$4 sm:$0xff]  }
 0x16a   : > { %4121 = vmatprep.subr.bf16.mxu0 %v5994_v31  ;;  %v6027_v31 = vld [vmem:[%s7819_s1 + $0xaf4] ss:$8 sps:$4 sm:$0xff]  }
 0x16b   : > { %v1544_v54 = vsel %vm7402_vm2, %v7457_v48, %v7459_v49  ;;  %v6060_v48 = vld [vmem:[%s7819_s1 + $0xd44] ss:$8 sps:$4 sm:$0xff]   ;;  %v6055_v49 = vld [vmem:[%s7819_s1 + $0xb40] ss:$8 sps:$4 sm:$0xff]  }
 0x16c   : > { %3663 = vmatpush1.bf16.msra.mxu1 %v5989_v25 }
 0x16d   : > { %4122 = vmatpush1.bf16.msra.mxu0 %v5992_v46  ;;  %3664 = vmatprep.subr.bf16.mxu1 %v5997_v35 }
 0x16e   : > { %4123 = vmatprep.subr.bf16.mxu0 %v6000_v53 }
 0x16f   : > { %2849 = vmatmul.mubr.bf16.gmra.mrb[28].mxu1 %v6970_v6  ;;  %v6012_v6 = vld [vmem:[%s7819_s1 + $0xcc4] ss:$8 sps:$4 sm:$0xff]  }
 0x170   : > { %3665 = vmatpush1.bf16.msra.mxu1 %v5995_v55  ;;  %3692 = vmatprep.mubr.bf16.mxu1 %v6982_v12  ;;  %v6018_v12 = vld [vmem:[%s7819_s1 + $0xcd4] ss:$8 sps:$4 sm:$0xff]  }
 0x171   : > { %4124 = vmatpush1.bf16.msra.mxu0 %v5998_v57  ;;  %3666 = vmatprep.subr.bf16.mxu1 %v6003_v60  ;;  %v6025_v57 = vld [vmem:[%s7819_s1 + $0xaf0] ss:$8 sps:$4 sm:$0xff]  }
 0x172   : > { %4125 = vmatprep.subr.bf16.mxu0 %v6006_v34  ;;  %v6028_v60 = vld [vmem:[%s7819_s1 + $0xcf0] ss:$8 sps:$4 sm:$0xff]   ;;  %v6033_v34 = vld [vmem:[%s7819_s1 + $0xb04] ss:$8 sps:$4 sm:$0xff]  }
 0x174   : > { %3667 = vmatpush1.bf16.msra.mxu1 %v6001_v62  ;;  %v6036_v62 = vld [vmem:[%s7819_s1 + $0xd04] ss:$8 sps:$4 sm:$0xff]  }
 0x175   : > { %4126 = vmatpush1.bf16.msra.mxu0 %v6004_v63  ;;  %3668 = vmatprep.subr.bf16.mxu1 %v6009_v0 }
 0x176   : > { %4127 = vmatprep.subr.bf16.mxu0 %v6012_v6 }
 0x178   : > { %3669 = vmatpush1.bf16.msra.mxu1 %v6007_v1 }
 0x179   : > { %4128 = vmatpush1.bf16.msra.mxu0 %v6010_v3  ;;  %3670 = vmatprep.subr.bf16.mxu1 %v6015_v9 }
 0x17a   : > { %4129 = vmatprep.subr.bf16.mxu0 %v6018_v12  ;;  %v1041_v26 = vpop.f32.mrb[8].mxu1 }
 0x17b   : > { %v1043_v27 = vpop.f32.mrb[9].mxu1 }
 0x17c   : > { %v1072_v33 = vcombine.low %v1041_v26, %v1043_v27  ;;  %v1073_v36 = vcombine.high %v1041_v26, %v1043_v27  ;;  %v1045_v32 = vpop.f32.mrb[10].mxu1  ;;  %3671 = vmatpush1.bf16.msra.mxu1 %v6013_v13 }
 0x17d   : > { %4130 = vmatpush1.bf16.msra.mxu0 %v6016_v17  ;;  %v1047_v39 = vpop.f32.mrb[11].mxu1  ;;  %3672 = vmatprep.subr.bf16.mxu1 %v6021_v18 }
 0x17e   : > { %4131 = vmatprep.subr.bf16.mxu0 %v6024_v24  ;;  %v4603_v44 = vrot.slane %v1072_v33, 9  ;;  %v1085_v45 = vrot.slane %v1073_v36, 5  ;;  %v1074_v25 = vcombine.low %v1045_v32, %v1047_v39  ;;  %v1075_v46 = vcombine.high %v1045_v32, %v1047_v39  ;;  %v6037_v33 = vld [vmem:[%s7819_s1 + $0xb10] ss:$8 sps:$4 sm:$0xff]   ;;  %v6066_v39 = vld [vmem:[%s7819_s1 + $0xd54] ss:$8 sps:$4 sm:$0xff]  }
 0x180   : > { %v1086_v35 = vsel %vm7532_vm5, %v4603_v44, %v1085_v45  ;;  %v4604_v53 = vrot.slane %v1074_v25, 9  ;;  %v1089_v55 = vrot.slane %v1075_v46, 5  ;;  %3673 = vmatpush1.bf16.msra.mxu1 %v6019_v51  ;;  %v6069_v44 = vld [vmem:[%s7819_s1 + $0xb64] ss:$8 sps:$4 sm:$0xff]   ;;  %v6067_v25 = vld [vmem:[%s7819_s1 + $0xb60] ss:$8 sps:$4 sm:$0xff]  }
 0x181   : > { %4132 = vmatpush1.bf16.msra.mxu0 %v6022_v37  ;;  %3674 = vmatprep.subr.bf16.mxu1 %v6027_v31  ;;  %v1103_v63 = vadd.f32 %v1086_v35, %v653_v20  ;;  %v6034_v20 = vld [vmem:[%s7819_s1 + $0xd00] ss:$8 sps:$4 sm:$0xff]   ;;  %v6061_v31 = vld [vmem:[%s7819_s1 + $0xb50] ss:$8 sps:$4 sm:$0xff]   ;;  %v6072_v45 = vld [vmem:[%s7819_s1 + $0xd64] ss:$8 sps:$4 sm:$0xff]  }
 0x182   : > { %4133 = vmatprep.subr.bf16.mxu0 %v6030_v41  ;;  %v1090_v0 = vsel %vm7532_vm5, %v4604_v53, %v1089_v55  ;;  %v1051_v6 = vpop.f32.mrb[12].mxu1  ;;  %v6064_v41 = vld [vmem:[%s7819_s1 + $0xd50] ss:$8 sps:$4 sm:$0xff]   ;;  %v6070_v46 = vld [vmem:[%s7819_s1 + $0xd60] ss:$8 sps:$4 sm:$0xff]  }
 0x183   : > { %v1053_v1 = vpop.f32.mrb[13].mxu1  ;;  %v7566_v3 = vadd.f32 %v1532_v22, %v1103_v63  ;;  %v1104_v9 = vadd.f32 %v1090_v0, %v654_v23  ;;  %v6075_v35 = vld [vmem:[%s7819_s1 + $0xb74] ss:$8 sps:$4 sm:$0xff]   ;;  %v6073_v55 = vld [vmem:[%s7819_s1 + $0xb70] ss:$8 sps:$4 sm:$0xff]  }
 0x184   : > { %v1076_v12 = vcombine.low %v1051_v6, %v1053_v1  ;;  %v1077_v13 = vcombine.high %v1051_v6, %v1053_v1  ;;  %v1055_v5 = vpop.f32.mrb[14].mxu1  ;;  %3675 = vmatpush1.bf16.msra.mxu1 %v6025_v57  ;;  %v6078_v53 = vld [vmem:[%s7819_s1 + $0xd74] ss:$8 sps:$4 sm:$0xff]   ;;  %v6076_v57 = vld [vmem:[%s7819_s1 + $0xd70] ss:$8 sps:$4 sm:$0xff]  }
 0x185   : > { %4134 = vmatpush1.bf16.msra.mxu0 %v6028_v60  ;;  %v1057_v11 = vpop.f32.mrb[15].mxu1  ;;  %3676 = vmatprep.subr.bf16.mxu1 %v6033_v34  ;;  %v7588_v23 = vadd.f32 %v1536_v29, %v1104_v9  ;;  %v6048_v29 = vld [vmem:[%s7819_s1 + $0xd24] ss:$8 sps:$4 sm:$0xff]   ;;  %v6079_v34 = vld [vmem:[%s7819_s1 + $0xb80] ss:$8 sps:$4 sm:$0xff]  }
 0x186   : > { %4156 = vmatprep.subr.bf16.mxu0 %v6036_v62  ;;  %v4605_v7 = vrot.slane %v1076_v12, 9  ;;  %v1093_v22 = vrot.slane %v1077_v13, 5  ;;  %v1078_v17 = vcombine.low %v1055_v5, %v1057_v11  ;;  %v1079_v18 = vcombine.high %v1055_v5, %v1057_v11  ;;  %v6081_v60 = vld [vmem:[%s7819_s1 + $0xb84] ss:$8 sps:$4 sm:$0xff]   ;;  %v6084_v62 = vld [vmem:[%s7819_s1 + $0xb94] ss:$8 sps:$4 sm:$0xff]  }
 0x187   : > { %v6082_v63 = vld [vmem:[%s7819_s1 + $0xb90] ss:$8 sps:$4 sm:$0xff]   ;;  %v6087_v0 = vld [vmem:[%s7819_s1 + $0xba4] ss:$8 sps:$4 sm:$0xff]   ;;  %v6085_v6 = vld [vmem:[%s7819_s1 + $0xba0] ss:$8 sps:$4 sm:$0xff]  }
 0x188   : > { %4136 = vmatmul.mubr.bf16.vlgmr.msra.gmra.mrb[32].mxu0 %v7176_v10  ;;  %v1094_v24 = vsel %vm7532_vm5, %v4605_v7, %v1093_v22  ;;  %v4606_v26 = vrot.slane %v1078_v17, 9  ;;  %v1097_v27 = vrot.slane %v1079_v18, 5  ;;  %3677 = vmatpush1.bf16.msra.mxu1 %v6031_v8  ;;  %v6088_v1 = vld [vmem:[%s7819_s1 + $0xbb0] ss:$8 sps:$4 sm:$0xff]   ;;  %v6091_v9 = vld [vmem:[%s7819_s1 + $0xbc0] ss:$8 sps:$4 sm:$0xff]  }
 0x189   : > { %4157 = vmatpush1.bf16.msra.mxu0 %v6034_v20  ;;  %3678 = vmatprep.subr.bf16.mxu1 %v6039_v16  ;;  %v1105_v36 = vadd.f32 %v1094_v24, %v655_v58  ;;  %v6051_v58 = vld [vmem:[%s7819_s1 + $0xb34] ss:$8 sps:$4 sm:$0xff]   ;;  %v6094_v12 = vld [vmem:[%s7819_s1 + $0xbd0] ss:$8 sps:$4 sm:$0xff]   ;;  %v6099_v13 = vld [vmem:[%s7819_s1 + $0xbe4] ss:$8 sps:$4 sm:$0xff]  }
 0x18a   : > { %4158 = vmatprep.subr.bf16.mxu0 %v6042_v21  ;;  %v1098_v32 = vsel %vm7532_vm5, %v4606_v26, %v1097_v27  ;;  %4145 = vmatprep.mubr.bf16.mxu0 %v7201_v40  ;;  %v6097_v21 = vld [vmem:[%s7819_s1 + $0xbe0] ss:$8 sps:$4 sm:$0xff]   ;;  %v6102_v22 = vld [vmem:[%s7819_s1 + $0xbf4] ss:$8 sps:$4 sm:$0xff]  }
 0x18b   : > { %v7616_v51 = vadd.f32 %v1540_v50, %v1105_v36  ;;  %v1106_v37 = vadd.f32 %v1098_v32, %v656_v61  ;;  %v6049_v61 = vld [vmem:[%s7819_s1 + $0xb30] ss:$8 sps:$4 sm:$0xff]   ;;  %v6058_v50 = vld [vmem:[%s7819_s1 + $0xd40] ss:$8 sps:$4 sm:$0xff]  }
 0x18c   : > { %3679 = vmatpush1.bf16.msra.mxu1 %v6037_v33 }
 0x18d   : > { %4159 = vmatpush1.bf16.msra.mxu0 %v6040_v14  ;;  %3680 = vmatprep.subr.bf16.mxu1 %v6045_v15  ;;  %v7638_v59 = vadd.f32 %v1544_v54, %v1106_v37  ;;  %v6063_v54 = vld [vmem:[%s7819_s1 + $0xb54] ss:$8 sps:$4 sm:$0xff]   ;;  %v6100_v14 = vld [vmem:[%s7819_s1 + $0xbf0] ss:$8 sps:$4 sm:$0xff]  }
 0x18e   : > { %4160 = vmatprep.subr.bf16.mxu0 %v6048_v29 }
 0x190   : > { %4146 = vmatmul.mubr.bf16.gmra.mrb[36].mxu0 %v7212_v42  ;;  %3681 = vmatpush1.bf16.msra.mxu1 %v6043_v47 }
 0x191   : > { %4161 = vmatpush1.bf16.msra.mxu0 %v6046_v52  ;;  %3682 = vmatprep.subr.bf16.mxu1 %v6051_v58 }
 0x192   : > { %4162 = vmatprep.subr.bf16.mxu0 %v6054_v56  ;;  %4188 = vmatprep.mubr.bf16.mxu0 %v6127_v2 }
 0x194   : > { %3683 = vmatpush1.bf16.msra.mxu1 %v6049_v61 }
 0x195   : > { %4163 = vmatpush1.bf16.msra.mxu0 %v6052_v43  ;;  %3684 = vmatprep.subr.bf16.mxu1 %v6057_v30 }
 0x196   : > { %4164 = vmatprep.subr.bf16.mxu0 %v6060_v48 }
 0x198   : > { %3685 = vmatpush1.bf16.msra.mxu1 %v6055_v49 }
 0x199   : > { %4165 = vmatpush1.bf16.msra.mxu0 %v6058_v50  ;;  %3686 = vmatprep.subr.bf16.mxu1 %v6063_v54 }
 0x19a   : > { %4166 = vmatprep.subr.bf16.mxu0 %v6066_v39 }
 0x19c   : > { %3687 = vmatpush1.bf16.msra.mxu1 %v6061_v31 }
 0x19d   : > { %4167 = vmatpush1.bf16.msra.mxu0 %v6064_v41  ;;  %3688 = vmatprep.subr.bf16.mxu1 %v6069_v44 }
 0x19e   : > { %4168 = vmatprep.subr.bf16.mxu0 %v6072_v45 }
 0x1a0   : > { %3689 = vmatpush1.bf16.msra.mxu1 %v6067_v25 }
 0x1a1   : > { %4169 = vmatpush1.bf16.msra.mxu0 %v6070_v46  ;;  %3690 = vmatprep.subr.bf16.mxu1 %v6075_v35 }
 0x1a2   : > { %4170 = vmatprep.subr.bf16.mxu0 %v6078_v53 }
 0x1a4   : > { %3691 = vmatpush1.bf16.msra.mxu1 %v6073_v55 }
 0x1a5   : > { %4171 = vmatpush1.bf16.msra.mxu0 %v6076_v57  ;;  %3713 = vmatprep.subr.bf16.mxu1 %v6081_v60 }
 0x1a7   : > { %3693 = vmatmul.mubr.bf16.vlgmr.msra.gmra.mrb[32].mxu1 %v7176_v10  ;;  %v6090_v10 = vld [vmem:[%s7819_s1 + $0xbb4] ss:$8 sps:$4 sm:$0xff]  }
 0x1a8   : > { %4189 = vmatmul.mubr.bf16.vlgmr.msra.gmra.mrb[32].mxu0 %v7304_v19  ;;  %3714 = vmatpush1.bf16.msra.mxu1 %v6079_v34 }
 0x1a9   : > { %4198 = vmatprep.mubr.bf16.mxu0 %v6127_v2  ;;  %3715 = vmatprep.subr.bf16.mxu1 %v6084_v62 }
 0x1aa   : > { %3702 = vmatprep.mubr.bf16.mxu1 %v7201_v40  ;;  %v6093_v40 = vld [vmem:[%s7819_s1 + $0xbc4] ss:$8 sps:$4 sm:$0xff]  }
 0x1ac   : > { %3716 = vmatpush1.bf16.msra.mxu1 %v6082_v63 }
 0x1ad   : > { %3717 = vmatprep.subr.bf16.mxu1 %v6087_v0 }
 0x1af   : > { %3703 = vmatmul.mubr.bf16.gmra.mrb[36].mxu1 %v7212_v42  ;;  %v6096_v42 = vld [vmem:[%s7819_s1 + $0xbd4] ss:$8 sps:$4 sm:$0xff]  }
 0x1b0   : > { %4199 = vmatmul.mubr.bf16.gmra.mrb[36].mxu0 %v7335_v38  ;;  %3718 = vmatpush1.bf16.msra.mxu1 %v6085_v6 }
 0x1b1   : > { %3745 = vmatprep.mubr.bf16.mxu1 %v6127_v2  ;;  %3719 = vmatprep.subr.bf16.mxu1 %v6090_v10 }
 0x1b4   : > { %3720 = vmatpush1.bf16.msra.mxu1 %v6088_v1 }
 0x1b5   : > { %3721 = vmatprep.subr.bf16.mxu1 %v6093_v40 }
 0x1b8   : > { %3722 = vmatpush1.bf16.msra.mxu1 %v6091_v9 }
 0x1b9   : > { %3723 = vmatprep.subr.bf16.mxu1 %v6096_v42 }
 0x1bb   : > { %v2397_v5 = vpop.f32.mrb[16].mxu0 }
 0x1bc   : > { %v2399_v8 = vpop.f32.mrb[17].mxu0  ;;  %3724 = vmatpush1.bf16.msra.mxu1 %v6094_v12 }
 0x1bd   : > { %v2428_v20 = vcombine.low %v2397_v5, %v2399_v8  ;;  %v2429_v11 = vcombine.high %v2397_v5, %v2399_v8  ;;  %v2401_v16 = vpop.f32.mrb[18].mxu0  ;;  %3725 = vmatprep.subr.bf16.mxu1 %v6099_v13 }
 0x1be   : > { %v2403_v7 = vpop.f32.mrb[19].mxu0 }
 0x1bf   : > { %v4913_v17 = vrot.slane %v2428_v20, 9  ;;  %v2438_v18 = vrot.slane %v2429_v11, 5  ;;  %v2430_v24 = vcombine.low %v2401_v16, %v2403_v7  ;;  %v2431_v26 = vcombine.high %v2401_v16, %v2403_v7 }
 0x1c0   : > { %3726 = vmatpush1.bf16.msra.mxu1 %v6097_v21 }
 0x1c1   : > { %v4914_v27 = vrot.slane %v2430_v24, 9  ;;  %v2442_v33 = vrot.slane %v2431_v26, 5  ;;  %v2439_v15 = vsel %vm7532_vm5, %v4913_v17, %v2438_v18  ;;  %3727 = vmatprep.subr.bf16.mxu1 %v6102_v22 }
 0x1c3   : > { %v2407_v29 = vpop.f32.mrb[20].mxu0  ;;  %v2443_v36 = vsel %vm7532_vm5, %v4914_v27, %v2442_v33 }
 0x1c4   : > { %v2409_v32 = vpop.f32.mrb[21].mxu0  ;;  %3728 = vmatpush1.bf16.msra.mxu1 %v6100_v14 }
 0x1c5   : > { %v2432_v37 = vcombine.low %v2407_v29, %v2409_v32  ;;  %v2433_v47 = vcombine.high %v2407_v29, %v2409_v32  ;;  %v2411_v52 = vpop.f32.mrb[22].mxu0 }
 0x1c6   : > { %v2413_v58 = vpop.f32.mrb[23].mxu0 }
 0x1c7   : > { %v4915_v56 = vrot.slane %v2432_v37, 9  ;;  %v2446_v61 = vrot.slane %v2433_v47, 5  ;;  %v2434_v43 = vcombine.low %v2411_v52, %v2413_v58  ;;  %v2435_v30 = vcombine.high %v2411_v52, %v2413_v58  ;;  %3746 = vmatmul.mubr.bf16.vlgmr.msra.gmra.mrb[32].mxu1 %v7304_v19 }
 0x1c8   : > { %3755 = vmatprep.mubr.bf16.mxu1 %v6127_v2 }
 0x1c9   : > { %v4916_v48 = vrot.slane %v2434_v43, 9  ;;  %v2450_v49 = vrot.slane %v2435_v30, 5  ;;  %v2447_v50 = vsel %vm7532_vm5, %v4915_v56, %v2446_v61 }
 0x1cb   : > { %v2451_v54 = vsel %vm7532_vm5, %v4916_v48, %v2450_v49 }
 0x1cf   : > { %3756 = vmatmul.mubr.bf16.gmra.mrb[36].mxu1 %v7335_v38 }
 0x1da   : > { %v1974_v39 = vpop.f32.mrb[16].mxu1 }
 0x1db   : > { %v1976_v31 = vpop.f32.mrb[17].mxu1 }
 0x1dc   : > { %v2005_v41 = vcombine.low %v1974_v39, %v1976_v31  ;;  %v1978_v44 = vpop.f32.mrb[18].mxu1 }
 0x1dd   : > { %v1980_v45 = vpop.f32.mrb[19].mxu1 }
 0x1de   : > { %v2013_v25 = vadd.f32 %v2005_v41, %v7566_v3  ;;  %v2006_v19 = vcombine.low %v1978_v44, %v1980_v45 }
 0x1e0   : > { %v2456_v46 = vadd.f32 %v2439_v15, %v2013_v25  ;;  %v2014_v2 = vadd.f32 %v2006_v19, %v7588_v23 }
 0x1e2   : > { %v2457_v35 = vadd.f32 %v2443_v36, %v2014_v2  ;;  %v1984_v53 = vpop.f32.mrb[20].mxu1 }
 0x1e3   : > { %v1986_v55 = vpop.f32.mrb[21].mxu1 }
 0x1e4   : > { %v2007_v57 = vcombine.low %v1984_v53, %v1986_v55  ;;  %v1988_v60 = vpop.f32.mrb[22].mxu1 }
 0x1e5   : > { %v1990_v34 = vpop.f32.mrb[23].mxu1 }
 0x1e6   : > { %v2015_v62 = vadd.f32 %v2007_v57, %v7616_v51  ;;  %v2008_v38 = vcombine.low %v1988_v60, %v1990_v34 }
 0x1e8   : > { %v2458_v63 = vadd.f32 %v2447_v50, %v2015_v62  ;;  %v2016_v0 = vadd.f32 %v2008_v38, %v7638_v59 }
 0x1ea   : > { %v2459_v6 = vadd.f32 %v2451_v54, %v2016_v0 }
 0x21b   : > { %v3324_v10 = vpop.f32.mrb[24].mxu0 }
 0x21c   : > { %v3326_v1 = vpop.f32.mrb[25].mxu0 }
 0x21d   : > { %v3355_v3 = vcombine.low %v3324_v10, %v3326_v1  ;;  %v3328_v40 = vpop.f32.mrb[26].mxu0 }
 0x21e   : > { %v3330_v9 = vpop.f32.mrb[27].mxu0 }
 0x21f   : > { %v3356_v42 = vcombine.low %v3328_v40, %v3330_v9 }
 0x223   : > { %v3334_v23 = vpop.f32.mrb[28].mxu0 }
 0x224   : > { %v3336_v12 = vpop.f32.mrb[29].mxu0 }
 0x225   : > { %v3357_v13 = vcombine.low %v3334_v23, %v3336_v12  ;;  %v3338_v5 = vpop.f32.mrb[30].mxu0 }
 0x226   : > { %v3340_v8 = vpop.f32.mrb[31].mxu0 }
 0x227   : > { %v3358_v20 = vcombine.low %v3338_v5, %v3340_v8 }
 0x23a   : > { %v2840_v11 = vpop.f32.mrb[24].mxu1 }
 0x23b   : > { %v2842_v16 = vpop.f32.mrb[25].mxu1 }
 0x23c   : > { %v2871_v51 = vcombine.low %v2840_v11, %v2842_v16  ;;  %v2872_v21 = vcombine.high %v2840_v11, %v2842_v16  ;;  %v2844_v7 = vpop.f32.mrb[26].mxu1 }
 0x23d   : > { %v2846_v22 = vpop.f32.mrb[27].mxu1 }
 0x23e   : > { %v5013_v59 = vrot.slane %v2871_v51, 10  ;;  %v2881_v17 = vrot.slane %v2872_v21, 6  ;;  %v2873_v18 = vcombine.low %v2844_v7, %v2846_v22  ;;  %v2874_v24 = vcombine.high %v2844_v7, %v2846_v22 }
 0x23f   : > { %v4263_v51 = vlaneseq }
 0x240   : > { %v2882_v26 = vsel %vm7402_vm2, %v5013_v59, %v2881_v17  ;;  %v5014_v27 = vrot.slane %v2873_v18, 10  ;;  %v2885_v33 = vrot.slane %v2874_v24, 6  ;;  %v4261_v17 = vld [vmem:[%s7820_s2] sm:$0x3] }
 0x241   : > { %v2899_v14 = vadd.f32 %v2882_v26, %v2456_v46  ;;  %v4264_v21 = vshrl.u32 %v4263_v51, 7 }
 0x242   : > { %v2886_v15 = vsel %vm7402_vm2, %v5014_v27, %v2885_v33  ;;  %v2850_v29 = vpop.f32.mrb[28].mxu1 }
 0x243   : > { %v2900_v36 = vadd.f32 %v2886_v15, %v2457_v35  ;;  %v2852_v32 = vpop.f32.mrb[29].mxu1  ;;  %v7770_v37 = vadd.f32 %v3355_v3, %v2899_v14  ;;  %v4265_v7 = vsub.s32 0, %v4264_v21  ;;  %v4269_v22 = vsub.s32 1, %v4264_v21 }
 0x244   : > { %v2875_v47 = vcombine.low %v2850_v29, %v2852_v32  ;;  %v2876_v52 = vcombine.high %v2850_v29, %v2852_v32  ;;  %v2854_v58 = vpop.f32.mrb[30].mxu1 }
 0x245   : > { %v2856_v56 = vpop.f32.mrb[31].mxu1  ;;  %v7772_v61 = vadd.f32 %v3356_v42, %v2900_v36  ;;  %v4266_v33 = vrot.slane %v4261_v17, %v4265_v7  ;;  %v4270_v14 = vrot.slane %v4261_v17, %v4269_v22 }
 0x246   : > { %v5015_v43 = vrot.slane %v2875_v47, 10  ;;  %v2889_v30 = vrot.slane %v2876_v52, 6  ;;  %v2877_v48 = vcombine.low %v2854_v58, %v2856_v56  ;;  %v2878_v49 = vcombine.high %v2854_v58, %v2856_v56 }
 0x248   : > { %v2890_v50 = vsel %vm7402_vm2, %v5015_v43, %v2889_v30  ;;  %v5016_v54 = vrot.slane %v2877_v48, 10  ;;  %v2893_v39 = vrot.slane %v2878_v49, 6  ;;  %v4271_v43 = vcombine.low %v4266_v33, %v4270_v14 }
 0x249   : > { %v2901_v31 = vadd.f32 %v2890_v50, %v2458_v63 }
 0x24a   : > { %v2894_v41 = vsel %vm7402_vm2, %v5016_v54, %v2893_v39 }
 0x24b   : > { %v2902_v44 = vadd.f32 %v2894_v41, %v2459_v6  ;;  %v7778_v45 = vadd.f32 %v3357_v13, %v2901_v31 }
 0x24d   : > { %v7780_v25 = vadd.f32 %v3358_v20, %v2902_v44 }
 0x27b   : > { %v4190_v19 = vpop.f32.mrb[32].mxu0 }
 0x27c   : > { %v4192_v46 = vpop.f32.mrb[33].mxu0 }
 0x27d   : > { %v4221_v2 = vcombine.low %v4190_v19, %v4192_v46  ;;  %v4222_v35 = vcombine.high %v4190_v19, %v4192_v46  ;;  %v4194_v53 = vpop.f32.mrb[34].mxu0 }
 0x27e   : > { %v4196_v55 = vpop.f32.mrb[35].mxu0 }
 0x27f   : > { %v5323_v57 = vrot.slane %v4221_v2, 10  ;;  %v4231_v60 = vrot.slane %v4222_v35, 6  ;;  %v4223_v34 = vcombine.low %v4194_v53, %v4196_v55  ;;  %v4224_v62 = vcombine.high %v4194_v53, %v4196_v55 }
 0x281   : > { %v4232_v38 = vsel %vm7402_vm2, %v5323_v57, %v4231_v60  ;;  %v5324_v63 = vrot.slane %v4223_v34, 10  ;;  %v4235_v0 = vrot.slane %v4224_v62, 6 }
 0x283   : > { %v4236_v6 = vsel %vm7402_vm2, %v5324_v63, %v4235_v0  ;;  %v4200_v10 = vpop.f32.mrb[36].mxu0 }
 0x284   : > { %v4202_v1 = vpop.f32.mrb[37].mxu0 }
 0x285   : > { %v4225_v3 = vcombine.low %v4200_v10, %v4202_v1  ;;  %v4226_v40 = vcombine.high %v4200_v10, %v4202_v1  ;;  %v4204_v9 = vpop.f32.mrb[38].mxu0 }
 0x286   : > { %v4206_v42 = vpop.f32.mrb[39].mxu0 }
 0x287   : > { %v5325_v23 = vrot.slane %v4225_v3, 10  ;;  %v4239_v12 = vrot.slane %v4226_v40, 6  ;;  %v4227_v13 = vcombine.low %v4204_v9, %v4206_v42  ;;  %v4228_v5 = vcombine.high %v4204_v9, %v4206_v42 }
 0x289   : > { %v4240_v8 = vsel %vm7402_vm2, %v5325_v23, %v4239_v12  ;;  %v5326_v20 = vrot.slane %v4227_v13, 10  ;;  %v4243_v11 = vrot.slane %v4228_v5, 6 }
 0x28b   : > { %v4244_v16 = vsel %vm7402_vm2, %v5326_v20, %v4243_v11 }
 0x29a   : > { %v3747_v59 = vpop.f32.mrb[32].mxu1 }
 0x29b   : > { %v3749_v18 = vpop.f32.mrb[33].mxu1 }
 0x29c   : > { %v3778_v24 = vcombine.low %v3747_v59, %v3749_v18  ;;  %v3779_v26 = vcombine.high %v3747_v59, %v3749_v18  ;;  %v3751_v27 = vpop.f32.mrb[34].mxu1 }
 0x29d   : > { %v3753_v15 = vpop.f32.mrb[35].mxu1 }
 0x29e   : > { %v5223_v29 = vrot.slane %v3778_v24, 9  ;;  %v3788_v36 = vrot.slane %v3779_v26, 5  ;;  %v3780_v4 = vcombine.low %v3751_v27, %v3753_v15  ;;  %v3781_v32 = vcombine.high %v3751_v27, %v3753_v15 }
 0x2a0   : > { %v3789_v47 = vsel %vm7532_vm5, %v5223_v29, %v3788_v36  ;;  %v5224_v52 = vrot.slane %v3780_v4, 9  ;;  %v3792_v58 = vrot.slane %v3781_v32, 5 }
 0x2a1   : > { %v3806_v56 = vadd.f32 %v3789_v47, %v7770_v37 }
 0x2a2   : > { %v3793_v30 = vsel %vm7532_vm5, %v5224_v52, %v3792_v58  ;;  %v3757_v48 = vpop.f32.mrb[36].mxu1 }
 0x2a3   : > { %v4249_v49 = vadd.f32 %v4232_v38, %v3806_v56  ;;  %v3807_v50 = vadd.f32 %v3793_v30, %v7772_v61  ;;  %v3759_v54 = vpop.f32.mrb[37].mxu1 }
 0x2a4   : > { %v3782_v39 = vcombine.low %v3757_v48, %v3759_v54  ;;  %v3783_v31 = vcombine.high %v3757_v48, %v3759_v54  ;;  %v3761_v41 = vpop.f32.mrb[38].mxu1 }
 0x2a5   : > { %v4273_v44 = vadd.f32 %v4271_v43, %v4249_v49  ;;  %v4250_v19 = vadd.f32 %v4236_v6, %v3807_v50  ;;  %v3763_v46 = vpop.f32.mrb[39].mxu1 }
 0x2a6   : > { %v5225_v2 = vrot.slane %v3782_v39, 9  ;;  %v3796_v35 = vrot.slane %v3783_v31, 5  ;;  %v3784_v53 = vcombine.low %v3761_v41, %v3763_v46  ;;  %v3785_v37 = vcombine.high %v3761_v41, %v3763_v46 }
 0x2a7   : > { %v4277_v55 = vmax.f32 %v4273_v44, 0.0  ;;  %v4274_v57 = vadd.f32 %v4271_v43, %v4250_v19 }
 0x2a8   : > { %v3797_v60 = vsel %vm7532_vm5, %v5225_v2, %v3796_v35  ;;  %v5226_v34 = vrot.slane %v3784_v53, 9  ;;  %v3800_v62 = vrot.slane %v3785_v37, 5 }
 0x2a9   : > { %v4285_v61 = vcombine.high %v4277_v55, %v4277_v55  ;;  %v4278_v38 = vmax.f32 %v4274_v57, 0.0  ;;  %v3808_v63 = vadd.f32 %v3797_v60, %v7778_v45 }
 0x2aa   : > { %v3801_v0 = vsel %vm7532_vm5, %v5226_v34, %v3800_v62 }
 0x2ab   : > { %v5327_v6 = vpack.c.bf16 %v4285_v61, %v4277_v55  ;;  %v4286_v10 = vcombine.high %v4278_v38, %v4278_v38  ;;  %v4251_v1 = vadd.f32 %v4240_v8, %v3808_v63  ;;  %v3809_v3 = vadd.f32 %v3801_v0, %v7780_v25 }
 0x2ad   : > { %5331 = vst.sshfl [vmem:[%s208_s19] sm:$0x33 pattern:$0x76325410] %v5327_v6  ;;  %v5328_v40 = vpack.c.bf16 %v4286_v10, %v4278_v38  ;;  %v4275_v9 = vadd.f32 %v4271_v43, %v4251_v1  ;;  %v4252_v42 = vadd.f32 %v4244_v16, %v3809_v3 }
 0x2af   : > { %5332 = vst.sshfl [vmem:[%s208_s19 + $0x4] sm:$0x33 pattern:$0x76325410] %v5328_v40  ;;  %v4279_v23 = vmax.f32 %v4275_v9, 0.0  ;;  %v4276_v12 = vadd.f32 %v4271_v43, %v4252_v42 }
 0x2b1   : > { %v4287_v45 = vcombine.high %v4279_v23, %v4279_v23  ;;  %v4280_v13 = vmax.f32 %v4276_v12, 0.0 }
 0x2b3   : > { %v5329_v5 = vpack.c.bf16 %v4287_v45, %v4279_v23  ;;  %v4288_v20 = vcombine.high %v4280_v13, %v4280_v13 }
 0x2b5   : > { %5333 = vst.sshfl [vmem:[%s208_s19 + $0x8] sm:$0x33 pattern:$0x76325410] %v5329_v5  ;;  %v5330_v11 = vpack.c.bf16 %v4288_v20, %v4280_v13 }
 0x2b7   : > { %5334 = vst.sshfl [vmem:[%s208_s19 + $0xc] sm:$0x33 pattern:$0x76325410] %v5330_v11 }
 0x2b8 PF: > { %s13_s14 = sadd.s32 1, %s6125_s14   ;;  %s7826_s12 = smov %s6121_s13 }
 0x2b9   : > { %p10_p5 = scmp.ge.s32.totalorder %s13_s14, 4   ;;  %s7827_s13 = smov %s7829_s15 }
 0x2bb   :  { %12 = sbr.rel (!%p10_p5) target bundleno = 2 (0x2), region = 72 }

</bundles_post_ra>
